<compile_context>
chip_gen: v7x
topology: tpu7x:2x2x1
jax: 0.10.0
libtpu: 0.0.40
codegen_flags: <defaults>
</compile_context>

<pallas_src>
import math

import jax
import jax.numpy as jnp
from jax.experimental import pallas as pl
from jax.experimental.pallas import tpu as pltpu

# ----------------------------- model config (small, synthetic) -----------------------------
D_MODEL   = 32
N_HEADS   = 4
D_K       = D_MODEL // N_HEADS
D_FF      = 64
N_LAYERS  = 2
SRC_VOCAB = 16
TGT_VOCAB = 16
EPS       = 1e-6        # LayerNorm eps (added to std, as in the Annotated Transformer)


# ------------------------------- in-kernel building blocks ---------------------------------

def _ln(x, a, b):
    """LayerNorm matching the Annotated Transformer: a*(x-mean)/(std+eps)+b (unbiased std)."""
    d = x.shape[-1]
    a = a.reshape((1,) * (x.ndim - 1) + (d,))
    b = b.reshape((1,) * (x.ndim - 1) + (d,))
    mean = jnp.mean(x, axis=-1, keepdims=True)
    var = jnp.sum((x - mean) ** 2, axis=-1, keepdims=True) / (d - 1)
    std = jnp.sqrt(var)
    return a * (x - mean) / (std + EPS) + b


def _linear(x3, w, b):
    """x3: (B, T, K) f32, w: (K, N) bf16, b: (1, N) f32 -> (B, T, N) f32 (f32 accumulation)."""
    B, T, K = x3.shape
    N = w.shape[-1]
    y = jnp.dot(x3.reshape(B * T, K).astype(jnp.bfloat16), w,
                preferred_element_type=jnp.float32) + b
    return y.reshape(B, T, N)


def _attn(q, k, v, mask):
    """q: (B, Tq, D), k/v: (B, Tk, D) f32; mask: (B, 1, Tk) or (B, Tq, Tk), 1.0 = keep."""
    B, Tq, _ = q.shape
    Tk = k.shape[1]
    keep = jnp.broadcast_to(mask, (B, Tq, Tk)) > 0.0      # hoisted out of the head loop
    scale = 1.0 / math.sqrt(D_K)
    heads = []
    for h in range(N_HEADS):
        sl = slice(h * D_K, (h + 1) * D_K)
        qh = q[..., sl].astype(jnp.bfloat16)
        kh = k[..., sl].astype(jnp.bfloat16)
        vh = v[..., sl].astype(jnp.bfloat16)
        s = jnp.einsum("bqd,bkd->bqk", qh, kh,
                       preferred_element_type=jnp.float32) * scale      # f32 scores
        s = jnp.where(keep, s, -1e9)
        p = jnp.exp(s - jnp.max(s, axis=-1, keepdims=True))
        p = p * pl.reciprocal(jnp.sum(p, axis=-1, keepdims=True), approx=True)
        heads.append(jnp.einsum("bqk,bkd->bqd", p.astype(jnp.bfloat16), vh,
                                preferred_element_type=jnp.float32))
    return jnp.concatenate(heads, axis=-1)                # (B, Tq, D) f32, lane-dense D


# ------------------------------ the fully fused forward kernel -----------------------------

def _encdec_kernel(
        # activations / masks
        src_ref, tgt_ref, srcm_ref, tgtm_ref,
        # encoder params (stacked over layers)
        e_ln1a, e_ln1b, e_wqkv, e_bqkv, e_wo, e_bo,
        e_ln2a, e_ln2b, e_w1, e_b1, e_w2, e_b2, e_na, e_nb,
        # decoder params (stacked over layers)
        d_ln1a, d_ln1b, d_sa_wqkv, d_sa_bqkv, d_sa_wo, d_sa_bo,
        d_ln2a, d_ln2b, d_ca_wq, d_ca_bq, d_ca_wkv, d_ca_bkv, d_ca_wo, d_ca_bo,
        d_ln3a, d_ln3b, d_w1, d_b1, d_w2, d_b2, d_na, d_nb,
        # output
        out_ref):
    D = D_MODEL
    src_mask = srcm_ref[...]          # (B, 1, Ts)
    tgt_mask = tgtm_ref[...]          # (B, Tt, Tt)

    # --------------------------------- encoder ---------------------------------
    x = src_ref[...]                  # (B, Ts, D) f32
    for l in range(N_LAYERS):         # static unroll, all weights already in VMEM
        y = _ln(x, e_ln1a[l], e_ln1b[l])
        qkv = _linear(y, e_wqkv[l], e_bqkv[l])                              # fused Q|K|V
        a = _attn(qkv[..., :D], qkv[..., D:2 * D], qkv[..., 2 * D:], src_mask)
        x = x + _linear(a, e_wo[l], e_bo[l])
        y = _ln(x, e_ln2a[l], e_ln2b[l])
        h = jnp.maximum(_linear(y, e_w1[l], e_b1[l]), 0.0)
        x = x + _linear(h, e_w2[l], e_b2[l])
    memory = _ln(x, e_na[...], e_nb[...])                                   # (B, Ts, D)

    # --------------------------------- decoder ---------------------------------
    x = tgt_ref[...]                  # (B, Tt, D) f32
    for l in range(N_LAYERS):
        y = _ln(x, d_ln1a[l], d_ln1b[l])
        qkv = _linear(y, d_sa_wqkv[l], d_sa_bqkv[l])                        # fused Q|K|V
        a = _attn(qkv[..., :D], qkv[..., D:2 * D], qkv[..., 2 * D:], tgt_mask)
        x = x + _linear(a, d_sa_wo[l], d_sa_bo[l])

        y = _ln(x, d_ln2a[l], d_ln2b[l])
        q = _linear(y, d_ca_wq[l], d_ca_bq[l])
        kv = _linear(memory, d_ca_wkv[l], d_ca_bkv[l])                      # fused K|V
        a = _attn(q, kv[..., :D], kv[..., D:], src_mask)
        x = x + _linear(a, d_ca_wo[l], d_ca_bo[l])

        y = _ln(x, d_ln3a[l], d_ln3b[l])
        h = jnp.maximum(_linear(y, d_w1[l], d_b1[l]), 0.0)
        x = x + _linear(h, d_w2[l], d_b2[l])

    out_ref[...] = _ln(x, d_na[...], d_nb[...])


# ----------------------------------- model glue (JAX) --------------------------------------

def positional_encoding(seq_len, d_model):
    pos = jnp.arange(seq_len, dtype=jnp.float32)[:, None]
    div = jnp.exp(jnp.arange(0, d_model, 2, dtype=jnp.float32) * (-math.log(10000.0) / d_model))
    pe = jnp.zeros((seq_len, d_model), dtype=jnp.float32)
    pe = pe.at[:, 0::2].set(jnp.sin(pos * div))
    pe = pe.at[:, 1::2].set(jnp.cos(pos * div))
    return pe


@jax.jit
def encoder_decoder_forward(params, src, tgt, src_mask, tgt_mask):
    """Matches EncoderDecoder.forward: decode(encode(src, src_mask), src_mask, tgt, tgt_mask).
    The generator (final linear+softmax) is NOT applied, matching the PyTorch forward."""
    B, Ts = src.shape
    _, Tt = tgt.shape

    # Embedding * sqrt(d_model) + positional encoding (dropout = identity in eval): JAX glue.
    src_x = params["src_lut"][src] * math.sqrt(D_MODEL) + positional_encoding(Ts, D_MODEL)[None]
    tgt_x = params["tgt_lut"][tgt] * math.sqrt(D_MODEL) + positional_encoding(Tt, D_MODEL)[None]

    e, d = params["enc"], params["dec"]
    bf = lambda w: w.astype(jnp.bfloat16)     # MXU operands in bf16; accumulation stays f32

    args = (
        src_x.astype(jnp.float32), tgt_x.astype(jnp.float32),
        src_mask.astype(jnp.float32), tgt_mask.astype(jnp.float32),
        # encoder
        e["ln1_a"], e["ln1_b"], bf(e["wqkv"]), e["bqkv"], bf(e["wo"]), e["bo"],
        e["ln2_a"], e["ln2_b"], bf(e["w1"]), e["b1"], bf(e["w2"]), e["b2"],
        e["norm_a"], e["norm_b"],
        # decoder
        d["ln1_a"], d["ln1_b"], bf(d["sa_wqkv"]), d["sa_bqkv"], bf(d["sa_wo"]), d["sa_bo"],
        d["ln2_a"], d["ln2_b"], bf(d["ca_wq"]), d["ca_bq"], bf(d["ca_wkv"]), d["ca_bkv"],
        bf(d["ca_wo"]), d["ca_bo"],
        d["ln3_a"], d["ln3_b"], bf(d["w1"]), d["b1"], bf(d["w2"]), d["b2"],
        d["norm_a"], d["norm_b"],
    )
    return pl.pallas_call(
        _encdec_kernel,
        out_shape=jax.ShapeDtypeStruct((B, Tt, D_MODEL), jnp.float32),
        compiler_params=pltpu.CompilerParams(vmem_limit_bytes=32 * 1024 * 1024),
    )(*args)


# ----------------------------------- parameter init ----------------------------------------

def init_params(key):
    keys = iter(jax.random.split(key, 32))

    def rnd(shape, scale=0.05):
        return jax.random.normal(next(keys), shape, jnp.float32) * scale

    ones = lambda s: jnp.ones(s, jnp.float32)
    zeros = lambda s: jnp.zeros(s, jnp.float32)

    L, D, DF = N_LAYERS, D_MODEL, D_FF
    enc = {
        "ln1_a": ones((L, 1, D)), "ln1_b": zeros((L, 1, D)),
        "wqkv": rnd((L, D, 3 * D)), "bqkv": rnd((L, 1, 3 * D), 0.01),
        "wo": rnd((L, D, D)), "bo": rnd((L, 1, D), 0.01),
        "ln2_a": ones((L, 1, D)), "ln2_b": zeros((L, 1, D)),
        "w1": rnd((L, D, DF)), "b1": rnd((L, 1, DF), 0.01),
        "w2": rnd((L, DF, D)), "b2": rnd((L, 1, D), 0.01),
        "norm_a": ones((1, D)), "norm_b": zeros((1, D)),
    }
    dec = {
        "ln1_a": ones((L, 1, D)), "ln1_b": zeros((L, 1, D)),
        "sa_wqkv": rnd((L, D, 3 * D)), "sa_bqkv": rnd((L, 1, 3 * D), 0.01),
        "sa_wo": rnd((L, D, D)), "sa_bo": rnd((L, 1, D), 0.01),
        "ln2_a": ones((L, 1, D)), "ln2_b": zeros((L, 1, D)),
        "ca_wq": rnd((L, D, D)), "ca_bq": rnd((L, 1, D), 0.01),
        "ca_wkv": rnd((L, D, 2 * D)), "ca_bkv": rnd((L, 1, 2 * D), 0.01),
        "ca_wo": rnd((L, D, D)), "ca_bo": rnd((L, 1, D), 0.01),
        "ln3_a": ones((L, 1, D)), "ln3_b": zeros((L, 1, D)),
        "w1": rnd((L, D, DF)), "b1": rnd((L, 1, DF), 0.01),
        "w2": rnd((L, DF, D)), "b2": rnd((L, 1, D), 0.01),
        "norm_a": ones((1, D)), "norm_b": zeros((1, D)),
    }
    return {
        "src_lut": jax.random.normal(next(keys), (SRC_VOCAB, D), jnp.float32),
        "tgt_lut": jax.random.normal(next(keys), (TGT_VOCAB, D), jnp.float32),
        "enc": enc,
        "dec": dec,
        # Generator (final linear) params kept for parity with the PyTorch module, but NOT
        # applied in forward, exactly like EncoderDecoder.forward.
        "gen_w": rnd((D, TGT_VOCAB)), "gen_b": zeros((TGT_VOCAB,)),
    }


# --------------------------------------- main ----------------------------------------------

if __name__ == "__main__":
    key = jax.random.PRNGKey(0)
    kp, ks, kt = jax.random.split(key, 3)

    params = init_params(kp)

    B, S_SRC, S_TGT = 2, 8, 8
    src = jax.random.randint(ks, (B, S_SRC), 0, SRC_VOCAB, dtype=jnp.int32)
    tgt = jax.random.randint(kt, (B, S_TGT), 0, TGT_VOCAB, dtype=jnp.int32)

    # src_mask: (B, 1, S_src) all-ones pad mask; tgt_mask: (B, S_tgt, S_tgt) causal mask
    src_mask = jnp.ones((B, 1, S_SRC), jnp.float32)
    tgt_mask = jnp.tril(jnp.ones((S_TGT, S_TGT), jnp.float32))[None].repeat(B, axis=0)

    out = encoder_decoder_forward(params, src, tgt, src_mask, tgt_mask)
    out = jax.block_until_ready(out)
    assert out.shape == (B, S_TGT, D_MODEL)
    assert bool(jnp.all(jnp.isfinite(out)))
    print("KERNEL_OK")
</pallas_src>

<mosaic_0001>
module attributes {stable_mosaic.version = 11 : i64} {
  func.func @_encdec_kernel(%arg0: memref<2x8x32xf32, #tpu.memory_space<vmem>>, %arg1: memref<2x8x32xf32, #tpu.memory_space<vmem>>, %arg2: memref<2x1x8xf32, #tpu.memory_space<vmem>>, %arg3: memref<2x8x8xf32, #tpu.memory_space<vmem>>, %arg4: memref<2x1x32xf32, #tpu.memory_space<vmem>>, %arg5: memref<2x1x32xf32, #tpu.memory_space<vmem>>, %arg6: memref<2x32x96xbf16, #tpu.memory_space<vmem>>, %arg7: memref<2x1x96xf32, #tpu.memory_space<vmem>>, %arg8: memref<2x32x32xbf16, #tpu.memory_space<vmem>>, %arg9: memref<2x1x32xf32, #tpu.memory_space<vmem>>, %arg10: memref<2x1x32xf32, #tpu.memory_space<vmem>>, %arg11: memref<2x1x32xf32, #tpu.memory_space<vmem>>, %arg12: memref<2x32x64xbf16, #tpu.memory_space<vmem>>, %arg13: memref<2x1x64xf32, #tpu.memory_space<vmem>>, %arg14: memref<2x64x32xbf16, #tpu.memory_space<vmem>>, %arg15: memref<2x1x32xf32, #tpu.memory_space<vmem>>, %arg16: memref<1x32xf32, #tpu.memory_space<vmem>>, %arg17: memref<1x32xf32, #tpu.memory_space<vmem>>, %arg18: memref<2x1x32xf32, #tpu.memory_space<vmem>>, %arg19: memref<2x1x32xf32, #tpu.memory_space<vmem>>, %arg20: memref<2x32x96xbf16, #tpu.memory_space<vmem>>, %arg21: memref<2x1x96xf32, #tpu.memory_space<vmem>>, %arg22: memref<2x32x32xbf16, #tpu.memory_space<vmem>>, %arg23: memref<2x1x32xf32, #tpu.memory_space<vmem>>, %arg24: memref<2x1x32xf32, #tpu.memory_space<vmem>>, %arg25: memref<2x1x32xf32, #tpu.memory_space<vmem>>, %arg26: memref<2x32x32xbf16, #tpu.memory_space<vmem>>, %arg27: memref<2x1x32xf32, #tpu.memory_space<vmem>>, %arg28: memref<2x32x64xbf16, #tpu.memory_space<vmem>>, %arg29: memref<2x1x64xf32, #tpu.memory_space<vmem>>, %arg30: memref<2x32x32xbf16, #tpu.memory_space<vmem>>, %arg31: memref<2x1x32xf32, #tpu.memory_space<vmem>>, %arg32: memref<2x1x32xf32, #tpu.memory_space<vmem>>, %arg33: memref<2x1x32xf32, #tpu.memory_space<vmem>>, %arg34: memref<2x32x64xbf16, #tpu.memory_space<vmem>>, %arg35: memref<2x1x64xf32, #tpu.memory_space<vmem>>, %arg36: memref<2x64x32xbf16, #tpu.memory_space<vmem>>, %arg37: memref<2x1x32xf32, #tpu.memory_space<vmem>>, %arg38: memref<1x32xf32, #tpu.memory_space<vmem>>, %arg39: memref<1x32xf32, #tpu.memory_space<vmem>>, %arg40: memref<2x8x32xf32, #tpu.memory_space<vmem>>) attributes {dimension_semantics = [], scalar_prefetch = 0 : i64, scratch_operands = 0 : i64, tpu.core_type = #tpu.core_type<tc>} {
    %c0 = arith.constant 0 : index
    %c0_0 = arith.constant 0 : index
    %c0_1 = arith.constant 0 : index
    %0 = vector.load %arg2[%c0, %c0_0, %c0_1] : memref<2x1x8xf32, #tpu.memory_space<vmem>>, vector<2x1x8xf32>
    %c0_2 = arith.constant 0 : index
    %c0_3 = arith.constant 0 : index
    %c0_4 = arith.constant 0 : index
    %1 = vector.load %arg3[%c0_2, %c0_3, %c0_4] : memref<2x8x8xf32, #tpu.memory_space<vmem>>, vector<2x8x8xf32>
    %c0_5 = arith.constant 0 : index
    %c0_6 = arith.constant 0 : index
    %c0_7 = arith.constant 0 : index
    %2 = vector.load %arg0[%c0_5, %c0_6, %c0_7] : memref<2x8x32xf32, #tpu.memory_space<vmem>>, vector<2x8x32xf32>
    %c0_8 = arith.constant 0 : index
    %c0_9 = arith.constant 0 : index
    %c0_10 = arith.constant 0 : index
    %3 = vector.load %arg4[%c0_8, %c0_9, %c0_10] : memref<2x1x32xf32, #tpu.memory_space<vmem>>, vector<1x1x32xf32>
    %4 = vector.shape_cast %3 : vector<1x1x32xf32> to vector<1x32xf32>
    %c0_11 = arith.constant 0 : index
    %c0_12 = arith.constant 0 : index
    %c0_13 = arith.constant 0 : index
    %5 = vector.load %arg5[%c0_11, %c0_12, %c0_13] : memref<2x1x32xf32, #tpu.memory_space<vmem>>, vector<1x1x32xf32>
    %6 = vector.shape_cast %5 : vector<1x1x32xf32> to vector<1x32xf32>
    %7 = vector.shape_cast %4 : vector<1x32xf32> to vector<1x1x32xf32>
    %8 = vector.shape_cast %6 : vector<1x32xf32> to vector<1x1x32xf32>
    %cst = arith.constant dense<0.000000e+00> : vector<2x8xf32>
    %9 = vector.multi_reduction <add>, %2, %cst [2] : vector<2x8x32xf32> to vector<2x8xf32>
    %10 = vector.shape_cast %9 : vector<2x8xf32> to vector<2x8x1xf32>
    %cst_14 = arith.constant 3.200000e+01 : f32
    %11 = vector.broadcast %cst_14 : f32 to vector<2x8x1xf32>
    %12 = arith.divf %10, %11 : vector<2x8x1xf32>
    %13 = vector.broadcast %12 : vector<2x8x1xf32> to vector<2x8x32xf32>
    %14 = arith.subf %2, %13 : vector<2x8x32xf32>
    %15 = arith.mulf %14, %14 : vector<2x8x32xf32>
    %cst_15 = arith.constant dense<0.000000e+00> : vector<2x8xf32>
    %16 = vector.multi_reduction <add>, %15, %cst_15 [2] : vector<2x8x32xf32> to vector<2x8xf32>
    %17 = vector.shape_cast %16 : vector<2x8xf32> to vector<2x8x1xf32>
    %cst_16 = arith.constant 3.100000e+01 : f32
    %18 = vector.broadcast %cst_16 : f32 to vector<2x8x1xf32>
    %19 = arith.divf %17, %18 : vector<2x8x1xf32>
    %20 = math.sqrt %19 : vector<2x8x1xf32>
    %21 = vector.broadcast %12 : vector<2x8x1xf32> to vector<2x8x32xf32>
    %22 = arith.subf %2, %21 : vector<2x8x32xf32>
    %23 = vector.broadcast %7 : vector<1x1x32xf32> to vector<2x8x32xf32>
    %24 = arith.mulf %23, %22 : vector<2x8x32xf32>
    %cst_17 = arith.constant 9.99999997E-7 : f32
    %25 = vector.broadcast %cst_17 : f32 to vector<2x8x1xf32>
    %26 = arith.addf %20, %25 : vector<2x8x1xf32>
    %27 = vector.broadcast %26 : vector<2x8x1xf32> to vector<2x8x32xf32>
    %28 = arith.divf %24, %27 : vector<2x8x32xf32>
    %29 = vector.broadcast %8 : vector<1x1x32xf32> to vector<2x8x32xf32>
    %30 = arith.addf %28, %29 : vector<2x8x32xf32>
    %c0_18 = arith.constant 0 : index
    %c0_19 = arith.constant 0 : index
    %c0_20 = arith.constant 0 : index
    %31 = vector.load %arg6[%c0_18, %c0_19, %c0_20] : memref<2x32x96xbf16, #tpu.memory_space<vmem>>, vector<1x32x96xbf16>
    %32 = vector.shape_cast %31 : vector<1x32x96xbf16> to vector<32x96xbf16>
    %c0_21 = arith.constant 0 : index
    %c0_22 = arith.constant 0 : index
    %c0_23 = arith.constant 0 : index
    %33 = vector.load %arg7[%c0_21, %c0_22, %c0_23] : memref<2x1x96xf32, #tpu.memory_space<vmem>>, vector<1x1x96xf32>
    %34 = vector.shape_cast %33 : vector<1x1x96xf32> to vector<1x96xf32>
    %35 = vector.shape_cast %30 : vector<2x8x32xf32> to vector<16x32xf32>
    %36 = arith.truncf %35 : vector<16x32xf32> to vector<16x32xbf16>
    %cst_24 = arith.constant dense<0.000000e+00> : vector<16x96xf32>
    %37 = tpu.matmul %36, %32, %cst_24 {dimension_numbers = #tpu.dot_dimension_numbers<[1], [0], [0], [1], [0, 0, 1, 1], [], []>} : vector<16x32xbf16>, vector<32x96xbf16>, vector<16x96xf32> -> vector<16x96xf32>
    %38 = vector.broadcast %34 : vector<1x96xf32> to vector<16x96xf32>
    %39 = arith.addf %37, %38 : vector<16x96xf32>
    %40 = vector.shape_cast %39 : vector<16x96xf32> to vector<2x8x96xf32>
    %41 = vector.extract_strided_slice %40 {offsets = [0, 0, 0], sizes = [2, 8, 32], strides = [1, 1, 1]} : vector<2x8x96xf32> to vector<2x8x32xf32>
    %42 = vector.extract_strided_slice %40 {offsets = [0, 0, 32], sizes = [2, 8, 32], strides = [1, 1, 1]} : vector<2x8x96xf32> to vector<2x8x32xf32>
    %43 = vector.extract_strided_slice %40 {offsets = [0, 0, 64], sizes = [2, 8, 32], strides = [1, 1, 1]} : vector<2x8x96xf32> to vector<2x8x32xf32>
    %44 = vector.shape_cast %0 : vector<2x1x8xf32> to vector<2x1x8xf32>
    %45 = vector.broadcast %44 : vector<2x1x8xf32> to vector<2x8x8xf32>
    %cst_25 = arith.constant 0.000000e+00 : f32
    %46 = vector.broadcast %cst_25 : f32 to vector<2x8x8xf32>
    %47 = arith.cmpf ogt, %45, %46 : vector<2x8x8xf32>
    %48 = vector.extract_strided_slice %41 {offsets = [0, 0, 0], sizes = [2, 8, 8], strides = [1, 1, 1]} : vector<2x8x32xf32> to vector<2x8x8xf32>
    %49 = arith.truncf %48 : vector<2x8x8xf32> to vector<2x8x8xbf16>
    %50 = vector.extract_strided_slice %42 {offsets = [0, 0, 0], sizes = [2, 8, 8], strides = [1, 1, 1]} : vector<2x8x32xf32> to vector<2x8x8xf32>
    %51 = arith.truncf %50 : vector<2x8x8xf32> to vector<2x8x8xbf16>
    %52 = vector.extract_strided_slice %43 {offsets = [0, 0, 0], sizes = [2, 8, 8], strides = [1, 1, 1]} : vector<2x8x32xf32> to vector<2x8x8xf32>
    %53 = arith.truncf %52 : vector<2x8x8xf32> to vector<2x8x8xbf16>
    "tpu.trace_start"() <{level = 10 : i32, message = "bqd,bkd->bqk"}> : () -> ()
    %cst_26 = arith.constant dense<0.000000e+00> : vector<2x8x8xf32>
    %54 = tpu.matmul %49, %51, %cst_26 {dimension_numbers = #tpu.dot_dimension_numbers<[2], [2], [1], [1], [0, 0, 0, 1, 1, 1], [0], [0]>} : vector<2x8x8xbf16>, vector<2x8x8xbf16>, vector<2x8x8xf32> -> vector<2x8x8xf32>
    "tpu.trace_stop"() : () -> ()
    %cst_27 = arith.constant 0.353553385 : f32
    %55 = vector.broadcast %cst_27 : f32 to vector<2x8x8xf32>
    %56 = arith.mulf %54, %55 : vector<2x8x8xf32>
    %cst_28 = arith.constant -1.000000e+09 : f32
    %57 = vector.broadcast %cst_28 : f32 to vector<2x8x8xf32>
    %58 = arith.select %47, %56, %57 : vector<2x8x8xi1>, vector<2x8x8xf32>
    %cst_29 = arith.constant dense<0xFF800000> : vector<2x8xf32>
    %59 = vector.multi_reduction <maximumf>, %58, %cst_29 [2] : vector<2x8x8xf32> to vector<2x8xf32>
    %60 = vector.shape_cast %59 : vector<2x8xf32> to vector<2x8x1xf32>
    %61 = vector.broadcast %60 : vector<2x8x1xf32> to vector<2x8x8xf32>
    %62 = arith.subf %58, %61 : vector<2x8x8xf32>
    %63 = math.exp %62 : vector<2x8x8xf32>
    %cst_30 = arith.constant dense<0.000000e+00> : vector<2x8xf32>
    %64 = vector.multi_reduction <add>, %63, %cst_30 [2] : vector<2x8x8xf32> to vector<2x8xf32>
    %65 = vector.shape_cast %64 : vector<2x8xf32> to vector<2x8x1xf32>
    %66 = tpu.reciprocal %65 {approx = true} : vector<2x8x1xf32> -> vector<2x8x1xf32>
    %67 = vector.broadcast %66 : vector<2x8x1xf32> to vector<2x8x8xf32>
    %68 = arith.mulf %63, %67 : vector<2x8x8xf32>
    %69 = arith.truncf %68 : vector<2x8x8xf32> to vector<2x8x8xbf16>
    "tpu.trace_start"() <{level = 10 : i32, message = "bqk,bkd->bqd"}> : () -> ()
    %cst_31 = arith.constant dense<0.000000e+00> : vector<2x8x8xf32>
    %70 = tpu.matmul %69, %53, %cst_31 {dimension_numbers = #tpu.dot_dimension_numbers<[2], [1], [1], [2], [0, 0, 0, 1, 1, 2], [0], [0]>} : vector<2x8x8xbf16>, vector<2x8x8xbf16>, vector<2x8x8xf32> -> vector<2x8x8xf32>
    "tpu.trace_stop"() : () -> ()
    %71 = vector.extract_strided_slice %41 {offsets = [0, 0, 8], sizes = [2, 8, 8], strides = [1, 1, 1]} : vector<2x8x32xf32> to vector<2x8x8xf32>
    %72 = arith.truncf %71 : vector<2x8x8xf32> to vector<2x8x8xbf16>
    %73 = vector.extract_strided_slice %42 {offsets = [0, 0, 8], sizes = [2, 8, 8], strides = [1, 1, 1]} : vector<2x8x32xf32> to vector<2x8x8xf32>
    %74 = arith.truncf %73 : vector<2x8x8xf32> to vector<2x8x8xbf16>
    %75 = vector.extract_strided_slice %43 {offsets = [0, 0, 8], sizes = [2, 8, 8], strides = [1, 1, 1]} : vector<2x8x32xf32> to vector<2x8x8xf32>
    %76 = arith.truncf %75 : vector<2x8x8xf32> to vector<2x8x8xbf16>
    "tpu.trace_start"() <{level = 10 : i32, message = "bqd,bkd->bqk"}> : () -> ()
    %cst_32 = arith.constant dense<0.000000e+00> : vector<2x8x8xf32>
    %77 = tpu.matmul %72, %74, %cst_32 {dimension_numbers = #tpu.dot_dimension_numbers<[2], [2], [1], [1], [0, 0, 0, 1, 1, 1], [0], [0]>} : vector<2x8x8xbf16>, vector<2x8x8xbf16>, vector<2x8x8xf32> -> vector<2x8x8xf32>
    "tpu.trace_stop"() : () -> ()
    %cst_33 = arith.constant 0.353553385 : f32
    %78 = vector.broadcast %cst_33 : f32 to vector<2x8x8xf32>
    %79 = arith.mulf %77, %78 : vector<2x8x8xf32>
    %cst_34 = arith.constant -1.000000e+09 : f32
    %80 = vector.broadcast %cst_34 : f32 to vector<2x8x8xf32>
    %81 = arith.select %47, %79, %80 : vector<2x8x8xi1>, vector<2x8x8xf32>
    %cst_35 = arith.constant dense<0xFF800000> : vector<2x8xf32>
    %82 = vector.multi_reduction <maximumf>, %81, %cst_35 [2] : vector<2x8x8xf32> to vector<2x8xf32>
    %83 = vector.shape_cast %82 : vector<2x8xf32> to vector<2x8x1xf32>
    %84 = vector.broadcast %83 : vector<2x8x1xf32> to vector<2x8x8xf32>
    %85 = arith.subf %81, %84 : vector<2x8x8xf32>
    %86 = math.exp %85 : vector<2x8x8xf32>
    %cst_36 = arith.constant dense<0.000000e+00> : vector<2x8xf32>
    %87 = vector.multi_reduction <add>, %86, %cst_36 [2] : vector<2x8x8xf32> to vector<2x8xf32>
    %88 = vector.shape_cast %87 : vector<2x8xf32> to vector<2x8x1xf32>
    %89 = tpu.reciprocal %88 {approx = true} : vector<2x8x1xf32> -> vector<2x8x1xf32>
    %90 = vector.broadcast %89 : vector<2x8x1xf32> to vector<2x8x8xf32>
    %91 = arith.mulf %86, %90 : vector<2x8x8xf32>
    %92 = arith.truncf %91 : vector<2x8x8xf32> to vector<2x8x8xbf16>
    "tpu.trace_start"() <{level = 10 : i32, message = "bqk,bkd->bqd"}> : () -> ()
    %cst_37 = arith.constant dense<0.000000e+00> : vector<2x8x8xf32>
    %93 = tpu.matmul %92, %76, %cst_37 {dimension_numbers = #tpu.dot_dimension_numbers<[2], [1], [1], [2], [0, 0, 0, 1, 1, 2], [0], [0]>} : vector<2x8x8xbf16>, vector<2x8x8xbf16>, vector<2x8x8xf32> -> vector<2x8x8xf32>
    "tpu.trace_stop"() : () -> ()
    %94 = vector.extract_strided_slice %41 {offsets = [0, 0, 16], sizes = [2, 8, 8], strides = [1, 1, 1]} : vector<2x8x32xf32> to vector<2x8x8xf32>
    %95 = arith.truncf %94 : vector<2x8x8xf32> to vector<2x8x8xbf16>
    %96 = vector.extract_strided_slice %42 {offsets = [0, 0, 16], sizes = [2, 8, 8], strides = [1, 1, 1]} : vector<2x8x32xf32> to vector<2x8x8xf32>
    %97 = arith.truncf %96 : vector<2x8x8xf32> to vector<2x8x8xbf16>
    %98 = vector.extract_strided_slice %43 {offsets = [0, 0, 16], sizes = [2, 8, 8], strides = [1, 1, 1]} : vector<2x8x32xf32> to vector<2x8x8xf32>
    %99 = arith.truncf %98 : vector<2x8x8xf32> to vector<2x8x8xbf16>
    "tpu.trace_start"() <{level = 10 : i32, message = "bqd,bkd->bqk"}> : () -> ()
    %cst_38 = arith.constant dense<0.000000e+00> : vector<2x8x8xf32>
    %100 = tpu.matmul %95, %97, %cst_38 {dimension_numbers = #tpu.dot_dimension_numbers<[2], [2], [1], [1], [0, 0, 0, 1, 1, 1], [0], [0]>} : vector<2x8x8xbf16>, vector<2x8x8xbf16>, vector<2x8x8xf32> -> vector<2x8x8xf32>
    "tpu.trace_stop"() : () -> ()
    %cst_39 = arith.constant 0.353553385 : f32
    %101 = vector.broadcast %cst_39 : f32 to vector<2x8x8xf32>
    %102 = arith.mulf %100, %101 : vector<2x8x8xf32>
    %cst_40 = arith.constant -1.000000e+09 : f32
    %103 = vector.broadcast %cst_40 : f32 to vector<2x8x8xf32>
    %104 = arith.select %47, %102, %103 : vector<2x8x8xi1>, vector<2x8x8xf32>
    %cst_41 = arith.constant dense<0xFF800000> : vector<2x8xf32>
    %105 = vector.multi_reduction <maximumf>, %104, %cst_41 [2] : vector<2x8x8xf32> to vector<2x8xf32>
    %106 = vector.shape_cast %105 : vector<2x8xf32> to vector<2x8x1xf32>
    %107 = vector.broadcast %106 : vector<2x8x1xf32> to vector<2x8x8xf32>
    %108 = arith.subf %104, %107 : vector<2x8x8xf32>
    %109 = math.exp %108 : vector<2x8x8xf32>
    %cst_42 = arith.constant dense<0.000000e+00> : vector<2x8xf32>
    %110 = vector.multi_reduction <add>, %109, %cst_42 [2] : vector<2x8x8xf32> to vector<2x8xf32>
    %111 = vector.shape_cast %110 : vector<2x8xf32> to vector<2x8x1xf32>
    %112 = tpu.reciprocal %111 {approx = true} : vector<2x8x1xf32> -> vector<2x8x1xf32>
    %113 = vector.broadcast %112 : vector<2x8x1xf32> to vector<2x8x8xf32>
    %114 = arith.mulf %109, %113 : vector<2x8x8xf32>
    %115 = arith.truncf %114 : vector<2x8x8xf32> to vector<2x8x8xbf16>
    "tpu.trace_start"() <{level = 10 : i32, message = "bqk,bkd->bqd"}> : () -> ()
    %cst_43 = arith.constant dense<0.000000e+00> : vector<2x8x8xf32>
    %116 = tpu.matmul %115, %99, %cst_43 {dimension_numbers = #tpu.dot_dimension_numbers<[2], [1], [1], [2], [0, 0, 0, 1, 1, 2], [0], [0]>} : vector<2x8x8xbf16>, vector<2x8x8xbf16>, vector<2x8x8xf32> -> vector<2x8x8xf32>
    "tpu.trace_stop"() : () -> ()
    %117 = vector.extract_strided_slice %41 {offsets = [0, 0, 24], sizes = [2, 8, 8], strides = [1, 1, 1]} : vector<2x8x32xf32> to vector<2x8x8xf32>
    %118 = arith.truncf %117 : vector<2x8x8xf32> to vector<2x8x8xbf16>
    %119 = vector.extract_strided_slice %42 {offsets = [0, 0, 24], sizes = [2, 8, 8], strides = [1, 1, 1]} : vector<2x8x32xf32> to vector<2x8x8xf32>
    %120 = arith.truncf %119 : vector<2x8x8xf32> to vector<2x8x8xbf16>
    %121 = vector.extract_strided_slice %43 {offsets = [0, 0, 24], sizes = [2, 8, 8], strides = [1, 1, 1]} : vector<2x8x32xf32> to vector<2x8x8xf32>
    %122 = arith.truncf %121 : vector<2x8x8xf32> to vector<2x8x8xbf16>
    "tpu.trace_start"() <{level = 10 : i32, message = "bqd,bkd->bqk"}> : () -> ()
    %cst_44 = arith.constant dense<0.000000e+00> : vector<2x8x8xf32>
    %123 = tpu.matmul %118, %120, %cst_44 {dimension_numbers = #tpu.dot_dimension_numbers<[2], [2], [1], [1], [0, 0, 0, 1, 1, 1], [0], [0]>} : vector<2x8x8xbf16>, vector<2x8x8xbf16>, vector<2x8x8xf32> -> vector<2x8x8xf32>
    "tpu.trace_stop"() : () -> ()
    %cst_45 = arith.constant 0.353553385 : f32
    %124 = vector.broadcast %cst_45 : f32 to vector<2x8x8xf32>
    %125 = arith.mulf %123, %124 : vector<2x8x8xf32>
    %cst_46 = arith.constant -1.000000e+09 : f32
    %126 = vector.broadcast %cst_46 : f32 to vector<2x8x8xf32>
    %127 = arith.select %47, %125, %126 : vector<2x8x8xi1>, vector<2x8x8xf32>
    %cst_47 = arith.constant dense<0xFF800000> : vector<2x8xf32>
    %128 = vector.multi_reduction <maximumf>, %127, %cst_47 [2] : vector<2x8x8xf32> to vector<2x8xf32>
    %129 = vector.shape_cast %128 : vector<2x8xf32> to vector<2x8x1xf32>
    %130 = vector.broadcast %129 : vector<2x8x1xf32> to vector<2x8x8xf32>
    %131 = arith.subf %127, %130 : vector<2x8x8xf32>
    %132 = math.exp %131 : vector<2x8x8xf32>
    %cst_48 = arith.constant dense<0.000000e+00> : vector<2x8xf32>
    %133 = vector.multi_reduction <add>, %132, %cst_48 [2] : vector<2x8x8xf32> to vector<2x8xf32>
    %134 = vector.shape_cast %133 : vector<2x8xf32> to vector<2x8x1xf32>
    %135 = tpu.reciprocal %134 {approx = true} : vector<2x8x1xf32> -> vector<2x8x1xf32>
    %136 = vector.broadcast %135 : vector<2x8x1xf32> to vector<2x8x8xf32>
    %137 = arith.mulf %132, %136 : vector<2x8x8xf32>
    %138 = arith.truncf %137 : vector<2x8x8xf32> to vector<2x8x8xbf16>
    "tpu.trace_start"() <{level = 10 : i32, message = "bqk,bkd->bqd"}> : () -> ()
    %cst_49 = arith.constant dense<0.000000e+00> : vector<2x8x8xf32>
    %139 = tpu.matmul %138, %122, %cst_49 {dimension_numbers = #tpu.dot_dimension_numbers<[2], [1], [1], [2], [0, 0, 0, 1, 1, 2], [0], [0]>} : vector<2x8x8xbf16>, vector<2x8x8xbf16>, vector<2x8x8xf32> -> vector<2x8x8xf32>
    "tpu.trace_stop"() : () -> ()
    %140 = tpu.concatenate %70, %93, %116, %139 in 2 : vector<2x8x8xf32>, vector<2x8x8xf32>, vector<2x8x8xf32>, vector<2x8x8xf32> -> vector<2x8x32xf32>
    %c0_50 = arith.constant 0 : index
    %c0_51 = arith.constant 0 : index
    %c0_52 = arith.constant 0 : index
    %141 = vector.load %arg8[%c0_50, %c0_51, %c0_52] : memref<2x32x32xbf16, #tpu.memory_space<vmem>>, vector<1x32x32xbf16>
    %142 = vector.shape_cast %141 : vector<1x32x32xbf16> to vector<32x32xbf16>
    %c0_53 = arith.constant 0 : index
    %c0_54 = arith.constant 0 : index
    %c0_55 = arith.constant 0 : index
    %143 = vector.load %arg9[%c0_53, %c0_54, %c0_55] : memref<2x1x32xf32, #tpu.memory_space<vmem>>, vector<1x1x32xf32>
    %144 = vector.shape_cast %143 : vector<1x1x32xf32> to vector<1x32xf32>
    %145 = vector.shape_cast %140 : vector<2x8x32xf32> to vector<16x32xf32>
    %146 = arith.truncf %145 : vector<16x32xf32> to vector<16x32xbf16>
    %cst_56 = arith.constant dense<0.000000e+00> : vector<16x32xf32>
    %147 = tpu.matmul %146, %142, %cst_56 {dimension_numbers = #tpu.dot_dimension_numbers<[1], [0], [0], [1], [0, 0, 1, 1], [], []>} : vector<16x32xbf16>, vector<32x32xbf16>, vector<16x32xf32> -> vector<16x32xf32>
    %148 = vector.broadcast %144 : vector<1x32xf32> to vector<16x32xf32>
    %149 = arith.addf %147, %148 : vector<16x32xf32>
    %150 = vector.shape_cast %149 : vector<16x32xf32> to vector<2x8x32xf32>
    %151 = arith.addf %2, %150 : vector<2x8x32xf32>
    %c0_57 = arith.constant 0 : index
    %c0_58 = arith.constant 0 : index
    %c0_59 = arith.constant 0 : index
    %152 = vector.load %arg10[%c0_57, %c0_58, %c0_59] : memref<2x1x32xf32, #tpu.memory_space<vmem>>, vector<1x1x32xf32>
    %153 = vector.shape_cast %152 : vector<1x1x32xf32> to vector<1x32xf32>
    %c0_60 = arith.constant 0 : index
    %c0_61 = arith.constant 0 : index
    %c0_62 = arith.constant 0 : index
    %154 = vector.load %arg11[%c0_60, %c0_61, %c0_62] : memref<2x1x32xf32, #tpu.memory_space<vmem>>, vector<1x1x32xf32>
    %155 = vector.shape_cast %154 : vector<1x1x32xf32> to vector<1x32xf32>
    %156 = vector.shape_cast %153 : vector<1x32xf32> to vector<1x1x32xf32>
    %157 = vector.shape_cast %155 : vector<1x32xf32> to vector<1x1x32xf32>
    %cst_63 = arith.constant dense<0.000000e+00> : vector<2x8xf32>
    %158 = vector.multi_reduction <add>, %151, %cst_63 [2] : vector<2x8x32xf32> to vector<2x8xf32>
    %159 = vector.shape_cast %158 : vector<2x8xf32> to vector<2x8x1xf32>
    %cst_64 = arith.constant 3.200000e+01 : f32
    %160 = vector.broadcast %cst_64 : f32 to vector<2x8x1xf32>
    %161 = arith.divf %159, %160 : vector<2x8x1xf32>
    %162 = vector.broadcast %161 : vector<2x8x1xf32> to vector<2x8x32xf32>
    %163 = arith.subf %151, %162 : vector<2x8x32xf32>
    %164 = arith.mulf %163, %163 : vector<2x8x32xf32>
    %cst_65 = arith.constant dense<0.000000e+00> : vector<2x8xf32>
    %165 = vector.multi_reduction <add>, %164, %cst_65 [2] : vector<2x8x32xf32> to vector<2x8xf32>
    %166 = vector.shape_cast %165 : vector<2x8xf32> to vector<2x8x1xf32>
    %cst_66 = arith.constant 3.100000e+01 : f32
    %167 = vector.broadcast %cst_66 : f32 to vector<2x8x1xf32>
    %168 = arith.divf %166, %167 : vector<2x8x1xf32>
    %169 = math.sqrt %168 : vector<2x8x1xf32>
    %170 = vector.broadcast %161 : vector<2x8x1xf32> to vector<2x8x32xf32>
    %171 = arith.subf %151, %170 : vector<2x8x32xf32>
    %172 = vector.broadcast %156 : vector<1x1x32xf32> to vector<2x8x32xf32>
    %173 = arith.mulf %172, %171 : vector<2x8x32xf32>
    %cst_67 = arith.constant 9.99999997E-7 : f32
    %174 = vector.broadcast %cst_67 : f32 to vector<2x8x1xf32>
    %175 = arith.addf %169, %174 : vector<2x8x1xf32>
    %176 = vector.broadcast %175 : vector<2x8x1xf32> to vector<2x8x32xf32>
    %177 = arith.divf %173, %176 : vector<2x8x32xf32>
    %178 = vector.broadcast %157 : vector<1x1x32xf32> to vector<2x8x32xf32>
    %179 = arith.addf %177, %178 : vector<2x8x32xf32>
    %c0_68 = arith.constant 0 : index
    %c0_69 = arith.constant 0 : index
    %c0_70 = arith.constant 0 : index
    %180 = vector.load %arg12[%c0_68, %c0_69, %c0_70] : memref<2x32x64xbf16, #tpu.memory_space<vmem>>, vector<1x32x64xbf16>
    %181 = vector.shape_cast %180 : vector<1x32x64xbf16> to vector<32x64xbf16>
    %c0_71 = arith.constant 0 : index
    %c0_72 = arith.constant 0 : index
    %c0_73 = arith.constant 0 : index
    %182 = vector.load %arg13[%c0_71, %c0_72, %c0_73] : memref<2x1x64xf32, #tpu.memory_space<vmem>>, vector<1x1x64xf32>
    %183 = vector.shape_cast %182 : vector<1x1x64xf32> to vector<1x64xf32>
    %184 = vector.shape_cast %179 : vector<2x8x32xf32> to vector<16x32xf32>
    %185 = arith.truncf %184 : vector<16x32xf32> to vector<16x32xbf16>
    %cst_74 = arith.constant dense<0.000000e+00> : vector<16x64xf32>
    %186 = tpu.matmul %185, %181, %cst_74 {dimension_numbers = #tpu.dot_dimension_numbers<[1], [0], [0], [1], [0, 0, 1, 1], [], []>} : vector<16x32xbf16>, vector<32x64xbf16>, vector<16x64xf32> -> vector<16x64xf32>
    %187 = vector.broadcast %183 : vector<1x64xf32> to vector<16x64xf32>
    %188 = arith.addf %186, %187 : vector<16x64xf32>
    %189 = vector.shape_cast %188 : vector<16x64xf32> to vector<2x8x64xf32>
    %cst_75 = arith.constant 0.000000e+00 : f32
    %190 = vector.broadcast %cst_75 : f32 to vector<2x8x64xf32>
    %191 = arith.maximumf %189, %190 : vector<2x8x64xf32>
    %c0_76 = arith.constant 0 : index
    %c0_77 = arith.constant 0 : index
    %c0_78 = arith.constant 0 : index
    %192 = vector.load %arg14[%c0_76, %c0_77, %c0_78] : memref<2x64x32xbf16, #tpu.memory_space<vmem>>, vector<1x64x32xbf16>
    %193 = vector.shape_cast %192 : vector<1x64x32xbf16> to vector<64x32xbf16>
    %c0_79 = arith.constant 0 : index
    %c0_80 = arith.constant 0 : index
    %c0_81 = arith.constant 0 : index
    %194 = vector.load %arg15[%c0_79, %c0_80, %c0_81] : memref<2x1x32xf32, #tpu.memory_space<vmem>>, vector<1x1x32xf32>
    %195 = vector.shape_cast %194 : vector<1x1x32xf32> to vector<1x32xf32>
    %196 = vector.shape_cast %191 : vector<2x8x64xf32> to vector<16x64xf32>
    %197 = arith.truncf %196 : vector<16x64xf32> to vector<16x64xbf16>
    %cst_82 = arith.constant dense<0.000000e+00> : vector<16x32xf32>
    %198 = tpu.matmul %197, %193, %cst_82 {dimension_numbers = #tpu.dot_dimension_numbers<[1], [0], [0], [1], [0, 0, 1, 1], [], []>} : vector<16x64xbf16>, vector<64x32xbf16>, vector<16x32xf32> -> vector<16x32xf32>
    %199 = vector.broadcast %195 : vector<1x32xf32> to vector<16x32xf32>
    %200 = arith.addf %198, %199 : vector<16x32xf32>
    %201 = vector.shape_cast %200 : vector<16x32xf32> to vector<2x8x32xf32>
    %202 = arith.addf %151, %201 : vector<2x8x32xf32>
    %c1 = arith.constant 1 : index
    %c0_83 = arith.constant 0 : index
    %c0_84 = arith.constant 0 : index
    %203 = vector.load %arg4[%c1, %c0_83, %c0_84] : memref<2x1x32xf32, #tpu.memory_space<vmem>>, vector<1x1x32xf32>
    %204 = vector.shape_cast %203 : vector<1x1x32xf32> to vector<1x32xf32>
    %c1_85 = arith.constant 1 : index
    %c0_86 = arith.constant 0 : index
    %c0_87 = arith.constant 0 : index
    %205 = vector.load %arg5[%c1_85, %c0_86, %c0_87] : memref<2x1x32xf32, #tpu.memory_space<vmem>>, vector<1x1x32xf32>
    %206 = vector.shape_cast %205 : vector<1x1x32xf32> to vector<1x32xf32>
    %207 = vector.shape_cast %204 : vector<1x32xf32> to vector<1x1x32xf32>
    %208 = vector.shape_cast %206 : vector<1x32xf32> to vector<1x1x32xf32>
    %cst_88 = arith.constant dense<0.000000e+00> : vector<2x8xf32>
    %209 = vector.multi_reduction <add>, %202, %cst_88 [2] : vector<2x8x32xf32> to vector<2x8xf32>
    %210 = vector.shape_cast %209 : vector<2x8xf32> to vector<2x8x1xf32>
    %cst_89 = arith.constant 3.200000e+01 : f32
    %211 = vector.broadcast %cst_89 : f32 to vector<2x8x1xf32>
    %212 = arith.divf %210, %211 : vector<2x8x1xf32>
    %213 = vector.broadcast %212 : vector<2x8x1xf32> to vector<2x8x32xf32>
    %214 = arith.subf %202, %213 : vector<2x8x32xf32>
    %215 = arith.mulf %214, %214 : vector<2x8x32xf32>
    %cst_90 = arith.constant dense<0.000000e+00> : vector<2x8xf32>
    %216 = vector.multi_reduction <add>, %215, %cst_90 [2] : vector<2x8x32xf32> to vector<2x8xf32>
    %217 = vector.shape_cast %216 : vector<2x8xf32> to vector<2x8x1xf32>
    %cst_91 = arith.constant 3.100000e+01 : f32
    %218 = vector.broadcast %cst_91 : f32 to vector<2x8x1xf32>
    %219 = arith.divf %217, %218 : vector<2x8x1xf32>
    %220 = math.sqrt %219 : vector<2x8x1xf32>
    %221 = vector.broadcast %212 : vector<2x8x1xf32> to vector<2x8x32xf32>
    %222 = arith.subf %202, %221 : vector<2x8x32xf32>
    %223 = vector.broadcast %207 : vector<1x1x32xf32> to vector<2x8x32xf32>
    %224 = arith.mulf %223, %222 : vector<2x8x32xf32>
    %cst_92 = arith.constant 9.99999997E-7 : f32
    %225 = vector.broadcast %cst_92 : f32 to vector<2x8x1xf32>
    %226 = arith.addf %220, %225 : vector<2x8x1xf32>
    %227 = vector.broadcast %226 : vector<2x8x1xf32> to vector<2x8x32xf32>
    %228 = arith.divf %224, %227 : vector<2x8x32xf32>
    %229 = vector.broadcast %208 : vector<1x1x32xf32> to vector<2x8x32xf32>
    %230 = arith.addf %228, %229 : vector<2x8x32xf32>
    %c1_93 = arith.constant 1 : index
    %c0_94 = arith.constant 0 : index
    %c0_95 = arith.constant 0 : index
    %231 = vector.load %arg6[%c1_93, %c0_94, %c0_95] : memref<2x32x96xbf16, #tpu.memory_space<vmem>>, vector<1x32x96xbf16>
    %232 = vector.shape_cast %231 : vector<1x32x96xbf16> to vector<32x96xbf16>
    %c1_96 = arith.constant 1 : index
    %c0_97 = arith.constant 0 : index
    %c0_98 = arith.constant 0 : index
    %233 = vector.load %arg7[%c1_96, %c0_97, %c0_98] : memref<2x1x96xf32, #tpu.memory_space<vmem>>, vector<1x1x96xf32>
    %234 = vector.shape_cast %233 : vector<1x1x96xf32> to vector<1x96xf32>
    %235 = vector.shape_cast %230 : vector<2x8x32xf32> to vector<16x32xf32>
    %236 = arith.truncf %235 : vector<16x32xf32> to vector<16x32xbf16>
    %cst_99 = arith.constant dense<0.000000e+00> : vector<16x96xf32>
    %237 = tpu.matmul %236, %232, %cst_99 {dimension_numbers = #tpu.dot_dimension_numbers<[1], [0], [0], [1], [0, 0, 1, 1], [], []>} : vector<16x32xbf16>, vector<32x96xbf16>, vector<16x96xf32> -> vector<16x96xf32>
    %238 = vector.broadcast %234 : vector<1x96xf32> to vector<16x96xf32>
    %239 = arith.addf %237, %238 : vector<16x96xf32>
    %240 = vector.shape_cast %239 : vector<16x96xf32> to vector<2x8x96xf32>
    %241 = vector.extract_strided_slice %240 {offsets = [0, 0, 0], sizes = [2, 8, 32], strides = [1, 1, 1]} : vector<2x8x96xf32> to vector<2x8x32xf32>
    %242 = vector.extract_strided_slice %240 {offsets = [0, 0, 32], sizes = [2, 8, 32], strides = [1, 1, 1]} : vector<2x8x96xf32> to vector<2x8x32xf32>
    %243 = vector.extract_strided_slice %240 {offsets = [0, 0, 64], sizes = [2, 8, 32], strides = [1, 1, 1]} : vector<2x8x96xf32> to vector<2x8x32xf32>
    %244 = vector.shape_cast %0 : vector<2x1x8xf32> to vector<2x1x8xf32>
    %245 = vector.broadcast %244 : vector<2x1x8xf32> to vector<2x8x8xf32>
    %cst_100 = arith.constant 0.000000e+00 : f32
    %246 = vector.broadcast %cst_100 : f32 to vector<2x8x8xf32>
    %247 = arith.cmpf ogt, %245, %246 : vector<2x8x8xf32>
    %248 = vector.extract_strided_slice %241 {offsets = [0, 0, 0], sizes = [2, 8, 8], strides = [1, 1, 1]} : vector<2x8x32xf32> to vector<2x8x8xf32>
    %249 = arith.truncf %248 : vector<2x8x8xf32> to vector<2x8x8xbf16>
    %250 = vector.extract_strided_slice %242 {offsets = [0, 0, 0], sizes = [2, 8, 8], strides = [1, 1, 1]} : vector<2x8x32xf32> to vector<2x8x8xf32>
    %251 = arith.truncf %250 : vector<2x8x8xf32> to vector<2x8x8xbf16>
    %252 = vector.extract_strided_slice %243 {offsets = [0, 0, 0], sizes = [2, 8, 8], strides = [1, 1, 1]} : vector<2x8x32xf32> to vector<2x8x8xf32>
    %253 = arith.truncf %252 : vector<2x8x8xf32> to vector<2x8x8xbf16>
    "tpu.trace_start"() <{level = 10 : i32, message = "bqd,bkd->bqk"}> : () -> ()
    %cst_101 = arith.constant dense<0.000000e+00> : vector<2x8x8xf32>
    %254 = tpu.matmul %249, %251, %cst_101 {dimension_numbers = #tpu.dot_dimension_numbers<[2], [2], [1], [1], [0, 0, 0, 1, 1, 1], [0], [0]>} : vector<2x8x8xbf16>, vector<2x8x8xbf16>, vector<2x8x8xf32> -> vector<2x8x8xf32>
    "tpu.trace_stop"() : () -> ()
    %cst_102 = arith.constant 0.353553385 : f32
    %255 = vector.broadcast %cst_102 : f32 to vector<2x8x8xf32>
    %256 = arith.mulf %254, %255 : vector<2x8x8xf32>
    %cst_103 = arith.constant -1.000000e+09 : f32
    %257 = vector.broadcast %cst_103 : f32 to vector<2x8x8xf32>
    %258 = arith.select %247, %256, %257 : vector<2x8x8xi1>, vector<2x8x8xf32>
    %cst_104 = arith.constant dense<0xFF800000> : vector<2x8xf32>
    %259 = vector.multi_reduction <maximumf>, %258, %cst_104 [2] : vector<2x8x8xf32> to vector<2x8xf32>
    %260 = vector.shape_cast %259 : vector<2x8xf32> to vector<2x8x1xf32>
    %261 = vector.broadcast %260 : vector<2x8x1xf32> to vector<2x8x8xf32>
    %262 = arith.subf %258, %261 : vector<2x8x8xf32>
    %263 = math.exp %262 : vector<2x8x8xf32>
    %cst_105 = arith.constant dense<0.000000e+00> : vector<2x8xf32>
    %264 = vector.multi_reduction <add>, %263, %cst_105 [2] : vector<2x8x8xf32> to vector<2x8xf32>
    %265 = vector.shape_cast %264 : vector<2x8xf32> to vector<2x8x1xf32>
    %266 = tpu.reciprocal %265 {approx = true} : vector<2x8x1xf32> -> vector<2x8x1xf32>
    %267 = vector.broadcast %266 : vector<2x8x1xf32> to vector<2x8x8xf32>
    %268 = arith.mulf %263, %267 : vector<2x8x8xf32>
    %269 = arith.truncf %268 : vector<2x8x8xf32> to vector<2x8x8xbf16>
    "tpu.trace_start"() <{level = 10 : i32, message = "bqk,bkd->bqd"}> : () -> ()
    %cst_106 = arith.constant dense<0.000000e+00> : vector<2x8x8xf32>
    %270 = tpu.matmul %269, %253, %cst_106 {dimension_numbers = #tpu.dot_dimension_numbers<[2], [1], [1], [2], [0, 0, 0, 1, 1, 2], [0], [0]>} : vector<2x8x8xbf16>, vector<2x8x8xbf16>, vector<2x8x8xf32> -> vector<2x8x8xf32>
    "tpu.trace_stop"() : () -> ()
    %271 = vector.extract_strided_slice %241 {offsets = [0, 0, 8], sizes = [2, 8, 8], strides = [1, 1, 1]} : vector<2x8x32xf32> to vector<2x8x8xf32>
    %272 = arith.truncf %271 : vector<2x8x8xf32> to vector<2x8x8xbf16>
    %273 = vector.extract_strided_slice %242 {offsets = [0, 0, 8], sizes = [2, 8, 8], strides = [1, 1, 1]} : vector<2x8x32xf32> to vector<2x8x8xf32>
    %274 = arith.truncf %273 : vector<2x8x8xf32> to vector<2x8x8xbf16>
    %275 = vector.extract_strided_slice %243 {offsets = [0, 0, 8], sizes = [2, 8, 8], strides = [1, 1, 1]} : vector<2x8x32xf32> to vector<2x8x8xf32>
    %276 = arith.truncf %275 : vector<2x8x8xf32> to vector<2x8x8xbf16>
    "tpu.trace_start"() <{level = 10 : i32, message = "bqd,bkd->bqk"}> : () -> ()
    %cst_107 = arith.constant dense<0.000000e+00> : vector<2x8x8xf32>
    %277 = tpu.matmul %272, %274, %cst_107 {dimension_numbers = #tpu.dot_dimension_numbers<[2], [2], [1], [1], [0, 0, 0, 1, 1, 1], [0], [0]>} : vector<2x8x8xbf16>, vector<2x8x8xbf16>, vector<2x8x8xf32> -> vector<2x8x8xf32>
    "tpu.trace_stop"() : () -> ()
    %cst_108 = arith.constant 0.353553385 : f32
    %278 = vector.broadcast %cst_108 : f32 to vector<2x8x8xf32>
    %279 = arith.mulf %277, %278 : vector<2x8x8xf32>
    %cst_109 = arith.constant -1.000000e+09 : f32
    %280 = vector.broadcast %cst_109 : f32 to vector<2x8x8xf32>
    %281 = arith.select %247, %279, %280 : vector<2x8x8xi1>, vector<2x8x8xf32>
    %cst_110 = arith.constant dense<0xFF800000> : vector<2x8xf32>
    %282 = vector.multi_reduction <maximumf>, %281, %cst_110 [2] : vector<2x8x8xf32> to vector<2x8xf32>
    %283 = vector.shape_cast %282 : vector<2x8xf32> to vector<2x8x1xf32>
    %284 = vector.broadcast %283 : vector<2x8x1xf32> to vector<2x8x8xf32>
    %285 = arith.subf %281, %284 : vector<2x8x8xf32>
    %286 = math.exp %285 : vector<2x8x8xf32>
    %cst_111 = arith.constant dense<0.000000e+00> : vector<2x8xf32>
    %287 = vector.multi_reduction <add>, %286, %cst_111 [2] : vector<2x8x8xf32> to vector<2x8xf32>
    %288 = vector.shape_cast %287 : vector<2x8xf32> to vector<2x8x1xf32>
    %289 = tpu.reciprocal %288 {approx = true} : vector<2x8x1xf32> -> vector<2x8x1xf32>
    %290 = vector.broadcast %289 : vector<2x8x1xf32> to vector<2x8x8xf32>
    %291 = arith.mulf %286, %290 : vector<2x8x8xf32>
    %292 = arith.truncf %291 : vector<2x8x8xf32> to vector<2x8x8xbf16>
    "tpu.trace_start"() <{level = 10 : i32, message = "bqk,bkd->bqd"}> : () -> ()
    %cst_112 = arith.constant dense<0.000000e+00> : vector<2x8x8xf32>
    %293 = tpu.matmul %292, %276, %cst_112 {dimension_numbers = #tpu.dot_dimension_numbers<[2], [1], [1], [2], [0, 0, 0, 1, 1, 2], [0], [0]>} : vector<2x8x8xbf16>, vector<2x8x8xbf16>, vector<2x8x8xf32> -> vector<2x8x8xf32>
    "tpu.trace_stop"() : () -> ()
    %294 = vector.extract_strided_slice %241 {offsets = [0, 0, 16], sizes = [2, 8, 8], strides = [1, 1, 1]} : vector<2x8x32xf32> to vector<2x8x8xf32>
    %295 = arith.truncf %294 : vector<2x8x8xf32> to vector<2x8x8xbf16>
    %296 = vector.extract_strided_slice %242 {offsets = [0, 0, 16], sizes = [2, 8, 8], strides = [1, 1, 1]} : vector<2x8x32xf32> to vector<2x8x8xf32>
    %297 = arith.truncf %296 : vector<2x8x8xf32> to vector<2x8x8xbf16>
    %298 = vector.extract_strided_slice %243 {offsets = [0, 0, 16], sizes = [2, 8, 8], strides = [1, 1, 1]} : vector<2x8x32xf32> to vector<2x8x8xf32>
    %299 = arith.truncf %298 : vector<2x8x8xf32> to vector<2x8x8xbf16>
    "tpu.trace_start"() <{level = 10 : i32, message = "bqd,bkd->bqk"}> : () -> ()
    %cst_113 = arith.constant dense<0.000000e+00> : vector<2x8x8xf32>
    %300 = tpu.matmul %295, %297, %cst_113 {dimension_numbers = #tpu.dot_dimension_numbers<[2], [2], [1], [1], [0, 0, 0, 1, 1, 1], [0], [0]>} : vector<2x8x8xbf16>, vector<2x8x8xbf16>, vector<2x8x8xf32> -> vector<2x8x8xf32>
    "tpu.trace_stop"() : () -> ()
    %cst_114 = arith.constant 0.353553385 : f32
    %301 = vector.broadcast %cst_114 : f32 to vector<2x8x8xf32>
    %302 = arith.mulf %300, %301 : vector<2x8x8xf32>
    %cst_115 = arith.constant -1.000000e+09 : f32
    %303 = vector.broadcast %cst_115 : f32 to vector<2x8x8xf32>
    %304 = arith.select %247, %302, %303 : vector<2x8x8xi1>, vector<2x8x8xf32>
    %cst_116 = arith.constant dense<0xFF800000> : vector<2x8xf32>
    %305 = vector.multi_reduction <maximumf>, %304, %cst_116 [2] : vector<2x8x8xf32> to vector<2x8xf32>
    %306 = vector.shape_cast %305 : vector<2x8xf32> to vector<2x8x1xf32>
    %307 = vector.broadcast %306 : vector<2x8x1xf32> to vector<2x8x8xf32>
    %308 = arith.subf %304, %307 : vector<2x8x8xf32>
    %309 = math.exp %308 : vector<2x8x8xf32>
    %cst_117 = arith.constant dense<0.000000e+00> : vector<2x8xf32>
    %310 = vector.multi_reduction <add>, %309, %cst_117 [2] : vector<2x8x8xf32> to vector<2x8xf32>
    %311 = vector.shape_cast %310 : vector<2x8xf32> to vector<2x8x1xf32>
    %312 = tpu.reciprocal %311 {approx = true} : vector<2x8x1xf32> -> vector<2x8x1xf32>
    %313 = vector.broadcast %312 : vector<2x8x1xf32> to vector<2x8x8xf32>
    %314 = arith.mulf %309, %313 : vector<2x8x8xf32>
    %315 = arith.truncf %314 : vector<2x8x8xf32> to vector<2x8x8xbf16>
    "tpu.trace_start"() <{level = 10 : i32, message = "bqk,bkd->bqd"}> : () -> ()
    %cst_118 = arith.constant dense<0.000000e+00> : vector<2x8x8xf32>
    %316 = tpu.matmul %315, %299, %cst_118 {dimension_numbers = #tpu.dot_dimension_numbers<[2], [1], [1], [2], [0, 0, 0, 1, 1, 2], [0], [0]>} : vector<2x8x8xbf16>, vector<2x8x8xbf16>, vector<2x8x8xf32> -> vector<2x8x8xf32>
    "tpu.trace_stop"() : () -> ()
    %317 = vector.extract_strided_slice %241 {offsets = [0, 0, 24], sizes = [2, 8, 8], strides = [1, 1, 1]} : vector<2x8x32xf32> to vector<2x8x8xf32>
    %318 = arith.truncf %317 : vector<2x8x8xf32> to vector<2x8x8xbf16>
    %319 = vector.extract_strided_slice %242 {offsets = [0, 0, 24], sizes = [2, 8, 8], strides = [1, 1, 1]} : vector<2x8x32xf32> to vector<2x8x8xf32>
    %320 = arith.truncf %319 : vector<2x8x8xf32> to vector<2x8x8xbf16>
    %321 = vector.extract_strided_slice %243 {offsets = [0, 0, 24], sizes = [2, 8, 8], strides = [1, 1, 1]} : vector<2x8x32xf32> to vector<2x8x8xf32>
    %322 = arith.truncf %321 : vector<2x8x8xf32> to vector<2x8x8xbf16>
    "tpu.trace_start"() <{level = 10 : i32, message = "bqd,bkd->bqk"}> : () -> ()
    %cst_119 = arith.constant dense<0.000000e+00> : vector<2x8x8xf32>
    %323 = tpu.matmul %318, %320, %cst_119 {dimension_numbers = #tpu.dot_dimension_numbers<[2], [2], [1], [1], [0, 0, 0, 1, 1, 1], [0], [0]>} : vector<2x8x8xbf16>, vector<2x8x8xbf16>, vector<2x8x8xf32> -> vector<2x8x8xf32>
    "tpu.trace_stop"() : () -> ()
    %cst_120 = arith.constant 0.353553385 : f32
    %324 = vector.broadcast %cst_120 : f32 to vector<2x8x8xf32>
    %325 = arith.mulf %323, %324 : vector<2x8x8xf32>
    %cst_121 = arith.constant -1.000000e+09 : f32
    %326 = vector.broadcast %cst_121 : f32 to vector<2x8x8xf32>
    %327 = arith.select %247, %325, %326 : vector<2x8x8xi1>, vector<2x8x8xf32>
    %cst_122 = arith.constant dense<0xFF800000> : vector<2x8xf32>
    %328 = vector.multi_reduction <maximumf>, %327, %cst_122 [2] : vector<2x8x8xf32> to vector<2x8xf32>
    %329 = vector.shape_cast %328 : vector<2x8xf32> to vector<2x8x1xf32>
    %330 = vector.broadcast %329 : vector<2x8x1xf32> to vector<2x8x8xf32>
    %331 = arith.subf %327, %330 : vector<2x8x8xf32>
    %332 = math.exp %331 : vector<2x8x8xf32>
    %cst_123 = arith.constant dense<0.000000e+00> : vector<2x8xf32>
    %333 = vector.multi_reduction <add>, %332, %cst_123 [2] : vector<2x8x8xf32> to vector<2x8xf32>
    %334 = vector.shape_cast %333 : vector<2x8xf32> to vector<2x8x1xf32>
    %335 = tpu.reciprocal %334 {approx = true} : vector<2x8x1xf32> -> vector<2x8x1xf32>
    %336 = vector.broadcast %335 : vector<2x8x1xf32> to vector<2x8x8xf32>
    %337 = arith.mulf %332, %336 : vector<2x8x8xf32>
    %338 = arith.truncf %337 : vector<2x8x8xf32> to vector<2x8x8xbf16>
    "tpu.trace_start"() <{level = 10 : i32, message = "bqk,bkd->bqd"}> : () -> ()
    %cst_124 = arith.constant dense<0.000000e+00> : vector<2x8x8xf32>
    %339 = tpu.matmul %338, %322, %cst_124 {dimension_numbers = #tpu.dot_dimension_numbers<[2], [1], [1], [2], [0, 0, 0, 1, 1, 2], [0], [0]>} : vector<2x8x8xbf16>, vector<2x8x8xbf16>, vector<2x8x8xf32> -> vector<2x8x8xf32>
    "tpu.trace_stop"() : () -> ()
    %340 = tpu.concatenate %270, %293, %316, %339 in 2 : vector<2x8x8xf32>, vector<2x8x8xf32>, vector<2x8x8xf32>, vector<2x8x8xf32> -> vector<2x8x32xf32>
    %c1_125 = arith.constant 1 : index
    %c0_126 = arith.constant 0 : index
    %c0_127 = arith.constant 0 : index
    %341 = vector.load %arg8[%c1_125, %c0_126, %c0_127] : memref<2x32x32xbf16, #tpu.memory_space<vmem>>, vector<1x32x32xbf16>
    %342 = vector.shape_cast %341 : vector<1x32x32xbf16> to vector<32x32xbf16>
    %c1_128 = arith.constant 1 : index
    %c0_129 = arith.constant 0 : index
    %c0_130 = arith.constant 0 : index
    %343 = vector.load %arg9[%c1_128, %c0_129, %c0_130] : memref<2x1x32xf32, #tpu.memory_space<vmem>>, vector<1x1x32xf32>
    %344 = vector.shape_cast %343 : vector<1x1x32xf32> to vector<1x32xf32>
    %345 = vector.shape_cast %340 : vector<2x8x32xf32> to vector<16x32xf32>
    %346 = arith.truncf %345 : vector<16x32xf32> to vector<16x32xbf16>
    %cst_131 = arith.constant dense<0.000000e+00> : vector<16x32xf32>
    %347 = tpu.matmul %346, %342, %cst_131 {dimension_numbers = #tpu.dot_dimension_numbers<[1], [0], [0], [1], [0, 0, 1, 1], [], []>} : vector<16x32xbf16>, vector<32x32xbf16>, vector<16x32xf32> -> vector<16x32xf32>
    %348 = vector.broadcast %344 : vector<1x32xf32> to vector<16x32xf32>
    %349 = arith.addf %347, %348 : vector<16x32xf32>
    %350 = vector.shape_cast %349 : vector<16x32xf32> to vector<2x8x32xf32>
    %351 = arith.addf %202, %350 : vector<2x8x32xf32>
    %c1_132 = arith.constant 1 : index
    %c0_133 = arith.constant 0 : index
    %c0_134 = arith.constant 0 : index
    %352 = vector.load %arg10[%c1_132, %c0_133, %c0_134] : memref<2x1x32xf32, #tpu.memory_space<vmem>>, vector<1x1x32xf32>
    %353 = vector.shape_cast %352 : vector<1x1x32xf32> to vector<1x32xf32>
    %c1_135 = arith.constant 1 : index
    %c0_136 = arith.constant 0 : index
    %c0_137 = arith.constant 0 : index
    %354 = vector.load %arg11[%c1_135, %c0_136, %c0_137] : memref<2x1x32xf32, #tpu.memory_space<vmem>>, vector<1x1x32xf32>
    %355 = vector.shape_cast %354 : vector<1x1x32xf32> to vector<1x32xf32>
    %356 = vector.shape_cast %353 : vector<1x32xf32> to vector<1x1x32xf32>
    %357 = vector.shape_cast %355 : vector<1x32xf32> to vector<1x1x32xf32>
    %cst_138 = arith.constant dense<0.000000e+00> : vector<2x8xf32>
    %358 = vector.multi_reduction <add>, %351, %cst_138 [2] : vector<2x8x32xf32> to vector<2x8xf32>
    %359 = vector.shape_cast %358 : vector<2x8xf32> to vector<2x8x1xf32>
    %cst_139 = arith.constant 3.200000e+01 : f32
    %360 = vector.broadcast %cst_139 : f32 to vector<2x8x1xf32>
    %361 = arith.divf %359, %360 : vector<2x8x1xf32>
    %362 = vector.broadcast %361 : vector<2x8x1xf32> to vector<2x8x32xf32>
    %363 = arith.subf %351, %362 : vector<2x8x32xf32>
    %364 = arith.mulf %363, %363 : vector<2x8x32xf32>
    %cst_140 = arith.constant dense<0.000000e+00> : vector<2x8xf32>
    %365 = vector.multi_reduction <add>, %364, %cst_140 [2] : vector<2x8x32xf32> to vector<2x8xf32>
    %366 = vector.shape_cast %365 : vector<2x8xf32> to vector<2x8x1xf32>
    %cst_141 = arith.constant 3.100000e+01 : f32
    %367 = vector.broadcast %cst_141 : f32 to vector<2x8x1xf32>
    %368 = arith.divf %366, %367 : vector<2x8x1xf32>
    %369 = math.sqrt %368 : vector<2x8x1xf32>
    %370 = vector.broadcast %361 : vector<2x8x1xf32> to vector<2x8x32xf32>
    %371 = arith.subf %351, %370 : vector<2x8x32xf32>
    %372 = vector.broadcast %356 : vector<1x1x32xf32> to vector<2x8x32xf32>
    %373 = arith.mulf %372, %371 : vector<2x8x32xf32>
    %cst_142 = arith.constant 9.99999997E-7 : f32
    %374 = vector.broadcast %cst_142 : f32 to vector<2x8x1xf32>
    %375 = arith.addf %369, %374 : vector<2x8x1xf32>
    %376 = vector.broadcast %375 : vector<2x8x1xf32> to vector<2x8x32xf32>
    %377 = arith.divf %373, %376 : vector<2x8x32xf32>
    %378 = vector.broadcast %357 : vector<1x1x32xf32> to vector<2x8x32xf32>
    %379 = arith.addf %377, %378 : vector<2x8x32xf32>
    %c1_143 = arith.constant 1 : index
    %c0_144 = arith.constant 0 : index
    %c0_145 = arith.constant 0 : index
    %380 = vector.load %arg12[%c1_143, %c0_144, %c0_145] : memref<2x32x64xbf16, #tpu.memory_space<vmem>>, vector<1x32x64xbf16>
    %381 = vector.shape_cast %380 : vector<1x32x64xbf16> to vector<32x64xbf16>
    %c1_146 = arith.constant 1 : index
    %c0_147 = arith.constant 0 : index
    %c0_148 = arith.constant 0 : index
    %382 = vector.load %arg13[%c1_146, %c0_147, %c0_148] : memref<2x1x64xf32, #tpu.memory_space<vmem>>, vector<1x1x64xf32>
    %383 = vector.shape_cast %382 : vector<1x1x64xf32> to vector<1x64xf32>
    %384 = vector.shape_cast %379 : vector<2x8x32xf32> to vector<16x32xf32>
    %385 = arith.truncf %384 : vector<16x32xf32> to vector<16x32xbf16>
    %cst_149 = arith.constant dense<0.000000e+00> : vector<16x64xf32>
    %386 = tpu.matmul %385, %381, %cst_149 {dimension_numbers = #tpu.dot_dimension_numbers<[1], [0], [0], [1], [0, 0, 1, 1], [], []>} : vector<16x32xbf16>, vector<32x64xbf16>, vector<16x64xf32> -> vector<16x64xf32>
    %387 = vector.broadcast %383 : vector<1x64xf32> to vector<16x64xf32>
    %388 = arith.addf %386, %387 : vector<16x64xf32>
    %389 = vector.shape_cast %388 : vector<16x64xf32> to vector<2x8x64xf32>
    %cst_150 = arith.constant 0.000000e+00 : f32
    %390 = vector.broadcast %cst_150 : f32 to vector<2x8x64xf32>
    %391 = arith.maximumf %389, %390 : vector<2x8x64xf32>
    %c1_151 = arith.constant 1 : index
    %c0_152 = arith.constant 0 : index
    %c0_153 = arith.constant 0 : index
    %392 = vector.load %arg14[%c1_151, %c0_152, %c0_153] : memref<2x64x32xbf16, #tpu.memory_space<vmem>>, vector<1x64x32xbf16>
    %393 = vector.shape_cast %392 : vector<1x64x32xbf16> to vector<64x32xbf16>
    %c1_154 = arith.constant 1 : index
    %c0_155 = arith.constant 0 : index
    %c0_156 = arith.constant 0 : index
    %394 = vector.load %arg15[%c1_154, %c0_155, %c0_156] : memref<2x1x32xf32, #tpu.memory_space<vmem>>, vector<1x1x32xf32>
    %395 = vector.shape_cast %394 : vector<1x1x32xf32> to vector<1x32xf32>
    %396 = vector.shape_cast %391 : vector<2x8x64xf32> to vector<16x64xf32>
    %397 = arith.truncf %396 : vector<16x64xf32> to vector<16x64xbf16>
    %cst_157 = arith.constant dense<0.000000e+00> : vector<16x32xf32>
    %398 = tpu.matmul %397, %393, %cst_157 {dimension_numbers = #tpu.dot_dimension_numbers<[1], [0], [0], [1], [0, 0, 1, 1], [], []>} : vector<16x64xbf16>, vector<64x32xbf16>, vector<16x32xf32> -> vector<16x32xf32>
    %399 = vector.broadcast %395 : vector<1x32xf32> to vector<16x32xf32>
    %400 = arith.addf %398, %399 : vector<16x32xf32>
    %401 = vector.shape_cast %400 : vector<16x32xf32> to vector<2x8x32xf32>
    %402 = arith.addf %351, %401 : vector<2x8x32xf32>
    %c0_158 = arith.constant 0 : index
    %c0_159 = arith.constant 0 : index
    %403 = vector.load %arg16[%c0_158, %c0_159] : memref<1x32xf32, #tpu.memory_space<vmem>>, vector<1x32xf32>
    %c0_160 = arith.constant 0 : index
    %c0_161 = arith.constant 0 : index
    %404 = vector.load %arg17[%c0_160, %c0_161] : memref<1x32xf32, #tpu.memory_space<vmem>>, vector<1x32xf32>
    %405 = vector.shape_cast %403 : vector<1x32xf32> to vector<1x1x32xf32>
    %406 = vector.shape_cast %404 : vector<1x32xf32> to vector<1x1x32xf32>
    %cst_162 = arith.constant dense<0.000000e+00> : vector<2x8xf32>
    %407 = vector.multi_reduction <add>, %402, %cst_162 [2] : vector<2x8x32xf32> to vector<2x8xf32>
    %408 = vector.shape_cast %407 : vector<2x8xf32> to vector<2x8x1xf32>
    %cst_163 = arith.constant 3.200000e+01 : f32
    %409 = vector.broadcast %cst_163 : f32 to vector<2x8x1xf32>
    %410 = arith.divf %408, %409 : vector<2x8x1xf32>
    %411 = vector.broadcast %410 : vector<2x8x1xf32> to vector<2x8x32xf32>
    %412 = arith.subf %402, %411 : vector<2x8x32xf32>
    %413 = arith.mulf %412, %412 : vector<2x8x32xf32>
    %cst_164 = arith.constant dense<0.000000e+00> : vector<2x8xf32>
    %414 = vector.multi_reduction <add>, %413, %cst_164 [2] : vector<2x8x32xf32> to vector<2x8xf32>
    %415 = vector.shape_cast %414 : vector<2x8xf32> to vector<2x8x1xf32>
    %cst_165 = arith.constant 3.100000e+01 : f32
    %416 = vector.broadcast %cst_165 : f32 to vector<2x8x1xf32>
    %417 = arith.divf %415, %416 : vector<2x8x1xf32>
    %418 = math.sqrt %417 : vector<2x8x1xf32>
    %419 = vector.broadcast %410 : vector<2x8x1xf32> to vector<2x8x32xf32>
    %420 = arith.subf %402, %419 : vector<2x8x32xf32>
    %421 = vector.broadcast %405 : vector<1x1x32xf32> to vector<2x8x32xf32>
    %422 = arith.mulf %421, %420 : vector<2x8x32xf32>
    %cst_166 = arith.constant 9.99999997E-7 : f32
    %423 = vector.broadcast %cst_166 : f32 to vector<2x8x1xf32>
    %424 = arith.addf %418, %423 : vector<2x8x1xf32>
    %425 = vector.broadcast %424 : vector<2x8x1xf32> to vector<2x8x32xf32>
    %426 = arith.divf %422, %425 : vector<2x8x32xf32>
    %427 = vector.broadcast %406 : vector<1x1x32xf32> to vector<2x8x32xf32>
    %428 = arith.addf %426, %427 : vector<2x8x32xf32>
    %c0_167 = arith.constant 0 : index
    %c0_168 = arith.constant 0 : index
    %c0_169 = arith.constant 0 : index
    %429 = vector.load %arg1[%c0_167, %c0_168, %c0_169] : memref<2x8x32xf32, #tpu.memory_space<vmem>>, vector<2x8x32xf32>
    %c0_170 = arith.constant 0 : index
    %c0_171 = arith.constant 0 : index
    %c0_172 = arith.constant 0 : index
    %430 = vector.load %arg18[%c0_170, %c0_171, %c0_172] : memref<2x1x32xf32, #tpu.memory_space<vmem>>, vector<1x1x32xf32>
    %431 = vector.shape_cast %430 : vector<1x1x32xf32> to vector<1x32xf32>
    %c0_173 = arith.constant 0 : index
    %c0_174 = arith.constant 0 : index
    %c0_175 = arith.constant 0 : index
    %432 = vector.load %arg19[%c0_173, %c0_174, %c0_175] : memref<2x1x32xf32, #tpu.memory_space<vmem>>, vector<1x1x32xf32>
    %433 = vector.shape_cast %432 : vector<1x1x32xf32> to vector<1x32xf32>
    %434 = vector.shape_cast %431 : vector<1x32xf32> to vector<1x1x32xf32>
    %435 = vector.shape_cast %433 : vector<1x32xf32> to vector<1x1x32xf32>
    %cst_176 = arith.constant dense<0.000000e+00> : vector<2x8xf32>
    %436 = vector.multi_reduction <add>, %429, %cst_176 [2] : vector<2x8x32xf32> to vector<2x8xf32>
    %437 = vector.shape_cast %436 : vector<2x8xf32> to vector<2x8x1xf32>
    %cst_177 = arith.constant 3.200000e+01 : f32
    %438 = vector.broadcast %cst_177 : f32 to vector<2x8x1xf32>
    %439 = arith.divf %437, %438 : vector<2x8x1xf32>
    %440 = vector.broadcast %439 : vector<2x8x1xf32> to vector<2x8x32xf32>
    %441 = arith.subf %429, %440 : vector<2x8x32xf32>
    %442 = arith.mulf %441, %441 : vector<2x8x32xf32>
    %cst_178 = arith.constant dense<0.000000e+00> : vector<2x8xf32>
    %443 = vector.multi_reduction <add>, %442, %cst_178 [2] : vector<2x8x32xf32> to vector<2x8xf32>
    %444 = vector.shape_cast %443 : vector<2x8xf32> to vector<2x8x1xf32>
    %cst_179 = arith.constant 3.100000e+01 : f32
    %445 = vector.broadcast %cst_179 : f32 to vector<2x8x1xf32>
    %446 = arith.divf %444, %445 : vector<2x8x1xf32>
    %447 = math.sqrt %446 : vector<2x8x1xf32>
    %448 = vector.broadcast %439 : vector<2x8x1xf32> to vector<2x8x32xf32>
    %449 = arith.subf %429, %448 : vector<2x8x32xf32>
    %450 = vector.broadcast %434 : vector<1x1x32xf32> to vector<2x8x32xf32>
    %451 = arith.mulf %450, %449 : vector<2x8x32xf32>
    %cst_180 = arith.constant 9.99999997E-7 : f32
    %452 = vector.broadcast %cst_180 : f32 to vector<2x8x1xf32>
    %453 = arith.addf %447, %452 : vector<2x8x1xf32>
    %454 = vector.broadcast %453 : vector<2x8x1xf32> to vector<2x8x32xf32>
    %455 = arith.divf %451, %454 : vector<2x8x32xf32>
    %456 = vector.broadcast %435 : vector<1x1x32xf32> to vector<2x8x32xf32>
    %457 = arith.addf %455, %456 : vector<2x8x32xf32>
    %c0_181 = arith.constant 0 : index
    %c0_182 = arith.constant 0 : index
    %c0_183 = arith.constant 0 : index
    %458 = vector.load %arg20[%c0_181, %c0_182, %c0_183] : memref<2x32x96xbf16, #tpu.memory_space<vmem>>, vector<1x32x96xbf16>
    %459 = vector.shape_cast %458 : vector<1x32x96xbf16> to vector<32x96xbf16>
    %c0_184 = arith.constant 0 : index
    %c0_185 = arith.constant 0 : index
    %c0_186 = arith.constant 0 : index
    %460 = vector.load %arg21[%c0_184, %c0_185, %c0_186] : memref<2x1x96xf32, #tpu.memory_space<vmem>>, vector<1x1x96xf32>
    %461 = vector.shape_cast %460 : vector<1x1x96xf32> to vector<1x96xf32>
    %462 = vector.shape_cast %457 : vector<2x8x32xf32> to vector<16x32xf32>
    %463 = arith.truncf %462 : vector<16x32xf32> to vector<16x32xbf16>
    %cst_187 = arith.constant dense<0.000000e+00> : vector<16x96xf32>
    %464 = tpu.matmul %463, %459, %cst_187 {dimension_numbers = #tpu.dot_dimension_numbers<[1], [0], [0], [1], [0, 0, 1, 1], [], []>} : vector<16x32xbf16>, vector<32x96xbf16>, vector<16x96xf32> -> vector<16x96xf32>
    %465 = vector.broadcast %461 : vector<1x96xf32> to vector<16x96xf32>
    %466 = arith.addf %464, %465 : vector<16x96xf32>
    %467 = vector.shape_cast %466 : vector<16x96xf32> to vector<2x8x96xf32>
    %468 = vector.extract_strided_slice %467 {offsets = [0, 0, 0], sizes = [2, 8, 32], strides = [1, 1, 1]} : vector<2x8x96xf32> to vector<2x8x32xf32>
    %469 = vector.extract_strided_slice %467 {offsets = [0, 0, 32], sizes = [2, 8, 32], strides = [1, 1, 1]} : vector<2x8x96xf32> to vector<2x8x32xf32>
    %470 = vector.extract_strided_slice %467 {offsets = [0, 0, 64], sizes = [2, 8, 32], strides = [1, 1, 1]} : vector<2x8x96xf32> to vector<2x8x32xf32>
    %cst_188 = arith.constant 0.000000e+00 : f32
    %471 = vector.broadcast %cst_188 : f32 to vector<2x8x8xf32>
    %472 = arith.cmpf ogt, %1, %471 : vector<2x8x8xf32>
    %473 = vector.extract_strided_slice %468 {offsets = [0, 0, 0], sizes = [2, 8, 8], strides = [1, 1, 1]} : vector<2x8x32xf32> to vector<2x8x8xf32>
    %474 = arith.truncf %473 : vector<2x8x8xf32> to vector<2x8x8xbf16>
    %475 = vector.extract_strided_slice %469 {offsets = [0, 0, 0], sizes = [2, 8, 8], strides = [1, 1, 1]} : vector<2x8x32xf32> to vector<2x8x8xf32>
    %476 = arith.truncf %475 : vector<2x8x8xf32> to vector<2x8x8xbf16>
    %477 = vector.extract_strided_slice %470 {offsets = [0, 0, 0], sizes = [2, 8, 8], strides = [1, 1, 1]} : vector<2x8x32xf32> to vector<2x8x8xf32>
    %478 = arith.truncf %477 : vector<2x8x8xf32> to vector<2x8x8xbf16>
    "tpu.trace_start"() <{level = 10 : i32, message = "bqd,bkd->bqk"}> : () -> ()
    %cst_189 = arith.constant dense<0.000000e+00> : vector<2x8x8xf32>
    %479 = tpu.matmul %474, %476, %cst_189 {dimension_numbers = #tpu.dot_dimension_numbers<[2], [2], [1], [1], [0, 0, 0, 1, 1, 1], [0], [0]>} : vector<2x8x8xbf16>, vector<2x8x8xbf16>, vector<2x8x8xf32> -> vector<2x8x8xf32>
    "tpu.trace_stop"() : () -> ()
    %cst_190 = arith.constant 0.353553385 : f32
    %480 = vector.broadcast %cst_190 : f32 to vector<2x8x8xf32>
    %481 = arith.mulf %479, %480 : vector<2x8x8xf32>
    %cst_191 = arith.constant -1.000000e+09 : f32
    %482 = vector.broadcast %cst_191 : f32 to vector<2x8x8xf32>
    %483 = arith.select %472, %481, %482 : vector<2x8x8xi1>, vector<2x8x8xf32>
    %cst_192 = arith.constant dense<0xFF800000> : vector<2x8xf32>
    %484 = vector.multi_reduction <maximumf>, %483, %cst_192 [2] : vector<2x8x8xf32> to vector<2x8xf32>
    %485 = vector.shape_cast %484 : vector<2x8xf32> to vector<2x8x1xf32>
    %486 = vector.broadcast %485 : vector<2x8x1xf32> to vector<2x8x8xf32>
    %487 = arith.subf %483, %486 : vector<2x8x8xf32>
    %488 = math.exp %487 : vector<2x8x8xf32>
    %cst_193 = arith.constant dense<0.000000e+00> : vector<2x8xf32>
    %489 = vector.multi_reduction <add>, %488, %cst_193 [2] : vector<2x8x8xf32> to vector<2x8xf32>
    %490 = vector.shape_cast %489 : vector<2x8xf32> to vector<2x8x1xf32>
    %491 = tpu.reciprocal %490 {approx = true} : vector<2x8x1xf32> -> vector<2x8x1xf32>
    %492 = vector.broadcast %491 : vector<2x8x1xf32> to vector<2x8x8xf32>
    %493 = arith.mulf %488, %492 : vector<2x8x8xf32>
    %494 = arith.truncf %493 : vector<2x8x8xf32> to vector<2x8x8xbf16>
    "tpu.trace_start"() <{level = 10 : i32, message = "bqk,bkd->bqd"}> : () -> ()
    %cst_194 = arith.constant dense<0.000000e+00> : vector<2x8x8xf32>
    %495 = tpu.matmul %494, %478, %cst_194 {dimension_numbers = #tpu.dot_dimension_numbers<[2], [1], [1], [2], [0, 0, 0, 1, 1, 2], [0], [0]>} : vector<2x8x8xbf16>, vector<2x8x8xbf16>, vector<2x8x8xf32> -> vector<2x8x8xf32>
    "tpu.trace_stop"() : () -> ()
    %496 = vector.extract_strided_slice %468 {offsets = [0, 0, 8], sizes = [2, 8, 8], strides = [1, 1, 1]} : vector<2x8x32xf32> to vector<2x8x8xf32>
    %497 = arith.truncf %496 : vector<2x8x8xf32> to vector<2x8x8xbf16>
    %498 = vector.extract_strided_slice %469 {offsets = [0, 0, 8], sizes = [2, 8, 8], strides = [1, 1, 1]} : vector<2x8x32xf32> to vector<2x8x8xf32>
    %499 = arith.truncf %498 : vector<2x8x8xf32> to vector<2x8x8xbf16>
    %500 = vector.extract_strided_slice %470 {offsets = [0, 0, 8], sizes = [2, 8, 8], strides = [1, 1, 1]} : vector<2x8x32xf32> to vector<2x8x8xf32>
    %501 = arith.truncf %500 : vector<2x8x8xf32> to vector<2x8x8xbf16>
    "tpu.trace_start"() <{level = 10 : i32, message = "bqd,bkd->bqk"}> : () -> ()
    %cst_195 = arith.constant dense<0.000000e+00> : vector<2x8x8xf32>
    %502 = tpu.matmul %497, %499, %cst_195 {dimension_numbers = #tpu.dot_dimension_numbers<[2], [2], [1], [1], [0, 0, 0, 1, 1, 1], [0], [0]>} : vector<2x8x8xbf16>, vector<2x8x8xbf16>, vector<2x8x8xf32> -> vector<2x8x8xf32>
    "tpu.trace_stop"() : () -> ()
    %cst_196 = arith.constant 0.353553385 : f32
    %503 = vector.broadcast %cst_196 : f32 to vector<2x8x8xf32>
    %504 = arith.mulf %502, %503 : vector<2x8x8xf32>
    %cst_197 = arith.constant -1.000000e+09 : f32
    %505 = vector.broadcast %cst_197 : f32 to vector<2x8x8xf32>
    %506 = arith.select %472, %504, %505 : vector<2x8x8xi1>, vector<2x8x8xf32>
    %cst_198 = arith.constant dense<0xFF800000> : vector<2x8xf32>
    %507 = vector.multi_reduction <maximumf>, %506, %cst_198 [2] : vector<2x8x8xf32> to vector<2x8xf32>
    %508 = vector.shape_cast %507 : vector<2x8xf32> to vector<2x8x1xf32>
    %509 = vector.broadcast %508 : vector<2x8x1xf32> to vector<2x8x8xf32>
    %510 = arith.subf %506, %509 : vector<2x8x8xf32>
    %511 = math.exp %510 : vector<2x8x8xf32>
    %cst_199 = arith.constant dense<0.000000e+00> : vector<2x8xf32>
    %512 = vector.multi_reduction <add>, %511, %cst_199 [2] : vector<2x8x8xf32> to vector<2x8xf32>
    %513 = vector.shape_cast %512 : vector<2x8xf32> to vector<2x8x1xf32>
    %514 = tpu.reciprocal %513 {approx = true} : vector<2x8x1xf32> -> vector<2x8x1xf32>
    %515 = vector.broadcast %514 : vector<2x8x1xf32> to vector<2x8x8xf32>
    %516 = arith.mulf %511, %515 : vector<2x8x8xf32>
    %517 = arith.truncf %516 : vector<2x8x8xf32> to vector<2x8x8xbf16>
    "tpu.trace_start"() <{level = 10 : i32, message = "bqk,bkd->bqd"}> : () -> ()
    %cst_200 = arith.constant dense<0.000000e+00> : vector<2x8x8xf32>
    %518 = tpu.matmul %517, %501, %cst_200 {dimension_numbers = #tpu.dot_dimension_numbers<[2], [1], [1], [2], [0, 0, 0, 1, 1, 2], [0], [0]>} : vector<2x8x8xbf16>, vector<2x8x8xbf16>, vector<2x8x8xf32> -> vector<2x8x8xf32>
    "tpu.trace_stop"() : () -> ()
    %519 = vector.extract_strided_slice %468 {offsets = [0, 0, 16], sizes = [2, 8, 8], strides = [1, 1, 1]} : vector<2x8x32xf32> to vector<2x8x8xf32>
    %520 = arith.truncf %519 : vector<2x8x8xf32> to vector<2x8x8xbf16>
    %521 = vector.extract_strided_slice %469 {offsets = [0, 0, 16], sizes = [2, 8, 8], strides = [1, 1, 1]} : vector<2x8x32xf32> to vector<2x8x8xf32>
    %522 = arith.truncf %521 : vector<2x8x8xf32> to vector<2x8x8xbf16>
    %523 = vector.extract_strided_slice %470 {offsets = [0, 0, 16], sizes = [2, 8, 8], strides = [1, 1, 1]} : vector<2x8x32xf32> to vector<2x8x8xf32>
    %524 = arith.truncf %523 : vector<2x8x8xf32> to vector<2x8x8xbf16>
    "tpu.trace_start"() <{level = 10 : i32, message = "bqd,bkd->bqk"}> : () -> ()
    %cst_201 = arith.constant dense<0.000000e+00> : vector<2x8x8xf32>
    %525 = tpu.matmul %520, %522, %cst_201 {dimension_numbers = #tpu.dot_dimension_numbers<[2], [2], [1], [1], [0, 0, 0, 1, 1, 1], [0], [0]>} : vector<2x8x8xbf16>, vector<2x8x8xbf16>, vector<2x8x8xf32> -> vector<2x8x8xf32>
    "tpu.trace_stop"() : () -> ()
    %cst_202 = arith.constant 0.353553385 : f32
    %526 = vector.broadcast %cst_202 : f32 to vector<2x8x8xf32>
    %527 = arith.mulf %525, %526 : vector<2x8x8xf32>
    %cst_203 = arith.constant -1.000000e+09 : f32
    %528 = vector.broadcast %cst_203 : f32 to vector<2x8x8xf32>
    %529 = arith.select %472, %527, %528 : vector<2x8x8xi1>, vector<2x8x8xf32>
    %cst_204 = arith.constant dense<0xFF800000> : vector<2x8xf32>
    %530 = vector.multi_reduction <maximumf>, %529, %cst_204 [2] : vector<2x8x8xf32> to vector<2x8xf32>
    %531 = vector.shape_cast %530 : vector<2x8xf32> to vector<2x8x1xf32>
    %532 = vector.broadcast %531 : vector<2x8x1xf32> to vector<2x8x8xf32>
    %533 = arith.subf %529, %532 : vector<2x8x8xf32>
    %534 = math.exp %533 : vector<2x8x8xf32>
    %cst_205 = arith.constant dense<0.000000e+00> : vector<2x8xf32>
    %535 = vector.multi_reduction <add>, %534, %cst_205 [2] : vector<2x8x8xf32> to vector<2x8xf32>
    %536 = vector.shape_cast %535 : vector<2x8xf32> to vector<2x8x1xf32>
    %537 = tpu.reciprocal %536 {approx = true} : vector<2x8x1xf32> -> vector<2x8x1xf32>
    %538 = vector.broadcast %537 : vector<2x8x1xf32> to vector<2x8x8xf32>
    %539 = arith.mulf %534, %538 : vector<2x8x8xf32>
    %540 = arith.truncf %539 : vector<2x8x8xf32> to vector<2x8x8xbf16>
    "tpu.trace_start"() <{level = 10 : i32, message = "bqk,bkd->bqd"}> : () -> ()
    %cst_206 = arith.constant dense<0.000000e+00> : vector<2x8x8xf32>
    %541 = tpu.matmul %540, %524, %cst_206 {dimension_numbers = #tpu.dot_dimension_numbers<[2], [1], [1], [2], [0, 0, 0, 1, 1, 2], [0], [0]>} : vector<2x8x8xbf16>, vector<2x8x8xbf16>, vector<2x8x8xf32> -> vector<2x8x8xf32>
    "tpu.trace_stop"() : () -> ()
    %542 = vector.extract_strided_slice %468 {offsets = [0, 0, 24], sizes = [2, 8, 8], strides = [1, 1, 1]} : vector<2x8x32xf32> to vector<2x8x8xf32>
    %543 = arith.truncf %542 : vector<2x8x8xf32> to vector<2x8x8xbf16>
    %544 = vector.extract_strided_slice %469 {offsets = [0, 0, 24], sizes = [2, 8, 8], strides = [1, 1, 1]} : vector<2x8x32xf32> to vector<2x8x8xf32>
    %545 = arith.truncf %544 : vector<2x8x8xf32> to vector<2x8x8xbf16>
    %546 = vector.extract_strided_slice %470 {offsets = [0, 0, 24], sizes = [2, 8, 8], strides = [1, 1, 1]} : vector<2x8x32xf32> to vector<2x8x8xf32>
    %547 = arith.truncf %546 : vector<2x8x8xf32> to vector<2x8x8xbf16>
    "tpu.trace_start"() <{level = 10 : i32, message = "bqd,bkd->bqk"}> : () -> ()
    %cst_207 = arith.constant dense<0.000000e+00> : vector<2x8x8xf32>
    %548 = tpu.matmul %543, %545, %cst_207 {dimension_numbers = #tpu.dot_dimension_numbers<[2], [2], [1], [1], [0, 0, 0, 1, 1, 1], [0], [0]>} : vector<2x8x8xbf16>, vector<2x8x8xbf16>, vector<2x8x8xf32> -> vector<2x8x8xf32>
    "tpu.trace_stop"() : () -> ()
    %cst_208 = arith.constant 0.353553385 : f32
    %549 = vector.broadcast %cst_208 : f32 to vector<2x8x8xf32>
    %550 = arith.mulf %548, %549 : vector<2x8x8xf32>
    %cst_209 = arith.constant -1.000000e+09 : f32
    %551 = vector.broadcast %cst_209 : f32 to vector<2x8x8xf32>
    %552 = arith.select %472, %550, %551 : vector<2x8x8xi1>, vector<2x8x8xf32>
    %cst_210 = arith.constant dense<0xFF800000> : vector<2x8xf32>
    %553 = vector.multi_reduction <maximumf>, %552, %cst_210 [2] : vector<2x8x8xf32> to vector<2x8xf32>
    %554 = vector.shape_cast %553 : vector<2x8xf32> to vector<2x8x1xf32>
    %555 = vector.broadcast %554 : vector<2x8x1xf32> to vector<2x8x8xf32>
    %556 = arith.subf %552, %555 : vector<2x8x8xf32>
    %557 = math.exp %556 : vector<2x8x8xf32>
    %cst_211 = arith.constant dense<0.000000e+00> : vector<2x8xf32>
    %558 = vector.multi_reduction <add>, %557, %cst_211 [2] : vector<2x8x8xf32> to vector<2x8xf32>
    %559 = vector.shape_cast %558 : vector<2x8xf32> to vector<2x8x1xf32>
    %560 = tpu.reciprocal %559 {approx = true} : vector<2x8x1xf32> -> vector<2x8x1xf32>
    %561 = vector.broadcast %560 : vector<2x8x1xf32> to vector<2x8x8xf32>
    %562 = arith.mulf %557, %561 : vector<2x8x8xf32>
    %563 = arith.truncf %562 : vector<2x8x8xf32> to vector<2x8x8xbf16>
    "tpu.trace_start"() <{level = 10 : i32, message = "bqk,bkd->bqd"}> : () -> ()
    %cst_212 = arith.constant dense<0.000000e+00> : vector<2x8x8xf32>
    %564 = tpu.matmul %563, %547, %cst_212 {dimension_numbers = #tpu.dot_dimension_numbers<[2], [1], [1], [2], [0, 0, 0, 1, 1, 2], [0], [0]>} : vector<2x8x8xbf16>, vector<2x8x8xbf16>, vector<2x8x8xf32> -> vector<2x8x8xf32>
    "tpu.trace_stop"() : () -> ()
    %565 = tpu.concatenate %495, %518, %541, %564 in 2 : vector<2x8x8xf32>, vector<2x8x8xf32>, vector<2x8x8xf32>, vector<2x8x8xf32> -> vector<2x8x32xf32>
    %c0_213 = arith.constant 0 : index
    %c0_214 = arith.constant 0 : index
    %c0_215 = arith.constant 0 : index
    %566 = vector.load %arg22[%c0_213, %c0_214, %c0_215] : memref<2x32x32xbf16, #tpu.memory_space<vmem>>, vector<1x32x32xbf16>
    %567 = vector.shape_cast %566 : vector<1x32x32xbf16> to vector<32x32xbf16>
    %c0_216 = arith.constant 0 : index
    %c0_217 = arith.constant 0 : index
    %c0_218 = arith.constant 0 : index
    %568 = vector.load %arg23[%c0_216, %c0_217, %c0_218] : memref<2x1x32xf32, #tpu.memory_space<vmem>>, vector<1x1x32xf32>
    %569 = vector.shape_cast %568 : vector<1x1x32xf32> to vector<1x32xf32>
    %570 = vector.shape_cast %565 : vector<2x8x32xf32> to vector<16x32xf32>
    %571 = arith.truncf %570 : vector<16x32xf32> to vector<16x32xbf16>
    %cst_219 = arith.constant dense<0.000000e+00> : vector<16x32xf32>
    %572 = tpu.matmul %571, %567, %cst_219 {dimension_numbers = #tpu.dot_dimension_numbers<[1], [0], [0], [1], [0, 0, 1, 1], [], []>} : vector<16x32xbf16>, vector<32x32xbf16>, vector<16x32xf32> -> vector<16x32xf32>
    %573 = vector.broadcast %569 : vector<1x32xf32> to vector<16x32xf32>
    %574 = arith.addf %572, %573 : vector<16x32xf32>
    %575 = vector.shape_cast %574 : vector<16x32xf32> to vector<2x8x32xf32>
    %576 = arith.addf %429, %575 : vector<2x8x32xf32>
    %c0_220 = arith.constant 0 : index
    %c0_221 = arith.constant 0 : index
    %c0_222 = arith.constant 0 : index
    %577 = vector.load %arg24[%c0_220, %c0_221, %c0_222] : memref<2x1x32xf32, #tpu.memory_space<vmem>>, vector<1x1x32xf32>
    %578 = vector.shape_cast %577 : vector<1x1x32xf32> to vector<1x32xf32>
    %c0_223 = arith.constant 0 : index
    %c0_224 = arith.constant 0 : index
    %c0_225 = arith.constant 0 : index
    %579 = vector.load %arg25[%c0_223, %c0_224, %c0_225] : memref<2x1x32xf32, #tpu.memory_space<vmem>>, vector<1x1x32xf32>
    %580 = vector.shape_cast %579 : vector<1x1x32xf32> to vector<1x32xf32>
    %581 = vector.shape_cast %578 : vector<1x32xf32> to vector<1x1x32xf32>
    %582 = vector.shape_cast %580 : vector<1x32xf32> to vector<1x1x32xf32>
    %cst_226 = arith.constant dense<0.000000e+00> : vector<2x8xf32>
    %583 = vector.multi_reduction <add>, %576, %cst_226 [2] : vector<2x8x32xf32> to vector<2x8xf32>
    %584 = vector.shape_cast %583 : vector<2x8xf32> to vector<2x8x1xf32>
    %cst_227 = arith.constant 3.200000e+01 : f32
    %585 = vector.broadcast %cst_227 : f32 to vector<2x8x1xf32>
    %586 = arith.divf %584, %585 : vector<2x8x1xf32>
    %587 = vector.broadcast %586 : vector<2x8x1xf32> to vector<2x8x32xf32>
    %588 = arith.subf %576, %587 : vector<2x8x32xf32>
    %589 = arith.mulf %588, %588 : vector<2x8x32xf32>
    %cst_228 = arith.constant dense<0.000000e+00> : vector<2x8xf32>
    %590 = vector.multi_reduction <add>, %589, %cst_228 [2] : vector<2x8x32xf32> to vector<2x8xf32>
    %591 = vector.shape_cast %590 : vector<2x8xf32> to vector<2x8x1xf32>
    %cst_229 = arith.constant 3.100000e+01 : f32
    %592 = vector.broadcast %cst_229 : f32 to vector<2x8x1xf32>
    %593 = arith.divf %591, %592 : vector<2x8x1xf32>
    %594 = math.sqrt %593 : vector<2x8x1xf32>
    %595 = vector.broadcast %586 : vector<2x8x1xf32> to vector<2x8x32xf32>
    %596 = arith.subf %576, %595 : vector<2x8x32xf32>
    %597 = vector.broadcast %581 : vector<1x1x32xf32> to vector<2x8x32xf32>
    %598 = arith.mulf %597, %596 : vector<2x8x32xf32>
    %cst_230 = arith.constant 9.99999997E-7 : f32
    %599 = vector.broadcast %cst_230 : f32 to vector<2x8x1xf32>
    %600 = arith.addf %594, %599 : vector<2x8x1xf32>
    %601 = vector.broadcast %600 : vector<2x8x1xf32> to vector<2x8x32xf32>
    %602 = arith.divf %598, %601 : vector<2x8x32xf32>
    %603 = vector.broadcast %582 : vector<1x1x32xf32> to vector<2x8x32xf32>
    %604 = arith.addf %602, %603 : vector<2x8x32xf32>
    %c0_231 = arith.constant 0 : index
    %c0_232 = arith.constant 0 : index
    %c0_233 = arith.constant 0 : index
    %605 = vector.load %arg26[%c0_231, %c0_232, %c0_233] : memref<2x32x32xbf16, #tpu.memory_space<vmem>>, vector<1x32x32xbf16>
    %606 = vector.shape_cast %605 : vector<1x32x32xbf16> to vector<32x32xbf16>
    %c0_234 = arith.constant 0 : index
    %c0_235 = arith.constant 0 : index
    %c0_236 = arith.constant 0 : index
    %607 = vector.load %arg27[%c0_234, %c0_235, %c0_236] : memref<2x1x32xf32, #tpu.memory_space<vmem>>, vector<1x1x32xf32>
    %608 = vector.shape_cast %607 : vector<1x1x32xf32> to vector<1x32xf32>
    %609 = vector.shape_cast %604 : vector<2x8x32xf32> to vector<16x32xf32>
    %610 = arith.truncf %609 : vector<16x32xf32> to vector<16x32xbf16>
    %cst_237 = arith.constant dense<0.000000e+00> : vector<16x32xf32>
    %611 = tpu.matmul %610, %606, %cst_237 {dimension_numbers = #tpu.dot_dimension_numbers<[1], [0], [0], [1], [0, 0, 1, 1], [], []>} : vector<16x32xbf16>, vector<32x32xbf16>, vector<16x32xf32> -> vector<16x32xf32>
    %612 = vector.broadcast %608 : vector<1x32xf32> to vector<16x32xf32>
    %613 = arith.addf %611, %612 : vector<16x32xf32>
    %614 = vector.shape_cast %613 : vector<16x32xf32> to vector<2x8x32xf32>
    %c0_238 = arith.constant 0 : index
    %c0_239 = arith.constant 0 : index
    %c0_240 = arith.constant 0 : index
    %615 = vector.load %arg28[%c0_238, %c0_239, %c0_240] : memref<2x32x64xbf16, #tpu.memory_space<vmem>>, vector<1x32x64xbf16>
    %616 = vector.shape_cast %615 : vector<1x32x64xbf16> to vector<32x64xbf16>
    %c0_241 = arith.constant 0 : index
    %c0_242 = arith.constant 0 : index
    %c0_243 = arith.constant 0 : index
    %617 = vector.load %arg29[%c0_241, %c0_242, %c0_243] : memref<2x1x64xf32, #tpu.memory_space<vmem>>, vector<1x1x64xf32>
    %618 = vector.shape_cast %617 : vector<1x1x64xf32> to vector<1x64xf32>
    %619 = vector.shape_cast %428 : vector<2x8x32xf32> to vector<16x32xf32>
    %620 = arith.truncf %619 : vector<16x32xf32> to vector<16x32xbf16>
    %cst_244 = arith.constant dense<0.000000e+00> : vector<16x64xf32>
    %621 = tpu.matmul %620, %616, %cst_244 {dimension_numbers = #tpu.dot_dimension_numbers<[1], [0], [0], [1], [0, 0, 1, 1], [], []>} : vector<16x32xbf16>, vector<32x64xbf16>, vector<16x64xf32> -> vector<16x64xf32>
    %622 = vector.broadcast %618 : vector<1x64xf32> to vector<16x64xf32>
    %623 = arith.addf %621, %622 : vector<16x64xf32>
    %624 = vector.shape_cast %623 : vector<16x64xf32> to vector<2x8x64xf32>
    %625 = vector.extract_strided_slice %624 {offsets = [0, 0, 0], sizes = [2, 8, 32], strides = [1, 1, 1]} : vector<2x8x64xf32> to vector<2x8x32xf32>
    %626 = vector.extract_strided_slice %624 {offsets = [0, 0, 32], sizes = [2, 8, 32], strides = [1, 1, 1]} : vector<2x8x64xf32> to vector<2x8x32xf32>
    %627 = vector.shape_cast %0 : vector<2x1x8xf32> to vector<2x1x8xf32>
    %628 = vector.broadcast %627 : vector<2x1x8xf32> to vector<2x8x8xf32>
    %cst_245 = arith.constant 0.000000e+00 : f32
    %629 = vector.broadcast %cst_245 : f32 to vector<2x8x8xf32>
    %630 = arith.cmpf ogt, %628, %629 : vector<2x8x8xf32>
    %631 = vector.extract_strided_slice %614 {offsets = [0, 0, 0], sizes = [2, 8, 8], strides = [1, 1, 1]} : vector<2x8x32xf32> to vector<2x8x8xf32>
    %632 = arith.truncf %631 : vector<2x8x8xf32> to vector<2x8x8xbf16>
    %633 = vector.extract_strided_slice %625 {offsets = [0, 0, 0], sizes = [2, 8, 8], strides = [1, 1, 1]} : vector<2x8x32xf32> to vector<2x8x8xf32>
    %634 = arith.truncf %633 : vector<2x8x8xf32> to vector<2x8x8xbf16>
    %635 = vector.extract_strided_slice %626 {offsets = [0, 0, 0], sizes = [2, 8, 8], strides = [1, 1, 1]} : vector<2x8x32xf32> to vector<2x8x8xf32>
    %636 = arith.truncf %635 : vector<2x8x8xf32> to vector<2x8x8xbf16>
    "tpu.trace_start"() <{level = 10 : i32, message = "bqd,bkd->bqk"}> : () -> ()
    %cst_246 = arith.constant dense<0.000000e+00> : vector<2x8x8xf32>
    %637 = tpu.matmul %632, %634, %cst_246 {dimension_numbers = #tpu.dot_dimension_numbers<[2], [2], [1], [1], [0, 0, 0, 1, 1, 1], [0], [0]>} : vector<2x8x8xbf16>, vector<2x8x8xbf16>, vector<2x8x8xf32> -> vector<2x8x8xf32>
    "tpu.trace_stop"() : () -> ()
    %cst_247 = arith.constant 0.353553385 : f32
    %638 = vector.broadcast %cst_247 : f32 to vector<2x8x8xf32>
    %639 = arith.mulf %637, %638 : vector<2x8x8xf32>
    %cst_248 = arith.constant -1.000000e+09 : f32
    %640 = vector.broadcast %cst_248 : f32 to vector<2x8x8xf32>
    %641 = arith.select %630, %639, %640 : vector<2x8x8xi1>, vector<2x8x8xf32>
    %cst_249 = arith.constant dense<0xFF800000> : vector<2x8xf32>
    %642 = vector.multi_reduction <maximumf>, %641, %cst_249 [2] : vector<2x8x8xf32> to vector<2x8xf32>
    %643 = vector.shape_cast %642 : vector<2x8xf32> to vector<2x8x1xf32>
    %644 = vector.broadcast %643 : vector<2x8x1xf32> to vector<2x8x8xf32>
    %645 = arith.subf %641, %644 : vector<2x8x8xf32>
    %646 = math.exp %645 : vector<2x8x8xf32>
    %cst_250 = arith.constant dense<0.000000e+00> : vector<2x8xf32>
    %647 = vector.multi_reduction <add>, %646, %cst_250 [2] : vector<2x8x8xf32> to vector<2x8xf32>
    %648 = vector.shape_cast %647 : vector<2x8xf32> to vector<2x8x1xf32>
    %649 = tpu.reciprocal %648 {approx = true} : vector<2x8x1xf32> -> vector<2x8x1xf32>
    %650 = vector.broadcast %649 : vector<2x8x1xf32> to vector<2x8x8xf32>
    %651 = arith.mulf %646, %650 : vector<2x8x8xf32>
    %652 = arith.truncf %651 : vector<2x8x8xf32> to vector<2x8x8xbf16>
    "tpu.trace_start"() <{level = 10 : i32, message = "bqk,bkd->bqd"}> : () -> ()
    %cst_251 = arith.constant dense<0.000000e+00> : vector<2x8x8xf32>
    %653 = tpu.matmul %652, %636, %cst_251 {dimension_numbers = #tpu.dot_dimension_numbers<[2], [1], [1], [2], [0, 0, 0, 1, 1, 2], [0], [0]>} : vector<2x8x8xbf16>, vector<2x8x8xbf16>, vector<2x8x8xf32> -> vector<2x8x8xf32>
    "tpu.trace_stop"() : () -> ()
    %654 = vector.extract_strided_slice %614 {offsets = [0, 0, 8], sizes = [2, 8, 8], strides = [1, 1, 1]} : vector<2x8x32xf32> to vector<2x8x8xf32>
    %655 = arith.truncf %654 : vector<2x8x8xf32> to vector<2x8x8xbf16>
    %656 = vector.extract_strided_slice %625 {offsets = [0, 0, 8], sizes = [2, 8, 8], strides = [1, 1, 1]} : vector<2x8x32xf32> to vector<2x8x8xf32>
    %657 = arith.truncf %656 : vector<2x8x8xf32> to vector<2x8x8xbf16>
    %658 = vector.extract_strided_slice %626 {offsets = [0, 0, 8], sizes = [2, 8, 8], strides = [1, 1, 1]} : vector<2x8x32xf32> to vector<2x8x8xf32>
    %659 = arith.truncf %658 : vector<2x8x8xf32> to vector<2x8x8xbf16>
    "tpu.trace_start"() <{level = 10 : i32, message = "bqd,bkd->bqk"}> : () -> ()
    %cst_252 = arith.constant dense<0.000000e+00> : vector<2x8x8xf32>
    %660 = tpu.matmul %655, %657, %cst_252 {dimension_numbers = #tpu.dot_dimension_numbers<[2], [2], [1], [1], [0, 0, 0, 1, 1, 1], [0], [0]>} : vector<2x8x8xbf16>, vector<2x8x8xbf16>, vector<2x8x8xf32> -> vector<2x8x8xf32>
    "tpu.trace_stop"() : () -> ()
    %cst_253 = arith.constant 0.353553385 : f32
    %661 = vector.broadcast %cst_253 : f32 to vector<2x8x8xf32>
    %662 = arith.mulf %660, %661 : vector<2x8x8xf32>
    %cst_254 = arith.constant -1.000000e+09 : f32
    %663 = vector.broadcast %cst_254 : f32 to vector<2x8x8xf32>
    %664 = arith.select %630, %662, %663 : vector<2x8x8xi1>, vector<2x8x8xf32>
    %cst_255 = arith.constant dense<0xFF800000> : vector<2x8xf32>
    %665 = vector.multi_reduction <maximumf>, %664, %cst_255 [2] : vector<2x8x8xf32> to vector<2x8xf32>
    %666 = vector.shape_cast %665 : vector<2x8xf32> to vector<2x8x1xf32>
    %667 = vector.broadcast %666 : vector<2x8x1xf32> to vector<2x8x8xf32>
    %668 = arith.subf %664, %667 : vector<2x8x8xf32>
    %669 = math.exp %668 : vector<2x8x8xf32>
    %cst_256 = arith.constant dense<0.000000e+00> : vector<2x8xf32>
    %670 = vector.multi_reduction <add>, %669, %cst_256 [2] : vector<2x8x8xf32> to vector<2x8xf32>
    %671 = vector.shape_cast %670 : vector<2x8xf32> to vector<2x8x1xf32>
    %672 = tpu.reciprocal %671 {approx = true} : vector<2x8x1xf32> -> vector<2x8x1xf32>
    %673 = vector.broadcast %672 : vector<2x8x1xf32> to vector<2x8x8xf32>
    %674 = arith.mulf %669, %673 : vector<2x8x8xf32>
    %675 = arith.truncf %674 : vector<2x8x8xf32> to vector<2x8x8xbf16>
    "tpu.trace_start"() <{level = 10 : i32, message = "bqk,bkd->bqd"}> : () -> ()
    %cst_257 = arith.constant dense<0.000000e+00> : vector<2x8x8xf32>
    %676 = tpu.matmul %675, %659, %cst_257 {dimension_numbers = #tpu.dot_dimension_numbers<[2], [1], [1], [2], [0, 0, 0, 1, 1, 2], [0], [0]>} : vector<2x8x8xbf16>, vector<2x8x8xbf16>, vector<2x8x8xf32> -> vector<2x8x8xf32>
    "tpu.trace_stop"() : () -> ()
    %677 = vector.extract_strided_slice %614 {offsets = [0, 0, 16], sizes = [2, 8, 8], strides = [1, 1, 1]} : vector<2x8x32xf32> to vector<2x8x8xf32>
    %678 = arith.truncf %677 : vector<2x8x8xf32> to vector<2x8x8xbf16>
    %679 = vector.extract_strided_slice %625 {offsets = [0, 0, 16], sizes = [2, 8, 8], strides = [1, 1, 1]} : vector<2x8x32xf32> to vector<2x8x8xf32>
    %680 = arith.truncf %679 : vector<2x8x8xf32> to vector<2x8x8xbf16>
    %681 = vector.extract_strided_slice %626 {offsets = [0, 0, 16], sizes = [2, 8, 8], strides = [1, 1, 1]} : vector<2x8x32xf32> to vector<2x8x8xf32>
    %682 = arith.truncf %681 : vector<2x8x8xf32> to vector<2x8x8xbf16>
    "tpu.trace_start"() <{level = 10 : i32, message = "bqd,bkd->bqk"}> : () -> ()
    %cst_258 = arith.constant dense<0.000000e+00> : vector<2x8x8xf32>
    %683 = tpu.matmul %678, %680, %cst_258 {dimension_numbers = #tpu.dot_dimension_numbers<[2], [2], [1], [1], [0, 0, 0, 1, 1, 1], [0], [0]>} : vector<2x8x8xbf16>, vector<2x8x8xbf16>, vector<2x8x8xf32> -> vector<2x8x8xf32>
    "tpu.trace_stop"() : () -> ()
    %cst_259 = arith.constant 0.353553385 : f32
    %684 = vector.broadcast %cst_259 : f32 to vector<2x8x8xf32>
    %685 = arith.mulf %683, %684 : vector<2x8x8xf32>
    %cst_260 = arith.constant -1.000000e+09 : f32
    %686 = vector.broadcast %cst_260 : f32 to vector<2x8x8xf32>
    %687 = arith.select %630, %685, %686 : vector<2x8x8xi1>, vector<2x8x8xf32>
    %cst_261 = arith.constant dense<0xFF800000> : vector<2x8xf32>
    %688 = vector.multi_reduction <maximumf>, %687, %cst_261 [2] : vector<2x8x8xf32> to vector<2x8xf32>
    %689 = vector.shape_cast %688 : vector<2x8xf32> to vector<2x8x1xf32>
    %690 = vector.broadcast %689 : vector<2x8x1xf32> to vector<2x8x8xf32>
    %691 = arith.subf %687, %690 : vector<2x8x8xf32>
    %692 = math.exp %691 : vector<2x8x8xf32>
    %cst_262 = arith.constant dense<0.000000e+00> : vector<2x8xf32>
    %693 = vector.multi_reduction <add>, %692, %cst_262 [2] : vector<2x8x8xf32> to vector<2x8xf32>
    %694 = vector.shape_cast %693 : vector<2x8xf32> to vector<2x8x1xf32>
    %695 = tpu.reciprocal %694 {approx = true} : vector<2x8x1xf32> -> vector<2x8x1xf32>
    %696 = vector.broadcast %695 : vector<2x8x1xf32> to vector<2x8x8xf32>
    %697 = arith.mulf %692, %696 : vector<2x8x8xf32>
    %698 = arith.truncf %697 : vector<2x8x8xf32> to vector<2x8x8xbf16>
    "tpu.trace_start"() <{level = 10 : i32, message = "bqk,bkd->bqd"}> : () -> ()
    %cst_263 = arith.constant dense<0.000000e+00> : vector<2x8x8xf32>
    %699 = tpu.matmul %698, %682, %cst_263 {dimension_numbers = #tpu.dot_dimension_numbers<[2], [1], [1], [2], [0, 0, 0, 1, 1, 2], [0], [0]>} : vector<2x8x8xbf16>, vector<2x8x8xbf16>, vector<2x8x8xf32> -> vector<2x8x8xf32>
    "tpu.trace_stop"() : () -> ()
    %700 = vector.extract_strided_slice %614 {offsets = [0, 0, 24], sizes = [2, 8, 8], strides = [1, 1, 1]} : vector<2x8x32xf32> to vector<2x8x8xf32>
    %701 = arith.truncf %700 : vector<2x8x8xf32> to vector<2x8x8xbf16>
    %702 = vector.extract_strided_slice %625 {offsets = [0, 0, 24], sizes = [2, 8, 8], strides = [1, 1, 1]} : vector<2x8x32xf32> to vector<2x8x8xf32>
    %703 = arith.truncf %702 : vector<2x8x8xf32> to vector<2x8x8xbf16>
    %704 = vector.extract_strided_slice %626 {offsets = [0, 0, 24], sizes = [2, 8, 8], strides = [1, 1, 1]} : vector<2x8x32xf32> to vector<2x8x8xf32>
    %705 = arith.truncf %704 : vector<2x8x8xf32> to vector<2x8x8xbf16>
    "tpu.trace_start"() <{level = 10 : i32, message = "bqd,bkd->bqk"}> : () -> ()
    %cst_264 = arith.constant dense<0.000000e+00> : vector<2x8x8xf32>
    %706 = tpu.matmul %701, %703, %cst_264 {dimension_numbers = #tpu.dot_dimension_numbers<[2], [2], [1], [1], [0, 0, 0, 1, 1, 1], [0], [0]>} : vector<2x8x8xbf16>, vector<2x8x8xbf16>, vector<2x8x8xf32> -> vector<2x8x8xf32>
    "tpu.trace_stop"() : () -> ()
    %cst_265 = arith.constant 0.353553385 : f32
    %707 = vector.broadcast %cst_265 : f32 to vector<2x8x8xf32>
    %708 = arith.mulf %706, %707 : vector<2x8x8xf32>
    %cst_266 = arith.constant -1.000000e+09 : f32
    %709 = vector.broadcast %cst_266 : f32 to vector<2x8x8xf32>
    %710 = arith.select %630, %708, %709 : vector<2x8x8xi1>, vector<2x8x8xf32>
    %cst_267 = arith.constant dense<0xFF800000> : vector<2x8xf32>
    %711 = vector.multi_reduction <maximumf>, %710, %cst_267 [2] : vector<2x8x8xf32> to vector<2x8xf32>
    %712 = vector.shape_cast %711 : vector<2x8xf32> to vector<2x8x1xf32>
    %713 = vector.broadcast %712 : vector<2x8x1xf32> to vector<2x8x8xf32>
    %714 = arith.subf %710, %713 : vector<2x8x8xf32>
    %715 = math.exp %714 : vector<2x8x8xf32>
    %cst_268 = arith.constant dense<0.000000e+00> : vector<2x8xf32>
    %716 = vector.multi_reduction <add>, %715, %cst_268 [2] : vector<2x8x8xf32> to vector<2x8xf32>
    %717 = vector.shape_cast %716 : vector<2x8xf32> to vector<2x8x1xf32>
    %718 = tpu.reciprocal %717 {approx = true} : vector<2x8x1xf32> -> vector<2x8x1xf32>
    %719 = vector.broadcast %718 : vector<2x8x1xf32> to vector<2x8x8xf32>
    %720 = arith.mulf %715, %719 : vector<2x8x8xf32>
    %721 = arith.truncf %720 : vector<2x8x8xf32> to vector<2x8x8xbf16>
    "tpu.trace_start"() <{level = 10 : i32, message = "bqk,bkd->bqd"}> : () -> ()
    %cst_269 = arith.constant dense<0.000000e+00> : vector<2x8x8xf32>
    %722 = tpu.matmul %721, %705, %cst_269 {dimension_numbers = #tpu.dot_dimension_numbers<[2], [1], [1], [2], [0, 0, 0, 1, 1, 2], [0], [0]>} : vector<2x8x8xbf16>, vector<2x8x8xbf16>, vector<2x8x8xf32> -> vector<2x8x8xf32>
    "tpu.trace_stop"() : () -> ()
    %723 = tpu.concatenate %653, %676, %699, %722 in 2 : vector<2x8x8xf32>, vector<2x8x8xf32>, vector<2x8x8xf32>, vector<2x8x8xf32> -> vector<2x8x32xf32>
    %c0_270 = arith.constant 0 : index
    %c0_271 = arith.constant 0 : index
    %c0_272 = arith.constant 0 : index
    %724 = vector.load %arg30[%c0_270, %c0_271, %c0_272] : memref<2x32x32xbf16, #tpu.memory_space<vmem>>, vector<1x32x32xbf16>
    %725 = vector.shape_cast %724 : vector<1x32x32xbf16> to vector<32x32xbf16>
    %c0_273 = arith.constant 0 : index
    %c0_274 = arith.constant 0 : index
    %c0_275 = arith.constant 0 : index
    %726 = vector.load %arg31[%c0_273, %c0_274, %c0_275] : memref<2x1x32xf32, #tpu.memory_space<vmem>>, vector<1x1x32xf32>
    %727 = vector.shape_cast %726 : vector<1x1x32xf32> to vector<1x32xf32>
    %728 = vector.shape_cast %723 : vector<2x8x32xf32> to vector<16x32xf32>
    %729 = arith.truncf %728 : vector<16x32xf32> to vector<16x32xbf16>
    %cst_276 = arith.constant dense<0.000000e+00> : vector<16x32xf32>
    %730 = tpu.matmul %729, %725, %cst_276 {dimension_numbers = #tpu.dot_dimension_numbers<[1], [0], [0], [1], [0, 0, 1, 1], [], []>} : vector<16x32xbf16>, vector<32x32xbf16>, vector<16x32xf32> -> vector<16x32xf32>
    %731 = vector.broadcast %727 : vector<1x32xf32> to vector<16x32xf32>
    %732 = arith.addf %730, %731 : vector<16x32xf32>
    %733 = vector.shape_cast %732 : vector<16x32xf32> to vector<2x8x32xf32>
    %734 = arith.addf %576, %733 : vector<2x8x32xf32>
    %c0_277 = arith.constant 0 : index
    %c0_278 = arith.constant 0 : index
    %c0_279 = arith.constant 0 : index
    %735 = vector.load %arg32[%c0_277, %c0_278, %c0_279] : memref<2x1x32xf32, #tpu.memory_space<vmem>>, vector<1x1x32xf32>
    %736 = vector.shape_cast %735 : vector<1x1x32xf32> to vector<1x32xf32>
    %c0_280 = arith.constant 0 : index
    %c0_281 = arith.constant 0 : index
    %c0_282 = arith.constant 0 : index
    %737 = vector.load %arg33[%c0_280, %c0_281, %c0_282] : memref<2x1x32xf32, #tpu.memory_space<vmem>>, vector<1x1x32xf32>
    %738 = vector.shape_cast %737 : vector<1x1x32xf32> to vector<1x32xf32>
    %739 = vector.shape_cast %736 : vector<1x32xf32> to vector<1x1x32xf32>
    %740 = vector.shape_cast %738 : vector<1x32xf32> to vector<1x1x32xf32>
    %cst_283 = arith.constant dense<0.000000e+00> : vector<2x8xf32>
    %741 = vector.multi_reduction <add>, %734, %cst_283 [2] : vector<2x8x32xf32> to vector<2x8xf32>
    %742 = vector.shape_cast %741 : vector<2x8xf32> to vector<2x8x1xf32>
    %cst_284 = arith.constant 3.200000e+01 : f32
    %743 = vector.broadcast %cst_284 : f32 to vector<2x8x1xf32>
    %744 = arith.divf %742, %743 : vector<2x8x1xf32>
    %745 = vector.broadcast %744 : vector<2x8x1xf32> to vector<2x8x32xf32>
    %746 = arith.subf %734, %745 : vector<2x8x32xf32>
    %747 = arith.mulf %746, %746 : vector<2x8x32xf32>
    %cst_285 = arith.constant dense<0.000000e+00> : vector<2x8xf32>
    %748 = vector.multi_reduction <add>, %747, %cst_285 [2] : vector<2x8x32xf32> to vector<2x8xf32>
    %749 = vector.shape_cast %748 : vector<2x8xf32> to vector<2x8x1xf32>
    %cst_286 = arith.constant 3.100000e+01 : f32
    %750 = vector.broadcast %cst_286 : f32 to vector<2x8x1xf32>
    %751 = arith.divf %749, %750 : vector<2x8x1xf32>
    %752 = math.sqrt %751 : vector<2x8x1xf32>
    %753 = vector.broadcast %744 : vector<2x8x1xf32> to vector<2x8x32xf32>
    %754 = arith.subf %734, %753 : vector<2x8x32xf32>
    %755 = vector.broadcast %739 : vector<1x1x32xf32> to vector<2x8x32xf32>
    %756 = arith.mulf %755, %754 : vector<2x8x32xf32>
    %cst_287 = arith.constant 9.99999997E-7 : f32
    %757 = vector.broadcast %cst_287 : f32 to vector<2x8x1xf32>
    %758 = arith.addf %752, %757 : vector<2x8x1xf32>
    %759 = vector.broadcast %758 : vector<2x8x1xf32> to vector<2x8x32xf32>
    %760 = arith.divf %756, %759 : vector<2x8x32xf32>
    %761 = vector.broadcast %740 : vector<1x1x32xf32> to vector<2x8x32xf32>
    %762 = arith.addf %760, %761 : vector<2x8x32xf32>
    %c0_288 = arith.constant 0 : index
    %c0_289 = arith.constant 0 : index
    %c0_290 = arith.constant 0 : index
    %763 = vector.load %arg34[%c0_288, %c0_289, %c0_290] : memref<2x32x64xbf16, #tpu.memory_space<vmem>>, vector<1x32x64xbf16>
    %764 = vector.shape_cast %763 : vector<1x32x64xbf16> to vector<32x64xbf16>
    %c0_291 = arith.constant 0 : index
    %c0_292 = arith.constant 0 : index
    %c0_293 = arith.constant 0 : index
    %765 = vector.load %arg35[%c0_291, %c0_292, %c0_293] : memref<2x1x64xf32, #tpu.memory_space<vmem>>, vector<1x1x64xf32>
    %766 = vector.shape_cast %765 : vector<1x1x64xf32> to vector<1x64xf32>
    %767 = vector.shape_cast %762 : vector<2x8x32xf32> to vector<16x32xf32>
    %768 = arith.truncf %767 : vector<16x32xf32> to vector<16x32xbf16>
    %cst_294 = arith.constant dense<0.000000e+00> : vector<16x64xf32>
    %769 = tpu.matmul %768, %764, %cst_294 {dimension_numbers = #tpu.dot_dimension_numbers<[1], [0], [0], [1], [0, 0, 1, 1], [], []>} : vector<16x32xbf16>, vector<32x64xbf16>, vector<16x64xf32> -> vector<16x64xf32>
    %770 = vector.broadcast %766 : vector<1x64xf32> to vector<16x64xf32>
    %771 = arith.addf %769, %770 : vector<16x64xf32>
    %772 = vector.shape_cast %771 : vector<16x64xf32> to vector<2x8x64xf32>
    %cst_295 = arith.constant 0.000000e+00 : f32
    %773 = vector.broadcast %cst_295 : f32 to vector<2x8x64xf32>
    %774 = arith.maximumf %772, %773 : vector<2x8x64xf32>
    %c0_296 = arith.constant 0 : index
    %c0_297 = arith.constant 0 : index
    %c0_298 = arith.constant 0 : index
    %775 = vector.load %arg36[%c0_296, %c0_297, %c0_298] : memref<2x64x32xbf16, #tpu.memory_space<vmem>>, vector<1x64x32xbf16>
    %776 = vector.shape_cast %775 : vector<1x64x32xbf16> to vector<64x32xbf16>
    %c0_299 = arith.constant 0 : index
    %c0_300 = arith.constant 0 : index
    %c0_301 = arith.constant 0 : index
    %777 = vector.load %arg37[%c0_299, %c0_300, %c0_301] : memref<2x1x32xf32, #tpu.memory_space<vmem>>, vector<1x1x32xf32>
    %778 = vector.shape_cast %777 : vector<1x1x32xf32> to vector<1x32xf32>
    %779 = vector.shape_cast %774 : vector<2x8x64xf32> to vector<16x64xf32>
    %780 = arith.truncf %779 : vector<16x64xf32> to vector<16x64xbf16>
    %cst_302 = arith.constant dense<0.000000e+00> : vector<16x32xf32>
    %781 = tpu.matmul %780, %776, %cst_302 {dimension_numbers = #tpu.dot_dimension_numbers<[1], [0], [0], [1], [0, 0, 1, 1], [], []>} : vector<16x64xbf16>, vector<64x32xbf16>, vector<16x32xf32> -> vector<16x32xf32>
    %782 = vector.broadcast %778 : vector<1x32xf32> to vector<16x32xf32>
    %783 = arith.addf %781, %782 : vector<16x32xf32>
    %784 = vector.shape_cast %783 : vector<16x32xf32> to vector<2x8x32xf32>
    %785 = arith.addf %734, %784 : vector<2x8x32xf32>
    %c1_303 = arith.constant 1 : index
    %c0_304 = arith.constant 0 : index
    %c0_305 = arith.constant 0 : index
    %786 = vector.load %arg18[%c1_303, %c0_304, %c0_305] : memref<2x1x32xf32, #tpu.memory_space<vmem>>, vector<1x1x32xf32>
    %787 = vector.shape_cast %786 : vector<1x1x32xf32> to vector<1x32xf32>
    %c1_306 = arith.constant 1 : index
    %c0_307 = arith.constant 0 : index
    %c0_308 = arith.constant 0 : index
    %788 = vector.load %arg19[%c1_306, %c0_307, %c0_308] : memref<2x1x32xf32, #tpu.memory_space<vmem>>, vector<1x1x32xf32>
    %789 = vector.shape_cast %788 : vector<1x1x32xf32> to vector<1x32xf32>
    %790 = vector.shape_cast %787 : vector<1x32xf32> to vector<1x1x32xf32>
    %791 = vector.shape_cast %789 : vector<1x32xf32> to vector<1x1x32xf32>
    %cst_309 = arith.constant dense<0.000000e+00> : vector<2x8xf32>
    %792 = vector.multi_reduction <add>, %785, %cst_309 [2] : vector<2x8x32xf32> to vector<2x8xf32>
    %793 = vector.shape_cast %792 : vector<2x8xf32> to vector<2x8x1xf32>
    %cst_310 = arith.constant 3.200000e+01 : f32
    %794 = vector.broadcast %cst_310 : f32 to vector<2x8x1xf32>
    %795 = arith.divf %793, %794 : vector<2x8x1xf32>
    %796 = vector.broadcast %795 : vector<2x8x1xf32> to vector<2x8x32xf32>
    %797 = arith.subf %785, %796 : vector<2x8x32xf32>
    %798 = arith.mulf %797, %797 : vector<2x8x32xf32>
    %cst_311 = arith.constant dense<0.000000e+00> : vector<2x8xf32>
    %799 = vector.multi_reduction <add>, %798, %cst_311 [2] : vector<2x8x32xf32> to vector<2x8xf32>
    %800 = vector.shape_cast %799 : vector<2x8xf32> to vector<2x8x1xf32>
    %cst_312 = arith.constant 3.100000e+01 : f32
    %801 = vector.broadcast %cst_312 : f32 to vector<2x8x1xf32>
    %802 = arith.divf %800, %801 : vector<2x8x1xf32>
    %803 = math.sqrt %802 : vector<2x8x1xf32>
    %804 = vector.broadcast %795 : vector<2x8x1xf32> to vector<2x8x32xf32>
    %805 = arith.subf %785, %804 : vector<2x8x32xf32>
    %806 = vector.broadcast %790 : vector<1x1x32xf32> to vector<2x8x32xf32>
    %807 = arith.mulf %806, %805 : vector<2x8x32xf32>
    %cst_313 = arith.constant 9.99999997E-7 : f32
    %808 = vector.broadcast %cst_313 : f32 to vector<2x8x1xf32>
    %809 = arith.addf %803, %808 : vector<2x8x1xf32>
    %810 = vector.broadcast %809 : vector<2x8x1xf32> to vector<2x8x32xf32>
    %811 = arith.divf %807, %810 : vector<2x8x32xf32>
    %812 = vector.broadcast %791 : vector<1x1x32xf32> to vector<2x8x32xf32>
    %813 = arith.addf %811, %812 : vector<2x8x32xf32>
    %c1_314 = arith.constant 1 : index
    %c0_315 = arith.constant 0 : index
    %c0_316 = arith.constant 0 : index
    %814 = vector.load %arg20[%c1_314, %c0_315, %c0_316] : memref<2x32x96xbf16, #tpu.memory_space<vmem>>, vector<1x32x96xbf16>
    %815 = vector.shape_cast %814 : vector<1x32x96xbf16> to vector<32x96xbf16>
    %c1_317 = arith.constant 1 : index
    %c0_318 = arith.constant 0 : index
    %c0_319 = arith.constant 0 : index
    %816 = vector.load %arg21[%c1_317, %c0_318, %c0_319] : memref<2x1x96xf32, #tpu.memory_space<vmem>>, vector<1x1x96xf32>
    %817 = vector.shape_cast %816 : vector<1x1x96xf32> to vector<1x96xf32>
    %818 = vector.shape_cast %813 : vector<2x8x32xf32> to vector<16x32xf32>
    %819 = arith.truncf %818 : vector<16x32xf32> to vector<16x32xbf16>
    %cst_320 = arith.constant dense<0.000000e+00> : vector<16x96xf32>
    %820 = tpu.matmul %819, %815, %cst_320 {dimension_numbers = #tpu.dot_dimension_numbers<[1], [0], [0], [1], [0, 0, 1, 1], [], []>} : vector<16x32xbf16>, vector<32x96xbf16>, vector<16x96xf32> -> vector<16x96xf32>
    %821 = vector.broadcast %817 : vector<1x96xf32> to vector<16x96xf32>
    %822 = arith.addf %820, %821 : vector<16x96xf32>
    %823 = vector.shape_cast %822 : vector<16x96xf32> to vector<2x8x96xf32>
    %824 = vector.extract_strided_slice %823 {offsets = [0, 0, 0], sizes = [2, 8, 32], strides = [1, 1, 1]} : vector<2x8x96xf32> to vector<2x8x32xf32>
    %825 = vector.extract_strided_slice %823 {offsets = [0, 0, 32], sizes = [2, 8, 32], strides = [1, 1, 1]} : vector<2x8x96xf32> to vector<2x8x32xf32>
    %826 = vector.extract_strided_slice %823 {offsets = [0, 0, 64], sizes = [2, 8, 32], strides = [1, 1, 1]} : vector<2x8x96xf32> to vector<2x8x32xf32>
    %cst_321 = arith.constant 0.000000e+00 : f32
    %827 = vector.broadcast %cst_321 : f32 to vector<2x8x8xf32>
    %828 = arith.cmpf ogt, %1, %827 : vector<2x8x8xf32>
    %829 = vector.extract_strided_slice %824 {offsets = [0, 0, 0], sizes = [2, 8, 8], strides = [1, 1, 1]} : vector<2x8x32xf32> to vector<2x8x8xf32>
    %830 = arith.truncf %829 : vector<2x8x8xf32> to vector<2x8x8xbf16>
    %831 = vector.extract_strided_slice %825 {offsets = [0, 0, 0], sizes = [2, 8, 8], strides = [1, 1, 1]} : vector<2x8x32xf32> to vector<2x8x8xf32>
    %832 = arith.truncf %831 : vector<2x8x8xf32> to vector<2x8x8xbf16>
    %833 = vector.extract_strided_slice %826 {offsets = [0, 0, 0], sizes = [2, 8, 8], strides = [1, 1, 1]} : vector<2x8x32xf32> to vector<2x8x8xf32>
    %834 = arith.truncf %833 : vector<2x8x8xf32> to vector<2x8x8xbf16>
    "tpu.trace_start"() <{level = 10 : i32, message = "bqd,bkd->bqk"}> : () -> ()
    %cst_322 = arith.constant dense<0.000000e+00> : vector<2x8x8xf32>
    %835 = tpu.matmul %830, %832, %cst_322 {dimension_numbers = #tpu.dot_dimension_numbers<[2], [2], [1], [1], [0, 0, 0, 1, 1, 1], [0], [0]>} : vector<2x8x8xbf16>, vector<2x8x8xbf16>, vector<2x8x8xf32> -> vector<2x8x8xf32>
    "tpu.trace_stop"() : () -> ()
    %cst_323 = arith.constant 0.353553385 : f32
    %836 = vector.broadcast %cst_323 : f32 to vector<2x8x8xf32>
    %837 = arith.mulf %835, %836 : vector<2x8x8xf32>
    %cst_324 = arith.constant -1.000000e+09 : f32
    %838 = vector.broadcast %cst_324 : f32 to vector<2x8x8xf32>
    %839 = arith.select %828, %837, %838 : vector<2x8x8xi1>, vector<2x8x8xf32>
    %cst_325 = arith.constant dense<0xFF800000> : vector<2x8xf32>
    %840 = vector.multi_reduction <maximumf>, %839, %cst_325 [2] : vector<2x8x8xf32> to vector<2x8xf32>
    %841 = vector.shape_cast %840 : vector<2x8xf32> to vector<2x8x1xf32>
    %842 = vector.broadcast %841 : vector<2x8x1xf32> to vector<2x8x8xf32>
    %843 = arith.subf %839, %842 : vector<2x8x8xf32>
    %844 = math.exp %843 : vector<2x8x8xf32>
    %cst_326 = arith.constant dense<0.000000e+00> : vector<2x8xf32>
    %845 = vector.multi_reduction <add>, %844, %cst_326 [2] : vector<2x8x8xf32> to vector<2x8xf32>
    %846 = vector.shape_cast %845 : vector<2x8xf32> to vector<2x8x1xf32>
    %847 = tpu.reciprocal %846 {approx = true} : vector<2x8x1xf32> -> vector<2x8x1xf32>
    %848 = vector.broadcast %847 : vector<2x8x1xf32> to vector<2x8x8xf32>
    %849 = arith.mulf %844, %848 : vector<2x8x8xf32>
    %850 = arith.truncf %849 : vector<2x8x8xf32> to vector<2x8x8xbf16>
    "tpu.trace_start"() <{level = 10 : i32, message = "bqk,bkd->bqd"}> : () -> ()
    %cst_327 = arith.constant dense<0.000000e+00> : vector<2x8x8xf32>
    %851 = tpu.matmul %850, %834, %cst_327 {dimension_numbers = #tpu.dot_dimension_numbers<[2], [1], [1], [2], [0, 0, 0, 1, 1, 2], [0], [0]>} : vector<2x8x8xbf16>, vector<2x8x8xbf16>, vector<2x8x8xf32> -> vector<2x8x8xf32>
    "tpu.trace_stop"() : () -> ()
    %852 = vector.extract_strided_slice %824 {offsets = [0, 0, 8], sizes = [2, 8, 8], strides = [1, 1, 1]} : vector<2x8x32xf32> to vector<2x8x8xf32>
    %853 = arith.truncf %852 : vector<2x8x8xf32> to vector<2x8x8xbf16>
    %854 = vector.extract_strided_slice %825 {offsets = [0, 0, 8], sizes = [2, 8, 8], strides = [1, 1, 1]} : vector<2x8x32xf32> to vector<2x8x8xf32>
    %855 = arith.truncf %854 : vector<2x8x8xf32> to vector<2x8x8xbf16>
    %856 = vector.extract_strided_slice %826 {offsets = [0, 0, 8], sizes = [2, 8, 8], strides = [1, 1, 1]} : vector<2x8x32xf32> to vector<2x8x8xf32>
    %857 = arith.truncf %856 : vector<2x8x8xf32> to vector<2x8x8xbf16>
    "tpu.trace_start"() <{level = 10 : i32, message = "bqd,bkd->bqk"}> : () -> ()
    %cst_328 = arith.constant dense<0.000000e+00> : vector<2x8x8xf32>
    %858 = tpu.matmul %853, %855, %cst_328 {dimension_numbers = #tpu.dot_dimension_numbers<[2], [2], [1], [1], [0, 0, 0, 1, 1, 1], [0], [0]>} : vector<2x8x8xbf16>, vector<2x8x8xbf16>, vector<2x8x8xf32> -> vector<2x8x8xf32>
    "tpu.trace_stop"() : () -> ()
    %cst_329 = arith.constant 0.353553385 : f32
    %859 = vector.broadcast %cst_329 : f32 to vector<2x8x8xf32>
    %860 = arith.mulf %858, %859 : vector<2x8x8xf32>
    %cst_330 = arith.constant -1.000000e+09 : f32
    %861 = vector.broadcast %cst_330 : f32 to vector<2x8x8xf32>
    %862 = arith.select %828, %860, %861 : vector<2x8x8xi1>, vector<2x8x8xf32>
    %cst_331 = arith.constant dense<0xFF800000> : vector<2x8xf32>
    %863 = vector.multi_reduction <maximumf>, %862, %cst_331 [2] : vector<2x8x8xf32> to vector<2x8xf32>
    %864 = vector.shape_cast %863 : vector<2x8xf32> to vector<2x8x1xf32>
    %865 = vector.broadcast %864 : vector<2x8x1xf32> to vector<2x8x8xf32>
    %866 = arith.subf %862, %865 : vector<2x8x8xf32>
    %867 = math.exp %866 : vector<2x8x8xf32>
    %cst_332 = arith.constant dense<0.000000e+00> : vector<2x8xf32>
    %868 = vector.multi_reduction <add>, %867, %cst_332 [2] : vector<2x8x8xf32> to vector<2x8xf32>
    %869 = vector.shape_cast %868 : vector<2x8xf32> to vector<2x8x1xf32>
    %870 = tpu.reciprocal %869 {approx = true} : vector<2x8x1xf32> -> vector<2x8x1xf32>
    %871 = vector.broadcast %870 : vector<2x8x1xf32> to vector<2x8x8xf32>
    %872 = arith.mulf %867, %871 : vector<2x8x8xf32>
    %873 = arith.truncf %872 : vector<2x8x8xf32> to vector<2x8x8xbf16>
    "tpu.trace_start"() <{level = 10 : i32, message = "bqk,bkd->bqd"}> : () -> ()
    %cst_333 = arith.constant dense<0.000000e+00> : vector<2x8x8xf32>
    %874 = tpu.matmul %873, %857, %cst_333 {dimension_numbers = #tpu.dot_dimension_numbers<[2], [1], [1], [2], [0, 0, 0, 1, 1, 2], [0], [0]>} : vector<2x8x8xbf16>, vector<2x8x8xbf16>, vector<2x8x8xf32> -> vector<2x8x8xf32>
    "tpu.trace_stop"() : () -> ()
    %875 = vector.extract_strided_slice %824 {offsets = [0, 0, 16], sizes = [2, 8, 8], strides = [1, 1, 1]} : vector<2x8x32xf32> to vector<2x8x8xf32>
    %876 = arith.truncf %875 : vector<2x8x8xf32> to vector<2x8x8xbf16>
    %877 = vector.extract_strided_slice %825 {offsets = [0, 0, 16], sizes = [2, 8, 8], strides = [1, 1, 1]} : vector<2x8x32xf32> to vector<2x8x8xf32>
    %878 = arith.truncf %877 : vector<2x8x8xf32> to vector<2x8x8xbf16>
    %879 = vector.extract_strided_slice %826 {offsets = [0, 0, 16], sizes = [2, 8, 8], strides = [1, 1, 1]} : vector<2x8x32xf32> to vector<2x8x8xf32>
    %880 = arith.truncf %879 : vector<2x8x8xf32> to vector<2x8x8xbf16>
    "tpu.trace_start"() <{level = 10 : i32, message = "bqd,bkd->bqk"}> : () -> ()
    %cst_334 = arith.constant dense<0.000000e+00> : vector<2x8x8xf32>
    %881 = tpu.matmul %876, %878, %cst_334 {dimension_numbers = #tpu.dot_dimension_numbers<[2], [2], [1], [1], [0, 0, 0, 1, 1, 1], [0], [0]>} : vector<2x8x8xbf16>, vector<2x8x8xbf16>, vector<2x8x8xf32> -> vector<2x8x8xf32>
    "tpu.trace_stop"() : () -> ()
    %cst_335 = arith.constant 0.353553385 : f32
    %882 = vector.broadcast %cst_335 : f32 to vector<2x8x8xf32>
    %883 = arith.mulf %881, %882 : vector<2x8x8xf32>
    %cst_336 = arith.constant -1.000000e+09 : f32
    %884 = vector.broadcast %cst_336 : f32 to vector<2x8x8xf32>
    %885 = arith.select %828, %883, %884 : vector<2x8x8xi1>, vector<2x8x8xf32>
    %cst_337 = arith.constant dense<0xFF800000> : vector<2x8xf32>
    %886 = vector.multi_reduction <maximumf>, %885, %cst_337 [2] : vector<2x8x8xf32> to vector<2x8xf32>
    %887 = vector.shape_cast %886 : vector<2x8xf32> to vector<2x8x1xf32>
    %888 = vector.broadcast %887 : vector<2x8x1xf32> to vector<2x8x8xf32>
    %889 = arith.subf %885, %888 : vector<2x8x8xf32>
    %890 = math.exp %889 : vector<2x8x8xf32>
    %cst_338 = arith.constant dense<0.000000e+00> : vector<2x8xf32>
    %891 = vector.multi_reduction <add>, %890, %cst_338 [2] : vector<2x8x8xf32> to vector<2x8xf32>
    %892 = vector.shape_cast %891 : vector<2x8xf32> to vector<2x8x1xf32>
    %893 = tpu.reciprocal %892 {approx = true} : vector<2x8x1xf32> -> vector<2x8x1xf32>
    %894 = vector.broadcast %893 : vector<2x8x1xf32> to vector<2x8x8xf32>
    %895 = arith.mulf %890, %894 : vector<2x8x8xf32>
    %896 = arith.truncf %895 : vector<2x8x8xf32> to vector<2x8x8xbf16>
    "tpu.trace_start"() <{level = 10 : i32, message = "bqk,bkd->bqd"}> : () -> ()
    %cst_339 = arith.constant dense<0.000000e+00> : vector<2x8x8xf32>
    %897 = tpu.matmul %896, %880, %cst_339 {dimension_numbers = #tpu.dot_dimension_numbers<[2], [1], [1], [2], [0, 0, 0, 1, 1, 2], [0], [0]>} : vector<2x8x8xbf16>, vector<2x8x8xbf16>, vector<2x8x8xf32> -> vector<2x8x8xf32>
    "tpu.trace_stop"() : () -> ()
    %898 = vector.extract_strided_slice %824 {offsets = [0, 0, 24], sizes = [2, 8, 8], strides = [1, 1, 1]} : vector<2x8x32xf32> to vector<2x8x8xf32>
    %899 = arith.truncf %898 : vector<2x8x8xf32> to vector<2x8x8xbf16>
    %900 = vector.extract_strided_slice %825 {offsets = [0, 0, 24], sizes = [2, 8, 8], strides = [1, 1, 1]} : vector<2x8x32xf32> to vector<2x8x8xf32>
    %901 = arith.truncf %900 : vector<2x8x8xf32> to vector<2x8x8xbf16>
    %902 = vector.extract_strided_slice %826 {offsets = [0, 0, 24], sizes = [2, 8, 8], strides = [1, 1, 1]} : vector<2x8x32xf32> to vector<2x8x8xf32>
    %903 = arith.truncf %902 : vector<2x8x8xf32> to vector<2x8x8xbf16>
    "tpu.trace_start"() <{level = 10 : i32, message = "bqd,bkd->bqk"}> : () -> ()
    %cst_340 = arith.constant dense<0.000000e+00> : vector<2x8x8xf32>
    %904 = tpu.matmul %899, %901, %cst_340 {dimension_numbers = #tpu.dot_dimension_numbers<[2], [2], [1], [1], [0, 0, 0, 1, 1, 1], [0], [0]>} : vector<2x8x8xbf16>, vector<2x8x8xbf16>, vector<2x8x8xf32> -> vector<2x8x8xf32>
    "tpu.trace_stop"() : () -> ()
    %cst_341 = arith.constant 0.353553385 : f32
    %905 = vector.broadcast %cst_341 : f32 to vector<2x8x8xf32>
    %906 = arith.mulf %904, %905 : vector<2x8x8xf32>
    %cst_342 = arith.constant -1.000000e+09 : f32
    %907 = vector.broadcast %cst_342 : f32 to vector<2x8x8xf32>
    %908 = arith.select %828, %906, %907 : vector<2x8x8xi1>, vector<2x8x8xf32>
    %cst_343 = arith.constant dense<0xFF800000> : vector<2x8xf32>
    %909 = vector.multi_reduction <maximumf>, %908, %cst_343 [2] : vector<2x8x8xf32> to vector<2x8xf32>
    %910 = vector.shape_cast %909 : vector<2x8xf32> to vector<2x8x1xf32>
    %911 = vector.broadcast %910 : vector<2x8x1xf32> to vector<2x8x8xf32>
    %912 = arith.subf %908, %911 : vector<2x8x8xf32>
    %913 = math.exp %912 : vector<2x8x8xf32>
    %cst_344 = arith.constant dense<0.000000e+00> : vector<2x8xf32>
    %914 = vector.multi_reduction <add>, %913, %cst_344 [2] : vector<2x8x8xf32> to vector<2x8xf32>
    %915 = vector.shape_cast %914 : vector<2x8xf32> to vector<2x8x1xf32>
    %916 = tpu.reciprocal %915 {approx = true} : vector<2x8x1xf32> -> vector<2x8x1xf32>
    %917 = vector.broadcast %916 : vector<2x8x1xf32> to vector<2x8x8xf32>
    %918 = arith.mulf %913, %917 : vector<2x8x8xf32>
    %919 = arith.truncf %918 : vector<2x8x8xf32> to vector<2x8x8xbf16>
    "tpu.trace_start"() <{level = 10 : i32, message = "bqk,bkd->bqd"}> : () -> ()
    %cst_345 = arith.constant dense<0.000000e+00> : vector<2x8x8xf32>
    %920 = tpu.matmul %919, %903, %cst_345 {dimension_numbers = #tpu.dot_dimension_numbers<[2], [1], [1], [2], [0, 0, 0, 1, 1, 2], [0], [0]>} : vector<2x8x8xbf16>, vector<2x8x8xbf16>, vector<2x8x8xf32> -> vector<2x8x8xf32>
    "tpu.trace_stop"() : () -> ()
    %921 = tpu.concatenate %851, %874, %897, %920 in 2 : vector<2x8x8xf32>, vector<2x8x8xf32>, vector<2x8x8xf32>, vector<2x8x8xf32> -> vector<2x8x32xf32>
    %c1_346 = arith.constant 1 : index
    %c0_347 = arith.constant 0 : index
    %c0_348 = arith.constant 0 : index
    %922 = vector.load %arg22[%c1_346, %c0_347, %c0_348] : memref<2x32x32xbf16, #tpu.memory_space<vmem>>, vector<1x32x32xbf16>
    %923 = vector.shape_cast %922 : vector<1x32x32xbf16> to vector<32x32xbf16>
    %c1_349 = arith.constant 1 : index
    %c0_350 = arith.constant 0 : index
    %c0_351 = arith.constant 0 : index
    %924 = vector.load %arg23[%c1_349, %c0_350, %c0_351] : memref<2x1x32xf32, #tpu.memory_space<vmem>>, vector<1x1x32xf32>
    %925 = vector.shape_cast %924 : vector<1x1x32xf32> to vector<1x32xf32>
    %926 = vector.shape_cast %921 : vector<2x8x32xf32> to vector<16x32xf32>
    %927 = arith.truncf %926 : vector<16x32xf32> to vector<16x32xbf16>
    %cst_352 = arith.constant dense<0.000000e+00> : vector<16x32xf32>
    %928 = tpu.matmul %927, %923, %cst_352 {dimension_numbers = #tpu.dot_dimension_numbers<[1], [0], [0], [1], [0, 0, 1, 1], [], []>} : vector<16x32xbf16>, vector<32x32xbf16>, vector<16x32xf32> -> vector<16x32xf32>
    %929 = vector.broadcast %925 : vector<1x32xf32> to vector<16x32xf32>
    %930 = arith.addf %928, %929 : vector<16x32xf32>
    %931 = vector.shape_cast %930 : vector<16x32xf32> to vector<2x8x32xf32>
    %932 = arith.addf %785, %931 : vector<2x8x32xf32>
    %c1_353 = arith.constant 1 : index
    %c0_354 = arith.constant 0 : index
    %c0_355 = arith.constant 0 : index
    %933 = vector.load %arg24[%c1_353, %c0_354, %c0_355] : memref<2x1x32xf32, #tpu.memory_space<vmem>>, vector<1x1x32xf32>
    %934 = vector.shape_cast %933 : vector<1x1x32xf32> to vector<1x32xf32>
    %c1_356 = arith.constant 1 : index
    %c0_357 = arith.constant 0 : index
    %c0_358 = arith.constant 0 : index
    %935 = vector.load %arg25[%c1_356, %c0_357, %c0_358] : memref<2x1x32xf32, #tpu.memory_space<vmem>>, vector<1x1x32xf32>
    %936 = vector.shape_cast %935 : vector<1x1x32xf32> to vector<1x32xf32>
    %937 = vector.shape_cast %934 : vector<1x32xf32> to vector<1x1x32xf32>
    %938 = vector.shape_cast %936 : vector<1x32xf32> to vector<1x1x32xf32>
    %cst_359 = arith.constant dense<0.000000e+00> : vector<2x8xf32>
    %939 = vector.multi_reduction <add>, %932, %cst_359 [2] : vector<2x8x32xf32> to vector<2x8xf32>
    %940 = vector.shape_cast %939 : vector<2x8xf32> to vector<2x8x1xf32>
    %cst_360 = arith.constant 3.200000e+01 : f32
    %941 = vector.broadcast %cst_360 : f32 to vector<2x8x1xf32>
    %942 = arith.divf %940, %941 : vector<2x8x1xf32>
    %943 = vector.broadcast %942 : vector<2x8x1xf32> to vector<2x8x32xf32>
    %944 = arith.subf %932, %943 : vector<2x8x32xf32>
    %945 = arith.mulf %944, %944 : vector<2x8x32xf32>
    %cst_361 = arith.constant dense<0.000000e+00> : vector<2x8xf32>
    %946 = vector.multi_reduction <add>, %945, %cst_361 [2] : vector<2x8x32xf32> to vector<2x8xf32>
    %947 = vector.shape_cast %946 : vector<2x8xf32> to vector<2x8x1xf32>
    %cst_362 = arith.constant 3.100000e+01 : f32
    %948 = vector.broadcast %cst_362 : f32 to vector<2x8x1xf32>
    %949 = arith.divf %947, %948 : vector<2x8x1xf32>
    %950 = math.sqrt %949 : vector<2x8x1xf32>
    %951 = vector.broadcast %942 : vector<2x8x1xf32> to vector<2x8x32xf32>
    %952 = arith.subf %932, %951 : vector<2x8x32xf32>
    %953 = vector.broadcast %937 : vector<1x1x32xf32> to vector<2x8x32xf32>
    %954 = arith.mulf %953, %952 : vector<2x8x32xf32>
    %cst_363 = arith.constant 9.99999997E-7 : f32
    %955 = vector.broadcast %cst_363 : f32 to vector<2x8x1xf32>
    %956 = arith.addf %950, %955 : vector<2x8x1xf32>
    %957 = vector.broadcast %956 : vector<2x8x1xf32> to vector<2x8x32xf32>
    %958 = arith.divf %954, %957 : vector<2x8x32xf32>
    %959 = vector.broadcast %938 : vector<1x1x32xf32> to vector<2x8x32xf32>
    %960 = arith.addf %958, %959 : vector<2x8x32xf32>
    %c1_364 = arith.constant 1 : index
    %c0_365 = arith.constant 0 : index
    %c0_366 = arith.constant 0 : index
    %961 = vector.load %arg26[%c1_364, %c0_365, %c0_366] : memref<2x32x32xbf16, #tpu.memory_space<vmem>>, vector<1x32x32xbf16>
    %962 = vector.shape_cast %961 : vector<1x32x32xbf16> to vector<32x32xbf16>
    %c1_367 = arith.constant 1 : index
    %c0_368 = arith.constant 0 : index
    %c0_369 = arith.constant 0 : index
    %963 = vector.load %arg27[%c1_367, %c0_368, %c0_369] : memref<2x1x32xf32, #tpu.memory_space<vmem>>, vector<1x1x32xf32>
    %964 = vector.shape_cast %963 : vector<1x1x32xf32> to vector<1x32xf32>
    %965 = vector.shape_cast %960 : vector<2x8x32xf32> to vector<16x32xf32>
    %966 = arith.truncf %965 : vector<16x32xf32> to vector<16x32xbf16>
    %cst_370 = arith.constant dense<0.000000e+00> : vector<16x32xf32>
    %967 = tpu.matmul %966, %962, %cst_370 {dimension_numbers = #tpu.dot_dimension_numbers<[1], [0], [0], [1], [0, 0, 1, 1], [], []>} : vector<16x32xbf16>, vector<32x32xbf16>, vector<16x32xf32> -> vector<16x32xf32>
    %968 = vector.broadcast %964 : vector<1x32xf32> to vector<16x32xf32>
    %969 = arith.addf %967, %968 : vector<16x32xf32>
    %970 = vector.shape_cast %969 : vector<16x32xf32> to vector<2x8x32xf32>
    %c1_371 = arith.constant 1 : index
    %c0_372 = arith.constant 0 : index
    %c0_373 = arith.constant 0 : index
    %971 = vector.load %arg28[%c1_371, %c0_372, %c0_373] : memref<2x32x64xbf16, #tpu.memory_space<vmem>>, vector<1x32x64xbf16>
    %972 = vector.shape_cast %971 : vector<1x32x64xbf16> to vector<32x64xbf16>
    %c1_374 = arith.constant 1 : index
    %c0_375 = arith.constant 0 : index
    %c0_376 = arith.constant 0 : index
    %973 = vector.load %arg29[%c1_374, %c0_375, %c0_376] : memref<2x1x64xf32, #tpu.memory_space<vmem>>, vector<1x1x64xf32>
    %974 = vector.shape_cast %973 : vector<1x1x64xf32> to vector<1x64xf32>
    %975 = vector.shape_cast %428 : vector<2x8x32xf32> to vector<16x32xf32>
    %976 = arith.truncf %975 : vector<16x32xf32> to vector<16x32xbf16>
    %cst_377 = arith.constant dense<0.000000e+00> : vector<16x64xf32>
    %977 = tpu.matmul %976, %972, %cst_377 {dimension_numbers = #tpu.dot_dimension_numbers<[1], [0], [0], [1], [0, 0, 1, 1], [], []>} : vector<16x32xbf16>, vector<32x64xbf16>, vector<16x64xf32> -> vector<16x64xf32>
    %978 = vector.broadcast %974 : vector<1x64xf32> to vector<16x64xf32>
    %979 = arith.addf %977, %978 : vector<16x64xf32>
    %980 = vector.shape_cast %979 : vector<16x64xf32> to vector<2x8x64xf32>
    %981 = vector.extract_strided_slice %980 {offsets = [0, 0, 0], sizes = [2, 8, 32], strides = [1, 1, 1]} : vector<2x8x64xf32> to vector<2x8x32xf32>
    %982 = vector.extract_strided_slice %980 {offsets = [0, 0, 32], sizes = [2, 8, 32], strides = [1, 1, 1]} : vector<2x8x64xf32> to vector<2x8x32xf32>
    %983 = vector.shape_cast %0 : vector<2x1x8xf32> to vector<2x1x8xf32>
    %984 = vector.broadcast %983 : vector<2x1x8xf32> to vector<2x8x8xf32>
    %cst_378 = arith.constant 0.000000e+00 : f32
    %985 = vector.broadcast %cst_378 : f32 to vector<2x8x8xf32>
    %986 = arith.cmpf ogt, %984, %985 : vector<2x8x8xf32>
    %987 = vector.extract_strided_slice %970 {offsets = [0, 0, 0], sizes = [2, 8, 8], strides = [1, 1, 1]} : vector<2x8x32xf32> to vector<2x8x8xf32>
    %988 = arith.truncf %987 : vector<2x8x8xf32> to vector<2x8x8xbf16>
    %989 = vector.extract_strided_slice %981 {offsets = [0, 0, 0], sizes = [2, 8, 8], strides = [1, 1, 1]} : vector<2x8x32xf32> to vector<2x8x8xf32>
    %990 = arith.truncf %989 : vector<2x8x8xf32> to vector<2x8x8xbf16>
    %991 = vector.extract_strided_slice %982 {offsets = [0, 0, 0], sizes = [2, 8, 8], strides = [1, 1, 1]} : vector<2x8x32xf32> to vector<2x8x8xf32>
    %992 = arith.truncf %991 : vector<2x8x8xf32> to vector<2x8x8xbf16>
    "tpu.trace_start"() <{level = 10 : i32, message = "bqd,bkd->bqk"}> : () -> ()
    %cst_379 = arith.constant dense<0.000000e+00> : vector<2x8x8xf32>
    %993 = tpu.matmul %988, %990, %cst_379 {dimension_numbers = #tpu.dot_dimension_numbers<[2], [2], [1], [1], [0, 0, 0, 1, 1, 1], [0], [0]>} : vector<2x8x8xbf16>, vector<2x8x8xbf16>, vector<2x8x8xf32> -> vector<2x8x8xf32>
    "tpu.trace_stop"() : () -> ()
    %cst_380 = arith.constant 0.353553385 : f32
    %994 = vector.broadcast %cst_380 : f32 to vector<2x8x8xf32>
    %995 = arith.mulf %993, %994 : vector<2x8x8xf32>
    %cst_381 = arith.constant -1.000000e+09 : f32
    %996 = vector.broadcast %cst_381 : f32 to vector<2x8x8xf32>
    %997 = arith.select %986, %995, %996 : vector<2x8x8xi1>, vector<2x8x8xf32>
    %cst_382 = arith.constant dense<0xFF800000> : vector<2x8xf32>
    %998 = vector.multi_reduction <maximumf>, %997, %cst_382 [2] : vector<2x8x8xf32> to vector<2x8xf32>
    %999 = vector.shape_cast %998 : vector<2x8xf32> to vector<2x8x1xf32>
    %1000 = vector.broadcast %999 : vector<2x8x1xf32> to vector<2x8x8xf32>
    %1001 = arith.subf %997, %1000 : vector<2x8x8xf32>
    %1002 = math.exp %1001 : vector<2x8x8xf32>
    %cst_383 = arith.constant dense<0.000000e+00> : vector<2x8xf32>
    %1003 = vector.multi_reduction <add>, %1002, %cst_383 [2] : vector<2x8x8xf32> to vector<2x8xf32>
    %1004 = vector.shape_cast %1003 : vector<2x8xf32> to vector<2x8x1xf32>
    %1005 = tpu.reciprocal %1004 {approx = true} : vector<2x8x1xf32> -> vector<2x8x1xf32>
    %1006 = vector.broadcast %1005 : vector<2x8x1xf32> to vector<2x8x8xf32>
    %1007 = arith.mulf %1002, %1006 : vector<2x8x8xf32>
    %1008 = arith.truncf %1007 : vector<2x8x8xf32> to vector<2x8x8xbf16>
    "tpu.trace_start"() <{level = 10 : i32, message = "bqk,bkd->bqd"}> : () -> ()
    %cst_384 = arith.constant dense<0.000000e+00> : vector<2x8x8xf32>
    %1009 = tpu.matmul %1008, %992, %cst_384 {dimension_numbers = #tpu.dot_dimension_numbers<[2], [1], [1], [2], [0, 0, 0, 1, 1, 2], [0], [0]>} : vector<2x8x8xbf16>, vector<2x8x8xbf16>, vector<2x8x8xf32> -> vector<2x8x8xf32>
    "tpu.trace_stop"() : () -> ()
    %1010 = vector.extract_strided_slice %970 {offsets = [0, 0, 8], sizes = [2, 8, 8], strides = [1, 1, 1]} : vector<2x8x32xf32> to vector<2x8x8xf32>
    %1011 = arith.truncf %1010 : vector<2x8x8xf32> to vector<2x8x8xbf16>
    %1012 = vector.extract_strided_slice %981 {offsets = [0, 0, 8], sizes = [2, 8, 8], strides = [1, 1, 1]} : vector<2x8x32xf32> to vector<2x8x8xf32>
    %1013 = arith.truncf %1012 : vector<2x8x8xf32> to vector<2x8x8xbf16>
    %1014 = vector.extract_strided_slice %982 {offsets = [0, 0, 8], sizes = [2, 8, 8], strides = [1, 1, 1]} : vector<2x8x32xf32> to vector<2x8x8xf32>
    %1015 = arith.truncf %1014 : vector<2x8x8xf32> to vector<2x8x8xbf16>
    "tpu.trace_start"() <{level = 10 : i32, message = "bqd,bkd->bqk"}> : () -> ()
    %cst_385 = arith.constant dense<0.000000e+00> : vector<2x8x8xf32>
    %1016 = tpu.matmul %1011, %1013, %cst_385 {dimension_numbers = #tpu.dot_dimension_numbers<[2], [2], [1], [1], [0, 0, 0, 1, 1, 1], [0], [0]>} : vector<2x8x8xbf16>, vector<2x8x8xbf16>, vector<2x8x8xf32> -> vector<2x8x8xf32>
    "tpu.trace_stop"() : () -> ()
    %cst_386 = arith.constant 0.353553385 : f32
    %1017 = vector.broadcast %cst_386 : f32 to vector<2x8x8xf32>
    %1018 = arith.mulf %1016, %1017 : vector<2x8x8xf32>
    %cst_387 = arith.constant -1.000000e+09 : f32
    %1019 = vector.broadcast %cst_387 : f32 to vector<2x8x8xf32>
    %1020 = arith.select %986, %1018, %1019 : vector<2x8x8xi1>, vector<2x8x8xf32>
    %cst_388 = arith.constant dense<0xFF800000> : vector<2x8xf32>
    %1021 = vector.multi_reduction <maximumf>, %1020, %cst_388 [2] : vector<2x8x8xf32> to vector<2x8xf32>
    %1022 = vector.shape_cast %1021 : vector<2x8xf32> to vector<2x8x1xf32>
    %1023 = vector.broadcast %1022 : vector<2x8x1xf32> to vector<2x8x8xf32>
    %1024 = arith.subf %1020, %1023 : vector<2x8x8xf32>
    %1025 = math.exp %1024 : vector<2x8x8xf32>
    %cst_389 = arith.constant dense<0.000000e+00> : vector<2x8xf32>
    %1026 = vector.multi_reduction <add>, %1025, %cst_389 [2] : vector<2x8x8xf32> to vector<2x8xf32>
    %1027 = vector.shape_cast %1026 : vector<2x8xf32> to vector<2x8x1xf32>
    %1028 = tpu.reciprocal %1027 {approx = true} : vector<2x8x1xf32> -> vector<2x8x1xf32>
    %1029 = vector.broadcast %1028 : vector<2x8x1xf32> to vector<2x8x8xf32>
    %1030 = arith.mulf %1025, %1029 : vector<2x8x8xf32>
    %1031 = arith.truncf %1030 : vector<2x8x8xf32> to vector<2x8x8xbf16>
    "tpu.trace_start"() <{level = 10 : i32, message = "bqk,bkd->bqd"}> : () -> ()
    %cst_390 = arith.constant dense<0.000000e+00> : vector<2x8x8xf32>
    %1032 = tpu.matmul %1031, %1015, %cst_390 {dimension_numbers = #tpu.dot_dimension_numbers<[2], [1], [1], [2], [0, 0, 0, 1, 1, 2], [0], [0]>} : vector<2x8x8xbf16>, vector<2x8x8xbf16>, vector<2x8x8xf32> -> vector<2x8x8xf32>
    "tpu.trace_stop"() : () -> ()
    %1033 = vector.extract_strided_slice %970 {offsets = [0, 0, 16], sizes = [2, 8, 8], strides = [1, 1, 1]} : vector<2x8x32xf32> to vector<2x8x8xf32>
    %1034 = arith.truncf %1033 : vector<2x8x8xf32> to vector<2x8x8xbf16>
    %1035 = vector.extract_strided_slice %981 {offsets = [0, 0, 16], sizes = [2, 8, 8], strides = [1, 1, 1]} : vector<2x8x32xf32> to vector<2x8x8xf32>
    %1036 = arith.truncf %1035 : vector<2x8x8xf32> to vector<2x8x8xbf16>
    %1037 = vector.extract_strided_slice %982 {offsets = [0, 0, 16], sizes = [2, 8, 8], strides = [1, 1, 1]} : vector<2x8x32xf32> to vector<2x8x8xf32>
    %1038 = arith.truncf %1037 : vector<2x8x8xf32> to vector<2x8x8xbf16>
    "tpu.trace_start"() <{level = 10 : i32, message = "bqd,bkd->bqk"}> : () -> ()
    %cst_391 = arith.constant dense<0.000000e+00> : vector<2x8x8xf32>
    %1039 = tpu.matmul %1034, %1036, %cst_391 {dimension_numbers = #tpu.dot_dimension_numbers<[2], [2], [1], [1], [0, 0, 0, 1, 1, 1], [0], [0]>} : vector<2x8x8xbf16>, vector<2x8x8xbf16>, vector<2x8x8xf32> -> vector<2x8x8xf32>
    "tpu.trace_stop"() : () -> ()
    %cst_392 = arith.constant 0.353553385 : f32
    %1040 = vector.broadcast %cst_392 : f32 to vector<2x8x8xf32>
    %1041 = arith.mulf %1039, %1040 : vector<2x8x8xf32>
    %cst_393 = arith.constant -1.000000e+09 : f32
    %1042 = vector.broadcast %cst_393 : f32 to vector<2x8x8xf32>
    %1043 = arith.select %986, %1041, %1042 : vector<2x8x8xi1>, vector<2x8x8xf32>
    %cst_394 = arith.constant dense<0xFF800000> : vector<2x8xf32>
    %1044 = vector.multi_reduction <maximumf>, %1043, %cst_394 [2] : vector<2x8x8xf32> to vector<2x8xf32>
    %1045 = vector.shape_cast %1044 : vector<2x8xf32> to vector<2x8x1xf32>
    %1046 = vector.broadcast %1045 : vector<2x8x1xf32> to vector<2x8x8xf32>
    %1047 = arith.subf %1043, %1046 : vector<2x8x8xf32>
    %1048 = math.exp %1047 : vector<2x8x8xf32>
    %cst_395 = arith.constant dense<0.000000e+00> : vector<2x8xf32>
    %1049 = vector.multi_reduction <add>, %1048, %cst_395 [2] : vector<2x8x8xf32> to vector<2x8xf32>
    %1050 = vector.shape_cast %1049 : vector<2x8xf32> to vector<2x8x1xf32>
    %1051 = tpu.reciprocal %1050 {approx = true} : vector<2x8x1xf32> -> vector<2x8x1xf32>
    %1052 = vector.broadcast %1051 : vector<2x8x1xf32> to vector<2x8x8xf32>
    %1053 = arith.mulf %1048, %1052 : vector<2x8x8xf32>
    %1054 = arith.truncf %1053 : vector<2x8x8xf32> to vector<2x8x8xbf16>
    "tpu.trace_start"() <{level = 10 : i32, message = "bqk,bkd->bqd"}> : () -> ()
    %cst_396 = arith.constant dense<0.000000e+00> : vector<2x8x8xf32>
    %1055 = tpu.matmul %1054, %1038, %cst_396 {dimension_numbers = #tpu.dot_dimension_numbers<[2], [1], [1], [2], [0, 0, 0, 1, 1, 2], [0], [0]>} : vector<2x8x8xbf16>, vector<2x8x8xbf16>, vector<2x8x8xf32> -> vector<2x8x8xf32>
    "tpu.trace_stop"() : () -> ()
    %1056 = vector.extract_strided_slice %970 {offsets = [0, 0, 24], sizes = [2, 8, 8], strides = [1, 1, 1]} : vector<2x8x32xf32> to vector<2x8x8xf32>
    %1057 = arith.truncf %1056 : vector<2x8x8xf32> to vector<2x8x8xbf16>
    %1058 = vector.extract_strided_slice %981 {offsets = [0, 0, 24], sizes = [2, 8, 8], strides = [1, 1, 1]} : vector<2x8x32xf32> to vector<2x8x8xf32>
    %1059 = arith.truncf %1058 : vector<2x8x8xf32> to vector<2x8x8xbf16>
    %1060 = vector.extract_strided_slice %982 {offsets = [0, 0, 24], sizes = [2, 8, 8], strides = [1, 1, 1]} : vector<2x8x32xf32> to vector<2x8x8xf32>
    %1061 = arith.truncf %1060 : vector<2x8x8xf32> to vector<2x8x8xbf16>
    "tpu.trace_start"() <{level = 10 : i32, message = "bqd,bkd->bqk"}> : () -> ()
    %cst_397 = arith.constant dense<0.000000e+00> : vector<2x8x8xf32>
    %1062 = tpu.matmul %1057, %1059, %cst_397 {dimension_numbers = #tpu.dot_dimension_numbers<[2], [2], [1], [1], [0, 0, 0, 1, 1, 1], [0], [0]>} : vector<2x8x8xbf16>, vector<2x8x8xbf16>, vector<2x8x8xf32> -> vector<2x8x8xf32>
    "tpu.trace_stop"() : () -> ()
    %cst_398 = arith.constant 0.353553385 : f32
    %1063 = vector.broadcast %cst_398 : f32 to vector<2x8x8xf32>
    %1064 = arith.mulf %1062, %1063 : vector<2x8x8xf32>
    %cst_399 = arith.constant -1.000000e+09 : f32
    %1065 = vector.broadcast %cst_399 : f32 to vector<2x8x8xf32>
    %1066 = arith.select %986, %1064, %1065 : vector<2x8x8xi1>, vector<2x8x8xf32>
    %cst_400 = arith.constant dense<0xFF800000> : vector<2x8xf32>
    %1067 = vector.multi_reduction <maximumf>, %1066, %cst_400 [2] : vector<2x8x8xf32> to vector<2x8xf32>
    %1068 = vector.shape_cast %1067 : vector<2x8xf32> to vector<2x8x1xf32>
    %1069 = vector.broadcast %1068 : vector<2x8x1xf32> to vector<2x8x8xf32>
    %1070 = arith.subf %1066, %1069 : vector<2x8x8xf32>
    %1071 = math.exp %1070 : vector<2x8x8xf32>
    %cst_401 = arith.constant dense<0.000000e+00> : vector<2x8xf32>
    %1072 = vector.multi_reduction <add>, %1071, %cst_401 [2] : vector<2x8x8xf32> to vector<2x8xf32>
    %1073 = vector.shape_cast %1072 : vector<2x8xf32> to vector<2x8x1xf32>
    %1074 = tpu.reciprocal %1073 {approx = true} : vector<2x8x1xf32> -> vector<2x8x1xf32>
    %1075 = vector.broadcast %1074 : vector<2x8x1xf32> to vector<2x8x8xf32>
    %1076 = arith.mulf %1071, %1075 : vector<2x8x8xf32>
    %1077 = arith.truncf %1076 : vector<2x8x8xf32> to vector<2x8x8xbf16>
    "tpu.trace_start"() <{level = 10 : i32, message = "bqk,bkd->bqd"}> : () -> ()
    %cst_402 = arith.constant dense<0.000000e+00> : vector<2x8x8xf32>
    %1078 = tpu.matmul %1077, %1061, %cst_402 {dimension_numbers = #tpu.dot_dimension_numbers<[2], [1], [1], [2], [0, 0, 0, 1, 1, 2], [0], [0]>} : vector<2x8x8xbf16>, vector<2x8x8xbf16>, vector<2x8x8xf32> -> vector<2x8x8xf32>
    "tpu.trace_stop"() : () -> ()
    %1079 = tpu.concatenate %1009, %1032, %1055, %1078 in 2 : vector<2x8x8xf32>, vector<2x8x8xf32>, vector<2x8x8xf32>, vector<2x8x8xf32> -> vector<2x8x32xf32>
    %c1_403 = arith.constant 1 : index
    %c0_404 = arith.constant 0 : index
    %c0_405 = arith.constant 0 : index
    %1080 = vector.load %arg30[%c1_403, %c0_404, %c0_405] : memref<2x32x32xbf16, #tpu.memory_space<vmem>>, vector<1x32x32xbf16>
    %1081 = vector.shape_cast %1080 : vector<1x32x32xbf16> to vector<32x32xbf16>
    %c1_406 = arith.constant 1 : index
    %c0_407 = arith.constant 0 : index
    %c0_408 = arith.constant 0 : index
    %1082 = vector.load %arg31[%c1_406, %c0_407, %c0_408] : memref<2x1x32xf32, #tpu.memory_space<vmem>>, vector<1x1x32xf32>
    %1083 = vector.shape_cast %1082 : vector<1x1x32xf32> to vector<1x32xf32>
    %1084 = vector.shape_cast %1079 : vector<2x8x32xf32> to vector<16x32xf32>
    %1085 = arith.truncf %1084 : vector<16x32xf32> to vector<16x32xbf16>
    %cst_409 = arith.constant dense<0.000000e+00> : vector<16x32xf32>
    %1086 = tpu.matmul %1085, %1081, %cst_409 {dimension_numbers = #tpu.dot_dimension_numbers<[1], [0], [0], [1], [0, 0, 1, 1], [], []>} : vector<16x32xbf16>, vector<32x32xbf16>, vector<16x32xf32> -> vector<16x32xf32>
    %1087 = vector.broadcast %1083 : vector<1x32xf32> to vector<16x32xf32>
    %1088 = arith.addf %1086, %1087 : vector<16x32xf32>
    %1089 = vector.shape_cast %1088 : vector<16x32xf32> to vector<2x8x32xf32>
    %1090 = arith.addf %932, %1089 : vector<2x8x32xf32>
    %c1_410 = arith.constant 1 : index
    %c0_411 = arith.constant 0 : index
    %c0_412 = arith.constant 0 : index
    %1091 = vector.load %arg32[%c1_410, %c0_411, %c0_412] : memref<2x1x32xf32, #tpu.memory_space<vmem>>, vector<1x1x32xf32>
    %1092 = vector.shape_cast %1091 : vector<1x1x32xf32> to vector<1x32xf32>
    %c1_413 = arith.constant 1 : index
    %c0_414 = arith.constant 0 : index
    %c0_415 = arith.constant 0 : index
    %1093 = vector.load %arg33[%c1_413, %c0_414, %c0_415] : memref<2x1x32xf32, #tpu.memory_space<vmem>>, vector<1x1x32xf32>
    %1094 = vector.shape_cast %1093 : vector<1x1x32xf32> to vector<1x32xf32>
    %1095 = vector.shape_cast %1092 : vector<1x32xf32> to vector<1x1x32xf32>
    %1096 = vector.shape_cast %1094 : vector<1x32xf32> to vector<1x1x32xf32>
    %cst_416 = arith.constant dense<0.000000e+00> : vector<2x8xf32>
    %1097 = vector.multi_reduction <add>, %1090, %cst_416 [2] : vector<2x8x32xf32> to vector<2x8xf32>
    %1098 = vector.shape_cast %1097 : vector<2x8xf32> to vector<2x8x1xf32>
    %cst_417 = arith.constant 3.200000e+01 : f32
    %1099 = vector.broadcast %cst_417 : f32 to vector<2x8x1xf32>
    %1100 = arith.divf %1098, %1099 : vector<2x8x1xf32>
    %1101 = vector.broadcast %1100 : vector<2x8x1xf32> to vector<2x8x32xf32>
    %1102 = arith.subf %1090, %1101 : vector<2x8x32xf32>
    %1103 = arith.mulf %1102, %1102 : vector<2x8x32xf32>
    %cst_418 = arith.constant dense<0.000000e+00> : vector<2x8xf32>
    %1104 = vector.multi_reduction <add>, %1103, %cst_418 [2] : vector<2x8x32xf32> to vector<2x8xf32>
    %1105 = vector.shape_cast %1104 : vector<2x8xf32> to vector<2x8x1xf32>
    %cst_419 = arith.constant 3.100000e+01 : f32
    %1106 = vector.broadcast %cst_419 : f32 to vector<2x8x1xf32>
    %1107 = arith.divf %1105, %1106 : vector<2x8x1xf32>
    %1108 = math.sqrt %1107 : vector<2x8x1xf32>
    %1109 = vector.broadcast %1100 : vector<2x8x1xf32> to vector<2x8x32xf32>
    %1110 = arith.subf %1090, %1109 : vector<2x8x32xf32>
    %1111 = vector.broadcast %1095 : vector<1x1x32xf32> to vector<2x8x32xf32>
    %1112 = arith.mulf %1111, %1110 : vector<2x8x32xf32>
    %cst_420 = arith.constant 9.99999997E-7 : f32
    %1113 = vector.broadcast %cst_420 : f32 to vector<2x8x1xf32>
    %1114 = arith.addf %1108, %1113 : vector<2x8x1xf32>
    %1115 = vector.broadcast %1114 : vector<2x8x1xf32> to vector<2x8x32xf32>
    %1116 = arith.divf %1112, %1115 : vector<2x8x32xf32>
    %1117 = vector.broadcast %1096 : vector<1x1x32xf32> to vector<2x8x32xf32>
    %1118 = arith.addf %1116, %1117 : vector<2x8x32xf32>
    %c1_421 = arith.constant 1 : index
    %c0_422 = arith.constant 0 : index
    %c0_423 = arith.constant 0 : index
    %1119 = vector.load %arg34[%c1_421, %c0_422, %c0_423] : memref<2x32x64xbf16, #tpu.memory_space<vmem>>, vector<1x32x64xbf16>
    %1120 = vector.shape_cast %1119 : vector<1x32x64xbf16> to vector<32x64xbf16>
    %c1_424 = arith.constant 1 : index
    %c0_425 = arith.constant 0 : index
    %c0_426 = arith.constant 0 : index
    %1121 = vector.load %arg35[%c1_424, %c0_425, %c0_426] : memref<2x1x64xf32, #tpu.memory_space<vmem>>, vector<1x1x64xf32>
    %1122 = vector.shape_cast %1121 : vector<1x1x64xf32> to vector<1x64xf32>
    %1123 = vector.shape_cast %1118 : vector<2x8x32xf32> to vector<16x32xf32>
    %1124 = arith.truncf %1123 : vector<16x32xf32> to vector<16x32xbf16>
    %cst_427 = arith.constant dense<0.000000e+00> : vector<16x64xf32>
    %1125 = tpu.matmul %1124, %1120, %cst_427 {dimension_numbers = #tpu.dot_dimension_numbers<[1], [0], [0], [1], [0, 0, 1, 1], [], []>} : vector<16x32xbf16>, vector<32x64xbf16>, vector<16x64xf32> -> vector<16x64xf32>
    %1126 = vector.broadcast %1122 : vector<1x64xf32> to vector<16x64xf32>
    %1127 = arith.addf %1125, %1126 : vector<16x64xf32>
    %1128 = vector.shape_cast %1127 : vector<16x64xf32> to vector<2x8x64xf32>
    %cst_428 = arith.constant 0.000000e+00 : f32
    %1129 = vector.broadcast %cst_428 : f32 to vector<2x8x64xf32>
    %1130 = arith.maximumf %1128, %1129 : vector<2x8x64xf32>
    %c1_429 = arith.constant 1 : index
    %c0_430 = arith.constant 0 : index
    %c0_431 = arith.constant 0 : index
    %1131 = vector.load %arg36[%c1_429, %c0_430, %c0_431] : memref<2x64x32xbf16, #tpu.memory_space<vmem>>, vector<1x64x32xbf16>
    %1132 = vector.shape_cast %1131 : vector<1x64x32xbf16> to vector<64x32xbf16>
    %c1_432 = arith.constant 1 : index
    %c0_433 = arith.constant 0 : index
    %c0_434 = arith.constant 0 : index
    %1133 = vector.load %arg37[%c1_432, %c0_433, %c0_434] : memref<2x1x32xf32, #tpu.memory_space<vmem>>, vector<1x1x32xf32>
    %1134 = vector.shape_cast %1133 : vector<1x1x32xf32> to vector<1x32xf32>
    %1135 = vector.shape_cast %1130 : vector<2x8x64xf32> to vector<16x64xf32>
    %1136 = arith.truncf %1135 : vector<16x64xf32> to vector<16x64xbf16>
    %cst_435 = arith.constant dense<0.000000e+00> : vector<16x32xf32>
    %1137 = tpu.matmul %1136, %1132, %cst_435 {dimension_numbers = #tpu.dot_dimension_numbers<[1], [0], [0], [1], [0, 0, 1, 1], [], []>} : vector<16x64xbf16>, vector<64x32xbf16>, vector<16x32xf32> -> vector<16x32xf32>
    %1138 = vector.broadcast %1134 : vector<1x32xf32> to vector<16x32xf32>
    %1139 = arith.addf %1137, %1138 : vector<16x32xf32>
    %1140 = vector.shape_cast %1139 : vector<16x32xf32> to vector<2x8x32xf32>
    %1141 = arith.addf %1090, %1140 : vector<2x8x32xf32>
    %c0_436 = arith.constant 0 : index
    %c0_437 = arith.constant 0 : index
    %1142 = vector.load %arg38[%c0_436, %c0_437] : memref<1x32xf32, #tpu.memory_space<vmem>>, vector<1x32xf32>
    %c0_438 = arith.constant 0 : index
    %c0_439 = arith.constant 0 : index
    %1143 = vector.load %arg39[%c0_438, %c0_439] : memref<1x32xf32, #tpu.memory_space<vmem>>, vector<1x32xf32>
    %1144 = vector.shape_cast %1142 : vector<1x32xf32> to vector<1x1x32xf32>
    %1145 = vector.shape_cast %1143 : vector<1x32xf32> to vector<1x1x32xf32>
    %cst_440 = arith.constant dense<0.000000e+00> : vector<2x8xf32>
    %1146 = vector.multi_reduction <add>, %1141, %cst_440 [2] : vector<2x8x32xf32> to vector<2x8xf32>
    %1147 = vector.shape_cast %1146 : vector<2x8xf32> to vector<2x8x1xf32>
    %cst_441 = arith.constant 3.200000e+01 : f32
    %1148 = vector.broadcast %cst_441 : f32 to vector<2x8x1xf32>
    %1149 = arith.divf %1147, %1148 : vector<2x8x1xf32>
    %1150 = vector.broadcast %1149 : vector<2x8x1xf32> to vector<2x8x32xf32>
    %1151 = arith.subf %1141, %1150 : vector<2x8x32xf32>
    %1152 = arith.mulf %1151, %1151 : vector<2x8x32xf32>
    %cst_442 = arith.constant dense<0.000000e+00> : vector<2x8xf32>
    %1153 = vector.multi_reduction <add>, %1152, %cst_442 [2] : vector<2x8x32xf32> to vector<2x8xf32>
    %1154 = vector.shape_cast %1153 : vector<2x8xf32> to vector<2x8x1xf32>
    %cst_443 = arith.constant 3.100000e+01 : f32
    %1155 = vector.broadcast %cst_443 : f32 to vector<2x8x1xf32>
    %1156 = arith.divf %1154, %1155 : vector<2x8x1xf32>
    %1157 = math.sqrt %1156 : vector<2x8x1xf32>
    %1158 = vector.broadcast %1149 : vector<2x8x1xf32> to vector<2x8x32xf32>
    %1159 = arith.subf %1141, %1158 : vector<2x8x32xf32>
    %1160 = vector.broadcast %1144 : vector<1x1x32xf32> to vector<2x8x32xf32>
    %1161 = arith.mulf %1160, %1159 : vector<2x8x32xf32>
    %cst_444 = arith.constant 9.99999997E-7 : f32
    %1162 = vector.broadcast %cst_444 : f32 to vector<2x8x1xf32>
    %1163 = arith.addf %1157, %1162 : vector<2x8x1xf32>
    %1164 = vector.broadcast %1163 : vector<2x8x1xf32> to vector<2x8x32xf32>
    %1165 = arith.divf %1161, %1164 : vector<2x8x32xf32>
    %1166 = vector.broadcast %1145 : vector<1x1x32xf32> to vector<2x8x32xf32>
    %1167 = arith.addf %1165, %1166 : vector<2x8x32xf32>
    %c0_445 = arith.constant 0 : index
    %c0_446 = arith.constant 0 : index
    %c0_447 = arith.constant 0 : index
    %1168 = vector.load %arg40[%c0_445, %c0_446, %c0_447] : memref<2x8x32xf32, #tpu.memory_space<vmem>>, vector<2x8x32xf32>
    tpu.vector_store %arg40[%c0_445, %c0_446, %c0_447], %1167 {strides = array<i32>} : memref<2x8x32xf32, #tpu.memory_space<vmem>>, vector<2x8x32xf32>,
    return
  }
}

</mosaic_0001>

<bundles_post_ra>
// kernel: encoder_decoder_forward.1
= control target key start
LH: loop header
LB: loop body
LE: loop exit
PB: predicated region body
PF: predicated region fallthrough
CT: control target
= control target key end

     0   :  { %s9967_s6 = smov 1   ;;  %s9968_s10 = smov 2   ;;  %s11779_s0 = inlined_call_operand.smem [shape: u32[41], index: -1, kind: input, shape index: {}] }
   0x1   :  { %s10033_s5 = sld [smem:[%s11779_s0]]   ;;  %s9969_s14 = smov 3  }
   0x2   :  { %s10038_s9 = sld [smem:[%s11779_s0 + %s9967_s6]]   ;;  %s9970_s18 = smov 4  }
   0x3   :  { %s10043_s13 = sld [smem:[%s11779_s0 + %s9968_s10]]   ;;  %s9971_s22 = smov 5  }
   0x4   :  { %s10048_s17 = sld [smem:[%s11779_s0 + %s9969_s14]]   ;;  %s9972_s26 = smov 6  }
   0x5   :  { %s10053_s21 = sld [smem:[%s11779_s0 + %s9970_s18]]   ;;  %s9973_s30 = smov 7  }
   0x6   :  { %s10058_s25 = sld [smem:[%s11779_s0 + %s9971_s22]]   ;;  %s9974_s4 = smov 8  }
   0x7   :  { %s10063_s29 = sld [smem:[%s11779_s0 + %s9972_s26]]   ;;  %s9975_s10 = smov 9  }
   0x8   :  { %11813 = sst [smem:[#allocation5_spill]] %s10038_s9  ;;  %s9976_s15 = smov 10  }
   0x9   :  { %s10068_s3 = sld [smem:[%s11779_s0 + %s9973_s30]]   ;;  %s9977_s20 = smov 11  }
   0xa   :  { %11814 = sst [smem:[#allocation6_spill]] %s10048_s17  ;;  %s9978_s26 = smov 12  }
   0xb   :  { %s10073_s8 = sld [smem:[%s11779_s0 + %s9974_s4]]   ;;  %s9979_s1 = smov 13  }
   0xc   :  { %s10078_s14 = sld [smem:[%s11779_s0 + %s9975_s10]]   ;;  %s9980_s7 = smov 14  }
   0xd   :  { %s10083_s19 = sld [smem:[%s11779_s0 + %s9976_s15]]   ;;  %s9981_s15 = smov 15  }
   0xe   :  { %s10088_s24 = sld [smem:[%s11779_s0 + %s9977_s20]]   ;;  %s9982_s22 = smov 16  }
   0xf   :  { %s10093_s30 = sld [smem:[%s11779_s0 + %s9978_s26]]   ;;  %s9983_s28 = smov 17  }
  0x10   :  { %s10098_s6 = sld [smem:[%s11779_s0 + %s9979_s1]]  }
  0x11   :  { %s10103_s12 = sld [smem:[%s11779_s0 + %s9980_s7]]   ;;  %s9984_s7 = smov 18  }
  0x12   :  { %s10108_s20 = sld [smem:[%s11779_s0 + %s9981_s15]]   ;;  %s9985_s15 = smov 19  }
  0x13   :  { %s10113_s27 = sld [smem:[%s11779_s0 + %s9982_s22]]   ;;  %s9986_s22 = smov 20  }
  0x14   :  { %s10118_s4 = sld [smem:[%s11779_s0 + %s9983_s28]]   ;;  %s9987_s28 = smov 21  }
  0x15   :  { %s10123_s17 = sld [smem:[%s11779_s0 + %s9984_s7]]   ;;  %s9988_s7 = smov 22  }
  0x16   :  { %s10128_s9 = sld [smem:[%s11779_s0 + %s9985_s15]]   ;;  %s9989_s15 = smov 23  }
  0x19   :  { %11815 = sst [smem:[#allocation7_spill]] %s10113_s27 }
  0x1a   :  { %11816 = sst [smem:[#allocation8_spill]] %s10118_s4 }
  0x1b   :  { %11817 = sst [smem:[#allocation9_spill]] %s10123_s17 }
  0x1c   :  { %11818 = sst [smem:[#allocation10_spill]] %s10128_s9 }
  0x1d   :  { %s10133_s27 = sld [smem:[%s11779_s0 + %s9986_s22]]   ;;  %s9990_s22 = smov 24  }
  0x1e   :  { %s10138_s4 = sld [smem:[%s11779_s0 + %s9987_s28]]   ;;  %s9991_s28 = smov 25  }
  0x1f   :  { %s10143_s17 = sld [smem:[%s11779_s0 + %s9988_s7]]   ;;  %s9992_s7 = smov 26  }
  0x20   :  { %s10148_s9 = sld [smem:[%s11779_s0 + %s9989_s15]]   ;;  %s9993_s15 = smov 27  }
  0x23   :  { %11819 = sst [smem:[#allocation11_spill]] %s10133_s27 }
  0x24   :  { %11820 = sst [smem:[#allocation12_spill]] %s10138_s4 }
  0x25   :  { %11821 = sst [smem:[#allocation13_spill]] %s10143_s17 }
  0x26   :  { %11822 = sst [smem:[#allocation14_spill]] %s10148_s9 }
  0x27   :  { %s10153_s27 = sld [smem:[%s11779_s0 + %s9990_s22]]   ;;  %s9994_s22 = smov 28  }
  0x28   :  { %s10158_s4 = sld [smem:[%s11779_s0 + %s9991_s28]]   ;;  %s9995_s28 = smov 29  }
  0x29   :  { %s10163_s17 = sld [smem:[%s11779_s0 + %s9992_s7]]   ;;  %s9996_s7 = smov 30  }
  0x2a   :  { %s10168_s9 = sld [smem:[%s11779_s0 + %s9993_s15]]   ;;  %s9997_s15 = smov 31  }
  0x2d   :  { %11823 = sst [smem:[#allocation15_spill]] %s10153_s27 }
  0x2e   :  { %11824 = sst [smem:[#allocation16_spill]] %s10158_s4 }
  0x2f   :  { %11825 = sst [smem:[#allocation17_spill]] %s10163_s17 }
  0x30   :  { %11826 = sst [smem:[#allocation18_spill]] %s10168_s9 }
  0x31   :  { %s10173_s27 = sld [smem:[%s11779_s0 + %s9994_s22]]   ;;  %s9998_s22 = smov 32  }
  0x32   :  { %s10178_s4 = sld [smem:[%s11779_s0 + %s9995_s28]]   ;;  %s9999_s28 = smov 33  }
  0x33   :  { %s10183_s17 = sld [smem:[%s11779_s0 + %s9996_s7]]   ;;  %s10000_s7 = smov 34  }
  0x34   :  { %s10188_s9 = sld [smem:[%s11779_s0 + %s9997_s15]]   ;;  %s10001_s15 = smov 35  }
  0x37   :  { %11827 = sst [smem:[#allocation19_spill]] %s10173_s27 }
  0x38   :  { %11828 = sst [smem:[#allocation20_spill]] %s10178_s4 }
  0x39   :  { %11829 = sst [smem:[#allocation21_spill]] %s10183_s17 }
  0x3a   :  { %11830 = sst [smem:[#allocation22_spill]] %s10188_s9 }
  0x3b   :  { %s10193_s27 = sld [smem:[%s11779_s0 + %s9998_s22]]   ;;  %s10002_s22 = smov 36  }
  0x3c   :  { %s10198_s4 = sld [smem:[%s11779_s0 + %s9999_s28]]   ;;  %s10003_s28 = smov 37  }
  0x3d   :  { %s10203_s17 = sld [smem:[%s11779_s0 + %s10000_s7]]   ;;  %s10004_s7 = smov 38  }
  0x3e   :  { %s10208_s9 = sld [smem:[%s11779_s0 + %s10001_s15]]   ;;  %s10005_s15 = smov 39  }
  0x41   :  { %11831 = sst [smem:[#allocation23_spill]] %s10193_s27 }
  0x42   :  { %11832 = sst [smem:[#allocation24_spill]] %s10198_s4 }
  0x43   :  { %11833 = sst [smem:[#allocation25_spill]] %s10203_s17 }
  0x44   :  { %11834 = sst [smem:[#allocation26_spill]] %s10208_s9 }
  0x45   :  { %s10213_s27 = sld [smem:[%s11779_s0 + %s10002_s22]]   ;;  %s10006_s22 = smov 40  }
  0x46   :  { %s10218_s4 = sld [smem:[%s11779_s0 + %s10003_s28]]  }
  0x47   :  { %s10223_s17 = sld [smem:[%s11779_s0 + %s10004_s7]]  }
  0x48   :  { %s10228_s9 = sld [smem:[%s11779_s0 + %s10005_s15]]  }
  0x4b   :  { %11835 = sst [smem:[#allocation27_spill]] %s10213_s27 }
  0x4c   :  { %s10233_s27 = sld [smem:[%s11779_s0 + %s10006_s22]]  }
  0x4d   :  { %v172_v0 = vld [vmem:[%s10033_s5] sm:$0xff]  ;;  %vm176_vm0 = vcmask 261120   ;;  %v173_v1 = vld [vmem:[%s10033_s5 + $0x8] sm:$0xff] }
  0x4e   :  { %v177_v2 = vsel %vm176_vm0, %v172_v0, 0.0  ;;  %v180_v3 = vsel %vm176_vm0, %v173_v1, 0.0 }
  0x4f   :  { %178 = vadd.xlane.f32.xlu0 %v177_v2 }
  0x53   :  { %181 = vadd.xlane.f32.xlu0 %v180_v3 }
  0x54   :  { %86 = vsyncpa [#allocation3], 0  ;;  %v9599_v14 = vld [vmem:[%s10063_s29] sm:$0xff]   ;;  %v10007_v15 = vmov 0.0   ;;  %vm10008_vm1 = vmmov 0   ;;  %v9600_v16 = vld [vmem:[%s10063_s29 + $0x8] sm:$0xff]  }
  0x55   :  { %8683 = vmatprep.subr.bf16.mxu1 %v10007_v15  ;;  %8687 = vmatprep.mubr.msk.bf16.mxu1 %vm10008_vm1, %v10007_v15  ;;  %v8126_v33 = vld [vmem:[%s10053_s21] ss:$0 sm:$0xff]  ;;  %s10009_s0 = smov 96   ;;  %vm322_vm6 = vcmask 64512   ;;  %v10281_v58 = vld [vmem:[%s10043_s13 + $0x1] ss:$0 sm:$0xff] }
  0x56   :  { %8684 = vmatpush3.bf16.msra.mxu1 %v9599_v14  ;;  %8697 = vmatprep.subr.bf16.mxu0 %v10007_v15  ;;  %v8127_v39 = vld [vmem:[%s10058_s25] ss:$0 sm:$0xff]  ;;  %vm316_vm8 = vcmp.gt.f32.partialorder %v10281_v58, 0.0  ;;  %s10011_s28 = smov 88   ;;  %vm451_vm9 = vcmask 1043456   ;;  %s10012_s1 = smov 120  }
  0x57   :  { %8685 = vmatprep.subr.bf16.mxu1 %v10007_v15  ;;  %8699 = vmatprep.mubr.msk.bf16.mxu0 %vm10008_vm1, %v10007_v15  ;;  %v8128_v44 = vld [vmem:[%s10068_s3] ss:$0 sm:$0xff]  ;;  %s10013_s2 = smov 56   ;;  %s10014_s7 = smov 80   ;;  %vm1241_vm10 = vcmask 130048   ;;  %vm1244_vm11 = vcmask 195584  }
  0x58   :  { %v10278_v57 = vld [vmem:[%s10043_s13] ss:$0 sm:$0xff]  ;;  %s10010_s13 = smov 64   ;;  %s10015_s10 = smov 112  }
  0x59   :  { %vm315_vm7 = vcmp.gt.f32.partialorder %v10278_v57, 0.0  ;;  %s10016_s11 = smov 48   ;;  %s11811_s15 = smov 72  }
  0x5a   :  { %8686 = vmatpush3.bf16.msra.mxu1 %v9600_v16  ;;  %s11809_s16 = smov 104   ;;  %s11807_s18 = smov 40  }
  0x5b   :  { %8691 = vmatprep.subr.bf16.mxu1 %v10007_v15  ;;  %s11805_s22 = smov 8   ;;  %s11801_s23 = smov 16  }
  0x5c   :  { %s11803_s26 = smov 24  }
  0xdc   :  { %v179_v4 = vpop.xlane.xlu0 %178 }
  0xdd   :  { %v184_v5 = vmul.f32 0.03125, %v179_v4 }
  0xdf   :  { %v186_v6 = vsub.f32 %v172_v0, %v184_v5 }
  0xe0   :  { %v182_v7 = vpop.xlane.xlu0 %181 }
  0xe1   :  { %v185_v8 = vmul.f32 0.03125, %v182_v7  ;;  %v188_v9 = vmul.f32 %v186_v6, %v186_v6  ;;  %v219_v35 = vmul.f32 %v8126_v33, %v186_v6 }
  0xe3   :  { %v187_v10 = vsub.f32 %v173_v1, %v185_v8  ;;  %v190_v11 = vsel %vm176_vm0, %v188_v9, 0.0 }
  0xe4   :  { %191 = vadd.xlane.f32.xlu1 %v190_v11 }
  0xe5   :  { %v189_v12 = vmul.f32 %v187_v10, %v187_v10  ;;  %v220_v36 = vmul.f32 %v8126_v33, %v187_v10 }
  0xe7   :  { %v193_v13 = vsel %vm176_vm0, %v189_v12, 0.0 }
  0xe8   :  { %194 = vadd.xlane.f32.xlu1 %v193_v13 }
 0x171   :  { %v192_v17 = vpop.xlane.xlu1 %191 }
 0x172   :  { %v197_v18 = vmul.f32 0.032258064, %v192_v17 }
 0x174   :  { %9651 = vrsqrt.f32 %v197_v18  ;;  %vm201_vm2 = vcmp.eq.f32.partialorder %v197_v18, inf  ;;  %v204_v23 = vand.u32 2147483648, %v197_v18  ;;  %vm203_vm3 = vcmp.eq.f32.partialorder %v197_v18, 0.0 }
 0x175   :  { %v195_v19 = vpop.xlane.xlu1 %194 }
 0x176   :  { %v198_v20 = vmul.f32 0.032258064, %v195_v19 }
 0x178   :  { %9653 = vrsqrt.f32 %v198_v20  ;;  %vm208_vm4 = vcmp.eq.f32.partialorder %v198_v20, inf  ;;  %v211_v29 = vand.u32 2147483648, %v198_v20  ;;  %vm210_vm5 = vcmp.eq.f32.partialorder %v198_v20, 0.0 }
 0x17e   :  { %v9652_v21 = vpop.eup %9651 }
 0x17f   :  { %v200_v22 = vmul.f32 %v9652_v21, %v197_v18 }
 0x181   :  { %v202_v24 = vsel %vm201_vm2, %v197_v18, %v200_v22  ;;  %vm1485_vm2 = vcmask 523264  }
 0x182   :  { %v9654_v25 = vpop.eup %9653  ;;  %v205_v26 = vsel %vm203_vm3, %v204_v23, %v202_v24 }
 0x183   :  { %v221_v27 = vadd.f32 1e-06, %v205_v26  ;;  %v207_v28 = vmul.f32 %v9654_v25, %v198_v20 }
 0x185   :  { %v209_v30 = vsel %vm208_vm4, %v198_v20, %v207_v28  ;;  %9655 = vrcp.f32 %v221_v27 }
 0x186   :  { %v212_v31 = vsel %vm210_vm5, %v211_v29, %v209_v30 }
 0x187   :  { %v222_v32 = vadd.f32 1e-06, %v212_v31 }
 0x189   :  { %9657 = vrcp.f32 %v222_v32 }
 0x18f   :  { %v9656_v34 = vpop.eup %9655 }
 0x190   :  { %v224_v37 = vmul.f32 %v9656_v34, %v219_v35 }
 0x192   :  { %v233_v41 = vadd.f32 %v8127_v39, %v224_v37 }
 0x193   :  { %v9658_v38 = vpop.eup %9657 }
 0x194   :  { %v226_v40 = vmul.f32 %v9658_v38, %v220_v36 }
 0x196   :  { %v234_v42 = vadd.f32 %v8127_v39, %v226_v40 }
 0x198   :  { %v240_v43 = vpack.c.bf16 %v234_v42, %v233_v41 }
 0x19a   :  { %8688 = vmatmul.mubr.msk.bf16.vlgmr.msra.gmra.mrb[0].mxu1 %vm176_vm0, %v240_v43 }
 0x19b   :  { %8693 = vmatprep.mubr.msk.bf16.mxu1 %vm10008_vm1, %v10007_v15 }
 0x26d   :  { %v296_v45 = vpop.f32.mrb[0].mxu1 }
 0x26e   :  { %v297_v46 = vadd.f32 %v8128_v44, %v296_v45  ;;  %v8689_v47 = vpop.f32.mrb[1].mxu1 }
 0x26f   :  { %v299_v48 = vpop.f32.mrb[2].mxu1 }
 0x270   :  { %v10257_v49 = vpack.c.bf16 %v297_v46, %v297_v46  ;;  %v300_v50 = vadd.f32 %v8128_v44, %v299_v48  ;;  %v8690_v51 = vpop.f32.mrb[3].mxu1 }
 0x272   :  { %v10259_v52 = vpack.c.bf16 %v300_v50, %v300_v50  ;;  %320 = vrot.lane.b32.xlu0 %v10257_v49, %s10009_s0 }
 0x274   :  { %370 = vrot.lane.b32.xlu1 %v10259_v52, %s10009_s0 }
 0x2e4   :  { %v321_v53 = vpop.permute.xlu0 %320 }
 0x2e5   :  { %v327_v54 = vsel %vm322_vm6, %v321_v53, 0 }
 0x2e6   :  { %8692 = vmatpush3.bf16.xpose.msra.mxu1 %v327_v54  ;;  %v371_v55 = vpop.permute.xlu1 %370 }
 0x2e7   :  { %v376_v56 = vsel %vm322_vm6, %v371_v55, 0  ;;  %8703 = vmatprep.subr.bf16.mxu1 %v10007_v15 }
 0x2e8   :  { %8698 = vmatpush3.bf16.xpose.msra.mxu0 %v376_v56 }
 0x2e9   :  { %8709 = vmatprep.subr.bf16.mxu0 %v10007_v15 }
 0x2ed   :  { %8694 = vmatmul.mubr.msk.bf16.vlgmr.msra.gmra.mrb[4].mxu1 %vm322_vm6, %v10257_v49 }
 0x2ee   :  { %8705 = vmatprep.mubr.msk.bf16.mxu1 %vm10008_vm1, %v10007_v15 }
 0x2ef   :  { %8700 = vmatmul.mubr.msk.bf16.vlgmr.msra.gmra.mrb[0].mxu0 %vm322_vm6, %v10259_v52 }
 0x2f0   :  { %8711 = vmatprep.mubr.msk.bf16.mxu0 %vm10008_vm1, %v10007_v15 }
 0x3c0   :  { %v363_v59 = vpop.f32.mrb[4].mxu1 }
 0x3c1   :  { %v418_v60 = vmul.f32 0.35355338, %v363_v59  ;;  %v8695_v61 = vpop.f32.mrb[5].mxu1 }
 0x3c2   :  { %v366_v62 = vpop.f32.mrb[6].mxu1  ;;  %v412_v63 = vpop.f32.mrb[0].mxu0 }
 0x3c3   :  { %v419_v0 = vmul.f32 0.35355338, %v412_v63  ;;  %v8696_v1 = vpop.f32.mrb[7].mxu1  ;;  %v8701_v2 = vpop.f32.mrb[1].mxu0  ;;  %v420_v3 = vsel %vm315_vm7, %v418_v60, -1e+09 }
 0x3c4   :  { %v415_v4 = vpop.f32.mrb[2].mxu0  ;;  %v422_v5 = vsel %vm322_vm6, %v420_v3, -inf }
 0x3c5   :  { %v8702_v6 = vpop.f32.mrb[3].mxu0  ;;  %423 = vmax.xlane.f32.xlu1 %v422_v5  ;;  %v421_v7 = vsel %vm316_vm8, %v419_v0, -1e+09 }
 0x3c6   :  { %v425_v8 = vsel %vm322_vm6, %v421_v7, -inf }
 0x3c7   :  { %426 = vmax.xlane.f32.xlu0 %v425_v8 }
 0x3d6   :  { %495 = vrot.lane.b32.xlu1 %v10259_v52, %s10010_s13 }
 0x3da   :  { %545 = vrot.lane.b32.xlu1 %v10257_v49, %s10011_s28 }
 0x452   :  { %v424_v9 = vpop.xlane.xlu1 %423 }
 0x453   :  { %v428_v10 = vsub.f32 %v420_v3, %v424_v9 }
 0x454   :  { %v427_v11 = vpop.xlane.xlu0 %426 }
 0x455   :  { %v430_v12 = vmul.f32 1.442695, %v428_v10  ;;  %v429_v13 = vsub.f32 %v421_v7, %v427_v11 }
 0x456   :  { %v496_v14 = vpop.permute.xlu1 %495 }
 0x457   :  { %9659 = vpow2.f32 %v430_v12  ;;  %v432_v16 = vmul.f32 1.442695, %v429_v13  ;;  %v501_v17 = vsel %vm451_vm9, %v496_v14, 0 }
 0x458   :  { %8710 = vmatpush3.bf16.msra.mxu0 %v501_v17 }
 0x459   :  { %9661 = vpow2.f32 %v432_v16  ;;  %8721 = vmatprep.subr.bf16.mxu0 %v10007_v15 }
 0x45a   :  { %v546_v22 = vpop.permute.xlu1 %545 }
 0x45b   :  { %v551_v33 = vsel %vm322_vm6, %v546_v22, 0 }
 0x461   :  { %v9660_v18 = vpop.eup %9659 }
 0x462   :  { %v434_v19 = vsel %vm322_vm6, %v9660_v18, 0.0 }
 0x463   :  { %v9662_v20 = vpop.eup %9661  ;;  %435 = vadd.xlane.f32.xlu0 %v434_v19 }
 0x464   :  { %v437_v21 = vsel %vm322_vm6, %v9662_v20, 0.0 }
 0x465   :  { %438 = vadd.xlane.f32.xlu1 %v437_v21 }
 0x476   :  { %595 = vrot.lane.b32.xlu1 %v10259_v52, %s10011_s28 }
 0x479   :  { %446 = vrot.lane.b32.xlu0 %v10257_v49, %s10010_s13 }
 0x47a   :  { %593 = vrot.lane.b32.xlu1 %v10259_v52, %s10012_s1 }
 0x47d   :  { %543 = vrot.lane.b32.xlu0 %v10257_v49, %s10012_s1 }
 0x4f0   :  { %v436_v23 = vpop.xlane.xlu0 %435 }
 0x4f1   :  { %9663 = vrcp.f32 %v436_v23 }
 0x4f2   :  { %v439_v24 = vpop.xlane.xlu1 %438 }
 0x4f3   :  { %9665 = vrcp.f32 %v439_v24 }
 0x4f4   :  { %v447_v25 = vpop.permute.xlu0 %446 }
 0x4f5   :  { %v453_v26 = vsel %vm451_vm9, %v447_v25, 0 }
 0x4f6   :  { %8704 = vmatpush3.bf16.msra.mxu1 %v453_v26  ;;  %v596_v32 = vpop.permute.xlu1 %595 }
 0x4f7   :  { %8715 = vmatprep.subr.bf16.mxu1 %v10007_v15  ;;  %v601_v35 = vsel %vm322_vm6, %v596_v32, 0 }
 0x4f8   :  { %v544_v36 = vpop.permute.xlu0 %543 }
 0x4fa   :  { %v594_v37 = vpop.permute.xlu1 %593 }
 0x4fb   :  { %v9664_v27 = vpop.eup %9663 }
 0x4fc   :  { %v442_v28 = vmul.f32 %v9664_v27, %v9660_v18 }
 0x4fd   :  { %v9666_v29 = vpop.eup %9665 }
 0x4fe   :  { %v444_v30 = vpack.c.bf16 %v442_v28, %v442_v28  ;;  %v443_v31 = vmul.f32 %v9666_v29, %v9662_v20 }
 0x500   :  { %8706 = vmatmul.mubr.msk.bf16.vlgmr.msra.gmra.mrb[8].mxu1 %vm322_vm6, %v444_v30  ;;  %v445_v34 = vpack.c.bf16 %v443_v31, %v443_v31 }
 0x501   :  { %8716 = vmatpush3.bf16.xpose.msra.mxu1 %v551_v33  ;;  %8717 = vmatprep.mubr.msk.bf16.mxu1 %vm10008_vm1, %v10007_v15 }
 0x502   :  { %8712 = vmatmul.mubr.msk.bf16.vlgmr.msra.gmra.mrb[4].mxu0 %vm322_vm6, %v445_v34  ;;  %8727 = vmatprep.subr.bf16.mxu1 %v10007_v15 }
 0x503   :  { %8722 = vmatpush3.bf16.xpose.msra.mxu0 %v601_v35  ;;  %8723 = vmatprep.mubr.msk.bf16.mxu0 %vm10008_vm1, %v10007_v15 }
 0x504   :  { %8733 = vmatprep.subr.bf16.mxu0 %v10007_v15 }
 0x508   :  { %8718 = vmatmul.mubr.msk.bf16.vlgmr.msra.gmra.mrb[12].mxu1 %vm322_vm6, %v544_v36 }
 0x509   :  { %8729 = vmatprep.mubr.msk.bf16.mxu1 %vm10008_vm1, %v10007_v15 }
 0x50a   :  { %8724 = vmatmul.mubr.msk.bf16.vlgmr.msra.gmra.mrb[8].mxu0 %vm322_vm6, %v594_v37 }
 0x50b   :  { %8735 = vmatprep.mubr.msk.bf16.mxu0 %vm10008_vm1, %v10007_v15 }
 0x5d3   :  { %v10325_v38 = vpop.f32.mrb[8].mxu1 }
 0x5d4   :  { %v8707_v39 = vpop.f32.mrb[9].mxu1 }
 0x5d5   :  { %v492_v40 = vpop.f32.mrb[10].mxu1  ;;  %v10327_v41 = vpop.f32.mrb[4].mxu0 }
 0x5d6   :  { %v8708_v42 = vpop.f32.mrb[11].mxu1  ;;  %v8713_v43 = vpop.f32.mrb[5].mxu0 }
 0x5d7   :  { %v540_v44 = vpop.f32.mrb[6].mxu0 }
 0x5d8   :  { %v8714_v45 = vpop.f32.mrb[7].mxu0 }
 0x5db   :  { %v587_v46 = vpop.f32.mrb[12].mxu1 }
 0x5dc   :  { %v643_v47 = vmul.f32 0.35355338, %v587_v46  ;;  %v8719_v48 = vpop.f32.mrb[13].mxu1 }
 0x5dd   :  { %v590_v50 = vpop.f32.mrb[14].mxu1  ;;  %v637_v51 = vpop.f32.mrb[8].mxu0 }
 0x5de   :  { %v644_v53 = vmul.f32 0.35355338, %v637_v51  ;;  %v8720_v54 = vpop.f32.mrb[15].mxu1  ;;  %v8725_v55 = vpop.f32.mrb[9].mxu0  ;;  %v645_v56 = vsel %vm315_vm7, %v643_v47, -1e+09 }
 0x5df   :  { %v640_v59 = vpop.f32.mrb[10].mxu0  ;;  %v647_v60 = vsel %vm322_vm6, %v645_v56, -inf }
 0x5e0   :  { %648 = vmax.xlane.f32.xlu0 %v647_v60  ;;  %v8726_v61 = vpop.f32.mrb[11].mxu0  ;;  %v646_v62 = vsel %vm316_vm8, %v644_v53, -1e+09 }
 0x5e1   :  { %v650_v63 = vsel %vm322_vm6, %v646_v62, -inf }
 0x5e2   :  { %651 = vmax.xlane.f32.xlu1 %v650_v63 }
 0x5f3   :  { %719 = vrot.lane.b32.xlu1 %v10259_v52, %s10013_s2 }
 0x5f7   :  { %769 = vrot.lane.b32.xlu1 %v10257_v49, %s10014_s7 }
 0x5fb   :  { %819 = vrot.lane.b32.xlu1 %v10259_v52, %s10014_s7 }
 0x5ff   :  { %817 = vrot.lane.b32.xlu1 %v10259_v52, %s10015_s10 }
 0x66d   :  { %v649_v0 = vpop.xlane.xlu0 %648 }
 0x66e   :  { %v653_v1 = vsub.f32 %v645_v56, %v649_v0 }
 0x66f   :  { %v652_v2 = vpop.xlane.xlu1 %651 }
 0x670   :  { %v655_v3 = vmul.f32 1.442695, %v653_v1  ;;  %v654_v4 = vsub.f32 %v646_v62, %v652_v2 }
 0x672   :  { %9667 = vpow2.f32 %v655_v3  ;;  %v657_v5 = vmul.f32 1.442695, %v654_v4 }
 0x673   :  { %v720_v6 = vpop.permute.xlu1 %719 }
 0x674   :  { %9669 = vpow2.f32 %v657_v5  ;;  %v725_v7 = vsel %vm451_vm9, %v720_v6, 0 }
 0x675   :  { %8734 = vmatpush3.bf16.msra.mxu0 %v725_v7 }
 0x676   :  { %8745 = vmatprep.subr.bf16.mxu0 %v10007_v15 }
 0x677   :  { %v770_v18 = vpop.permute.xlu1 %769 }
 0x678   :  { %v775_v24 = vsel %vm322_vm6, %v770_v18, 0 }
 0x67b   :  { %v820_v23 = vpop.permute.xlu1 %819 }
 0x67c   :  { %v9668_v8 = vpop.eup %9667  ;;  %v825_v26 = vsel %vm322_vm6, %v820_v23, 0 }
 0x67d   :  { %v659_v9 = vsel %vm322_vm6, %v9668_v8, 0.0 }
 0x67e   :  { %v9670_v10 = vpop.eup %9669  ;;  %660 = vadd.xlane.f32.xlu0 %v659_v9 }
 0x67f   :  { %v662_v11 = vsel %vm322_vm6, %v9670_v10, 0.0  ;;  %v818_v28 = vpop.permute.xlu1 %817 }
 0x682   :  { %663 = vadd.xlane.f32.xlu0 %v662_v11 }
 0x698   :  { %671 = vrot.lane.b32.xlu0 %v10257_v49, %s10013_s2 }
 0x69c   :  { %767 = vrot.lane.b32.xlu0 %v10257_v49, %s10015_s10 }
 0x70b   :  { %v661_v12 = vpop.xlane.xlu0 %660 }
 0x70c   :  { %9671 = vrcp.f32 %v661_v12 }
 0x70f   :  { %v664_v13 = vpop.xlane.xlu0 %663 }
 0x710   :  { %9673 = vrcp.f32 %v664_v13 }
 0x713   :  { %v672_v14 = vpop.permute.xlu0 %671 }
 0x714   :  { %v677_v16 = vsel %vm451_vm9, %v672_v14, 0 }
 0x715   :  { %8728 = vmatpush3.bf16.msra.mxu1 %v677_v16 }
 0x716   :  { %v9672_v17 = vpop.eup %9671  ;;  %8739 = vmatprep.subr.bf16.mxu1 %v10007_v15 }
 0x717   :  { %v667_v19 = vmul.f32 %v9672_v17, %v9668_v8  ;;  %v768_v27 = vpop.permute.xlu0 %767 }
 0x719   :  { %v669_v20 = vpack.c.bf16 %v667_v19, %v667_v19 }
 0x71a   :  { %v9674_v21 = vpop.eup %9673 }
 0x71b   :  { %8730 = vmatmul.mubr.msk.bf16.vlgmr.msra.gmra.mrb[16].mxu1 %vm322_vm6, %v669_v20  ;;  %v668_v22 = vmul.f32 %v9674_v21, %v9670_v10 }
 0x71c   :  { %8741 = vmatprep.mubr.msk.bf16.mxu1 %vm10008_vm1, %v10007_v15 }
 0x71d   :  { %v670_v25 = vpack.c.bf16 %v668_v22, %v668_v22 }
 0x71e   :  { %8740 = vmatpush3.bf16.xpose.msra.mxu1 %v775_v24 }
 0x71f   :  { %8736 = vmatmul.mubr.msk.bf16.vlgmr.msra.gmra.mrb[12].mxu0 %vm322_vm6, %v670_v25  ;;  %8751 = vmatprep.subr.bf16.mxu1 %v10007_v15 }
 0x720   :  { %8746 = vmatpush3.bf16.xpose.msra.mxu0 %v825_v26  ;;  %8747 = vmatprep.mubr.msk.bf16.mxu0 %vm10008_vm1, %v10007_v15 }
 0x721   :  { %8757 = vmatprep.subr.bf16.mxu0 %v10007_v15 }
 0x725   :  { %8742 = vmatmul.mubr.msk.bf16.vlgmr.msra.gmra.mrb[20].mxu1 %vm322_vm6, %v768_v27 }
 0x726   :  { %8753 = vmatprep.mubr.msk.bf16.mxu1 %vm10008_vm1, %v10007_v15 }
 0x727   :  { %8748 = vmatmul.mubr.msk.bf16.vlgmr.msra.gmra.mrb[16].mxu0 %vm322_vm6, %v818_v28 }
 0x728   :  { %8759 = vmatprep.mubr.msk.bf16.mxu0 %vm10008_vm1, %v10007_v15 }
 0x7ee   :  { %v10369_v29 = vpop.f32.mrb[16].mxu1 }
 0x7ef   :  { %v8731_v30 = vpop.f32.mrb[17].mxu1 }
 0x7f0   :  { %v716_v31 = vpop.f32.mrb[18].mxu1 }
 0x7f1   :  { %v8732_v32 = vpop.f32.mrb[19].mxu1 }
 0x7f2   :  { %v10371_v33 = vpop.f32.mrb[12].mxu0 }
 0x7f3   :  { %v9509_v34 = vpack.i.bf16 %v10371_v33, %v10369_v29  ;;  %v8737_v35 = vpop.f32.mrb[13].mxu0 }
 0x7f4   :  { %v764_v36 = vpop.f32.mrb[14].mxu0 }
 0x7f5   :  { %v8738_v37 = vpop.f32.mrb[15].mxu0 }
 0x7f8   :  { %v811_v39 = vpop.f32.mrb[20].mxu1 }
 0x7f9   :  { %v867_v40 = vmul.f32 0.35355338, %v811_v39  ;;  %v8743_v42 = vpop.f32.mrb[21].mxu1 }
 0x7fa   :  { %v814_v43 = vpop.f32.mrb[22].mxu1  ;;  %v861_v44 = vpop.f32.mrb[16].mxu0 }
 0x7fb   :  { %v868_v45 = vmul.f32 0.35355338, %v861_v44  ;;  %v8744_v46 = vpop.f32.mrb[23].mxu1  ;;  %v8749_v47 = vpop.f32.mrb[17].mxu0  ;;  %v869_v48 = vsel %vm315_vm7, %v867_v40, -1e+09 }
 0x7fc   :  { %v864_v50 = vpop.f32.mrb[18].mxu0  ;;  %v871_v51 = vsel %vm322_vm6, %v869_v48, -inf }
 0x7fd   :  { %872 = vmax.xlane.f32.xlu0 %v871_v51  ;;  %v8750_v53 = vpop.f32.mrb[19].mxu0  ;;  %v870_v54 = vsel %vm316_vm8, %v868_v45, -1e+09 }
 0x7fe   :  { %v874_v55 = vsel %vm322_vm6, %v870_v54, -inf }
 0x7ff   :  { %875 = vmax.xlane.f32.xlu1 %v874_v55 }
 0x810   :  { %943 = vrot.lane.b32.xlu1 %v10259_v52, %s10016_s11 }
 0x814   :  { %993 = vrot.lane.b32.xlu1 %v10257_v49, %s11811_s15 }
 0x818   :  { %1043 = vrot.lane.b32.xlu1 %v10259_v52, %s11811_s15 }
 0x81c   :  { %1041 = vrot.lane.b32.xlu1 %v10259_v52, %s11809_s16 }
 0x88a   :  { %v873_v56 = vpop.xlane.xlu0 %872 }
 0x88b   :  { %v877_v59 = vsub.f32 %v869_v48, %v873_v56 }
 0x88c   :  { %v876_v60 = vpop.xlane.xlu1 %875 }
 0x88d   :  { %v879_v61 = vmul.f32 1.442695, %v877_v59  ;;  %v878_v62 = vsub.f32 %v870_v54, %v876_v60 }
 0x88f   :  { %9675 = vpow2.f32 %v879_v61  ;;  %v881_v63 = vmul.f32 1.442695, %v878_v62 }
 0x890   :  { %v944_v0 = vpop.permute.xlu1 %943 }
 0x891   :  { %9677 = vpow2.f32 %v881_v63  ;;  %v949_v1 = vsel %vm451_vm9, %v944_v0, 0 }
 0x892   :  { %8758 = vmatpush3.bf16.msra.mxu0 %v949_v1 }
 0x893   :  { %8769 = vmatprep.subr.bf16.mxu0 %v10007_v15 }
 0x894   :  { %v994_v11 = vpop.permute.xlu1 %993 }
 0x895   :  { %v999_v18 = vsel %vm322_vm6, %v994_v11, 0 }
 0x898   :  { %v1044_v17 = vpop.permute.xlu1 %1043 }
 0x899   :  { %v9676_v2 = vpop.eup %9675  ;;  %v1049_v20 = vsel %vm322_vm6, %v1044_v17, 0 }
 0x89a   :  { %v883_v3 = vsel %vm322_vm6, %v9676_v2, 0.0 }
 0x89b   :  { %v9678_v4 = vpop.eup %9677  ;;  %884 = vadd.xlane.f32.xlu0 %v883_v3 }
 0x89c   :  { %v886_v5 = vsel %vm322_vm6, %v9678_v4, 0.0  ;;  %v1042_v22 = vpop.permute.xlu1 %1041 }
 0x89f   :  { %887 = vadd.xlane.f32.xlu0 %v886_v5 }
 0x8b5   :  { %895 = vrot.lane.b32.xlu0 %v10257_v49, %s10016_s11 }
 0x8b9   :  { %991 = vrot.lane.b32.xlu0 %v10257_v49, %s11809_s16 }
 0x928   :  { %v885_v6 = vpop.xlane.xlu0 %884 }
 0x929   :  { %9679 = vrcp.f32 %v885_v6 }
 0x92c   :  { %v888_v7 = vpop.xlane.xlu0 %887 }
 0x92d   :  { %9681 = vrcp.f32 %v888_v7 }
 0x930   :  { %v896_v8 = vpop.permute.xlu0 %895 }
 0x931   :  { %v901_v9 = vsel %vm451_vm9, %v896_v8, 0  ;;  %v9601_v8 = vld [vmem:[%s10073_s8] sm:$0xff]  }
 0x932   :  { %8752 = vmatpush3.bf16.msra.mxu1 %v901_v9  ;;  %v9602_v9 = vld [vmem:[%s10073_s8 + $0x8] sm:$0xff]  }
 0x933   :  { %v9680_v10 = vpop.eup %9679  ;;  %8763 = vmatprep.subr.bf16.mxu1 %v10007_v15 }
 0x934   :  { %v891_v12 = vmul.f32 %v9680_v10, %v9676_v2  ;;  %v992_v21 = vpop.permute.xlu0 %991 }
 0x936   :  { %v893_v13 = vpack.c.bf16 %v891_v12, %v891_v12 }
 0x937   :  { %v9682_v14 = vpop.eup %9681 }
 0x938   :  { %8754 = vmatmul.mubr.msk.bf16.vlgmr.msra.gmra.mrb[24].mxu1 %vm322_vm6, %v893_v13  ;;  %v892_v16 = vmul.f32 %v9682_v14, %v9678_v4 }
 0x939   :  { %8765 = vmatprep.mubr.msk.bf16.mxu1 %vm10008_vm1, %v10007_v15 }
 0x93a   :  { %v894_v19 = vpack.c.bf16 %v892_v16, %v892_v16 }
 0x93b   :  { %8764 = vmatpush3.bf16.xpose.msra.mxu1 %v999_v18 }
 0x93c   :  { %8760 = vmatmul.mubr.msk.bf16.vlgmr.msra.gmra.mrb[20].mxu0 %vm322_vm6, %v894_v19  ;;  %8775 = vmatprep.subr.bf16.mxu1 %v10007_v15 }
 0x93d   :  { %8770 = vmatpush3.bf16.xpose.msra.mxu0 %v1049_v20  ;;  %8771 = vmatprep.mubr.msk.bf16.mxu0 %vm10008_vm1, %v10007_v15 }
 0x93e   :  { %8781 = vmatprep.subr.bf16.mxu0 %v10007_v15 }
 0x942   :  { %8766 = vmatmul.mubr.msk.bf16.vlgmr.msra.gmra.mrb[28].mxu1 %vm322_vm6, %v992_v21 }
 0x943   :  { %8777 = vmatprep.mubr.msk.bf16.mxu1 %vm10008_vm1, %v10007_v15 }
 0x944   :  { %8772 = vmatmul.mubr.msk.bf16.vlgmr.msra.gmra.mrb[24].mxu0 %vm322_vm6, %v1042_v22 }
 0x945   :  { %8783 = vmatprep.mubr.msk.bf16.mxu0 %vm10008_vm1, %v10007_v15 }
 0xa0b   :  { %v937_v23 = vpop.f32.mrb[24].mxu1 }
 0xa0c   :  { %v8755_v24 = vpop.f32.mrb[25].mxu1 }
 0xa0d   :  { %v940_v25 = vpop.f32.mrb[26].mxu1 }
 0xa0e   :  { %v8756_v26 = vpop.f32.mrb[27].mxu1 }
 0xa0f   :  { %v985_v27 = vpop.f32.mrb[20].mxu0 }
 0xa10   :  { %v9514_v28 = vpack.i.bf16 %v985_v27, %v937_v23  ;;  %v8761_v30 = vpop.f32.mrb[21].mxu0 }
 0xa11   :  { %v988_v31 = vpop.f32.mrb[22].mxu0 }
 0xa12   :  { %v8762_v32 = vpop.f32.mrb[23].mxu0 }
 0xa15   :  { %v1035_v35 = vpop.f32.mrb[28].mxu1 }
 0xa16   :  { %v1091_v36 = vmul.f32 0.35355338, %v1035_v35  ;;  %v8767_v37 = vpop.f32.mrb[29].mxu1 }
 0xa17   :  { %v1038_v39 = vpop.f32.mrb[30].mxu1  ;;  %v1085_v40 = vpop.f32.mrb[24].mxu0 }
 0xa18   :  { %v1092_v42 = vmul.f32 0.35355338, %v1085_v40  ;;  %v8768_v43 = vpop.f32.mrb[31].mxu1  ;;  %v8773_v44 = vpop.f32.mrb[25].mxu0  ;;  %v1093_v45 = vsel %vm315_vm7, %v1091_v36, -1e+09 }
 0xa19   :  { %v1088_v46 = vpop.f32.mrb[26].mxu0  ;;  %v1095_v47 = vsel %vm322_vm6, %v1093_v45, -inf  ;;  %v9939_v44 = vld [vmem:[%s10033_s5] sm:$0xff] }
 0xa1a   :  { %1096 = vmax.xlane.f32.xlu0 %v1095_v47  ;;  %v8774_v48 = vpop.f32.mrb[27].mxu0  ;;  %v1094_v50 = vsel %vm316_vm8, %v1092_v42, -1e+09 }
 0xa1b   :  { %v1098_v51 = vsel %vm322_vm6, %v1094_v50, -inf  ;;  %v9940_v48 = vld [vmem:[%s10033_s5 + $0x8] sm:$0xff]  ;;  %s11836_s5 = sld [smem:[#allocation5_spill]] }
 0xa1c   :  { %1099 = vmax.xlane.f32.xlu1 %v1098_v51 }
 0xa2d   :  { %1167 = vrot.lane.b32.xlu1 %v10259_v52, %s11807_s18 }
 0xa31   :  { %9510 = vrot.lane.b32.xlu1 %v9509_v34, %s11805_s22 }
 0xa35   :  { %9515 = vrot.lane.b32.xlu1 %v9514_v28, %s11801_s23 }
 0xaa7   :  { %v1097_v53 = vpop.xlane.xlu0 %1096 }
 0xaa8   :  { %v1101_v54 = vsub.f32 %v1093_v45, %v1097_v53 }
 0xaa9   :  { %v1100_v55 = vpop.xlane.xlu1 %1099 }
 0xaaa   :  { %v1103_v56 = vmul.f32 1.442695, %v1101_v54  ;;  %v1102_v59 = vsub.f32 %v1094_v50, %v1100_v55 }
 0xaac   :  { %9683 = vpow2.f32 %v1103_v56  ;;  %v1105_v60 = vmul.f32 1.442695, %v1102_v59 }
 0xaad   :  { %v1168_v61 = vpop.permute.xlu1 %1167 }
 0xaae   :  { %9685 = vpow2.f32 %v1105_v60  ;;  %v1173_v52 = vsel %vm451_vm9, %v1168_v61, 0 }
 0xaaf   :  { %8782 = vmatpush3.bf16.msra.mxu0 %v1173_v52 }
 0xab0   :  { %8795 = vmatprep.subr.bf16.mxu0 %v10007_v15 }
 0xab1   :  { %v9511_v20 = vpop.permute.xlu1 %9510 }
 0xab2   :  { %v9513_v22 = vunpack.i.h.bf16 %v9511_v20  ;;  %v9512_v23 = vunpack.i.l.bf16 %v9511_v20 }
 0xab4   :  { %v1240_v27 = vsel %vm322_vm6, %v10327_v41, %v9513_v22  ;;  %v1239_v28 = vsel %vm322_vm6, %v10325_v38, %v9512_v23  ;;  %v8150_v41 = vld [vmem:[%s10078_s14] ss:$0 sm:$0xff] }
 0xab5   :  { %v9516_v21 = vpop.permute.xlu1 %9515 }
 0xab6   :  { %v9684_v62 = vpop.eup %9683  ;;  %v9518_v24 = vunpack.i.h.bf16 %v9516_v21  ;;  %v9517_v25 = vunpack.i.l.bf16 %v9516_v21 }
 0xab7   :  { %v1107_v29 = vsel %vm322_vm6, %v9684_v62, 0.0 }
 0xab8   :  { %v9686_v33 = vpop.eup %9685  ;;  %1108 = vadd.xlane.f32.xlu0 %v1107_v29  ;;  %v1242_v32 = vsel %vm1241_vm10, %v1239_v28, %v9517_v25  ;;  %v1243_v35 = vsel %vm1241_vm10, %v1240_v27, %v9518_v24  ;;  %v8155_v24 = vld [vmem:[%s10088_s24] ss:$0 sm:$0xff] }
 0xab9   :  { %v1110_v34 = vsel %vm322_vm6, %v9686_v33, 0.0 }
 0xabc   :  { %1111 = vadd.xlane.f32.xlu0 %v1110_v34  ;;  %v9603_v34 = vld [vmem:[%s10093_s30] sm:$0xff]  }
 0xad2   :  { %1119 = vrot.lane.b32.xlu0 %v10257_v49, %s11807_s18 }
 0xb45   :  { %v1109_v63 = vpop.xlane.xlu0 %1108 }
 0xb46   :  { %9687 = vrcp.f32 %v1109_v63  ;;  %v9604_v63 = vld [vmem:[%s10093_s30 + $0x8] sm:$0xff]  }
 0xb49   :  { %v1112_v0 = vpop.xlane.xlu0 %1111 }
 0xb4a   :  { %9689 = vrcp.f32 %v1112_v0  ;;  %v9605_v0 = vld [vmem:[%s10103_s12] sm:$0xff]  }
 0xb4d   :  { %v1120_v1 = vpop.permute.xlu0 %1119 }
 0xb4e   :  { %v1125_v2 = vsel %vm451_vm9, %v1120_v1, 0  ;;  %v9606_v1 = vld [vmem:[%s10103_s12 + $0x8] sm:$0xff]  }
 0xb4f   :  { %8776 = vmatpush3.bf16.msra.mxu1 %v1125_v2 }
 0xb50   :  { %v9688_v3 = vpop.eup %9687  ;;  %8787 = vmatprep.subr.bf16.mxu1 %v10007_v15 }
 0xb51   :  { %v1115_v4 = vmul.f32 %v9688_v3, %v9684_v62 }
 0xb53   :  { %v1117_v5 = vpack.c.bf16 %v1115_v4, %v1115_v4 }
 0xb54   :  { %v9690_v6 = vpop.eup %9689 }
 0xb55   :  { %8778 = vmatmul.mubr.msk.bf16.vlgmr.msra.gmra.mrb[32].mxu1 %vm322_vm6, %v1117_v5  ;;  %v1116_v7 = vmul.f32 %v9690_v6, %v9686_v33 }
 0xb56   :  { %8791 = vmatprep.mubr.msk.bf16.mxu1 %vm10008_vm1, %v10007_v15  ;;  %8788 = vmatpush3.bf16.msra.mxu1 %v9601_v8 }
 0xb57   :  { %v1118_v49 = vpack.c.bf16 %v1116_v7, %v1116_v7  ;;  %8789 = vmatprep.subr.bf16.mxu1 %v10007_v15 }
 0xb59   :  { %8784 = vmatmul.mubr.msk.bf16.vlgmr.msra.gmra.mrb[28].mxu0 %vm322_vm6, %v1118_v49 }
 0xb5a   :  { %8799 = vmatprep.mubr.msk.bf16.mxu0 %vm10008_vm1, %v10007_v15  ;;  %8790 = vmatpush3.bf16.msra.mxu1 %v9602_v9 }
 0xb5b   :  { %8803 = vmatprep.subr.bf16.mxu1 %v10007_v15  ;;  %8796 = vmatpush3.bf16.msra.mxu0 %v9603_v34 }
 0xb5c   :  { %8797 = vmatprep.subr.bf16.mxu0 %v10007_v15 }
 0xb5f   :  { %8798 = vmatpush3.bf16.msra.mxu0 %v9604_v63 }
 0xb60   :  { %8815 = vmatprep.subr.bf16.mxu0 %v10007_v15 }
 0xc28   :  { %v1161_v10 = vpop.f32.mrb[32].mxu1 }
 0xc29   :  { %v8779_v11 = vpop.f32.mrb[33].mxu1 }
 0xc2a   :  { %v1164_v12 = vpop.f32.mrb[34].mxu1 }
 0xc2b   :  { %v8780_v13 = vpop.f32.mrb[35].mxu1 }
 0xc2c   :  { %v1209_v14 = vpop.f32.mrb[28].mxu0 }
 0xc2d   :  { %v9519_v16 = vpack.i.bf16 %v1209_v14, %v1161_v10  ;;  %v8785_v17 = vpop.f32.mrb[29].mxu0 }
 0xc2e   :  { %v1212_v18 = vpop.f32.mrb[30].mxu0 }
 0xc2f   :  { %9520 = vrot.lane.b32.xlu0 %v9519_v16, %s11803_s26  ;;  %v8786_v19 = vpop.f32.mrb[31].mxu0  ;;  %v8154_v18 = vld [vmem:[%s10083_s19] ss:$0 sm:$0xff] }
 0xca1   :  { %v9521_v26 = vpop.permute.xlu0 %9520 }
 0xca2   :  { %v9523_v30 = vunpack.i.h.bf16 %v9521_v26  ;;  %v9522_v31 = vunpack.i.l.bf16 %v9521_v26 }
 0xca4   :  { %v1246_v36 = vsel %vm1244_vm11, %v1243_v35, %v9523_v30  ;;  %v1245_v37 = vsel %vm1244_vm11, %v1242_v32, %v9522_v31  ;;  %v9607_v30 = vld [vmem:[%s10103_s12 + $0x10] sm:$0xff]   ;;  %v9608_v31 = vld [vmem:[%s10103_s12 + $0x18] sm:$0xff]   ;;  %v8156_v32 = vld [vmem:[%s10098_s6] ss:$0 sm:$0xff] }
 0xca5   :  { %v1252_v39 = vpack.c.bf16 %v1246_v36, %v1245_v37 }
 0xca7   :  { %8792 = vmatmul.mubr.msk.bf16.vlgmr.msra.gmra.mrb[36].mxu1 %vm176_vm0, %v1252_v39 }
 0xca8   :  { %8811 = vmatprep.mubr.msk.bf16.mxu1 %vm10008_vm1, %v10007_v15  ;;  %8804 = vmatpush3.bf16.msra.mxu1 %v9605_v0 }
 0xca9   :  { %8805 = vmatprep.subr.bf16.mxu1 %v10007_v15 }
 0xcac   :  { %8806 = vmatpush3.bf16.msra.mxu1 %v9606_v1  ;;  %v9609_v1 = vld [vmem:[%s10063_s29 + $0x10] sm:$0xff]  }
 0xcad   :  { %8807 = vmatprep.subr.bf16.mxu1 %v10007_v15 }
 0xcb0   :  { %8808 = vmatpush3.bf16.msra.mxu1 %v9607_v30 }
 0xcb1   :  { %8809 = vmatprep.subr.bf16.mxu1 %v10007_v15 }
 0xcb4   :  { %8810 = vmatpush3.bf16.msra.mxu1 %v9608_v31  ;;  %v8175_v31 = vld [vmem:[%s10068_s3 + $0x1] ss:$0 sm:$0xff]  ;;  %s11840_s3 = sld [smem:[#allocation12_spill]] }
 0xcb5   :  { %8829 = vmatprep.subr.bf16.mxu1 %v10007_v15 }
 0xd7a   :  { %v1308_v40 = vpop.f32.mrb[36].mxu1 }
 0xd7b   :  { %v1309_v38 = vadd.f32 %v8150_v41, %v1308_v40  ;;  %v8793_v42 = vpop.f32.mrb[37].mxu1 }
 0xd7c   :  { %v1311_v43 = vpop.f32.mrb[38].mxu1 }
 0xd7d   :  { %v10460_v45 = vadd.f32 %v9939_v44, %v1309_v38  ;;  %v1312_v46 = vadd.f32 %v8150_v41, %v1311_v43  ;;  %v8794_v47 = vpop.f32.mrb[39].mxu1  ;;  %v8160_v44 = vld [vmem:[%s10108_s20] ss:$0 sm:$0xff] }
 0xd7f   :  { %v10463_v50 = vadd.f32 %v9940_v48, %v1312_v46  ;;  %v1319_v51 = vsel %vm176_vm0, %v10460_v45, 0.0 }
 0xd80   :  { %1320 = vadd.xlane.f32.xlu1 %v1319_v51 }
 0xd81   :  { %v1322_v53 = vsel %vm176_vm0, %v10463_v50, 0.0 }
 0xd82   :  { %1323 = vadd.xlane.f32.xlu0 %v1322_v53 }
 0xe0d   :  { %v1321_v54 = vpop.xlane.xlu1 %1320 }
 0xe0e   :  { %v1325_v55 = vmul.f32 0.03125, %v1321_v54 }
 0xe0f   :  { %v1324_v56 = vpop.xlane.xlu0 %1323 }
 0xe10   :  { %v1327_v59 = vsub.f32 %v10460_v45, %v1325_v55  ;;  %v1326_v60 = vmul.f32 0.03125, %v1324_v56 }
 0xe12   :  { %v1328_v61 = vsub.f32 %v10463_v50, %v1326_v60  ;;  %v1329_v52 = vmul.f32 %v1327_v59, %v1327_v59  ;;  %v1359_v20 = vmul.f32 %v8154_v18, %v1327_v59 }
 0xe14   :  { %v1331_v62 = vsel %vm176_vm0, %v1329_v52, 0.0  ;;  %v1330_v29 = vmul.f32 %v1328_v61, %v1328_v61  ;;  %v1360_v21 = vmul.f32 %v8154_v18, %v1328_v61 }
 0xe15   :  { %1332 = vadd.xlane.f32.xlu0 %v1331_v62 }
 0xe16   :  { %v1334_v33 = vsel %vm176_vm0, %v1330_v29, 0.0 }
 0xe19   :  { %1335 = vadd.xlane.f32.xlu0 %v1334_v33 }
 0xea2   :  { %v1333_v2 = vpop.xlane.xlu0 %1332 }
 0xea3   :  { %v1337_v3 = vmul.f32 0.032258064, %v1333_v2  ;;  %v9610_v2 = vld [vmem:[%s10063_s29 + $0x18] sm:$0xff]   ;;  %s11839_s29 = sld [smem:[#allocation10_spill]] }
 0xea5   :  { %9691 = vrsqrt.f32 %v1337_v3  ;;  %vm1341_vm12 = vcmp.eq.f32.partialorder %v1337_v3, inf  ;;  %v1344_v49 = vand.u32 2147483648, %v1337_v3  ;;  %vm1343_vm13 = vcmp.eq.f32.partialorder %v1337_v3, 0.0 }
 0xea6   :  { %v1336_v4 = vpop.xlane.xlu0 %1335 }
 0xea7   :  { %v1338_v5 = vmul.f32 0.032258064, %v1336_v4 }
 0xea9   :  { %9693 = vrsqrt.f32 %v1338_v5  ;;  %vm1348_vm14 = vcmp.eq.f32.partialorder %v1338_v5, inf  ;;  %v1351_v13 = vand.u32 2147483648, %v1338_v5  ;;  %vm1350_vm15 = vcmp.eq.f32.partialorder %v1338_v5, 0.0 }
 0xeaf   :  { %v9692_v6 = vpop.eup %9691 }
 0xeb0   :  { %v1340_v7 = vmul.f32 %v9692_v6, %v1337_v3 }
 0xeb2   :  { %v1342_v8 = vsel %vm1341_vm12, %v1337_v3, %v1340_v7 }
 0xeb3   :  { %v9694_v9 = vpop.eup %9693  ;;  %v1345_v10 = vsel %vm1343_vm13, %v1344_v49, %v1342_v8 }
 0xeb4   :  { %v1361_v11 = vadd.f32 1e-06, %v1345_v10  ;;  %v1347_v12 = vmul.f32 %v9694_v9, %v1338_v5 }
 0xeb6   :  { %9695 = vrcp.f32 %v1361_v11  ;;  %v1349_v14 = vsel %vm1348_vm14, %v1338_v5, %v1347_v12 }
 0xeb7   :  { %v1352_v16 = vsel %vm1350_vm15, %v1351_v13, %v1349_v14 }
 0xeb8   :  { %v1362_v17 = vadd.f32 1e-06, %v1352_v16 }
 0xeba   :  { %9697 = vrcp.f32 %v1362_v17 }
 0xec0   :  { %v9696_v19 = vpop.eup %9695 }
 0xec1   :  { %v1364_v22 = vmul.f32 %v9696_v19, %v1359_v20  ;;  %v8168_v19 = vld [vmem:[%s10053_s21 + $0x1] ss:$0 sm:$0xff]  ;;  %s11837_s21 = sld [smem:[#allocation9_spill]] }
 0xec3   :  { %v1373_v26 = vadd.f32 %v8155_v24, %v1364_v22 }
 0xec4   :  { %v9698_v23 = vpop.eup %9697 }
 0xec5   :  { %v1366_v25 = vmul.f32 %v9698_v23, %v1360_v21 }
 0xec7   :  { %v1374_v27 = vadd.f32 %v8155_v24, %v1366_v25  ;;  %v8169_v25 = vld [vmem:[%s10058_s25 + $0x1] ss:$0 sm:$0xff]  ;;  %s11838_s25 = sld [smem:[#allocation11_spill]] }
 0xec9   :  { %v1380_v28 = vpack.c.bf16 %v1374_v27, %v1373_v26 }
 0xecb   :  { %8800 = vmatmul.mubr.msk.bf16.vlgmr.msra.gmra.mrb[32].mxu0 %vm176_vm0, %v1380_v28 }
 0xecc   :  { %8819 = vmatprep.mubr.msk.bf16.mxu0 %vm10008_vm1, %v10007_v15  ;;  %8816 = vmatpush3.bf16.msra.mxu0 %v9609_v1 }
 0xecd   :  { %8817 = vmatprep.subr.bf16.mxu0 %v10007_v15 }
 0xed0   :  { %8818 = vmatpush3.bf16.msra.mxu0 %v9610_v2 }
 0xed1   :  { %8823 = vmatprep.subr.bf16.mxu0 %v10007_v15 }
 0xf9e   :  { %v1436_v35 = vpop.f32.mrb[32].mxu0 }
 0xf9f   :  { %v1437_v36 = vadd.f32 %v8156_v32, %v1436_v35  ;;  %v8801_v37 = vpop.f32.mrb[33].mxu0 }
 0xfa0   :  { %v1439_v39 = vpop.f32.mrb[34].mxu0 }
 0xfa1   :  { %v1440_v41 = vadd.f32 %v8156_v32, %v1439_v39  ;;  %v8802_v40 = vpop.f32.mrb[35].mxu0  ;;  %v1443_v38 = vmax.f32 %v1437_v36, 0.0 }
 0xfa3   :  { %v1444_v42 = vmax.f32 %v1440_v41, 0.0 }
 0xfa5   :  { %v1454_v43 = vpack.c.bf16 %v1444_v42, %v1443_v38 }
 0xfa7   :  { %8812 = vmatmul.mubr.msk.bf16.vlgmr.msra.gmra.mrb[40].mxu1 %vm1485_vm2, %v1454_v43 }
 0xfa8   :  { %8831 = vmatprep.mubr.msk.bf16.mxu1 %vm10008_vm1, %v10007_v15 }
0x107a   :  { %v1523_v46 = vpop.f32.mrb[40].mxu1 }
0x107b   :  { %v1524_v47 = vadd.f32 %v8160_v44, %v1523_v46  ;;  %v8813_v48 = vpop.f32.mrb[41].mxu1 }
0x107c   :  { %v1526_v51 = vpop.f32.mrb[42].mxu1 }
0x107d   :  { %v10496_v53 = vadd.f32 %v1524_v47, %v10460_v45  ;;  %v1527_v54 = vadd.f32 %v8160_v44, %v1526_v51  ;;  %v8814_v55 = vpop.f32.mrb[43].mxu1 }
0x107f   :  { %v10499_v56 = vadd.f32 %v1527_v54, %v10463_v50  ;;  %v1536_v59 = vsel %vm176_vm0, %v10496_v53, 0.0 }
0x1080   :  { %1537 = vadd.xlane.f32.xlu1 %v1536_v59 }
0x1081   :  { %v1539_v60 = vsel %vm176_vm0, %v10499_v56, 0.0 }
0x1082   :  { %1540 = vadd.xlane.f32.xlu0 %v1539_v60 }
0x110d   :  { %v1538_v61 = vpop.xlane.xlu1 %1537 }
0x110e   :  { %v1542_v52 = vmul.f32 0.03125, %v1538_v61 }
0x110f   :  { %v1541_v62 = vpop.xlane.xlu0 %1540 }
0x1110   :  { %v1544_v45 = vsub.f32 %v10496_v53, %v1542_v52  ;;  %v1543_v29 = vmul.f32 0.03125, %v1541_v62 }
0x1112   :  { %v1545_v33 = vsub.f32 %v10499_v56, %v1543_v29  ;;  %v1546_v50 = vmul.f32 %v1544_v45, %v1544_v45  ;;  %v1576_v21 = vmul.f32 %v8168_v19, %v1544_v45 }
0x1114   :  { %v1548_v34 = vsel %vm176_vm0, %v1546_v50, 0.0  ;;  %v1547_v63 = vmul.f32 %v1545_v33, %v1545_v33  ;;  %v1577_v22 = vmul.f32 %v8168_v19, %v1545_v33 }
0x1115   :  { %1549 = vadd.xlane.f32.xlu1 %v1548_v34 }
0x1116   :  { %v1551_v0 = vsel %vm176_vm0, %v1547_v63, 0.0 }
0x1117   :  { %1552 = vadd.xlane.f32.xlu0 %v1551_v0 }
0x11a2   :  { %v1550_v3 = vpop.xlane.xlu1 %1549 }
0x11a3   :  { %v1554_v4 = vmul.f32 0.032258064, %v1550_v3 }
0x11a4   :  { %v1553_v5 = vpop.xlane.xlu0 %1552 }
0x11a5   :  { %9699 = vrsqrt.f32 %v1554_v4  ;;  %v1555_v6 = vmul.f32 0.032258064, %v1553_v5  ;;  %vm1558_vm3 = vcmp.eq.f32.partialorder %v1554_v4, inf  ;;  %v1561_v8 = vand.u32 2147483648, %v1554_v4 }
0x11a6   :  { %vm1560_vm4 = vcmp.eq.f32.partialorder %v1554_v4, 0.0 }
0x11a7   :  { %9701 = vrsqrt.f32 %v1555_v6  ;;  %vm1565_vm5 = vcmp.eq.f32.partialorder %v1555_v6, inf  ;;  %v1568_v14 = vand.u32 2147483648, %v1555_v6  ;;  %vm1567_vm12 = vcmp.eq.f32.partialorder %v1555_v6, 0.0 }
0x11af   :  { %v9700_v7 = vpop.eup %9699 }
0x11b0   :  { %v1557_v49 = vmul.f32 %v9700_v7, %v1554_v4 }
0x11b1   :  { %v9702_v9 = vpop.eup %9701 }
0x11b2   :  { %v1559_v10 = vsel %vm1558_vm3, %v1554_v4, %v1557_v49  ;;  %v1564_v12 = vmul.f32 %v9702_v9, %v1555_v6 }
0x11b3   :  { %v1562_v11 = vsel %vm1560_vm4, %v1561_v8, %v1559_v10 }
0x11b4   :  { %v1578_v13 = vadd.f32 1e-06, %v1562_v11  ;;  %v1566_v16 = vsel %vm1565_vm5, %v1555_v6, %v1564_v12 }
0x11b5   :  { %v1569_v17 = vsel %vm1567_vm12, %v1568_v14, %v1566_v16 }
0x11b6   :  { %9703 = vrcp.f32 %v1578_v13  ;;  %v1579_v18 = vadd.f32 1e-06, %v1569_v17 }
0x11b8   :  { %9705 = vrcp.f32 %v1579_v18 }
0x11c0   :  { %v9704_v20 = vpop.eup %9703 }
0x11c1   :  { %v1581_v23 = vmul.f32 %v9704_v20, %v1576_v21 }
0x11c2   :  { %v9706_v24 = vpop.eup %9705 }
0x11c3   :  { %v1583_v26 = vmul.f32 %v9706_v24, %v1577_v22  ;;  %v1590_v27 = vadd.f32 %v8169_v25, %v1581_v23 }
0x11c5   :  { %v1591_v28 = vadd.f32 %v8169_v25, %v1583_v26 }
0x11c7   :  { %v1599_v30 = vpack.c.bf16 %v1591_v28, %v1590_v27 }
0x11c9   :  { %8820 = vmatmul.mubr.msk.bf16.vlgmr.msra.gmra.mrb[36].mxu0 %vm176_vm0, %v1599_v30 }
0x11ca   :  { %8825 = vmatprep.mubr.msk.bf16.mxu0 %vm10008_vm1, %v10007_v15 }
0x129c   :  { %v1655_v32 = vpop.f32.mrb[36].mxu0 }
0x129d   :  { %v1656_v35 = vadd.f32 %v8175_v31, %v1655_v32  ;;  %v8821_v36 = vpop.f32.mrb[37].mxu0 }
0x129e   :  { %v1658_v37 = vpop.f32.mrb[38].mxu0 }
0x129f   :  { %v10519_v39 = vpack.c.bf16 %v1656_v35, %v1656_v35  ;;  %v1659_v41 = vadd.f32 %v8175_v31, %v1658_v37  ;;  %v8822_v40 = vpop.f32.mrb[39].mxu0 }
0x12a1   :  { %v10521_v38 = vpack.c.bf16 %v1659_v41, %v1659_v41  ;;  %1665 = vrot.lane.b32.xlu1 %v10519_v39, %s10009_s0 }
0x12a3   :  { %1714 = vrot.lane.b32.xlu0 %v10521_v38, %s10009_s0 }
0x1313   :  { %v1666_v42 = vpop.permute.xlu1 %1665 }
0x1314   :  { %v1671_v43 = vsel %vm322_vm6, %v1666_v42, 0 }
0x1315   :  { %8824 = vmatpush3.bf16.xpose.msra.mxu0 %v1671_v43  ;;  %v1715_v44 = vpop.permute.xlu0 %1714 }
0x1316   :  { %v1720_v46 = vsel %vm322_vm6, %v1715_v44, 0  ;;  %8835 = vmatprep.subr.bf16.mxu0 %v10007_v15 }
0x1317   :  { %8830 = vmatpush3.bf16.xpose.msra.mxu1 %v1720_v46 }
0x1318   :  { %8841 = vmatprep.subr.bf16.mxu1 %v10007_v15 }
0x131c   :  { %8826 = vmatmul.mubr.msk.bf16.vlgmr.msra.gmra.mrb[40].mxu0 %vm322_vm6, %v10519_v39 }
0x131d   :  { %8837 = vmatprep.mubr.msk.bf16.mxu0 %vm10008_vm1, %v10007_v15 }
0x131e   :  { %8832 = vmatmul.mubr.msk.bf16.vlgmr.msra.gmra.mrb[44].mxu1 %vm322_vm6, %v10521_v38 }
0x131f   :  { %8843 = vmatprep.mubr.msk.bf16.mxu1 %vm10008_vm1, %v10007_v15 }
0x13ef   :  { %v1707_v47 = vpop.f32.mrb[40].mxu0 }
0x13f0   :  { %v1762_v48 = vmul.f32 0.35355338, %v1707_v47  ;;  %v8827_v51 = vpop.f32.mrb[41].mxu0 }
0x13f1   :  { %v1710_v54 = vpop.f32.mrb[42].mxu0  ;;  %v1756_v55 = vpop.f32.mrb[44].mxu1 }
0x13f2   :  { %v1763_v59 = vmul.f32 0.35355338, %v1756_v55  ;;  %v8828_v60 = vpop.f32.mrb[43].mxu0  ;;  %v8833_v61 = vpop.f32.mrb[45].mxu1  ;;  %v1764_v52 = vsel %vm315_vm7, %v1762_v48, -1e+09 }
0x13f3   :  { %v1759_v62 = vpop.f32.mrb[46].mxu1  ;;  %v1766_v45 = vsel %vm322_vm6, %v1764_v52, -inf }
0x13f4   :  { %v8834_v29 = vpop.f32.mrb[47].mxu1  ;;  %1767 = vmax.xlane.f32.xlu1 %v1766_v45  ;;  %v1765_v33 = vsel %vm316_vm8, %v1763_v59, -1e+09 }
0x13f5   :  { %v1769_v50 = vsel %vm322_vm6, %v1765_v33, -inf }
0x13f6   :  { %1770 = vmax.xlane.f32.xlu0 %v1769_v50 }
0x1405   :  { %1790 = vrot.lane.b32.xlu1 %v10519_v39, %s10010_s13 }
0x1481   :  { %v1768_v34 = vpop.xlane.xlu1 %1767 }
0x1482   :  { %v1772_v63 = vsub.f32 %v1764_v52, %v1768_v34 }
0x1483   :  { %v1771_v0 = vpop.xlane.xlu0 %1770 }
0x1484   :  { %v1774_v1 = vmul.f32 1.442695, %v1772_v63  ;;  %v1773_v2 = vsub.f32 %v1765_v33, %v1771_v0 }
0x1485   :  { %v1791_v3 = vpop.permute.xlu1 %1790 }
0x1486   :  { %9707 = vpow2.f32 %v1774_v1  ;;  %v1776_v4 = vmul.f32 1.442695, %v1773_v2  ;;  %v1796_v5 = vsel %vm451_vm9, %v1791_v3, 0 }
0x1487   :  { %8836 = vmatpush3.bf16.msra.mxu0 %v1796_v5 }
0x1488   :  { %9709 = vpow2.f32 %v1776_v4  ;;  %8847 = vmatprep.subr.bf16.mxu0 %v10007_v15 }
0x1490   :  { %v9708_v6 = vpop.eup %9707 }
0x1491   :  { %v1778_v7 = vsel %vm322_vm6, %v9708_v6, 0.0 }
0x1492   :  { %v9710_v49 = vpop.eup %9709  ;;  %1779 = vadd.xlane.f32.xlu1 %v1778_v7 }
0x1493   :  { %v1781_v8 = vsel %vm322_vm6, %v9710_v49, 0.0 }
0x1494   :  { %1782 = vadd.xlane.f32.xlu0 %v1781_v8 }
0x14a3   :  { %1888 = vrot.lane.b32.xlu1 %v10519_v39, %s10011_s28 }
0x14a7   :  { %1938 = vrot.lane.b32.xlu1 %v10521_v38, %s10011_s28 }
0x14aa   :  { %1838 = vrot.lane.b32.xlu0 %v10521_v38, %s10010_s13 }
0x14ab   :  { %1886 = vrot.lane.b32.xlu1 %v10519_v39, %s10012_s1 }
0x14ae   :  { %1936 = vrot.lane.b32.xlu0 %v10521_v38, %s10012_s1 }
0x151f   :  { %v1780_v9 = vpop.xlane.xlu1 %1779 }
0x1520   :  { %9711 = vrcp.f32 %v1780_v9 }
0x1521   :  { %v1783_v10 = vpop.xlane.xlu0 %1782 }
0x1522   :  { %9713 = vrcp.f32 %v1783_v10 }
0x1523   :  { %v1889_v13 = vpop.permute.xlu1 %1888 }
0x1524   :  { %v1894_v21 = vsel %vm322_vm6, %v1889_v13, 0 }
0x1525   :  { %v1839_v11 = vpop.permute.xlu0 %1838 }
0x1526   :  { %v1844_v12 = vsel %vm451_vm9, %v1839_v11, 0 }
0x1527   :  { %8842 = vmatpush3.bf16.msra.mxu1 %v1844_v12  ;;  %v1939_v20 = vpop.permute.xlu1 %1938 }
0x1528   :  { %8853 = vmatprep.subr.bf16.mxu1 %v10007_v15  ;;  %v1944_v23 = vsel %vm322_vm6, %v1939_v20, 0 }
0x1529   :  { %v1937_v25 = vpop.permute.xlu0 %1936 }
0x152a   :  { %v9712_v14 = vpop.eup %9711 }
0x152b   :  { %v1786_v16 = vmul.f32 %v9712_v14, %v9708_v6  ;;  %v1887_v24 = vpop.permute.xlu1 %1886 }
0x152c   :  { %v9714_v17 = vpop.eup %9713 }
0x152d   :  { %v1788_v18 = vpack.c.bf16 %v1786_v16, %v1786_v16  ;;  %v1787_v19 = vmul.f32 %v9714_v17, %v9710_v49 }
0x152f   :  { %8838 = vmatmul.mubr.msk.bf16.vlgmr.msra.gmra.mrb[44].mxu0 %vm322_vm6, %v1788_v18  ;;  %v1789_v22 = vpack.c.bf16 %v1787_v19, %v1787_v19 }
0x1530   :  { %8848 = vmatpush3.bf16.xpose.msra.mxu0 %v1894_v21  ;;  %8849 = vmatprep.mubr.msk.bf16.mxu0 %vm10008_vm1, %v10007_v15 }
0x1531   :  { %8844 = vmatmul.mubr.msk.bf16.vlgmr.msra.gmra.mrb[48].mxu1 %vm322_vm6, %v1789_v22  ;;  %8859 = vmatprep.subr.bf16.mxu0 %v10007_v15 }
0x1532   :  { %8854 = vmatpush3.bf16.xpose.msra.mxu1 %v1944_v23  ;;  %8855 = vmatprep.mubr.msk.bf16.mxu1 %vm10008_vm1, %v10007_v15 }
0x1533   :  { %8865 = vmatprep.subr.bf16.mxu1 %v10007_v15 }
0x1537   :  { %8850 = vmatmul.mubr.msk.bf16.vlgmr.msra.gmra.mrb[48].mxu0 %vm322_vm6, %v1887_v24 }
0x1538   :  { %8861 = vmatprep.mubr.msk.bf16.mxu0 %vm10008_vm1, %v10007_v15 }
0x1539   :  { %8856 = vmatmul.mubr.msk.bf16.vlgmr.msra.gmra.mrb[52].mxu1 %vm322_vm6, %v1937_v25 }
0x153a   :  { %8867 = vmatprep.mubr.msk.bf16.mxu1 %vm10008_vm1, %v10007_v15 }
0x1602   :  { %v10579_v26 = vpop.f32.mrb[44].mxu0 }
0x1603   :  { %v8839_v27 = vpop.f32.mrb[45].mxu0 }
0x1604   :  { %v1835_v28 = vpop.f32.mrb[46].mxu0  ;;  %v10581_v30 = vpop.f32.mrb[48].mxu1 }
0x1605   :  { %v8840_v31 = vpop.f32.mrb[47].mxu0  ;;  %v8845_v32 = vpop.f32.mrb[49].mxu1 }
0x1606   :  { %v1883_v35 = vpop.f32.mrb[50].mxu1 }
0x1607   :  { %v8846_v36 = vpop.f32.mrb[51].mxu1 }
0x160a   :  { %v1930_v37 = vpop.f32.mrb[48].mxu0 }
0x160b   :  { %v1986_v41 = vmul.f32 0.35355338, %v1930_v37  ;;  %v8851_v40 = vpop.f32.mrb[49].mxu0 }
0x160c   :  { %v1933_v42 = vpop.f32.mrb[50].mxu0  ;;  %v1980_v43 = vpop.f32.mrb[52].mxu1 }
0x160d   :  { %v1987_v44 = vmul.f32 0.35355338, %v1980_v43  ;;  %v8852_v46 = vpop.f32.mrb[51].mxu0  ;;  %v8857_v47 = vpop.f32.mrb[53].mxu1  ;;  %v1988_v48 = vsel %vm315_vm7, %v1986_v41, -1e+09 }
0x160e   :  { %v1983_v51 = vpop.f32.mrb[54].mxu1  ;;  %v1990_v54 = vsel %vm322_vm6, %v1988_v48, -inf }
0x160f   :  { %v8858_v55 = vpop.f32.mrb[55].mxu1  ;;  %1991 = vmax.xlane.f32.xlu1 %v1990_v54  ;;  %v1989_v59 = vsel %vm316_vm8, %v1987_v44, -1e+09 }
0x1610   :  { %v1993_v60 = vsel %vm322_vm6, %v1989_v59, -inf }
0x1611   :  { %1994 = vmax.xlane.f32.xlu0 %v1993_v60 }
0x1620   :  { %2014 = vrot.lane.b32.xlu1 %v10519_v39, %s10013_s2 }
0x1624   :  { %2112 = vrot.lane.b32.xlu1 %v10519_v39, %s10014_s7 }
0x1628   :  { %2162 = vrot.lane.b32.xlu1 %v10521_v38, %s10014_s7 }
0x162c   :  { %2110 = vrot.lane.b32.xlu1 %v10519_v39, %s10015_s10 }
0x169c   :  { %v1992_v61 = vpop.xlane.xlu1 %1991 }
0x169d   :  { %v1996_v52 = vsub.f32 %v1988_v48, %v1992_v61 }
0x169e   :  { %v1995_v62 = vpop.xlane.xlu0 %1994 }
0x169f   :  { %v1998_v45 = vmul.f32 1.442695, %v1996_v52  ;;  %v1997_v29 = vsub.f32 %v1989_v59, %v1995_v62 }
0x16a0   :  { %v2015_v33 = vpop.permute.xlu1 %2014 }
0x16a1   :  { %9715 = vpow2.f32 %v1998_v45  ;;  %v2000_v50 = vmul.f32 1.442695, %v1997_v29  ;;  %v2020_v34 = vsel %vm451_vm9, %v2015_v33, 0 }
0x16a2   :  { %8860 = vmatpush3.bf16.msra.mxu0 %v2020_v34 }
0x16a3   :  { %9717 = vpow2.f32 %v2000_v50  ;;  %8871 = vmatprep.subr.bf16.mxu0 %v10007_v15 }
0x16a4   :  { %v2113_v49 = vpop.permute.xlu1 %2112 }
0x16a5   :  { %v2118_v11 = vsel %vm322_vm6, %v2113_v49, 0 }
0x16a8   :  { %v2163_v13 = vpop.permute.xlu1 %2162 }
0x16a9   :  { %v2168_v16 = vsel %vm322_vm6, %v2163_v13, 0 }
0x16ab   :  { %v9716_v63 = vpop.eup %9715 }
0x16ac   :  { %v2002_v0 = vsel %vm322_vm6, %v9716_v63, 0.0  ;;  %v2111_v17 = vpop.permute.xlu1 %2110 }
0x16ad   :  { %v9718_v1 = vpop.eup %9717  ;;  %2003 = vadd.xlane.f32.xlu0 %v2002_v0 }
0x16ae   :  { %v2005_v2 = vsel %vm322_vm6, %v9718_v1, 0.0 }
0x16b1   :  { %2006 = vadd.xlane.f32.xlu0 %v2005_v2 }
0x16c7   :  { %2062 = vrot.lane.b32.xlu0 %v10521_v38, %s10013_s2 }
0x16cb   :  { %2160 = vrot.lane.b32.xlu0 %v10521_v38, %s10015_s10 }
0x173a   :  { %v2004_v3 = vpop.xlane.xlu0 %2003 }
0x173b   :  { %9719 = vrcp.f32 %v2004_v3 }
0x173e   :  { %v2007_v4 = vpop.xlane.xlu0 %2006 }
0x173f   :  { %9721 = vrcp.f32 %v2007_v4 }
0x1742   :  { %v2063_v5 = vpop.permute.xlu0 %2062 }
0x1743   :  { %v2068_v6 = vsel %vm451_vm9, %v2063_v5, 0 }
0x1744   :  { %8866 = vmatpush3.bf16.msra.mxu1 %v2068_v6 }
0x1745   :  { %v9720_v7 = vpop.eup %9719  ;;  %8877 = vmatprep.subr.bf16.mxu1 %v10007_v15 }
0x1746   :  { %v2010_v8 = vmul.f32 %v9720_v7, %v9716_v63  ;;  %v2161_v18 = vpop.permute.xlu0 %2160 }
0x1748   :  { %v2012_v9 = vpack.c.bf16 %v2010_v8, %v2010_v8 }
0x1749   :  { %v9722_v10 = vpop.eup %9721 }
0x174a   :  { %8862 = vmatmul.mubr.msk.bf16.vlgmr.msra.gmra.mrb[52].mxu0 %vm322_vm6, %v2012_v9  ;;  %v2011_v12 = vmul.f32 %v9722_v10, %v9718_v1 }
0x174b   :  { %8872 = vmatpush3.bf16.xpose.msra.mxu0 %v2118_v11  ;;  %8873 = vmatprep.mubr.msk.bf16.mxu0 %vm10008_vm1, %v10007_v15 }
0x174c   :  { %v2013_v14 = vpack.c.bf16 %v2011_v12, %v2011_v12  ;;  %8883 = vmatprep.subr.bf16.mxu0 %v10007_v15 }
0x174e   :  { %8868 = vmatmul.mubr.msk.bf16.vlgmr.msra.gmra.mrb[56].mxu1 %vm322_vm6, %v2013_v14 }
0x174f   :  { %8878 = vmatpush3.bf16.xpose.msra.mxu1 %v2168_v16  ;;  %8879 = vmatprep.mubr.msk.bf16.mxu1 %vm10008_vm1, %v10007_v15 }
0x1750   :  { %8889 = vmatprep.subr.bf16.mxu1 %v10007_v15 }
0x1752   :  { %8874 = vmatmul.mubr.msk.bf16.vlgmr.msra.gmra.mrb[56].mxu0 %vm322_vm6, %v2111_v17 }
0x1753   :  { %8885 = vmatprep.mubr.msk.bf16.mxu0 %vm10008_vm1, %v10007_v15 }
0x1756   :  { %8880 = vmatmul.mubr.msk.bf16.vlgmr.msra.gmra.mrb[60].mxu1 %vm322_vm6, %v2161_v18 }
0x1757   :  { %8891 = vmatprep.mubr.msk.bf16.mxu1 %vm10008_vm1, %v10007_v15 }
0x181d   :  { %v10623_v19 = vpop.f32.mrb[52].mxu0 }
0x181e   :  { %v8863_v20 = vpop.f32.mrb[53].mxu0 }
0x181f   :  { %v2059_v21 = vpop.f32.mrb[54].mxu0 }
0x1820   :  { %v8864_v22 = vpop.f32.mrb[55].mxu0 }
0x1821   :  { %v10625_v23 = vpop.f32.mrb[56].mxu1 }
0x1822   :  { %v9524_v24 = vpack.i.bf16 %v10625_v23, %v10623_v19  ;;  %v8869_v25 = vpop.f32.mrb[57].mxu1 }
0x1823   :  { %v2107_v27 = vpop.f32.mrb[58].mxu1 }
0x1824   :  { %v8870_v28 = vpop.f32.mrb[59].mxu1 }
0x1825   :  { %v2154_v31 = vpop.f32.mrb[56].mxu0 }
0x1826   :  { %v2210_v32 = vmul.f32 0.35355338, %v2154_v31  ;;  %v8875_v35 = vpop.f32.mrb[57].mxu0 }
0x1827   :  { %v2157_v36 = vpop.f32.mrb[58].mxu0 }
0x1828   :  { %v8876_v37 = vpop.f32.mrb[59].mxu0  ;;  %v2212_v41 = vsel %vm315_vm7, %v2210_v32, -1e+09 }
0x1829   :  { %v2204_v40 = vpop.f32.mrb[60].mxu1  ;;  %v2214_v42 = vsel %vm322_vm6, %v2212_v41, -inf }
0x182a   :  { %v2211_v43 = vmul.f32 0.35355338, %v2204_v40  ;;  %v8881_v44 = vpop.f32.mrb[61].mxu1  ;;  %2215 = vmax.xlane.f32.xlu1 %v2214_v42 }
0x182b   :  { %v2207_v46 = vpop.f32.mrb[62].mxu1 }
0x182c   :  { %v8882_v47 = vpop.f32.mrb[63].mxu1  ;;  %v2213_v48 = vsel %vm316_vm8, %v2211_v43, -1e+09 }
0x182d   :  { %v2217_v51 = vsel %vm322_vm6, %v2213_v48, -inf }
0x182e   :  { %2218 = vmax.xlane.f32.xlu0 %v2217_v51 }
0x183b   :  { %2238 = vrot.lane.b32.xlu1 %v10519_v39, %s10016_s11 }
0x183f   :  { %2336 = vrot.lane.b32.xlu1 %v10519_v39, %s11811_s15 }
0x1843   :  { %2386 = vrot.lane.b32.xlu1 %v10521_v38, %s11811_s15 }
0x1847   :  { %2334 = vrot.lane.b32.xlu1 %v10519_v39, %s11809_s16 }
0x18b7   :  { %v2216_v54 = vpop.xlane.xlu1 %2215 }
0x18b8   :  { %v2220_v55 = vsub.f32 %v2212_v41, %v2216_v54 }
0x18ba   :  { %v2222_v59 = vmul.f32 1.442695, %v2220_v55 }
0x18bb   :  { %v2219_v60 = vpop.xlane.xlu0 %2218  ;;  %v2239_v61 = vpop.permute.xlu1 %2238 }
0x18bc   :  { %9723 = vpow2.f32 %v2222_v59  ;;  %v2221_v52 = vsub.f32 %v2213_v48, %v2219_v60  ;;  %v2244_v62 = vsel %vm451_vm9, %v2239_v61, 0 }
0x18bd   :  { %8884 = vmatpush3.bf16.msra.mxu0 %v2244_v62 }
0x18be   :  { %v2224_v45 = vmul.f32 1.442695, %v2221_v52  ;;  %8895 = vmatprep.subr.bf16.mxu0 %v10007_v15 }
0x18bf   :  { %v2337_v4 = vpop.permute.xlu1 %2336 }
0x18c0   :  { %9725 = vpow2.f32 %v2224_v45  ;;  %v2342_v49 = vsel %vm322_vm6, %v2337_v4, 0  ;;  %v9612_v4 = vld [vmem:[%s10073_s8 + $0x18] sm:$0xff]  }
0x18c3   :  { %v2387_v9 = vpop.permute.xlu1 %2386 }
0x18c4   :  { %v2392_v11 = vsel %vm322_vm6, %v2387_v9, 0 }
0x18c6   :  { %v9724_v29 = vpop.eup %9723 }
0x18c7   :  { %v2226_v33 = vsel %vm322_vm6, %v9724_v29, 0.0  ;;  %v2335_v12 = vpop.permute.xlu1 %2334 }
0x18c8   :  { %2227 = vadd.xlane.f32.xlu0 %v2226_v33 }
0x18ca   :  { %v9726_v50 = vpop.eup %9725 }
0x18cb   :  { %v2229_v34 = vsel %vm322_vm6, %v9726_v50, 0.0 }
0x18cc   :  { %2230 = vadd.xlane.f32.xlu0 %v2229_v34 }
0x18e2   :  { %2286 = vrot.lane.b32.xlu0 %v10521_v38, %s10016_s11 }
0x18e6   :  { %2384 = vrot.lane.b32.xlu0 %v10521_v38, %s11809_s16 }
0x1955   :  { %v2228_v63 = vpop.xlane.xlu0 %2227 }
0x1956   :  { %9727 = vrcp.f32 %v2228_v63 }
0x1959   :  { %v2231_v0 = vpop.xlane.xlu0 %2230 }
0x195a   :  { %9729 = vrcp.f32 %v2231_v0 }
0x195d   :  { %v2287_v1 = vpop.permute.xlu0 %2286 }
0x195e   :  { %v2292_v2 = vsel %vm451_vm9, %v2287_v1, 0 }
0x195f   :  { %8890 = vmatpush3.bf16.msra.mxu1 %v2292_v2 }
0x1960   :  { %v9728_v3 = vpop.eup %9727  ;;  %8901 = vmatprep.subr.bf16.mxu1 %v10007_v15 }
0x1961   :  { %v2234_v5 = vmul.f32 %v9728_v3, %v9724_v29  ;;  %v2385_v13 = vpop.permute.xlu0 %2384  ;;  %v9611_v3 = vld [vmem:[%s10073_s8 + $0x10] sm:$0xff]   ;;  %s11841_s8 = sld [smem:[#allocation6_spill]] }
0x1963   :  { %v2236_v6 = vpack.c.bf16 %v2234_v5, %v2234_v5 }
0x1964   :  { %v9730_v7 = vpop.eup %9729 }
0x1965   :  { %8886 = vmatmul.mubr.msk.bf16.vlgmr.msra.gmra.mrb[60].mxu0 %vm322_vm6, %v2236_v6  ;;  %v2235_v8 = vmul.f32 %v9730_v7, %v9726_v50 }
0x1966   :  { %8896 = vmatpush3.bf16.xpose.msra.mxu0 %v2342_v49  ;;  %8897 = vmatprep.mubr.msk.bf16.mxu0 %vm10008_vm1, %v10007_v15 }
0x1967   :  { %v2237_v10 = vpack.c.bf16 %v2235_v8, %v2235_v8  ;;  %8907 = vmatprep.subr.bf16.mxu0 %v10007_v15 }
0x1969   :  { %8892 = vmatmul.mubr.msk.bf16.vlgmr.msra.gmra.mrb[64].mxu1 %vm322_vm6, %v2237_v10 }
0x196a   :  { %8902 = vmatpush3.bf16.xpose.msra.mxu1 %v2392_v11  ;;  %8903 = vmatprep.mubr.msk.bf16.mxu1 %vm10008_vm1, %v10007_v15 }
0x196b   :  { %8913 = vmatprep.subr.bf16.mxu1 %v10007_v15 }
0x196d   :  { %8898 = vmatmul.mubr.msk.bf16.vlgmr.msra.gmra.mrb[64].mxu0 %vm322_vm6, %v2335_v12 }
0x196e   :  { %8909 = vmatprep.mubr.msk.bf16.mxu0 %vm10008_vm1, %v10007_v15 }
0x1971   :  { %8904 = vmatmul.mubr.msk.bf16.vlgmr.msra.gmra.mrb[68].mxu1 %vm322_vm6, %v2385_v13 }
0x1972   :  { %8915 = vmatprep.mubr.msk.bf16.mxu1 %vm10008_vm1, %v10007_v15 }
0x1a38   :  { %v2280_v14 = vpop.f32.mrb[60].mxu0 }
0x1a39   :  { %v8887_v16 = vpop.f32.mrb[61].mxu0 }
0x1a3a   :  { %v2283_v17 = vpop.f32.mrb[62].mxu0 }
0x1a3b   :  { %v8888_v18 = vpop.f32.mrb[63].mxu0 }
0x1a3c   :  { %v2328_v20 = vpop.f32.mrb[64].mxu1 }
0x1a3d   :  { %v9529_v21 = vpack.i.bf16 %v2328_v20, %v2280_v14  ;;  %v8893_v22 = vpop.f32.mrb[65].mxu1 }
0x1a3e   :  { %v2331_v25 = vpop.f32.mrb[66].mxu1 }
0x1a3f   :  { %v8894_v27 = vpop.f32.mrb[67].mxu1 }
0x1a40   :  { %v2378_v28 = vpop.f32.mrb[64].mxu0 }
0x1a41   :  { %v2434_v31 = vmul.f32 0.35355338, %v2378_v28  ;;  %v8899_v32 = vpop.f32.mrb[65].mxu0 }
0x1a42   :  { %v2381_v35 = vpop.f32.mrb[66].mxu0 }
0x1a43   :  { %v8900_v36 = vpop.f32.mrb[67].mxu0  ;;  %v2436_v37 = vsel %vm315_vm7, %v2434_v31, -1e+09 }
0x1a44   :  { %v2428_v41 = vpop.f32.mrb[68].mxu1  ;;  %v2438_v40 = vsel %vm322_vm6, %v2436_v37, -inf }
0x1a45   :  { %v2435_v42 = vmul.f32 0.35355338, %v2428_v41  ;;  %v8905_v43 = vpop.f32.mrb[69].mxu1  ;;  %2439 = vmax.xlane.f32.xlu1 %v2438_v40 }
0x1a46   :  { %v2431_v44 = vpop.f32.mrb[70].mxu1 }
0x1a47   :  { %v8906_v46 = vpop.f32.mrb[71].mxu1  ;;  %v2437_v47 = vsel %vm316_vm8, %v2435_v42, -1e+09 }
0x1a48   :  { %v2441_v48 = vsel %vm322_vm6, %v2437_v47, -inf }
0x1a49   :  { %2442 = vmax.xlane.f32.xlu0 %v2441_v48 }
0x1a56   :  { %2462 = vrot.lane.b32.xlu1 %v10519_v39, %s11807_s18 }
0x1a5a   :  { %9525 = vrot.lane.b32.xlu1 %v9524_v24, %s11805_s22 }
0x1a5e   :  { %9530 = vrot.lane.b32.xlu1 %v9529_v21, %s11801_s23 }
0x1ad2   :  { %v2440_v51 = vpop.xlane.xlu1 %2439 }
0x1ad3   :  { %v2444_v54 = vsub.f32 %v2436_v37, %v2440_v51 }
0x1ad5   :  { %v2446_v55 = vmul.f32 1.442695, %v2444_v54 }
0x1ad6   :  { %v2443_v59 = vpop.xlane.xlu0 %2442  ;;  %v2463_v60 = vpop.permute.xlu1 %2462 }
0x1ad7   :  { %9731 = vpow2.f32 %v2446_v55  ;;  %v2445_v61 = vsub.f32 %v2437_v47, %v2443_v59  ;;  %v2468_v52 = vsel %vm451_vm9, %v2463_v60, 0  ;;  %v2938_v47 = vld [vmem:[%s11836_s5] sm:$0xff]  ;;  %v2939_v59 = vld [vmem:[%s11836_s5 + $0x8] sm:$0xff] }
0x1ad8   :  { %8908 = vmatpush3.bf16.msra.mxu0 %v2468_v52  ;;  %v2942_v55 = vsel %vm176_vm0, %v2938_v47, 0.0 }
0x1ad9   :  { %v2448_v62 = vmul.f32 1.442695, %v2445_v61  ;;  %8919 = vmatprep.subr.bf16.mxu0 %v10007_v15 }
0x1ada   :  { %v9526_v13 = vpop.permute.xlu1 %9525 }
0x1adb   :  { %9733 = vpow2.f32 %v2448_v62  ;;  %v9528_v16 = vunpack.i.h.bf16 %v9526_v13  ;;  %v9527_v17 = vunpack.i.l.bf16 %v9526_v13 }
0x1add   :  { %v2583_v22 = vsel %vm322_vm6, %v10581_v30, %v9528_v16  ;;  %v2582_v25 = vsel %vm322_vm6, %v10579_v26, %v9527_v17  ;;  %v8200_v30 = vld [vmem:[%s10078_s14 + $0x1] ss:$0 sm:$0xff]  ;;  %s11842_s14 = sld [smem:[#allocation13_spill]] }
0x1ade   :  { %v9531_v14 = vpop.permute.xlu1 %9530 }
0x1adf   :  { %v9533_v18 = vunpack.i.h.bf16 %v9531_v14  ;;  %v9532_v20 = vunpack.i.l.bf16 %v9531_v14 }
0x1ae1   :  { %v9732_v39 = vpop.eup %9731  ;;  %v2584_v31 = vsel %vm1241_vm10, %v2582_v25, %v9532_v20  ;;  %v2585_v32 = vsel %vm1241_vm10, %v2583_v22, %v9533_v18 }
0x1ae2   :  { %v2450_v19 = vsel %vm322_vm6, %v9732_v39, 0.0 }
0x1ae3   :  { %2451 = vadd.xlane.f32.xlu0 %v2450_v19 }
0x1ae5   :  { %v9734_v23 = vpop.eup %9733 }
0x1ae6   :  { %v2453_v24 = vsel %vm322_vm6, %v9734_v23, 0.0 }
0x1ae7   :  { %2454 = vadd.xlane.f32.xlu0 %v2453_v24 }
0x1afd   :  { %2510 = vrot.lane.b32.xlu0 %v10521_v38, %s11807_s18 }
0x1b70   :  { %v2452_v45 = vpop.xlane.xlu0 %2451 }
0x1b71   :  { %9735 = vrcp.f32 %v2452_v45 }
0x1b74   :  { %v2455_v29 = vpop.xlane.xlu0 %2454 }
0x1b75   :  { %9737 = vrcp.f32 %v2455_v29 }
0x1b78   :  { %v2511_v33 = vpop.permute.xlu0 %2510 }
0x1b79   :  { %v2516_v50 = vsel %vm451_vm9, %v2511_v33, 0 }
0x1b7a   :  { %8914 = vmatpush3.bf16.msra.mxu1 %v2516_v50 }
0x1b7b   :  { %v9736_v34 = vpop.eup %9735  ;;  %8927 = vmatprep.subr.bf16.mxu1 %v10007_v15 }
0x1b7c   :  { %v2458_v63 = vmul.f32 %v9736_v34, %v9732_v39 }
0x1b7e   :  { %v2460_v0 = vpack.c.bf16 %v2458_v63, %v2458_v63 }
0x1b7f   :  { %v9738_v1 = vpop.eup %9737 }
0x1b80   :  { %8910 = vmatmul.mubr.msk.bf16.vlgmr.msra.gmra.mrb[68].mxu0 %vm322_vm6, %v2460_v0  ;;  %v2459_v2 = vmul.f32 %v9738_v1, %v9734_v23 }
0x1b81   :  { %8923 = vmatprep.mubr.msk.bf16.mxu0 %vm10008_vm1, %v10007_v15  ;;  %8920 = vmatpush3.bf16.msra.mxu0 %v9611_v3 }
0x1b82   :  { %v2461_v38 = vpack.c.bf16 %v2459_v2, %v2459_v2  ;;  %8921 = vmatprep.subr.bf16.mxu0 %v10007_v15 }
0x1b84   :  { %8916 = vmatmul.mubr.msk.bf16.vlgmr.msra.gmra.mrb[72].mxu1 %vm322_vm6, %v2461_v38 }
0x1b85   :  { %8931 = vmatprep.mubr.msk.bf16.mxu1 %vm10008_vm1, %v10007_v15  ;;  %8922 = vmatpush3.bf16.msra.mxu0 %v9612_v4  ;;  %v9613_v4 = vld [vmem:[%s10093_s30 + $0x10] sm:$0xff]  }
0x1b86   :  { %8935 = vmatprep.subr.bf16.mxu0 %v10007_v15  ;;  %8928 = vmatpush3.bf16.msra.mxu1 %v9613_v4 }
0x1b87   :  { %8929 = vmatprep.subr.bf16.mxu1 %v10007_v15 }
0x1c53   :  { %v2504_v5 = vpop.f32.mrb[68].mxu0 }
0x1c54   :  { %v8911_v6 = vpop.f32.mrb[69].mxu0 }
0x1c55   :  { %v2507_v7 = vpop.f32.mrb[70].mxu0  ;;  %v9617_v6 = vld [vmem:[%s10103_s12 + $0x20] sm:$0xff]  }
0x1c56   :  { %v8912_v49 = vpop.f32.mrb[71].mxu0  ;;  %v9618_v7 = vld [vmem:[%s10103_s12 + $0x28] sm:$0xff]  }
0x1c57   :  { %v2552_v8 = vpop.f32.mrb[72].mxu1 }
0x1c58   :  { %v9534_v9 = vpack.i.bf16 %v2552_v8, %v2504_v5  ;;  %v8917_v10 = vpop.f32.mrb[73].mxu1  ;;  %v9614_v5 = vld [vmem:[%s10093_s30 + $0x18] sm:$0xff]   ;;  %s11845_s30 = sld [smem:[#allocation7_spill]] }
0x1c59   :  { %v2555_v11 = vpop.f32.mrb[74].mxu1  ;;  %8930 = vmatpush3.bf16.msra.mxu1 %v9614_v5  ;;  %v9619_v5 = vld [vmem:[%s10103_s12 + $0x30] sm:$0xff]  }
0x1c5a   :  { %v8918_v12 = vpop.f32.mrb[75].mxu1  ;;  %9535 = vrot.lane.b32.xlu1 %v9534_v9, %s11803_s26  ;;  %8947 = vmatprep.subr.bf16.mxu1 %v10007_v15 }
0x1ccc   :  { %v9536_v21 = vpop.permute.xlu1 %9535 }
0x1ccd   :  { %v9538_v27 = vunpack.i.h.bf16 %v9536_v21  ;;  %v9537_v28 = vunpack.i.l.bf16 %v9536_v21 }
0x1ccf   :  { %v2587_v35 = vsel %vm1244_vm11, %v2585_v32, %v9538_v27  ;;  %v2586_v36 = vsel %vm1244_vm11, %v2584_v31, %v9537_v28 }
0x1cd0   :  { %v2595_v37 = vpack.c.bf16 %v2587_v35, %v2586_v36 }
0x1cd2   :  { %8924 = vmatmul.mubr.msk.bf16.vlgmr.msra.gmra.mrb[72].mxu0 %vm176_vm0, %v2595_v37 }
0x1cd3   :  { %8943 = vmatprep.mubr.msk.bf16.mxu0 %vm10008_vm1, %v10007_v15  ;;  %8936 = vmatpush3.bf16.msra.mxu0 %v9617_v6  ;;  %v9620_v6 = vld [vmem:[%s10103_s12 + $0x38] sm:$0xff]   ;;  %s11847_s12 = sld [smem:[#allocation17_spill]] }
0x1cd4   :  { %8937 = vmatprep.subr.bf16.mxu0 %v10007_v15 }
0x1cd7   :  { %8938 = vmatpush3.bf16.msra.mxu0 %v9618_v7  ;;  %v8213_v7 = vld [vmem:[%s10098_s6 + $0x1] ss:$0 sm:$0xff]  ;;  %s11846_s6 = sld [smem:[#allocation8_spill]] }
0x1cd8   :  { %8939 = vmatprep.subr.bf16.mxu0 %v10007_v15 }
0x1cdb   :  { %8940 = vmatpush3.bf16.msra.mxu0 %v9619_v5 }
0x1cdc   :  { %8941 = vmatprep.subr.bf16.mxu0 %v10007_v15 }
0x1cdf   :  { %8942 = vmatpush3.bf16.msra.mxu0 %v9620_v6 }
0x1ce0   :  { %8961 = vmatprep.subr.bf16.mxu0 %v10007_v15 }
0x1da5   :  { %v2651_v26 = vpop.f32.mrb[72].mxu0 }
0x1da6   :  { %v2652_v41 = vadd.f32 %v8200_v30, %v2651_v26  ;;  %v8925_v40 = vpop.f32.mrb[73].mxu0 }
0x1da7   :  { %v2654_v42 = vpop.f32.mrb[74].mxu0 }
0x1da8   :  { %v10714_v43 = vadd.f32 %v2652_v41, %v10496_v53  ;;  %v2655_v44 = vadd.f32 %v8200_v30, %v2654_v42  ;;  %v8926_v46 = vpop.f32.mrb[75].mxu0  ;;  %v2945_v53 = vsel %vm176_vm0, %v2939_v59, 0.0 }
0x1daa   :  { %v10718_v48 = vadd.f32 %v2655_v44, %v10499_v56  ;;  %v2664_v51 = vsel %vm176_vm0, %v10714_v43, 0.0 }
0x1dab   :  { %2665 = vadd.xlane.f32.xlu0 %v2664_v51 }
0x1dac   :  { %v2667_v54 = vsel %vm176_vm0, %v10718_v48, 0.0 }
0x1dad   :  { %2668 = vadd.xlane.f32.xlu1 %v2667_v54 }
0x1daf   :  { %2943 = vadd.xlane.f32.xlu0 %v2942_v55  ;;  %v8206_v55 = vld [vmem:[%s10083_s19 + $0x1] ss:$0 sm:$0xff]  ;;  %s11843_s19 = sld [smem:[#allocation14_spill]] }
0x1db3   :  { %2946 = vadd.xlane.f32.xlu0 %v2945_v53 }
0x1e38   :  { %v2666_v60 = vpop.xlane.xlu0 %2665 }
0x1e39   :  { %v2670_v61 = vmul.f32 0.03125, %v2666_v60 }
0x1e3a   :  { %v2669_v52 = vpop.xlane.xlu1 %2668 }
0x1e3b   :  { %v10728_v56 = vsub.f32 %v10714_v43, %v2670_v61  ;;  %v2671_v62 = vmul.f32 0.03125, %v2669_v52  ;;  %v8234_v61 = vld [vmem:[%s11837_s21] ss:$0 sm:$0xff] }
0x1e3c   :  { %v2944_v39 = vpop.xlane.xlu0 %2943 }
0x1e3d   :  { %v10731_v19 = vsub.f32 %v10718_v48, %v2671_v62  ;;  %v2948_v23 = vmul.f32 0.03125, %v2944_v39  ;;  %v2674_v24 = vmul.f32 %v10728_v56, %v10728_v56  ;;  %v2704_v53 = vmul.f32 %v8206_v55, %v10728_v56  ;;  %v8207_v39 = vld [vmem:[%s10088_s24 + $0x1] ss:$0 sm:$0xff]  ;;  %s11844_s24 = sld [smem:[#allocation19_spill]] }
0x1e3f   :  { %v10735_v45 = vsub.f32 %v2938_v47, %v2948_v23  ;;  %v2676_v29 = vsel %vm176_vm0, %v2674_v24, 0.0  ;;  %v2675_v33 = vmul.f32 %v10731_v19, %v10731_v19  ;;  %v2705_v60 = vmul.f32 %v8206_v55, %v10731_v19 }
0x1e40   :  { %2677 = vadd.xlane.f32.xlu0 %v2676_v29  ;;  %v2947_v50 = vpop.xlane.xlu0 %2946 }
0x1e41   :  { %v2949_v34 = vmul.f32 0.03125, %v2947_v50  ;;  %v2679_v63 = vsel %vm176_vm0, %v2675_v33, 0.0  ;;  %v2952_v0 = vmul.f32 %v10735_v45, %v10735_v45  ;;  %v2982_v29 = vmul.f32 %v8234_v61, %v10735_v45 }
0x1e42   :  { %2680 = vadd.xlane.f32.xlu1 %v2679_v63  ;;  %v9615_v63 = vld [vmem:[%s11838_s25] sm:$0xff]  }
0x1e43   :  { %v10743_v1 = vsub.f32 %v2939_v59, %v2949_v34  ;;  %v2954_v2 = vsel %vm176_vm0, %v2952_v0, 0.0 }
0x1e44   :  { %2955 = vadd.xlane.f32.xlu0 %v2954_v2 }
0x1e45   :  { %v2953_v38 = vmul.f32 %v10743_v1, %v10743_v1  ;;  %v2983_v34 = vmul.f32 %v8234_v61, %v10743_v1 }
0x1e47   :  { %v2957_v3 = vsel %vm176_vm0, %v2953_v38, 0.0  ;;  %v8235_v38 = vld [vmem:[%s11839_s29] ss:$0 sm:$0xff] }
0x1e48   :  { %2958 = vadd.xlane.f32.xlu1 %v2957_v3  ;;  %v9616_v3 = vld [vmem:[%s11838_s25 + $0x8] sm:$0xff]  }
0x1ecd   :  { %v2678_v49 = vpop.xlane.xlu0 %2677 }
0x1ece   :  { %v2682_v8 = vmul.f32 0.032258064, %v2678_v49 }
0x1ecf   :  { %v2681_v9 = vpop.xlane.xlu1 %2680 }
0x1ed0   :  { %9739 = vrsqrt.f32 %v2682_v8  ;;  %v2683_v10 = vmul.f32 0.032258064, %v2681_v9  ;;  %vm2686_vm13 = vcmp.eq.f32.partialorder %v2682_v8, inf  ;;  %v2689_v18 = vand.u32 2147483648, %v2682_v8 }
0x1ed1   :  { %v2956_v11 = vpop.xlane.xlu0 %2955  ;;  %vm2688_vm14 = vcmp.eq.f32.partialorder %v2682_v8, 0.0 }
0x1ed2   :  { %v2960_v12 = vmul.f32 0.032258064, %v2956_v11  ;;  %9741 = vrsqrt.f32 %v2683_v10  ;;  %vm2693_vm15 = vcmp.eq.f32.partialorder %v2683_v10, inf  ;;  %v2696_v31 = vand.u32 2147483648, %v2683_v10 }
0x1ed3   :  { %vm2695_vm3 = vcmp.eq.f32.partialorder %v2683_v10, 0.0 }
0x1ed4   :  { %9743 = vrsqrt.f32 %v2960_v12  ;;  %vm2964_vm4 = vcmp.eq.f32.partialorder %v2960_v12, inf  ;;  %v2967_v36 = vand.u32 2147483648, %v2960_v12  ;;  %vm2966_vm5 = vcmp.eq.f32.partialorder %v2960_v12, 0.0 }
0x1ed5   :  { %v2959_v13 = vpop.xlane.xlu1 %2958 }
0x1ed6   :  { %v2961_v14 = vmul.f32 0.032258064, %v2959_v13 }
0x1ed8   :  { %9745 = vrsqrt.f32 %v2961_v14  ;;  %vm2971_vm12 = vcmp.eq.f32.partialorder %v2961_v14, inf  ;;  %v2974_v46 = vand.u32 2147483648, %v2961_v14 }
0x1eda   :  { %v9740_v16 = vpop.eup %9739 }
0x1edb   :  { %v2685_v17 = vmul.f32 %v9740_v16, %v2682_v8  ;;  %v8236_v16 = vld [vmem:[%s11840_s3] ss:$0 sm:$0xff] }
0x1edc   :  { %v9742_v20 = vpop.eup %9741 }
0x1edd   :  { %v2687_v21 = vsel %vm2686_vm13, %v2682_v8, %v2685_v17  ;;  %v2692_v27 = vmul.f32 %v9742_v20, %v2683_v10  ;;  %vm2973_vm13 = vcmp.eq.f32.partialorder %v2961_v14, 0.0 }
0x1ede   :  { %v9744_v22 = vpop.eup %9743  ;;  %v2690_v25 = vsel %vm2688_vm14, %v2689_v18, %v2687_v21 }
0x1edf   :  { %v2706_v28 = vadd.f32 1e-06, %v2690_v25  ;;  %v2963_v32 = vmul.f32 %v9744_v22, %v2960_v12  ;;  %v2694_v35 = vsel %vm2693_vm15, %v2683_v10, %v2692_v27 }
0x1ee0   :  { %v2697_v37 = vsel %vm2695_vm3, %v2696_v31, %v2694_v35 }
0x1ee1   :  { %9747 = vrcp.f32 %v2706_v28  ;;  %v2965_v30 = vsel %vm2964_vm4, %v2960_v12, %v2963_v32  ;;  %v2707_v41 = vadd.f32 1e-06, %v2697_v37 }
0x1ee2   :  { %v9746_v26 = vpop.eup %9745  ;;  %v2968_v40 = vsel %vm2966_vm5, %v2967_v36, %v2965_v30 }
0x1ee3   :  { %v2984_v42 = vadd.f32 1e-06, %v2968_v40  ;;  %v2970_v44 = vmul.f32 %v9746_v26, %v2961_v14  ;;  %9749 = vrcp.f32 %v2707_v41  ;;  %v10807_v41 = vld [vmem:[%s10108_s20 + $0x1] ss:$0 sm:$0xff]  ;;  %s11848_s20 = sld [smem:[#allocation15_spill]] }
0x1ee5   :  { %9751 = vrcp.f32 %v2984_v42  ;;  %v2972_v47 = vsel %vm2971_vm12, %v2961_v14, %v2970_v44 }
0x1ee6   :  { %v2975_v51 = vsel %vm2973_vm13, %v2974_v46, %v2972_v47  ;;  %v10813_v46 = vld [vmem:[%s11841_s8] sm:$0xff]  ;;  %v10816_v47 = vld [vmem:[%s11841_s8 + $0x8] sm:$0xff]  ;;  %s11850_s8 = sld [smem:[#allocation20_spill]] }
0x1ee7   :  { %v2985_v54 = vadd.f32 1e-06, %v2975_v51  ;;  %vm3066_vm14 = vcmp.gt.f32.partialorder %v10813_v46, 0.0  ;;  %vm3067_vm15 = vcmp.gt.f32.partialorder %v10816_v47, 0.0 }
0x1ee9   :  { %9753 = vrcp.f32 %v2985_v54 }
0x1eeb   :  { %v9748_v59 = vpop.eup %9747 }
0x1eec   :  { %v2709_v52 = vmul.f32 %v9748_v59, %v2704_v53 }
0x1eed   :  { %v9750_v62 = vpop.eup %9749 }
0x1eee   :  { %v2711_v24 = vmul.f32 %v9750_v62, %v2705_v60  ;;  %v2718_v33 = vadd.f32 %v8207_v39, %v2709_v52 }
0x1eef   :  { %v9752_v23 = vpop.eup %9751 }
0x1ef0   :  { %v2719_v50 = vadd.f32 %v8207_v39, %v2711_v24  ;;  %v2987_v0 = vmul.f32 %v9752_v23, %v2982_v29 }
0x1ef2   :  { %v2727_v56 = vpack.c.bf16 %v2719_v50, %v2718_v33  ;;  %v2996_v45 = vadd.f32 %v8235_v38, %v2987_v0 }
0x1ef3   :  { %v9754_v2 = vpop.eup %9753 }
0x1ef4   :  { %v2989_v19 = vmul.f32 %v9754_v2, %v2983_v34  ;;  %8932 = vmatmul.mubr.msk.bf16.vlgmr.msra.gmra.mrb[76].mxu1 %vm176_vm0, %v2727_v56 }
0x1ef5   :  { %8948 = vmatpush3.bf16.msra.mxu1 %v9615_v63  ;;  %8951 = vmatprep.mubr.msk.bf16.mxu1 %vm10008_vm1, %v10007_v15 }
0x1ef6   :  { %v2997_v4 = vadd.f32 %v8235_v38, %v2989_v19  ;;  %8949 = vmatprep.subr.bf16.mxu1 %v10007_v15 }
0x1ef8   :  { %v3003_v1 = vpack.c.bf16 %v2997_v4, %v2996_v45 }
0x1ef9   :  { %8950 = vmatpush3.bf16.msra.mxu1 %v9616_v3 }
0x1efa   :  { %8955 = vmatprep.subr.bf16.mxu1 %v10007_v15 }
0x1efc   :  { %8952 = vmatmul.mubr.msk.bf16.vlgmr.msra.gmra.mrb[80].mxu1 %vm176_vm0, %v3003_v1 }
0x1efd   :  { %8957 = vmatprep.mubr.msk.bf16.mxu1 %vm10008_vm1, %v10007_v15 }
0x1fc7   :  { %v2783_v49 = vpop.f32.mrb[76].mxu1 }
0x1fc8   :  { %v2784_v8 = vadd.f32 %v8213_v7, %v2783_v49  ;;  %v8933_v9 = vpop.f32.mrb[77].mxu1 }
0x1fc9   :  { %v2786_v10 = vpop.f32.mrb[78].mxu1 }
0x1fca   :  { %v2787_v11 = vadd.f32 %v8213_v7, %v2786_v10  ;;  %v8934_v12 = vpop.f32.mrb[79].mxu1  ;;  %v2790_v13 = vmax.f32 %v2784_v8, 0.0 }
0x1fcc   :  { %v2791_v14 = vmax.f32 %v2787_v11, 0.0 }
0x1fce   :  { %v2803_v17 = vpack.c.bf16 %v2791_v14, %v2790_v13 }
0x1fcf   :  { %v3059_v18 = vpop.f32.mrb[80].mxu1 }
0x1fd0   :  { %v3060_v20 = vadd.f32 %v8236_v16, %v3059_v18  ;;  %8944 = vmatmul.mubr.msk.bf16.vlgmr.msra.gmra.mrb[76].mxu0 %vm1485_vm2, %v2803_v17  ;;  %v8953_v21 = vpop.f32.mrb[81].mxu1 }
0x1fd1   :  { %v3062_v22 = vpop.f32.mrb[82].mxu1  ;;  %8963 = vmatprep.mubr.msk.bf16.mxu0 %vm10008_vm1, %v10007_v15 }
0x1fd2   :  { %v10784_v25 = vpack.c.bf16 %v3060_v20, %v3060_v20  ;;  %v3063_v27 = vadd.f32 %v8236_v16, %v3062_v22  ;;  %v8954_v28 = vpop.f32.mrb[83].mxu1 }
0x1fd4   :  { %v10786_v31 = vpack.c.bf16 %v3063_v27, %v3063_v27  ;;  %3071 = vrot.lane.b32.xlu0 %v10784_v25, %s10009_s0 }
0x1fd6   :  { %3120 = vrot.lane.b32.xlu1 %v10786_v31, %s10009_s0 }
0x2046   :  { %v3072_v32 = vpop.permute.xlu0 %3071 }
0x2047   :  { %v3077_v35 = vsel %vm322_vm6, %v3072_v32, 0 }
0x2048   :  { %8956 = vmatpush3.bf16.xpose.msra.mxu1 %v3077_v35  ;;  %v3121_v36 = vpop.permute.xlu1 %3120 }
0x2049   :  { %v3126_v37 = vsel %vm322_vm6, %v3121_v36, 0  ;;  %8967 = vmatprep.subr.bf16.mxu1 %v10007_v15 }
0x204a   :  { %8962 = vmatpush3.bf16.xpose.msra.mxu0 %v3126_v37 }
0x204b   :  { %8973 = vmatprep.subr.bf16.mxu0 %v10007_v15 }
0x204f   :  { %8958 = vmatmul.mubr.msk.bf16.vlgmr.msra.gmra.mrb[84].mxu1 %vm322_vm6, %v10784_v25 }
0x2050   :  { %8969 = vmatprep.mubr.msk.bf16.mxu1 %vm10008_vm1, %v10007_v15 }
0x2051   :  { %8964 = vmatmul.mubr.msk.bf16.vlgmr.msra.gmra.mrb[80].mxu0 %vm322_vm6, %v10786_v31 }
0x2052   :  { %8975 = vmatprep.mubr.msk.bf16.mxu0 %vm10008_vm1, %v10007_v15 }
0x20a3   :  { %v10804_v30 = vpop.f32.mrb[76].mxu0 }
0x20a4   :  { %v8945_v26 = vpop.f32.mrb[77].mxu0 }
0x20a5   :  { %v2874_v40 = vpop.f32.mrb[78].mxu0 }
0x20a6   :  { %v10810_v42 = vadd.f32 %v10807_v41, %v2874_v40  ;;  %v8946_v44 = vpop.f32.mrb[79].mxu0 }
0x2122   :  { %v3113_v51 = vpop.f32.mrb[84].mxu1 }
0x2123   :  { %v3168_v54 = vmul.f32 0.35355338, %v3113_v51  ;;  %v8959_v55 = vpop.f32.mrb[85].mxu1 }
0x2124   :  { %v3116_v59 = vpop.f32.mrb[86].mxu1  ;;  %v3162_v53 = vpop.f32.mrb[80].mxu0 }
0x2125   :  { %v3170_v60 = vsel %vm3066_vm14, %v3168_v54, -1e+09  ;;  %v3169_v61 = vmul.f32 0.35355338, %v3162_v53  ;;  %v8960_v52 = vpop.f32.mrb[87].mxu1  ;;  %v8965_v62 = vpop.f32.mrb[81].mxu0 }
0x2126   :  { %v3165_v39 = vpop.f32.mrb[82].mxu0  ;;  %v3172_v23 = vsel %vm322_vm6, %v3170_v60, -inf }
0x2127   :  { %v3171_v24 = vsel %vm3067_vm15, %v3169_v61, -1e+09  ;;  %3173 = vmax.xlane.f32.xlu1 %v3172_v23  ;;  %v8966_v29 = vpop.f32.mrb[83].mxu0 }
0x2128   :  { %v3175_v33 = vsel %vm322_vm6, %v3171_v24, -inf }
0x2129   :  { %3176 = vmax.xlane.f32.xlu0 %v3175_v33 }
0x2138   :  { %3244 = vrot.lane.b32.xlu1 %v10786_v31, %s10010_s13 }
0x213c   :  { %3294 = vrot.lane.b32.xlu1 %v10784_v25, %s10011_s28 }
0x21b4   :  { %v3174_v50 = vpop.xlane.xlu1 %3173 }
0x21b5   :  { %v3178_v34 = vsub.f32 %v3170_v60, %v3174_v50 }
0x21b6   :  { %v3177_v63 = vpop.xlane.xlu0 %3176 }
0x21b7   :  { %v3180_v0 = vmul.f32 1.442695, %v3178_v34  ;;  %v3179_v2 = vsub.f32 %v3171_v24, %v3177_v63 }
0x21b8   :  { %v3245_v56 = vpop.permute.xlu1 %3244 }
0x21b9   :  { %9755 = vpow2.f32 %v3180_v0  ;;  %v3182_v38 = vmul.f32 1.442695, %v3179_v2  ;;  %v3250_v19 = vsel %vm451_vm9, %v3245_v56, 0 }
0x21ba   :  { %8974 = vmatpush3.bf16.msra.mxu0 %v3250_v19 }
0x21bb   :  { %9757 = vpow2.f32 %v3182_v38  ;;  %8985 = vmatprep.subr.bf16.mxu0 %v10007_v15 }
0x21bc   :  { %v3295_v5 = vpop.permute.xlu1 %3294 }
0x21bd   :  { %v3300_v16 = vsel %vm322_vm6, %v3295_v5, 0 }
0x21c3   :  { %v9756_v3 = vpop.eup %9755 }
0x21c4   :  { %v3184_v45 = vsel %vm322_vm6, %v9756_v3, 0.0 }
0x21c5   :  { %v9758_v4 = vpop.eup %9757  ;;  %3185 = vadd.xlane.f32.xlu0 %v3184_v45 }
0x21c6   :  { %v3187_v1 = vsel %vm322_vm6, %v9758_v4, 0.0 }
0x21c7   :  { %3188 = vadd.xlane.f32.xlu1 %v3187_v1 }
0x21d8   :  { %3344 = vrot.lane.b32.xlu1 %v10786_v31, %s10011_s28 }
0x21db   :  { %3196 = vrot.lane.b32.xlu0 %v10784_v25, %s10010_s13 }
0x21dc   :  { %3342 = vrot.lane.b32.xlu1 %v10786_v31, %s10012_s1 }
0x21df   :  { %3292 = vrot.lane.b32.xlu0 %v10784_v25, %s10012_s1 }
0x2252   :  { %v3186_v6 = vpop.xlane.xlu0 %3185 }
0x2253   :  { %9759 = vrcp.f32 %v3186_v6 }
0x2254   :  { %v3189_v7 = vpop.xlane.xlu1 %3188 }
0x2255   :  { %9761 = vrcp.f32 %v3189_v7 }
0x2256   :  { %v3197_v49 = vpop.permute.xlu0 %3196 }
0x2257   :  { %v3202_v8 = vsel %vm451_vm9, %v3197_v49, 0 }
0x2258   :  { %8968 = vmatpush3.bf16.msra.mxu1 %v3202_v8  ;;  %v3345_v14 = vpop.permute.xlu1 %3344 }
0x2259   :  { %8979 = vmatprep.subr.bf16.mxu1 %v10007_v15  ;;  %v3350_v18 = vsel %vm322_vm6, %v3345_v14, 0 }
0x225a   :  { %v3293_v20 = vpop.permute.xlu0 %3292 }
0x225c   :  { %v3343_v21 = vpop.permute.xlu1 %3342 }
0x225d   :  { %v9760_v9 = vpop.eup %9759 }
0x225e   :  { %v3192_v10 = vmul.f32 %v9760_v9, %v9756_v3 }
0x225f   :  { %v9762_v11 = vpop.eup %9761 }
0x2260   :  { %v3194_v12 = vpack.c.bf16 %v3192_v10, %v3192_v10  ;;  %v3193_v13 = vmul.f32 %v9762_v11, %v9758_v4 }
0x2262   :  { %8970 = vmatmul.mubr.msk.bf16.vlgmr.msra.gmra.mrb[88].mxu1 %vm322_vm6, %v3194_v12  ;;  %v3195_v17 = vpack.c.bf16 %v3193_v13, %v3193_v13 }
0x2263   :  { %8980 = vmatpush3.bf16.xpose.msra.mxu1 %v3300_v16  ;;  %8981 = vmatprep.mubr.msk.bf16.mxu1 %vm10008_vm1, %v10007_v15 }
0x2264   :  { %8976 = vmatmul.mubr.msk.bf16.vlgmr.msra.gmra.mrb[84].mxu0 %vm322_vm6, %v3195_v17  ;;  %8991 = vmatprep.subr.bf16.mxu1 %v10007_v15 }
0x2265   :  { %8986 = vmatpush3.bf16.xpose.msra.mxu0 %v3350_v18  ;;  %8987 = vmatprep.mubr.msk.bf16.mxu0 %vm10008_vm1, %v10007_v15 }
0x2266   :  { %8997 = vmatprep.subr.bf16.mxu0 %v10007_v15 }
0x226a   :  { %8982 = vmatmul.mubr.msk.bf16.vlgmr.msra.gmra.mrb[92].mxu1 %vm322_vm6, %v3293_v20 }
0x226b   :  { %8993 = vmatprep.mubr.msk.bf16.mxu1 %vm10008_vm1, %v10007_v15 }
0x226c   :  { %8988 = vmatmul.mubr.msk.bf16.vlgmr.msra.gmra.mrb[88].mxu0 %vm322_vm6, %v3343_v21 }
0x226d   :  { %8999 = vmatprep.mubr.msk.bf16.mxu0 %vm10008_vm1, %v10007_v15 }
0x2335   :  { %v10860_v22 = vpop.f32.mrb[88].mxu1 }
0x2336   :  { %v8971_v27 = vpop.f32.mrb[89].mxu1 }
0x2337   :  { %v3241_v28 = vpop.f32.mrb[90].mxu1  ;;  %v10862_v32 = vpop.f32.mrb[84].mxu0 }
0x2338   :  { %v8972_v35 = vpop.f32.mrb[91].mxu1  ;;  %v8977_v36 = vpop.f32.mrb[85].mxu0 }
0x2339   :  { %v3289_v37 = vpop.f32.mrb[86].mxu0 }
0x233a   :  { %v8978_v26 = vpop.f32.mrb[87].mxu0 }
0x233d   :  { %v3336_v40 = vpop.f32.mrb[92].mxu1 }
0x233e   :  { %v3392_v44 = vmul.f32 0.35355338, %v3336_v40  ;;  %v8983_v51 = vpop.f32.mrb[93].mxu1 }
0x233f   :  { %v3339_v54 = vpop.f32.mrb[94].mxu1  ;;  %v3386_v55 = vpop.f32.mrb[88].mxu0 }
0x2340   :  { %v3394_v59 = vsel %vm3066_vm14, %v3392_v44, -1e+09  ;;  %v3393_v53 = vmul.f32 0.35355338, %v3386_v55  ;;  %v8984_v60 = vpop.f32.mrb[95].mxu1  ;;  %v8989_v61 = vpop.f32.mrb[89].mxu0 }
0x2341   :  { %v3389_v52 = vpop.f32.mrb[90].mxu0  ;;  %v3396_v62 = vsel %vm322_vm6, %v3394_v59, -inf }
0x2342   :  { %v3395_v39 = vsel %vm3067_vm15, %v3393_v53, -1e+09  ;;  %3397 = vmax.xlane.f32.xlu0 %v3396_v62  ;;  %v8990_v23 = vpop.f32.mrb[91].mxu0 }
0x2343   :  { %v3399_v24 = vsel %vm322_vm6, %v3395_v39, -inf }
0x2344   :  { %3400 = vmax.xlane.f32.xlu1 %v3399_v24 }
0x2355   :  { %3468 = vrot.lane.b32.xlu1 %v10786_v31, %s10013_s2 }
0x2359   :  { %3518 = vrot.lane.b32.xlu1 %v10784_v25, %s10014_s7 }
0x235d   :  { %3568 = vrot.lane.b32.xlu1 %v10786_v31, %s10014_s7 }
0x2361   :  { %3566 = vrot.lane.b32.xlu1 %v10786_v31, %s10015_s10 }
0x23cf   :  { %v3398_v29 = vpop.xlane.xlu0 %3397 }
0x23d0   :  { %v3402_v33 = vsub.f32 %v3394_v59, %v3398_v29 }
0x23d1   :  { %v3401_v50 = vpop.xlane.xlu1 %3400 }
0x23d2   :  { %v3404_v34 = vmul.f32 1.442695, %v3402_v33  ;;  %v3403_v63 = vsub.f32 %v3395_v39, %v3401_v50 }
0x23d4   :  { %9763 = vpow2.f32 %v3404_v34  ;;  %v3406_v0 = vmul.f32 1.442695, %v3403_v63 }
0x23d5   :  { %v3469_v2 = vpop.permute.xlu1 %3468 }
0x23d6   :  { %9765 = vpow2.f32 %v3406_v0  ;;  %v3474_v56 = vsel %vm451_vm9, %v3469_v2, 0 }
0x23d7   :  { %8998 = vmatpush3.bf16.msra.mxu0 %v3474_v56 }
0x23d8   :  { %9009 = vmatprep.subr.bf16.mxu0 %v10007_v15 }
0x23d9   :  { %v3519_v49 = vpop.permute.xlu1 %3518 }
0x23da   :  { %v3524_v13 = vsel %vm322_vm6, %v3519_v49, 0 }
0x23dd   :  { %v3569_v12 = vpop.permute.xlu1 %3568 }
0x23de   :  { %v9764_v38 = vpop.eup %9763  ;;  %v3574_v16 = vsel %vm322_vm6, %v3569_v12, 0 }
0x23df   :  { %v3408_v19 = vsel %vm322_vm6, %v9764_v38, 0.0 }
0x23e0   :  { %v9766_v3 = vpop.eup %9765  ;;  %3409 = vadd.xlane.f32.xlu0 %v3408_v19 }
0x23e1   :  { %v3411_v45 = vsel %vm322_vm6, %v9766_v3, 0.0  ;;  %v3567_v18 = vpop.permute.xlu1 %3566 }
0x23e4   :  { %3412 = vadd.xlane.f32.xlu0 %v3411_v45 }
0x23fa   :  { %3420 = vrot.lane.b32.xlu0 %v10784_v25, %s10013_s2 }
0x23fe   :  { %3516 = vrot.lane.b32.xlu0 %v10784_v25, %s10015_s10 }
0x246d   :  { %v3410_v4 = vpop.xlane.xlu0 %3409 }
0x246e   :  { %9767 = vrcp.f32 %v3410_v4 }
0x2471   :  { %v3413_v1 = vpop.xlane.xlu0 %3412 }
0x2472   :  { %9769 = vrcp.f32 %v3413_v1 }
0x2475   :  { %v3421_v5 = vpop.permute.xlu0 %3420 }
0x2476   :  { %v3426_v6 = vsel %vm451_vm9, %v3421_v5, 0 }
0x2477   :  { %8992 = vmatpush3.bf16.msra.mxu1 %v3426_v6 }
0x2478   :  { %v9768_v7 = vpop.eup %9767  ;;  %9003 = vmatprep.subr.bf16.mxu1 %v10007_v15 }
0x2479   :  { %v3416_v8 = vmul.f32 %v9768_v7, %v9764_v38  ;;  %v3517_v17 = vpop.permute.xlu0 %3516 }
0x247b   :  { %v3418_v9 = vpack.c.bf16 %v3416_v8, %v3416_v8 }
0x247c   :  { %v9770_v10 = vpop.eup %9769 }
0x247d   :  { %8994 = vmatmul.mubr.msk.bf16.vlgmr.msra.gmra.mrb[96].mxu1 %vm322_vm6, %v3418_v9  ;;  %v3417_v11 = vmul.f32 %v9770_v10, %v9766_v3 }
0x247e   :  { %9005 = vmatprep.mubr.msk.bf16.mxu1 %vm10008_vm1, %v10007_v15 }
0x247f   :  { %v3419_v14 = vpack.c.bf16 %v3417_v11, %v3417_v11 }
0x2480   :  { %9004 = vmatpush3.bf16.xpose.msra.mxu1 %v3524_v13 }
0x2481   :  { %9000 = vmatmul.mubr.msk.bf16.vlgmr.msra.gmra.mrb[92].mxu0 %vm322_vm6, %v3419_v14  ;;  %9015 = vmatprep.subr.bf16.mxu1 %v10007_v15 }
0x2482   :  { %9010 = vmatpush3.bf16.xpose.msra.mxu0 %v3574_v16  ;;  %9011 = vmatprep.mubr.msk.bf16.mxu0 %vm10008_vm1, %v10007_v15 }
0x2483   :  { %9021 = vmatprep.subr.bf16.mxu0 %v10007_v15 }
0x2487   :  { %9006 = vmatmul.mubr.msk.bf16.vlgmr.msra.gmra.mrb[100].mxu1 %vm322_vm6, %v3517_v17 }
0x2488   :  { %9017 = vmatprep.mubr.msk.bf16.mxu1 %vm10008_vm1, %v10007_v15 }
0x2489   :  { %9012 = vmatmul.mubr.msk.bf16.vlgmr.msra.gmra.mrb[96].mxu0 %vm322_vm6, %v3567_v18 }
0x248a   :  { %9023 = vmatprep.mubr.msk.bf16.mxu0 %vm10008_vm1, %v10007_v15 }
0x2550   :  { %v10904_v20 = vpop.f32.mrb[96].mxu1 }
0x2551   :  { %v8995_v21 = vpop.f32.mrb[97].mxu1 }
0x2552   :  { %v3465_v27 = vpop.f32.mrb[98].mxu1 }
0x2553   :  { %v8996_v28 = vpop.f32.mrb[99].mxu1 }
0x2554   :  { %v10906_v35 = vpop.f32.mrb[92].mxu0 }
0x2555   :  { %v9539_v36 = vpack.i.bf16 %v10906_v35, %v10904_v20  ;;  %v9001_v37 = vpop.f32.mrb[93].mxu0 }
0x2556   :  { %v3513_v26 = vpop.f32.mrb[94].mxu0 }
0x2557   :  { %v9002_v40 = vpop.f32.mrb[95].mxu0 }
0x255a   :  { %v3560_v44 = vpop.f32.mrb[100].mxu1 }
0x255b   :  { %v3616_v51 = vmul.f32 0.35355338, %v3560_v44  ;;  %v9007_v54 = vpop.f32.mrb[101].mxu1 }
0x255c   :  { %v3563_v55 = vpop.f32.mrb[102].mxu1  ;;  %v3610_v59 = vpop.f32.mrb[96].mxu0 }
0x255d   :  { %v3618_v53 = vsel %vm3066_vm14, %v3616_v51, -1e+09  ;;  %v3617_v60 = vmul.f32 0.35355338, %v3610_v59  ;;  %v9008_v61 = vpop.f32.mrb[103].mxu1  ;;  %v9013_v52 = vpop.f32.mrb[97].mxu0 }
0x255e   :  { %v3613_v62 = vpop.f32.mrb[98].mxu0  ;;  %v3620_v39 = vsel %vm322_vm6, %v3618_v53, -inf }
0x255f   :  { %v3619_v23 = vsel %vm3067_vm15, %v3617_v60, -1e+09  ;;  %3621 = vmax.xlane.f32.xlu0 %v3620_v39  ;;  %v9014_v24 = vpop.f32.mrb[99].mxu0 }
0x2560   :  { %v3623_v29 = vsel %vm322_vm6, %v3619_v23, -inf }
0x2561   :  { %3624 = vmax.xlane.f32.xlu1 %v3623_v29 }
0x2572   :  { %3692 = vrot.lane.b32.xlu1 %v10786_v31, %s10016_s11 }
0x2576   :  { %3742 = vrot.lane.b32.xlu1 %v10784_v25, %s11811_s15 }
0x257a   :  { %3792 = vrot.lane.b32.xlu1 %v10786_v31, %s11811_s15 }
0x257e   :  { %3790 = vrot.lane.b32.xlu1 %v10786_v31, %s11809_s16 }
0x25ec   :  { %v3622_v33 = vpop.xlane.xlu0 %3621 }
0x25ed   :  { %v3626_v50 = vsub.f32 %v3618_v53, %v3622_v33 }
0x25ee   :  { %v3625_v34 = vpop.xlane.xlu1 %3624 }
0x25ef   :  { %v3628_v63 = vmul.f32 1.442695, %v3626_v50  ;;  %v3627_v0 = vsub.f32 %v3619_v23, %v3625_v34 }
0x25f1   :  { %9771 = vpow2.f32 %v3628_v63  ;;  %v3630_v2 = vmul.f32 1.442695, %v3627_v0  ;;  %v2872_v0 = vadd.f32 %v10807_v41, %v10804_v30 }
0x25f2   :  { %v3693_v56 = vpop.permute.xlu1 %3692 }
0x25f3   :  { %9773 = vpow2.f32 %v3630_v2  ;;  %v3698_v38 = vsel %vm451_vm9, %v3693_v56, 0  ;;  %v2878_v2 = vadd.f32 %v2872_v0, %v10714_v43 }
0x25f4   :  { %9022 = vmatpush3.bf16.msra.mxu0 %v3698_v38 }
0x25f5   :  { %9033 = vmatprep.subr.bf16.mxu0 %v10007_v15  ;;  %v2882_v56 = vsel %vm176_vm0, %v2878_v2, 0.0 }
0x25f6   :  { %v3743_v8 = vpop.permute.xlu1 %3742 }
0x25f7   :  { %v3748_v14 = vsel %vm322_vm6, %v3743_v8, 0 }
0x25fa   :  { %v3793_v13 = vpop.permute.xlu1 %3792 }
0x25fb   :  { %v9772_v19 = vpop.eup %9771  ;;  %v3798_v17 = vsel %vm322_vm6, %v3793_v13, 0 }
0x25fc   :  { %v3632_v3 = vsel %vm322_vm6, %v9772_v19, 0.0 }
0x25fd   :  { %v9774_v45 = vpop.eup %9773  ;;  %3633 = vadd.xlane.f32.xlu0 %v3632_v3 }
0x25fe   :  { %v3635_v4 = vsel %vm322_vm6, %v9774_v45, 0.0  ;;  %v3791_v21 = vpop.permute.xlu1 %3790 }
0x2601   :  { %3636 = vadd.xlane.f32.xlu0 %v3635_v4 }
0x2617   :  { %3644 = vrot.lane.b32.xlu0 %v10784_v25, %s10016_s11 }
0x261b   :  { %3740 = vrot.lane.b32.xlu0 %v10784_v25, %s11809_s16 }
0x268a   :  { %v3634_v1 = vpop.xlane.xlu0 %3633 }
0x268b   :  { %9775 = vrcp.f32 %v3634_v1 }
0x268e   :  { %v3637_v5 = vpop.xlane.xlu0 %3636 }
0x268f   :  { %9777 = vrcp.f32 %v3637_v5 }
0x2692   :  { %v3645_v6 = vpop.permute.xlu0 %3644 }
0x2693   :  { %v3650_v7 = vsel %vm451_vm9, %v3645_v6, 0 }
0x2694   :  { %9016 = vmatpush3.bf16.msra.mxu1 %v3650_v7 }
0x2695   :  { %v9776_v49 = vpop.eup %9775  ;;  %9027 = vmatprep.subr.bf16.mxu1 %v10007_v15 }
0x2696   :  { %v3640_v9 = vmul.f32 %v9776_v49, %v9772_v19  ;;  %v3741_v18 = vpop.permute.xlu0 %3740 }
0x2698   :  { %v3642_v10 = vpack.c.bf16 %v3640_v9, %v3640_v9 }
0x2699   :  { %v9778_v11 = vpop.eup %9777 }
0x269a   :  { %9018 = vmatmul.mubr.msk.bf16.vlgmr.msra.gmra.mrb[104].mxu1 %vm322_vm6, %v3642_v10  ;;  %v3641_v12 = vmul.f32 %v9778_v11, %v9774_v45 }
0x269b   :  { %9029 = vmatprep.mubr.msk.bf16.mxu1 %vm10008_vm1, %v10007_v15 }
0x269c   :  { %v3643_v16 = vpack.c.bf16 %v3641_v12, %v3641_v12 }
0x269d   :  { %9028 = vmatpush3.bf16.xpose.msra.mxu1 %v3748_v14 }
0x269e   :  { %9024 = vmatmul.mubr.msk.bf16.vlgmr.msra.gmra.mrb[100].mxu0 %vm322_vm6, %v3643_v16  ;;  %9039 = vmatprep.subr.bf16.mxu1 %v10007_v15 }
0x269f   :  { %9034 = vmatpush3.bf16.xpose.msra.mxu0 %v3798_v17  ;;  %9035 = vmatprep.mubr.msk.bf16.mxu0 %vm10008_vm1, %v10007_v15 }
0x26a0   :  { %9045 = vmatprep.subr.bf16.mxu0 %v10007_v15 }
0x26a4   :  { %9030 = vmatmul.mubr.msk.bf16.vlgmr.msra.gmra.mrb[108].mxu1 %vm322_vm6, %v3741_v18 }
0x26a5   :  { %9041 = vmatprep.mubr.msk.bf16.mxu1 %vm10008_vm1, %v10007_v15 }
0x26a6   :  { %9036 = vmatmul.mubr.msk.bf16.vlgmr.msra.gmra.mrb[104].mxu0 %vm322_vm6, %v3791_v21 }
0x26a7   :  { %9047 = vmatprep.mubr.msk.bf16.mxu0 %vm10008_vm1, %v10007_v15 }
0x276d   :  { %v3686_v27 = vpop.f32.mrb[104].mxu1 }
0x276e   :  { %v9019_v28 = vpop.f32.mrb[105].mxu1 }
0x276f   :  { %v3689_v37 = vpop.f32.mrb[106].mxu1  ;;  %v9622_v28 = vld [vmem:[%s11842_s14 + $0x8] sm:$0xff]  }
0x2770   :  { %v9020_v26 = vpop.f32.mrb[107].mxu1 }
0x2771   :  { %v3734_v40 = vpop.f32.mrb[100].mxu0 }
0x2772   :  { %v9544_v44 = vpack.i.bf16 %v3734_v40, %v3686_v27  ;;  %v9025_v51 = vpop.f32.mrb[101].mxu0  ;;  %v9621_v27 = vld [vmem:[%s11842_s14] sm:$0xff]  }
0x2773   :  { %v3737_v54 = vpop.f32.mrb[102].mxu0 }
0x2774   :  { %v9026_v55 = vpop.f32.mrb[103].mxu0 }
0x2777   :  { %v3784_v59 = vpop.f32.mrb[108].mxu1 }
0x2778   :  { %v3840_v53 = vmul.f32 0.35355338, %v3784_v59  ;;  %v9031_v60 = vpop.f32.mrb[109].mxu1 }
0x2779   :  { %v3787_v61 = vpop.f32.mrb[110].mxu1  ;;  %v3834_v52 = vpop.f32.mrb[104].mxu0  ;;  %v2879_v60 = vadd.f32 %v10810_v42, %v10718_v48 }
0x277a   :  { %v3842_v62 = vsel %vm3066_vm14, %v3840_v53, -1e+09  ;;  %v3841_v39 = vmul.f32 0.35355338, %v3834_v52  ;;  %v9032_v23 = vpop.f32.mrb[111].mxu1  ;;  %v9037_v24 = vpop.f32.mrb[105].mxu0 }
0x277b   :  { %v3837_v29 = vpop.f32.mrb[106].mxu0  ;;  %v3844_v33 = vsel %vm322_vm6, %v3842_v62, -inf  ;;  %v2885_v61 = vsel %vm176_vm0, %v2879_v60, 0.0 }
0x277c   :  { %v3843_v50 = vsel %vm3067_vm15, %v3841_v39, -1e+09  ;;  %3845 = vmax.xlane.f32.xlu0 %v3844_v33  ;;  %v9038_v34 = vpop.f32.mrb[107].mxu0 }
0x277d   :  { %v3847_v63 = vsel %vm322_vm6, %v3843_v50, -inf }
0x277e   :  { %3848 = vmax.xlane.f32.xlu1 %v3847_v63 }
0x278f   :  { %3916 = vrot.lane.b32.xlu1 %v10786_v31, %s11807_s18 }
0x2793   :  { %9540 = vrot.lane.b32.xlu1 %v9539_v36, %s11805_s22 }
0x2797   :  { %9545 = vrot.lane.b32.xlu1 %v9544_v44, %s11801_s23 }
0x27bb   :  { %2883 = vadd.xlane.f32.xlu1 %v2882_v56 }
0x2809   :  { %v3846_v38 = vpop.xlane.xlu0 %3845 }
0x280a   :  { %v3850_v19 = vsub.f32 %v3842_v62, %v3846_v38 }
0x280b   :  { %v3849_v3 = vpop.xlane.xlu1 %3848 }
0x280c   :  { %v3852_v45 = vmul.f32 1.442695, %v3850_v19  ;;  %v3851_v31 = vsub.f32 %v3843_v50, %v3849_v3 }
0x280e   :  { %9779 = vpow2.f32 %v3852_v45  ;;  %v3854_v4 = vmul.f32 1.442695, %v3851_v31  ;;  %v9941_v31 = vld [vmem:[%s11836_s5] sm:$0xff] }
0x280f   :  { %v3917_v1 = vpop.permute.xlu1 %3916 }
0x2810   :  { %9781 = vpow2.f32 %v3854_v4  ;;  %v3922_v20 = vsel %vm451_vm9, %v3917_v1, 0 }
0x2811   :  { %9046 = vmatpush3.bf16.msra.mxu0 %v3922_v20 }
0x2812   :  { %9059 = vmatprep.subr.bf16.mxu0 %v10007_v15 }
0x2813   :  { %v9541_v36 = vpop.permute.xlu1 %9540 }
0x2814   :  { %v9543_v52 = vunpack.i.h.bf16 %v9541_v36  ;;  %v9542_v62 = vunpack.i.l.bf16 %v9541_v36 }
0x2816   :  { %v3989_v29 = vsel %vm322_vm6, %v10862_v32, %v9543_v52  ;;  %v3988_v33 = vsel %vm322_vm6, %v10860_v22, %v9542_v62  ;;  %v8256_v22 = vld [vmem:[%s11843_s19] ss:$0 sm:$0xff] }
0x2817   :  { %v9546_v5 = vpop.permute.xlu1 %9545 }
0x2818   :  { %v9780_v30 = vpop.eup %9779  ;;  %v9548_v39 = vunpack.i.h.bf16 %v9546_v5  ;;  %v9547_v23 = vunpack.i.l.bf16 %v9546_v5 }
0x2819   :  { %v3856_v43 = vsel %vm322_vm6, %v9780_v30, 0.0 }
0x281a   :  { %v9782_v41 = vpop.eup %9781  ;;  %3857 = vadd.xlane.f32.xlu0 %v3856_v43  ;;  %v3990_v48 = vsel %vm1241_vm10, %v3988_v33, %v9547_v23  ;;  %v3991_v42 = vsel %vm1241_vm10, %v3989_v29, %v9548_v39  ;;  %v9942_v43 = vld [vmem:[%s11836_s5 + $0x8] sm:$0xff]  ;;  %v8232_v39 = vld [vmem:[%s11845_s30] ss:$0 sm:$0xff]  ;;  %s11849_s5 = sld [smem:[#allocation16_spill]]  ;;  %s11851_s30 = sld [smem:[#allocation18_spill]] }
0x281b   :  { %v3859_v35 = vsel %vm322_vm6, %v9782_v41, 0.0 }
0x281e   :  { %3860 = vadd.xlane.f32.xlu0 %v3859_v35 }
0x2834   :  { %3868 = vrot.lane.b32.xlu0 %v10784_v25, %s11807_s18  ;;  %s11856_s18 = sld [smem:[#allocation23_spill]] }
0x2848   :  { %v2884_v6 = vpop.xlane.xlu1 %2883 }
0x2849   :  { %v2888_v7 = vmul.f32 0.03125, %v2884_v6 }
0x284b   :  { %v10973_v49 = vsub.f32 %v2878_v2, %v2888_v7  ;;  %v9623_v7 = vld [vmem:[%s11844_s24] sm:$0xff]  }
0x284d   :  { %v2892_v8 = vmul.f32 %v10973_v49, %v10973_v49 }
0x284f   :  { %v2894_v9 = vsel %vm176_vm0, %v2892_v8, 0.0  ;;  %v9624_v8 = vld [vmem:[%s11844_s24 + $0x8] sm:$0xff]  }
0x2850   :  { %2895 = vadd.xlane.f32.xlu1 %v2894_v9 }
0x28a7   :  { %v3858_v10 = vpop.xlane.xlu0 %3857 }
0x28a8   :  { %9783 = vrcp.f32 %v3858_v10 }
0x28ab   :  { %v3861_v11 = vpop.xlane.xlu0 %3860 }
0x28ac   :  { %9785 = vrcp.f32 %v3861_v11 }
0x28af   :  { %v3869_v12 = vpop.permute.xlu0 %3868 }
0x28b0   :  { %v3874_v25 = vsel %vm451_vm9, %v3869_v12, 0 }
0x28b1   :  { %9040 = vmatpush3.bf16.msra.mxu1 %v3874_v25 }
0x28b2   :  { %v9784_v13 = vpop.eup %9783  ;;  %9051 = vmatprep.subr.bf16.mxu1 %v10007_v15 }
0x28b3   :  { %v3864_v14 = vmul.f32 %v9784_v13, %v9780_v30 }
0x28b5   :  { %v3866_v16 = vpack.c.bf16 %v3864_v14, %v3864_v14 }
0x28b6   :  { %v9786_v17 = vpop.eup %9785 }
0x28b7   :  { %9042 = vmatmul.mubr.msk.bf16.vlgmr.msra.gmra.mrb[112].mxu1 %vm322_vm6, %v3866_v16  ;;  %v3865_v18 = vmul.f32 %v9786_v17, %v9782_v41 }
0x28b8   :  { %9055 = vmatprep.mubr.msk.bf16.mxu1 %vm10008_vm1, %v10007_v15  ;;  %9052 = vmatpush3.bf16.msra.mxu1 %v9621_v27 }
0x28b9   :  { %v3867_v21 = vpack.c.bf16 %v3865_v18, %v3865_v18  ;;  %9053 = vmatprep.subr.bf16.mxu1 %v10007_v15 }
0x28bb   :  { %9048 = vmatmul.mubr.msk.bf16.vlgmr.msra.gmra.mrb[108].mxu0 %vm322_vm6, %v3867_v21 }
0x28bc   :  { %9063 = vmatprep.mubr.msk.bf16.mxu0 %vm10008_vm1, %v10007_v15  ;;  %9054 = vmatpush3.bf16.msra.mxu1 %v9622_v28 }
0x28bd   :  { %9067 = vmatprep.subr.bf16.mxu1 %v10007_v15 }
0x28dd   :  { %v2896_v9 = vpop.xlane.xlu1 %2895 }
0x28de   :  { %v2900_v10 = vmul.f32 0.032258064, %v2896_v9 }
0x28e0   :  { %9787 = vrsqrt.f32 %v2900_v10  ;;  %vm2904_vm3 = vcmp.eq.f32.partialorder %v2900_v10, inf  ;;  %vm2906_vm4 = vcmp.eq.f32.partialorder %v2900_v10, 0.0 }
0x28ea   :  { %v9788_v17 = vpop.eup %9787 }
0x298a   :  { %v3910_v37 = vpop.f32.mrb[112].mxu1 }
0x298b   :  { %v9043_v26 = vpop.f32.mrb[113].mxu1 }
0x298c   :  { %v3913_v40 = vpop.f32.mrb[114].mxu1  ;;  %v2903_v26 = vmul.f32 %v9788_v17, %v2900_v10 }
0x298d   :  { %v9044_v44 = vpop.f32.mrb[115].mxu1 }
0x298e   :  { %v3958_v51 = vpop.f32.mrb[108].mxu0  ;;  %v2905_v44 = vsel %vm2904_vm3, %v2900_v10, %v2903_v26 }
0x298f   :  { %v9549_v54 = vpack.i.bf16 %v3958_v51, %v3910_v37  ;;  %v9049_v55 = vpop.f32.mrb[109].mxu0  ;;  %v2907_v51 = vand.u32 2147483648, %v2900_v10 }
0x2990   :  { %v3961_v59 = vpop.f32.mrb[110].mxu0 }
0x2991   :  { %9550 = vrot.lane.b32.xlu0 %v9549_v54, %s11803_s26  ;;  %v9050_v53 = vpop.f32.mrb[111].mxu0  ;;  %v2908_v54 = vsel %vm2906_vm4, %v2907_v51, %v2905_v44 }
0x2992   :  { %v2924_v55 = vadd.f32 1e-06, %v2908_v54 }
0x29b0   :  { %2886 = vadd.xlane.f32.xlu0 %v2885_v61 }
0x2a03   :  { %v9551_v24 = vpop.permute.xlu0 %9550 }
0x2a04   :  { %v9553_v50 = vunpack.i.h.bf16 %v9551_v24  ;;  %v9552_v34 = vunpack.i.l.bf16 %v9551_v24  ;;  %v2922_v24 = vmul.f32 %v8232_v39, %v10973_v49 }
0x2a06   :  { %v3993_v63 = vsel %vm1244_vm11, %v3991_v42, %v9553_v50  ;;  %v3992_v0 = vsel %vm1244_vm11, %v3990_v48, %v9552_v34  ;;  %v8233_v34 = vld [vmem:[%s11846_s6] ss:$0 sm:$0xff]  ;;  %s11852_s6 = sld [smem:[#allocation21_spill]] }
0x2a07   :  { %v3999_v2 = vpack.c.bf16 %v3993_v63, %v3992_v0 }
0x2a09   :  { %9056 = vmatmul.mubr.msk.bf16.vlgmr.msra.gmra.mrb[116].mxu1 %vm176_vm0, %v3999_v2  ;;  %v9625_v2 = vld [vmem:[%s11847_s12] sm:$0xff]  }
0x2a0a   :  { %9071 = vmatprep.mubr.msk.bf16.mxu1 %vm10008_vm1, %v10007_v15  ;;  %9068 = vmatpush3.bf16.msra.mxu1 %v9623_v7  ;;  %v8260_v7 = vld [vmem:[%s11848_s20] ss:$0 sm:$0xff] }
0x2a0b   :  { %9069 = vmatprep.subr.bf16.mxu1 %v10007_v15  ;;  %9060 = vmatpush3.bf16.msra.mxu0 %v9625_v2 }
0x2a0c   :  { %9061 = vmatprep.subr.bf16.mxu0 %v10007_v15 }
0x2a0e   :  { %9070 = vmatpush3.bf16.msra.mxu1 %v9624_v8 }
0x2a0f   :  { %9081 = vmatprep.subr.bf16.mxu1 %v10007_v15 }
0x2a3d   :  { %v2887_v32 = vpop.xlane.xlu0 %2886 }
0x2a3e   :  { %v2889_v38 = vmul.f32 0.03125, %v2887_v32  ;;  %v9626_v32 = vld [vmem:[%s11847_s12 + $0x8] sm:$0xff]  }
0x2a3f   :  { %9062 = vmatpush3.bf16.msra.mxu0 %v9626_v32 }
0x2a40   :  { %v2891_v30 = vsub.f32 %v2879_v60, %v2889_v38  ;;  %9075 = vmatprep.subr.bf16.mxu0 %v10007_v15 }
0x2a42   :  { %v2893_v5 = vmul.f32 %v2891_v30, %v2891_v30  ;;  %v2923_v29 = vmul.f32 %v8232_v39, %v2891_v30 }
0x2a44   :  { %v2897_v6 = vsel %vm176_vm0, %v2893_v5, 0.0 }
0x2adc   :  { %v4055_v56 = vpop.f32.mrb[116].mxu1 }
0x2add   :  { %v4056_v19 = vadd.f32 %v8256_v22, %v4055_v56  ;;  %v9057_v3 = vpop.f32.mrb[117].mxu1 }
0x2ade   :  { %v4058_v45 = vpop.f32.mrb[118].mxu1 }
0x2adf   :  { %v11007_v4 = vadd.f32 %v9941_v31, %v4056_v19  ;;  %v4059_v1 = vadd.f32 %v8256_v22, %v4058_v45  ;;  %v9058_v20 = vpop.f32.mrb[119].mxu1 }
0x2ae1   :  { %v11010_v41 = vadd.f32 %v9942_v43, %v4059_v1  ;;  %v4066_v35 = vsel %vm176_vm0, %v11007_v4, 0.0 }
0x2ae2   :  { %4067 = vadd.xlane.f32.xlu0 %v4066_v35 }
0x2ae3   :  { %v4069_v36 = vsel %vm176_vm0, %v11010_v41, 0.0 }
0x2ae6   :  { %4070 = vadd.xlane.f32.xlu0 %v4069_v36 }
0x2aea   :  { %2898 = vadd.xlane.f32.xlu0 %v2897_v6 }
0x2b6f   :  { %v4068_v11 = vpop.xlane.xlu0 %4067 }
0x2b70   :  { %v4072_v12 = vmul.f32 0.03125, %v4068_v11 }
0x2b72   :  { %v11022_v25 = vsub.f32 %v11007_v4, %v4072_v12 }
0x2b73   :  { %v4071_v13 = vpop.xlane.xlu0 %4070 }
0x2b74   :  { %v4073_v14 = vmul.f32 0.03125, %v4071_v13  ;;  %v4076_v16 = vmul.f32 %v11022_v25, %v11022_v25  ;;  %v4106_v9 = vmul.f32 %v8260_v7, %v11022_v25  ;;  %v8261_v13 = vld [vmem:[%s11849_s5] ss:$0 sm:$0xff] }
0x2b76   :  { %v11027_v18 = vsub.f32 %v11010_v41, %v4073_v14  ;;  %v4078_v21 = vsel %vm176_vm0, %v4076_v16, 0.0 }
0x2b77   :  { %4079 = vadd.xlane.f32.xlu1 %v4078_v21  ;;  %v2899_v27 = vpop.xlane.xlu0 %2898 }
0x2b78   :  { %v2901_v28 = vmul.f32 0.032258064, %v2899_v27  ;;  %v4077_v37 = vmul.f32 %v11027_v18, %v11027_v18  ;;  %v4107_v10 = vmul.f32 %v8260_v7, %v11027_v18  ;;  %v8266_v27 = vld [vmem:[%s11850_s8] ss:$0 sm:$0xff] }
0x2b7a   :  { %9789 = vrsqrt.f32 %v2901_v28  ;;  %v4081_v40 = vsel %vm176_vm0, %v4077_v37, 0.0  ;;  %vm2911_vm5 = vcmp.eq.f32.partialorder %v2901_v28, inf  ;;  %v2914_v60 = vand.u32 2147483648, %v2901_v28 }
0x2b7b   :  { %4082 = vadd.xlane.f32.xlu0 %v4081_v40  ;;  %9791 = vrcp.f32 %v2924_v55  ;;  %vm2913_vm12 = vcmp.eq.f32.partialorder %v2901_v28, 0.0 }
0x2b84   :  { %v9790_v59 = vpop.eup %9789 }
0x2b85   :  { %v2910_v53 = vmul.f32 %v9790_v59, %v2901_v28  ;;  %v9792_v23 = vpop.eup %9791  ;;  %v8262_v59 = vld [vmem:[%s11851_s30] ss:$0 sm:$0xff] }
0x2b86   :  { %v2927_v33 = vmul.f32 %v9792_v23, %v2922_v24 }
0x2b87   :  { %v2912_v61 = vsel %vm2911_vm5, %v2901_v28, %v2910_v53 }
0x2b88   :  { %v2915_v52 = vsel %vm2913_vm12, %v2914_v60, %v2912_v61  ;;  %v2936_v42 = vadd.f32 %v8233_v34, %v2927_v33 }
0x2b89   :  { %v2925_v62 = vadd.f32 1e-06, %v2915_v52 }
0x2b8b   :  { %9793 = vrcp.f32 %v2925_v62 }
0x2b95   :  { %v9794_v50 = vpop.eup %9793 }
0x2b96   :  { %v2929_v48 = vmul.f32 %v9794_v50, %v2923_v29 }
0x2b98   :  { %v2937_v63 = vadd.f32 %v8233_v34, %v2929_v48 }
0x2b9a   :  { %v11036_v0 = vpack.c.bf16 %v2937_v63, %v2936_v42 }
0x2b9c   :  { %9072 = vmatmul.mubr.msk.bf16.vlgmr.msra.gmra.mrb[120].mxu1 %vm176_vm0, %v11036_v0 }
0x2b9d   :  { %9083 = vmatprep.mubr.msk.bf16.mxu1 %vm10008_vm1, %v10007_v15 }
0x2c04   :  { %v4080_v49 = vpop.xlane.xlu1 %4079 }
0x2c05   :  { %v4084_v22 = vmul.f32 0.032258064, %v4080_v49 }
0x2c07   :  { %9795 = vrsqrt.f32 %v4084_v22  ;;  %vm4088_vm13 = vcmp.eq.f32.partialorder %v4084_v22, inf  ;;  %v4091_v45 = vand.u32 2147483648, %v4084_v22  ;;  %vm4090_vm3 = vcmp.eq.f32.partialorder %v4084_v22, 0.0 }
0x2c08   :  { %v4083_v56 = vpop.xlane.xlu0 %4082 }
0x2c09   :  { %v4085_v38 = vmul.f32 0.032258064, %v4083_v56 }
0x2c0b   :  { %9797 = vrsqrt.f32 %v4085_v38  ;;  %vm4095_vm4 = vcmp.eq.f32.partialorder %v4085_v38, inf  ;;  %v4098_v35 = vand.u32 2147483648, %v4085_v38  ;;  %vm4097_vm5 = vcmp.eq.f32.partialorder %v4085_v38, 0.0 }
0x2c11   :  { %v9796_v19 = vpop.eup %9795 }
0x2c12   :  { %v4087_v3 = vmul.f32 %v9796_v19, %v4084_v22 }
0x2c14   :  { %v4089_v31 = vsel %vm4088_vm13, %v4084_v22, %v4087_v3 }
0x2c15   :  { %v4092_v1 = vsel %vm4090_vm3, %v4091_v45, %v4089_v31  ;;  %v9798_v20 = vpop.eup %9797 }
0x2c16   :  { %v4108_v30 = vadd.f32 1e-06, %v4092_v1  ;;  %v4094_v43 = vmul.f32 %v9798_v20, %v4085_v38 }
0x2c18   :  { %9799 = vrcp.f32 %v4108_v30  ;;  %v4096_v36 = vsel %vm4095_vm4, %v4085_v38, %v4094_v43 }
0x2c19   :  { %v4099_v5 = vsel %vm4097_vm5, %v4098_v35, %v4096_v36 }
0x2c1a   :  { %v4109_v6 = vadd.f32 1e-06, %v4099_v5 }
0x2c1c   :  { %9801 = vrcp.f32 %v4109_v6 }
0x2c22   :  { %v9800_v8 = vpop.eup %9799 }
0x2c23   :  { %v4111_v11 = vmul.f32 %v9800_v8, %v4106_v9 }
0x2c25   :  { %v4120_v16 = vadd.f32 %v8261_v13, %v4111_v11 }
0x2c26   :  { %v9802_v12 = vpop.eup %9801 }
0x2c27   :  { %v4113_v14 = vmul.f32 %v9802_v12, %v4107_v10 }
0x2c29   :  { %v4121_v17 = vadd.f32 %v8261_v13, %v4113_v14 }
0x2c2b   :  { %v4127_v21 = vpack.c.bf16 %v4121_v17, %v4120_v16 }
0x2c2d   :  { %9064 = vmatmul.mubr.msk.bf16.vlgmr.msra.gmra.mrb[112].mxu0 %vm176_vm0, %v4127_v21 }
0x2c2e   :  { %9077 = vmatprep.mubr.msk.bf16.mxu0 %vm10008_vm1, %v10007_v15 }
0x2c6f   :  { %v4251_v28 = vpop.f32.mrb[120].mxu1 }
0x2c70   :  { %v4252_v37 = vadd.f32 %v8266_v27, %v4251_v28  ;;  %v9073_v26 = vpop.f32.mrb[121].mxu1 }
0x2c71   :  { %v4254_v25 = vpop.f32.mrb[122].mxu1 }
0x2c72   :  { %v11054_v40 = vpack.c.bf16 %v4252_v37, %v4252_v37  ;;  %v4255_v18 = vadd.f32 %v8266_v27, %v4254_v25  ;;  %v9074_v44 = vpop.f32.mrb[123].mxu1 }
0x2c74   :  { %v11056_v51 = vpack.c.bf16 %v4255_v18, %v4255_v18  ;;  %v4266_v54 = vsel %vm322_vm6, %v11054_v40, 0 }
0x2c75   :  { %9076 = vmatpush3.bf16.xpose.msra.mxu0 %v4266_v54 }
0x2c76   :  { %v4312_v55 = vsel %vm322_vm6, %v11056_v51, 0  ;;  %9087 = vmatprep.subr.bf16.mxu0 %v10007_v15 }
0x2c77   :  { %9082 = vmatpush3.bf16.xpose.msra.mxu1 %v4312_v55 }
0x2c78   :  { %9093 = vmatprep.subr.bf16.mxu1 %v10007_v15 }
0x2d00   :  { %v4183_v53 = vpop.f32.mrb[112].mxu0 }
0x2d01   :  { %v4184_v60 = vadd.f32 %v8262_v59, %v4183_v53  ;;  %v9065_v61 = vpop.f32.mrb[113].mxu0 }
0x2d02   :  { %v4186_v52 = vpop.f32.mrb[114].mxu0 }
0x2d03   :  { %v11065_v62 = vpack.c.bf16 %v4184_v60, %v4184_v60  ;;  %v4187_v39 = vadd.f32 %v8262_v59, %v4186_v52  ;;  %v9066_v23 = vpop.f32.mrb[115].mxu0 }
0x2d05   :  { %v11067_v24 = vpack.c.bf16 %v4187_v39, %v4187_v39  ;;  %9078 = vmatmul.mubr.msk.bf16.vlgmr.msra.gmra.mrb[116].mxu0 %vm322_vm6, %v11065_v62 }
0x2d06   :  { %9089 = vmatprep.mubr.msk.bf16.mxu0 %vm10008_vm1, %v10007_v15 }
0x2d07   :  { %9084 = vmatmul.mubr.msk.bf16.vlgmr.msra.gmra.mrb[124].mxu1 %vm322_vm6, %v11067_v24 }
0x2d08   :  { %9095 = vmatprep.mubr.msk.bf16.mxu1 %vm10008_vm1, %v10007_v15 }
0x2dd8   :  { %v4302_v29 = vpop.f32.mrb[116].mxu0 }
0x2dd9   :  { %v4354_v33 = vmul.f32 0.35355338, %v4302_v29  ;;  %v9079_v50 = vpop.f32.mrb[117].mxu0 }
0x2dda   :  { %v4305_v34 = vpop.f32.mrb[118].mxu0  ;;  %v4348_v48 = vpop.f32.mrb[124].mxu1 }
0x2ddb   :  { %v4356_v42 = vsel %vm315_vm7, %v4354_v33, -1e+09  ;;  %v4355_v63 = vmul.f32 0.35355338, %v4348_v48  ;;  %v9080_v2 = vpop.f32.mrb[119].mxu0  ;;  %v9085_v32 = vpop.f32.mrb[125].mxu1 }
0x2ddc   :  { %v4351_v49 = vpop.f32.mrb[126].mxu1  ;;  %v4358_v22 = vsel %vm322_vm6, %v4356_v42, -inf }
0x2ddd   :  { %v4357_v56 = vsel %vm316_vm8, %v4355_v63, -1e+09  ;;  %v9086_v38 = vpop.f32.mrb[127].mxu1  ;;  %4359 = vmax.xlane.f32.xlu1 %v4358_v22 }
0x2dde   :  { %v4361_v19 = vsel %vm322_vm6, %v4357_v56, -inf }
0x2ddf   :  { %4362 = vmax.xlane.f32.xlu0 %v4361_v19 }
0x2dee   :  { %4383 = vrot.lane.b32.xlu1 %v11054_v40, %s10009_s0 }
0x2e6a   :  { %v4360_v3 = vpop.xlane.xlu1 %4359 }
0x2e6b   :  { %v4364_v45 = vsub.f32 %v4356_v42, %v4360_v3 }
0x2e6c   :  { %v4363_v31 = vpop.xlane.xlu0 %4362 }
0x2e6d   :  { %v4366_v1 = vmul.f32 1.442695, %v4364_v45  ;;  %v4365_v20 = vsub.f32 %v4357_v56, %v4363_v31 }
0x2e6e   :  { %v4384_v30 = vpop.permute.xlu1 %4383 }
0x2e6f   :  { %9803 = vpow2.f32 %v4366_v1  ;;  %v4368_v43 = vmul.f32 1.442695, %v4365_v20  ;;  %v4389_v35 = vsel %vm451_vm9, %v4384_v30, 0 }
0x2e70   :  { %9088 = vmatpush3.bf16.msra.mxu0 %v4389_v35 }
0x2e71   :  { %9805 = vpow2.f32 %v4368_v43  ;;  %9099 = vmatprep.subr.bf16.mxu0 %v10007_v15 }
0x2e79   :  { %v9804_v36 = vpop.eup %9803 }
0x2e7a   :  { %v4370_v5 = vsel %vm322_vm6, %v9804_v36, 0.0 }
0x2e7b   :  { %v9806_v6 = vpop.eup %9805  ;;  %4371 = vadd.xlane.f32.xlu1 %v4370_v5 }
0x2e7c   :  { %v4373_v7 = vsel %vm322_vm6, %v9806_v6, 0.0 }
0x2e7d   :  { %4374 = vadd.xlane.f32.xlu0 %v4373_v7 }
0x2e8c   :  { %4483 = vrot.lane.b32.xlu1 %v11054_v40, %s10012_s1 }
0x2e90   :  { %4534 = vrot.lane.b32.xlu1 %v11056_v51, %s10012_s1 }
0x2e93   :  { %4432 = vrot.lane.b32.xlu0 %v11056_v51, %s10009_s0 }
0x2e94   :  { %4481 = vrot.lane.b32.xlu1 %v11065_v62, %s10012_s1 }
0x2e97   :  { %4532 = vrot.lane.b32.xlu0 %v11067_v24, %s10012_s1 }
0x2f08   :  { %v4372_v8 = vpop.xlane.xlu1 %4371 }
0x2f09   :  { %9807 = vrcp.f32 %v4372_v8 }
0x2f0a   :  { %v4375_v9 = vpop.xlane.xlu0 %4374 }
0x2f0b   :  { %9809 = vrcp.f32 %v4375_v9 }
0x2f0c   :  { %v4484_v12 = vpop.permute.xlu1 %4483 }
0x2f0d   :  { %v4489_v28 = vsel %vm322_vm6, %v4484_v12, 0 }
0x2f0e   :  { %v4433_v10 = vpop.permute.xlu0 %4432 }
0x2f0f   :  { %v4438_v11 = vsel %vm451_vm9, %v4433_v10, 0 }
0x2f10   :  { %9094 = vmatpush3.bf16.msra.mxu1 %v4438_v11  ;;  %v4535_v27 = vpop.permute.xlu1 %4534 }
0x2f11   :  { %9105 = vmatprep.subr.bf16.mxu1 %v10007_v15  ;;  %v4540_v26 = vsel %vm322_vm6, %v4535_v27, 0 }
0x2f12   :  { %v4533_v18 = vpop.permute.xlu0 %4532 }
0x2f13   :  { %v9808_v13 = vpop.eup %9807 }
0x2f14   :  { %v4378_v14 = vmul.f32 %v9808_v13, %v9804_v36  ;;  %v4482_v25 = vpop.permute.xlu1 %4481 }
0x2f15   :  { %v9810_v16 = vpop.eup %9809 }
0x2f16   :  { %v4380_v17 = vpack.c.bf16 %v4378_v14, %v4378_v14  ;;  %v4379_v21 = vmul.f32 %v9810_v16, %v9806_v6 }
0x2f18   :  { %9090 = vmatmul.mubr.msk.bf16.vlgmr.msra.gmra.mrb[120].mxu0 %vm322_vm6, %v4380_v17  ;;  %v4381_v37 = vpack.c.bf16 %v4379_v21, %v4379_v21 }
0x2f19   :  { %9100 = vmatpush3.bf16.xpose.msra.mxu0 %v4489_v28  ;;  %9101 = vmatprep.mubr.msk.bf16.mxu0 %vm10008_vm1, %v10007_v15 }
0x2f1a   :  { %9096 = vmatmul.mubr.msk.bf16.vlgmr.msra.gmra.mrb[128].mxu1 %vm322_vm6, %v4381_v37  ;;  %9111 = vmatprep.subr.bf16.mxu0 %v10007_v15 }
0x2f1b   :  { %9106 = vmatpush3.bf16.xpose.msra.mxu1 %v4540_v26  ;;  %9107 = vmatprep.mubr.msk.bf16.mxu1 %vm10008_vm1, %v10007_v15 }
0x2f1c   :  { %9117 = vmatprep.subr.bf16.mxu1 %v10007_v15 }
0x2f20   :  { %9102 = vmatmul.mubr.msk.bf16.vlgmr.msra.gmra.mrb[124].mxu0 %vm322_vm6, %v4482_v25 }
0x2f21   :  { %9113 = vmatprep.mubr.msk.bf16.mxu0 %vm10008_vm1, %v10007_v15 }
0x2f22   :  { %9108 = vmatmul.mubr.msk.bf16.vlgmr.msra.gmra.mrb[132].mxu1 %vm322_vm6, %v4533_v18 }
0x2f23   :  { %9119 = vmatprep.mubr.msk.bf16.mxu1 %vm10008_vm1, %v10007_v15 }
0x2feb   :  { %v11117_v44 = vpop.f32.mrb[120].mxu0 }
0x2fec   :  { %v9091_v54 = vpop.f32.mrb[121].mxu0 }
0x2fed   :  { %v4428_v55 = vpop.f32.mrb[122].mxu0  ;;  %v11119_v59 = vpop.f32.mrb[128].mxu1 }
0x2fee   :  { %v9092_v53 = vpop.f32.mrb[123].mxu0  ;;  %v9097_v60 = vpop.f32.mrb[129].mxu1 }
0x2fef   :  { %v4477_v61 = vpop.f32.mrb[130].mxu1 }
0x2ff0   :  { %v9098_v52 = vpop.f32.mrb[131].mxu1 }
0x2ff3   :  { %v4525_v39 = vpop.f32.mrb[124].mxu0 }
0x2ff4   :  { %v4582_v23 = vmul.f32 0.35355338, %v4525_v39  ;;  %v9103_v29 = vpop.f32.mrb[125].mxu0 }
0x2ff5   :  { %v4528_v33 = vpop.f32.mrb[126].mxu0  ;;  %v4576_v50 = vpop.f32.mrb[132].mxu1 }
0x2ff6   :  { %v4584_v34 = vsel %vm315_vm7, %v4582_v23, -1e+09  ;;  %v4583_v48 = vmul.f32 0.35355338, %v4576_v50  ;;  %v9104_v42 = vpop.f32.mrb[127].mxu0  ;;  %v9109_v63 = vpop.f32.mrb[133].mxu1 }
0x2ff7   :  { %v4579_v2 = vpop.f32.mrb[134].mxu1  ;;  %v4586_v32 = vsel %vm322_vm6, %v4584_v34, -inf }
0x2ff8   :  { %v4585_v49 = vsel %vm316_vm8, %v4583_v48, -1e+09  ;;  %v9110_v22 = vpop.f32.mrb[135].mxu1  ;;  %4587 = vmax.xlane.f32.xlu1 %v4586_v32 }
0x2ff9   :  { %v4589_v56 = vsel %vm322_vm6, %v4585_v49, -inf }
0x2ffa   :  { %4590 = vmax.xlane.f32.xlu0 %v4589_v56 }
0x3009   :  { %4610 = vrot.lane.b32.xlu1 %v11054_v40, %s10011_s28 }
0x300d   :  { %4708 = vrot.lane.b32.xlu1 %v11054_v40, %s10015_s10 }
0x3011   :  { %4758 = vrot.lane.b32.xlu1 %v11056_v51, %s10015_s10 }
0x3015   :  { %4706 = vrot.lane.b32.xlu1 %v11065_v62, %s10015_s10 }
0x3085   :  { %v4588_v38 = vpop.xlane.xlu1 %4587 }
0x3086   :  { %v4592_v19 = vsub.f32 %v4584_v34, %v4588_v38 }
0x3087   :  { %v4591_v3 = vpop.xlane.xlu0 %4590 }
0x3088   :  { %v4594_v45 = vmul.f32 1.442695, %v4592_v19  ;;  %v4593_v31 = vsub.f32 %v4585_v49, %v4591_v3 }
0x3089   :  { %v4611_v1 = vpop.permute.xlu1 %4610 }
0x308a   :  { %9811 = vpow2.f32 %v4594_v45  ;;  %v4596_v20 = vmul.f32 1.442695, %v4593_v31  ;;  %v4616_v30 = vsel %vm451_vm9, %v4611_v1, 0 }
0x308b   :  { %9112 = vmatpush3.bf16.msra.mxu0 %v4616_v30 }
0x308c   :  { %9813 = vpow2.f32 %v4596_v20  ;;  %9123 = vmatprep.subr.bf16.mxu0 %v10007_v15 }
0x308d   :  { %v4709_v11 = vpop.permute.xlu1 %4708 }
0x308e   :  { %v4714_v16 = vsel %vm322_vm6, %v4709_v11, 0 }
0x3091   :  { %v4759_v21 = vpop.permute.xlu1 %4758 }
0x3092   :  { %v4764_v28 = vsel %vm322_vm6, %v4759_v21, 0 }
0x3094   :  { %v9812_v43 = vpop.eup %9811 }
0x3095   :  { %v4598_v35 = vsel %vm322_vm6, %v9812_v43, 0.0  ;;  %v4707_v37 = vpop.permute.xlu1 %4706 }
0x3096   :  { %v9814_v36 = vpop.eup %9813  ;;  %4599 = vadd.xlane.f32.xlu0 %v4598_v35 }
0x3097   :  { %v4601_v5 = vsel %vm322_vm6, %v9814_v36, 0.0 }
0x309a   :  { %4602 = vadd.xlane.f32.xlu0 %v4601_v5 }
0x30b0   :  { %4658 = vrot.lane.b32.xlu0 %v11056_v51, %s10011_s28 }
0x30b4   :  { %4756 = vrot.lane.b32.xlu0 %v11067_v24, %s10015_s10 }
0x3123   :  { %v4600_v6 = vpop.xlane.xlu0 %4599 }
0x3124   :  { %9815 = vrcp.f32 %v4600_v6 }
0x3127   :  { %v4603_v7 = vpop.xlane.xlu0 %4602 }
0x3128   :  { %9817 = vrcp.f32 %v4603_v7 }
0x312b   :  { %v4659_v8 = vpop.permute.xlu0 %4658 }
0x312c   :  { %v4664_v9 = vsel %vm451_vm9, %v4659_v8, 0 }
0x312d   :  { %9118 = vmatpush3.bf16.msra.mxu1 %v4664_v9 }
0x312e   :  { %v9816_v10 = vpop.eup %9815  ;;  %9129 = vmatprep.subr.bf16.mxu1 %v10007_v15 }
0x312f   :  { %v4606_v12 = vmul.f32 %v9816_v10, %v9812_v43  ;;  %v4757_v26 = vpop.permute.xlu0 %4756 }
0x3131   :  { %v4608_v13 = vpack.c.bf16 %v4606_v12, %v4606_v12 }
0x3132   :  { %v9818_v14 = vpop.eup %9817 }
0x3133   :  { %9114 = vmatmul.mubr.msk.bf16.vlgmr.msra.gmra.mrb[128].mxu0 %vm322_vm6, %v4608_v13  ;;  %v4607_v17 = vmul.f32 %v9818_v14, %v9814_v36 }
0x3134   :  { %9124 = vmatpush3.bf16.xpose.msra.mxu0 %v4714_v16  ;;  %9125 = vmatprep.mubr.msk.bf16.mxu0 %vm10008_vm1, %v10007_v15 }
0x3135   :  { %v4609_v27 = vpack.c.bf16 %v4607_v17, %v4607_v17  ;;  %9135 = vmatprep.subr.bf16.mxu0 %v10007_v15 }
0x3137   :  { %9120 = vmatmul.mubr.msk.bf16.vlgmr.msra.gmra.mrb[136].mxu1 %vm322_vm6, %v4609_v27 }
0x3138   :  { %9130 = vmatpush3.bf16.xpose.msra.mxu1 %v4764_v28  ;;  %9131 = vmatprep.mubr.msk.bf16.mxu1 %vm10008_vm1, %v10007_v15 }
0x3139   :  { %9141 = vmatprep.subr.bf16.mxu1 %v10007_v15 }
0x313b   :  { %9126 = vmatmul.mubr.msk.bf16.vlgmr.msra.gmra.mrb[132].mxu0 %vm322_vm6, %v4707_v37 }
0x313c   :  { %9137 = vmatprep.mubr.msk.bf16.mxu0 %vm10008_vm1, %v10007_v15 }
0x313f   :  { %9132 = vmatmul.mubr.msk.bf16.vlgmr.msra.gmra.mrb[140].mxu1 %vm322_vm6, %v4757_v26 }
0x3140   :  { %9143 = vmatprep.mubr.msk.bf16.mxu1 %vm10008_vm1, %v10007_v15 }
0x3206   :  { %v11161_v25 = vpop.f32.mrb[128].mxu0 }
0x3207   :  { %v9115_v18 = vpop.f32.mrb[129].mxu0 }
0x3208   :  { %v4655_v54 = vpop.f32.mrb[130].mxu0 }
0x3209   :  { %v9116_v55 = vpop.f32.mrb[131].mxu0 }
0x320a   :  { %v11163_v53 = vpop.f32.mrb[136].mxu1 }
0x320b   :  { %v9554_v60 = vpack.i.bf16 %v11163_v53, %v11161_v25  ;;  %v9121_v61 = vpop.f32.mrb[137].mxu1 }
0x320c   :  { %v4703_v52 = vpop.f32.mrb[138].mxu1 }
0x320d   :  { %v9122_v39 = vpop.f32.mrb[139].mxu1 }
0x320e   :  { %v4750_v23 = vpop.f32.mrb[132].mxu0 }
0x320f   :  { %v4806_v29 = vmul.f32 0.35355338, %v4750_v23  ;;  %v9127_v33 = vpop.f32.mrb[133].mxu0 }
0x3210   :  { %v4753_v50 = vpop.f32.mrb[134].mxu0 }
0x3211   :  { %v4808_v34 = vsel %vm315_vm7, %v4806_v29, -1e+09  ;;  %v9128_v48 = vpop.f32.mrb[135].mxu0 }
0x3212   :  { %v4800_v42 = vpop.f32.mrb[140].mxu1  ;;  %v4810_v63 = vsel %vm322_vm6, %v4808_v34, -inf }
0x3213   :  { %v4807_v2 = vmul.f32 0.35355338, %v4800_v42  ;;  %v9133_v32 = vpop.f32.mrb[141].mxu1  ;;  %4811 = vmax.xlane.f32.xlu1 %v4810_v63 }
0x3214   :  { %v4803_v49 = vpop.f32.mrb[142].mxu1 }
0x3215   :  { %v4809_v22 = vsel %vm316_vm8, %v4807_v2, -1e+09  ;;  %v9134_v56 = vpop.f32.mrb[143].mxu1 }
0x3216   :  { %v4813_v38 = vsel %vm322_vm6, %v4809_v22, -inf }
0x3217   :  { %4814 = vmax.xlane.f32.xlu0 %v4813_v38 }
0x3224   :  { %4834 = vrot.lane.b32.xlu1 %v11054_v40, %s10014_s7 }
0x3228   :  { %4932 = vrot.lane.b32.xlu1 %v11054_v40, %s11809_s16 }
0x322c   :  { %4982 = vrot.lane.b32.xlu1 %v11056_v51, %s11809_s16 }
0x3230   :  { %4930 = vrot.lane.b32.xlu1 %v11065_v62, %s11809_s16 }
0x32a0   :  { %v4812_v19 = vpop.xlane.xlu1 %4811 }
0x32a1   :  { %v4816_v3 = vsub.f32 %v4808_v34, %v4812_v19 }
0x32a3   :  { %v4818_v45 = vmul.f32 1.442695, %v4816_v3 }
0x32a4   :  { %v4815_v31 = vpop.xlane.xlu0 %4814  ;;  %v4835_v1 = vpop.permute.xlu1 %4834 }
0x32a5   :  { %9819 = vpow2.f32 %v4818_v45  ;;  %v4817_v20 = vsub.f32 %v4809_v22, %v4815_v31  ;;  %v4840_v30 = vsel %vm451_vm9, %v4835_v1, 0 }
0x32a6   :  { %9136 = vmatpush3.bf16.msra.mxu0 %v4840_v30 }
0x32a7   :  { %v4820_v43 = vmul.f32 1.442695, %v4817_v20  ;;  %9147 = vmatprep.subr.bf16.mxu0 %v10007_v15 }
0x32a8   :  { %v4933_v11 = vpop.permute.xlu1 %4932 }
0x32a9   :  { %9821 = vpow2.f32 %v4820_v43  ;;  %v4938_v16 = vsel %vm322_vm6, %v4933_v11, 0 }
0x32ac   :  { %v4983_v17 = vpop.permute.xlu1 %4982 }
0x32ad   :  { %v4988_v27 = vsel %vm322_vm6, %v4983_v17, 0 }
0x32af   :  { %v9820_v35 = vpop.eup %9819 }
0x32b0   :  { %v4822_v36 = vsel %vm322_vm6, %v9820_v35, 0.0  ;;  %v4931_v28 = vpop.permute.xlu1 %4930 }
0x32b1   :  { %4823 = vadd.xlane.f32.xlu0 %v4822_v36 }
0x32b3   :  { %v9822_v5 = vpop.eup %9821 }
0x32b4   :  { %v4825_v62 = vsel %vm322_vm6, %v9822_v5, 0.0 }
0x32b5   :  { %4826 = vadd.xlane.f32.xlu0 %v4825_v62 }
0x32cb   :  { %4882 = vrot.lane.b32.xlu0 %v11056_v51, %s10014_s7 }
0x32cf   :  { %4980 = vrot.lane.b32.xlu0 %v11067_v24, %s11809_s16  ;;  %s11857_s16 = sld [smem:[#allocation24_spill]] }
0x333e   :  { %v4824_v6 = vpop.xlane.xlu0 %4823 }
0x333f   :  { %9823 = vrcp.f32 %v4824_v6 }
0x3342   :  { %v4827_v7 = vpop.xlane.xlu0 %4826 }
0x3343   :  { %9825 = vrcp.f32 %v4827_v7 }
0x3346   :  { %v4883_v8 = vpop.permute.xlu0 %4882 }
0x3347   :  { %v4888_v9 = vsel %vm451_vm9, %v4883_v8, 0 }
0x3348   :  { %9142 = vmatpush3.bf16.msra.mxu1 %v4888_v9 }
0x3349   :  { %v9824_v10 = vpop.eup %9823  ;;  %9153 = vmatprep.subr.bf16.mxu1 %v10007_v15 }
0x334a   :  { %v4830_v12 = vmul.f32 %v9824_v10, %v9820_v35  ;;  %v4981_v37 = vpop.permute.xlu0 %4980 }
0x334c   :  { %v4832_v13 = vpack.c.bf16 %v4830_v12, %v4830_v12 }
0x334d   :  { %v9826_v14 = vpop.eup %9825 }
0x334e   :  { %9138 = vmatmul.mubr.msk.bf16.vlgmr.msra.gmra.mrb[136].mxu0 %vm322_vm6, %v4832_v13  ;;  %v4831_v24 = vmul.f32 %v9826_v14, %v9822_v5  ;;  %v9627_v13 = vld [vmem:[%s11852_s6] sm:$0xff]   ;;  %v9628_v14 = vld [vmem:[%s11852_s6 + $0x8] sm:$0xff]  }
0x334f   :  { %9148 = vmatpush3.bf16.xpose.msra.mxu0 %v4938_v16  ;;  %9149 = vmatprep.mubr.msk.bf16.mxu0 %vm10008_vm1, %v10007_v15 }
0x3350   :  { %v4833_v21 = vpack.c.bf16 %v4831_v24, %v4831_v24  ;;  %9159 = vmatprep.subr.bf16.mxu0 %v10007_v15 }
0x3352   :  { %9144 = vmatmul.mubr.msk.bf16.vlgmr.msra.gmra.mrb[144].mxu1 %vm322_vm6, %v4833_v21 }
0x3353   :  { %9154 = vmatpush3.bf16.xpose.msra.mxu1 %v4988_v27  ;;  %9155 = vmatprep.mubr.msk.bf16.mxu1 %vm10008_vm1, %v10007_v15 }
0x3354   :  { %9165 = vmatprep.subr.bf16.mxu1 %v10007_v15 }
0x3356   :  { %9150 = vmatmul.mubr.msk.bf16.vlgmr.msra.gmra.mrb[140].mxu0 %vm322_vm6, %v4931_v28 }
0x3357   :  { %9161 = vmatprep.mubr.msk.bf16.mxu0 %vm10008_vm1, %v10007_v15 }
0x335a   :  { %9156 = vmatmul.mubr.msk.bf16.vlgmr.msra.gmra.mrb[148].mxu1 %vm322_vm6, %v4981_v37 }
0x335b   :  { %9167 = vmatprep.mubr.msk.bf16.mxu1 %vm10008_vm1, %v10007_v15 }
0x3421   :  { %v4876_v26 = vpop.f32.mrb[136].mxu0 }
0x3422   :  { %v9139_v18 = vpop.f32.mrb[137].mxu0 }
0x3423   :  { %v4879_v54 = vpop.f32.mrb[138].mxu0 }
0x3424   :  { %v9140_v55 = vpop.f32.mrb[139].mxu0 }
0x3425   :  { %v4924_v61 = vpop.f32.mrb[144].mxu1 }
0x3426   :  { %v9559_v52 = vpack.i.bf16 %v4924_v61, %v4876_v26  ;;  %v9145_v39 = vpop.f32.mrb[145].mxu1 }
0x3427   :  { %v4927_v23 = vpop.f32.mrb[146].mxu1 }
0x3428   :  { %v9146_v29 = vpop.f32.mrb[147].mxu1 }
0x3429   :  { %v4974_v33 = vpop.f32.mrb[140].mxu0 }
0x342a   :  { %v5030_v50 = vmul.f32 0.35355338, %v4974_v33  ;;  %v9151_v34 = vpop.f32.mrb[141].mxu0 }
0x342b   :  { %v4977_v48 = vpop.f32.mrb[142].mxu0 }
0x342c   :  { %v5032_v42 = vsel %vm315_vm7, %v5030_v50, -1e+09  ;;  %v9152_v63 = vpop.f32.mrb[143].mxu0 }
0x342d   :  { %v5024_v2 = vpop.f32.mrb[148].mxu1  ;;  %v5034_v32 = vsel %vm322_vm6, %v5032_v42, -inf }
0x342e   :  { %v5031_v49 = vmul.f32 0.35355338, %v5024_v2  ;;  %v9157_v22 = vpop.f32.mrb[149].mxu1  ;;  %5035 = vmax.xlane.f32.xlu1 %v5034_v32 }
0x342f   :  { %v5027_v56 = vpop.f32.mrb[150].mxu1 }
0x3430   :  { %v5033_v38 = vsel %vm316_vm8, %v5031_v49, -1e+09  ;;  %v9158_v19 = vpop.f32.mrb[151].mxu1 }
0x3431   :  { %v5037_v3 = vsel %vm322_vm6, %v5033_v38, -inf }
0x3432   :  { %5038 = vmax.xlane.f32.xlu0 %v5037_v3 }
0x343f   :  { %5058 = vrot.lane.b32.xlu1 %v11054_v40, %s11811_s15 }
0x3443   :  { %9555 = vrot.lane.b32.xlu1 %v9554_v60, %s11805_s22  ;;  %s11855_s22 = sld [smem:[#allocation27_spill]] }
0x3447   :  { %9560 = vrot.lane.b32.xlu1 %v9559_v52, %s11801_s23  ;;  %s11853_s23 = sld [smem:[#allocation22_spill]] }
0x34bb   :  { %v5036_v45 = vpop.xlane.xlu1 %5035 }
0x34bc   :  { %v5040_v31 = vsub.f32 %v5032_v42, %v5036_v45 }
0x34be   :  { %v5042_v1 = vmul.f32 1.442695, %v5040_v31 }
0x34bf   :  { %v5039_v20 = vpop.xlane.xlu0 %5038  ;;  %v5059_v30 = vpop.permute.xlu1 %5058 }
0x34c0   :  { %9827 = vpow2.f32 %v5042_v1  ;;  %v5041_v43 = vsub.f32 %v5033_v38, %v5039_v20  ;;  %v5064_v35 = vsel %vm451_vm9, %v5059_v30, 0 }
0x34c1   :  { %9160 = vmatpush3.bf16.msra.mxu0 %v5064_v35 }
0x34c2   :  { %v5044_v36 = vmul.f32 1.442695, %v5041_v43  ;;  %9171 = vmatprep.subr.bf16.mxu0 %v10007_v15 }
0x34c3   :  { %v9556_v54 = vpop.permute.xlu1 %9555 }
0x34c4   :  { %9829 = vpow2.f32 %v5044_v36  ;;  %v9558_v61 = vunpack.i.h.bf16 %v9556_v54  ;;  %v9557_v52 = vunpack.i.l.bf16 %v9556_v54 }
0x34c6   :  { %v5179_v33 = vsel %vm322_vm6, %v11119_v59, %v9558_v61  ;;  %v5178_v50 = vsel %vm322_vm6, %v11117_v44, %v9557_v52  ;;  %v8286_v59 = vld [vmem:[%s11853_s23] ss:$0 sm:$0xff] }
0x34c7   :  { %v9561_v55 = vpop.permute.xlu1 %9560 }
0x34c8   :  { %v9563_v39 = vunpack.i.h.bf16 %v9561_v55  ;;  %v9562_v23 = vunpack.i.l.bf16 %v9561_v55 }
0x34ca   :  { %v9828_v40 = vpop.eup %9827  ;;  %v5180_v42 = vsel %vm1241_vm10, %v5178_v50, %v9562_v23  ;;  %v5181_v63 = vsel %vm1241_vm10, %v5179_v33, %v9563_v39  ;;  %v8291_v23 = vld [vmem:[%s11857_s16] ss:$0 sm:$0xff] }
0x34cb   :  { %v5046_v25 = vsel %vm322_vm6, %v9828_v40, 0.0 }
0x34cc   :  { %5047 = vadd.xlane.f32.xlu0 %v5046_v25 }
0x34ce   :  { %v9830_v53 = vpop.eup %9829 }
0x34cf   :  { %v5049_v60 = vsel %vm322_vm6, %v9830_v53, 0.0 }
0x34d0   :  { %5050 = vadd.xlane.f32.xlu0 %v5049_v60 }
0x34e6   :  { %5106 = vrot.lane.b32.xlu0 %v11056_v51, %s11811_s15  ;;  %s11858_s15 = sld [smem:[#allocation26_spill]] }
0x3559   :  { %v5048_v5 = vpop.xlane.xlu0 %5047 }
0x355a   :  { %9831 = vrcp.f32 %v5048_v5 }
0x355d   :  { %v5051_v62 = vpop.xlane.xlu0 %5050 }
0x355e   :  { %9833 = vrcp.f32 %v5051_v62 }
0x3561   :  { %v5107_v6 = vpop.permute.xlu0 %5106 }
0x3562   :  { %v5112_v7 = vsel %vm451_vm9, %v5107_v6, 0  ;;  %v9631_v6 = vld [vmem:[%s11855_s22] sm:$0xff]  }
0x3563   :  { %9166 = vmatpush3.bf16.msra.mxu1 %v5112_v7  ;;  %v9632_v7 = vld [vmem:[%s11855_s22 + $0x8] sm:$0xff]  }
0x3564   :  { %v9832_v8 = vpop.eup %9831  ;;  %9179 = vmatprep.subr.bf16.mxu1 %v10007_v15 }
0x3565   :  { %v5054_v9 = vmul.f32 %v9832_v8, %v9828_v40 }
0x3567   :  { %v5056_v10 = vpack.c.bf16 %v5054_v9, %v5054_v9 }
0x3568   :  { %v9834_v11 = vpop.eup %9833 }
0x3569   :  { %9162 = vmatmul.mubr.msk.bf16.vlgmr.msra.gmra.mrb[144].mxu0 %vm322_vm6, %v5056_v10  ;;  %v5055_v12 = vmul.f32 %v9834_v11, %v9830_v53 }
0x356a   :  { %9175 = vmatprep.mubr.msk.bf16.mxu0 %vm10008_vm1, %v10007_v15  ;;  %9172 = vmatpush3.bf16.msra.mxu0 %v9627_v13 }
0x356b   :  { %v5057_v51 = vpack.c.bf16 %v5055_v12, %v5055_v12  ;;  %9173 = vmatprep.subr.bf16.mxu0 %v10007_v15 }
0x356d   :  { %9168 = vmatmul.mubr.msk.bf16.vlgmr.msra.gmra.mrb[152].mxu1 %vm322_vm6, %v5057_v51 }
0x356e   :  { %9183 = vmatprep.mubr.msk.bf16.mxu1 %vm10008_vm1, %v10007_v15  ;;  %9174 = vmatpush3.bf16.msra.mxu0 %v9628_v14 }
0x356f   :  { %9187 = vmatprep.subr.bf16.mxu0 %v10007_v15 }
0x363c   :  { %v5100_v16 = vpop.f32.mrb[144].mxu0 }
0x363d   :  { %v9163_v24 = vpop.f32.mrb[145].mxu0 }
0x363e   :  { %v5103_v17 = vpop.f32.mrb[146].mxu0 }
0x363f   :  { %v9164_v21 = vpop.f32.mrb[147].mxu0 }
0x3640   :  { %v5148_v27 = vpop.f32.mrb[152].mxu1 }
0x3641   :  { %v9564_v28 = vpack.i.bf16 %v5148_v27, %v5100_v16  ;;  %v9169_v37 = vpop.f32.mrb[153].mxu1 }
0x3642   :  { %v5151_v26 = vpop.f32.mrb[154].mxu1 }
0x3643   :  { %v9170_v18 = vpop.f32.mrb[155].mxu1  ;;  %9565 = vrot.lane.b32.xlu1 %v9564_v28, %s11803_s26  ;;  %s11854_s26 = sld [smem:[#allocation25_spill]] }
0x3644   :  { %v8290_v18 = vld [vmem:[%s11856_s18] ss:$0 sm:$0xff] }
0x3649   :  { %v9629_v5 = vld [vmem:[%s11854_s26] sm:$0xff]   ;;  %v9630_v62 = vld [vmem:[%s11854_s26 + $0x8] sm:$0xff]  }
0x364a   :  { %9180 = vmatpush3.bf16.msra.mxu1 %v9629_v5 }
0x364b   :  { %9181 = vmatprep.subr.bf16.mxu1 %v10007_v15 }
0x364e   :  { %9182 = vmatpush3.bf16.msra.mxu1 %v9630_v62 }
0x364f   :  { %9199 = vmatprep.subr.bf16.mxu1 %v10007_v15 }
0x36b5   :  { %v9566_v29 = vpop.permute.xlu1 %9565 }
0x36b6   :  { %v9568_v34 = vunpack.i.h.bf16 %v9566_v29  ;;  %v9567_v48 = vunpack.i.l.bf16 %v9566_v29 }
0x36b8   :  { %v5183_v2 = vsel %vm1244_vm11, %v5181_v63, %v9568_v34  ;;  %v5182_v32 = vsel %vm1244_vm11, %v5180_v42, %v9567_v48  ;;  %v9633_v48 = vld [vmem:[%s11855_s22 + $0x10] sm:$0xff]   ;;  %v9634_v42 = vld [vmem:[%s11855_s22 + $0x18] sm:$0xff]   ;;  %v8292_v63 = vld [vmem:[%s11858_s15] ss:$0 sm:$0xff] }
0x36b9   :  { %v5189_v49 = vpack.c.bf16 %v5183_v2, %v5182_v32 }
0x36bb   :  { %9176 = vmatmul.mubr.msk.bf16.vlgmr.msra.gmra.mrb[148].mxu0 %vm176_vm0, %v5189_v49 }
0x36bc   :  { %9195 = vmatprep.mubr.msk.bf16.mxu0 %vm10008_vm1, %v10007_v15  ;;  %9188 = vmatpush3.bf16.msra.mxu0 %v9631_v6 }
0x36bd   :  { %9189 = vmatprep.subr.bf16.mxu0 %v10007_v15 }
0x36c0   :  { %9190 = vmatpush3.bf16.msra.mxu0 %v9632_v7 }
0x36c1   :  { %9191 = vmatprep.subr.bf16.mxu0 %v10007_v15 }
0x36c4   :  { %9192 = vmatpush3.bf16.msra.mxu0 %v9633_v48 }
0x36c5   :  { %9193 = vmatprep.subr.bf16.mxu0 %v10007_v15 }
0x36c8   :  { %9194 = vmatpush3.bf16.msra.mxu0 %v9634_v42 }
0x36c9   :  { %9213 = vmatprep.subr.bf16.mxu0 %v10007_v15 }
0x378e   :  { %v5245_v22 = vpop.f32.mrb[148].mxu0 }
0x378f   :  { %v5246_v56 = vadd.f32 %v8286_v59, %v5245_v22  ;;  %v9177_v44 = vpop.f32.mrb[149].mxu0 }
0x3790   :  { %v5248_v38 = vpop.f32.mrb[150].mxu0 }
0x3791   :  { %v11252_v19 = vadd.f32 %v5246_v56, %v11007_v4  ;;  %v5249_v3 = vadd.f32 %v8286_v59, %v5248_v38  ;;  %v9178_v45 = vpop.f32.mrb[151].mxu0 }
0x3792   :  { %v8296_v45 = vld [vmem:[%s10218_s4] ss:$0 sm:$0xff] }
0x3793   :  { %v11255_v31 = vadd.f32 %v5249_v3, %v11010_v41  ;;  %v5256_v1 = vsel %vm176_vm0, %v11252_v19, 0.0 }
0x3794   :  { %5257 = vadd.xlane.f32.xlu0 %v5256_v1 }
0x3795   :  { %v5259_v20 = vsel %vm176_vm0, %v11255_v31, 0.0 }
0x3796   :  { %5260 = vadd.xlane.f32.xlu1 %v5259_v20 }
0x3821   :  { %v5258_v30 = vpop.xlane.xlu0 %5257 }
0x3822   :  { %v5262_v43 = vmul.f32 0.03125, %v5258_v30 }
0x3823   :  { %v5261_v35 = vpop.xlane.xlu1 %5260 }
0x3824   :  { %v5264_v4 = vsub.f32 %v11252_v19, %v5262_v43  ;;  %v5263_v36 = vmul.f32 0.03125, %v5261_v35 }
0x3826   :  { %v5265_v41 = vsub.f32 %v11255_v31, %v5263_v36  ;;  %v5266_v40 = vmul.f32 %v5264_v4, %v5264_v4  ;;  %v5296_v55 = vmul.f32 %v8290_v18, %v5264_v4 }
0x3828   :  { %v5268_v25 = vsel %vm176_vm0, %v5266_v40, 0.0  ;;  %v5267_v53 = vmul.f32 %v5265_v41, %v5265_v41  ;;  %v5297_v61 = vmul.f32 %v8290_v18, %v5265_v41 }
0x3829   :  { %5269 = vadd.xlane.f32.xlu0 %v5268_v25 }
0x382a   :  { %v5271_v60 = vsel %vm176_vm0, %v5267_v53, 0.0 }
0x382d   :  { %5272 = vadd.xlane.f32.xlu0 %v5271_v60 }
0x38b6   :  { %v5270_v8 = vpop.xlane.xlu0 %5269 }
0x38b7   :  { %v5274_v9 = vmul.f32 0.032258064, %v5270_v8 }
0x38b9   :  { %9835 = vrsqrt.f32 %v5274_v9  ;;  %vm5278_vm12 = vcmp.eq.f32.partialorder %v5274_v9, inf  ;;  %v5281_v13 = vand.u32 2147483648, %v5274_v9  ;;  %vm5280_vm13 = vcmp.eq.f32.partialorder %v5274_v9, 0.0 }
0x38ba   :  { %v5273_v10 = vpop.xlane.xlu0 %5272 }
0x38bb   :  { %v5275_v11 = vmul.f32 0.032258064, %v5273_v10  ;;  %v9635_v10 = vld [vmem:[%s11838_s25 + $0x10] sm:$0xff]  }
0x38bd   :  { %9837 = vrsqrt.f32 %v5275_v11  ;;  %vm5285_vm3 = vcmp.eq.f32.partialorder %v5275_v11, inf  ;;  %v5288_v27 = vand.u32 2147483648, %v5275_v11  ;;  %vm5287_vm4 = vcmp.eq.f32.partialorder %v5275_v11, 0.0 }
0x38c3   :  { %v9836_v12 = vpop.eup %9835 }
0x38c4   :  { %v5277_v51 = vmul.f32 %v9836_v12, %v5274_v9 }
0x38c6   :  { %v5279_v14 = vsel %vm5278_vm12, %v5274_v9, %v5277_v51 }
0x38c7   :  { %v9838_v16 = vpop.eup %9837  ;;  %v5282_v24 = vsel %vm5280_vm13, %v5281_v13, %v5279_v14 }
0x38c8   :  { %v5298_v17 = vadd.f32 1e-06, %v5282_v24  ;;  %v5284_v21 = vmul.f32 %v9838_v16, %v5275_v11 }
0x38ca   :  { %9839 = vrcp.f32 %v5298_v17  ;;  %v5286_v28 = vsel %vm5285_vm3, %v5275_v11, %v5284_v21  ;;  %v9636_v11 = vld [vmem:[%s11838_s25 + $0x18] sm:$0xff]   ;;  %s11863_s25 = smov 16  }
0x38cb   :  { %v5289_v37 = vsel %vm5287_vm4, %v5288_v27, %v5286_v28 }
0x38cc   :  { %v5299_v26 = vadd.f32 1e-06, %v5289_v37 }
0x38ce   :  { %9841 = vrcp.f32 %v5299_v26 }
0x38d4   :  { %v9840_v54 = vpop.eup %9839 }
0x38d5   :  { %v5301_v52 = vmul.f32 %v9840_v54, %v5296_v55 }
0x38d7   :  { %v5310_v33 = vadd.f32 %v8291_v23, %v5301_v52  ;;  %v8304_v52 = vld [vmem:[%s11837_s21 + $0x1] ss:$0 sm:$0xff]  ;;  %s11862_s21 = smov 8  }
0x38d8   :  { %v9842_v39 = vpop.eup %9841 }
0x38d9   :  { %v5303_v29 = vmul.f32 %v9842_v39, %v5297_v61 }
0x38db   :  { %v5311_v50 = vadd.f32 %v8291_v23, %v5303_v29 }
0x38dd   :  { %v5317_v34 = vpack.c.bf16 %v5311_v50, %v5310_v33 }
0x38df   :  { %9184 = vmatmul.mubr.msk.bf16.vlgmr.msra.gmra.mrb[156].mxu1 %vm176_vm0, %v5317_v34  ;;  %v8305_v34 = vld [vmem:[%s11839_s29 + $0x1] ss:$0 sm:$0xff]  ;;  %s11864_s29 = smov 24  }
0x38e0   :  { %9203 = vmatprep.mubr.msk.bf16.mxu1 %vm10008_vm1, %v10007_v15  ;;  %9200 = vmatpush3.bf16.msra.mxu1 %v9635_v10 }
0x38e1   :  { %9201 = vmatprep.subr.bf16.mxu1 %v10007_v15 }
0x38e4   :  { %9202 = vmatpush3.bf16.msra.mxu1 %v9636_v11 }
0x38e5   :  { %9207 = vmatprep.subr.bf16.mxu1 %v10007_v15 }
0x39b2   :  { %v5373_v2 = vpop.f32.mrb[156].mxu1 }
0x39b3   :  { %v5374_v32 = vadd.f32 %v8292_v63, %v5373_v2  ;;  %v9185_v49 = vpop.f32.mrb[157].mxu1 }
0x39b4   :  { %v5376_v59 = vpop.f32.mrb[158].mxu1 }
0x39b5   :  { %v5377_v22 = vadd.f32 %v8292_v63, %v5376_v59  ;;  %v9186_v56 = vpop.f32.mrb[159].mxu1  ;;  %v5380_v44 = vmax.f32 %v5374_v32, 0.0  ;;  %v8311_v32 = vld [vmem:[%s11840_s3 + $0x1] ss:$0 sm:$0xff] }
0x39b7   :  { %v5381_v38 = vmax.f32 %v5377_v22, 0.0 }
0x39b9   :  { %v5391_v3 = vpack.c.bf16 %v5381_v38, %v5380_v44 }
0x39bb   :  { %9196 = vmatmul.mubr.msk.bf16.vlgmr.msra.gmra.mrb[152].mxu0 %vm1485_vm2, %v5391_v3 }
0x39bc   :  { %9215 = vmatprep.mubr.msk.bf16.mxu0 %vm10008_vm1, %v10007_v15 }
0x3a8e   :  { %v5459_v1 = vpop.f32.mrb[152].mxu0 }
0x3a8f   :  { %v5460_v20 = vadd.f32 %v8296_v45, %v5459_v1  ;;  %v9197_v30 = vpop.f32.mrb[153].mxu0 }
0x3a90   :  { %v5462_v43 = vpop.f32.mrb[154].mxu0 }
0x3a91   :  { %v11288_v35 = vadd.f32 %v5460_v20, %v11252_v19  ;;  %v5463_v4 = vadd.f32 %v8296_v45, %v5462_v43  ;;  %v9198_v36 = vpop.f32.mrb[155].mxu0 }
0x3a93   :  { %v11291_v41 = vadd.f32 %v5463_v4, %v11255_v31  ;;  %v5472_v40 = vsel %vm176_vm0, %v11288_v35, 0.0 }
0x3a94   :  { %5473 = vadd.xlane.f32.xlu0 %v5472_v40 }
0x3a95   :  { %v5475_v25 = vsel %vm176_vm0, %v11291_v41, 0.0 }
0x3a96   :  { %5476 = vadd.xlane.f32.xlu1 %v5475_v25 }
0x3b21   :  { %v5474_v53 = vpop.xlane.xlu0 %5473 }
0x3b22   :  { %v5478_v60 = vmul.f32 0.03125, %v5474_v53 }
0x3b23   :  { %v5477_v5 = vpop.xlane.xlu1 %5476 }
0x3b24   :  { %v5480_v19 = vsub.f32 %v11288_v35, %v5478_v60  ;;  %v5479_v62 = vmul.f32 0.03125, %v5477_v5 }
0x3b26   :  { %v5481_v6 = vsub.f32 %v11291_v41, %v5479_v62  ;;  %v5482_v31 = vmul.f32 %v5480_v19, %v5480_v19  ;;  %v5512_v23 = vmul.f32 %v8304_v52, %v5480_v19 }
0x3b28   :  { %v5484_v7 = vsel %vm176_vm0, %v5482_v31, 0.0  ;;  %v5483_v8 = vmul.f32 %v5481_v6, %v5481_v6  ;;  %v5513_v29 = vmul.f32 %v8304_v52, %v5481_v6 }
0x3b29   :  { %5485 = vadd.xlane.f32.xlu0 %v5484_v7 }
0x3b2a   :  { %v5487_v9 = vsel %vm176_vm0, %v5483_v8, 0.0 }
0x3b2b   :  { %5488 = vadd.xlane.f32.xlu1 %v5487_v9 }
0x3bb6   :  { %v5486_v12 = vpop.xlane.xlu0 %5485 }
0x3bb7   :  { %v5490_v51 = vmul.f32 0.032258064, %v5486_v12 }
0x3bb8   :  { %v5489_v13 = vpop.xlane.xlu1 %5488 }
0x3bb9   :  { %9843 = vrsqrt.f32 %v5490_v51  ;;  %v5491_v14 = vmul.f32 0.032258064, %v5489_v13  ;;  %vm5494_vm5 = vcmp.eq.f32.partialorder %v5490_v51, inf  ;;  %v5497_v17 = vand.u32 2147483648, %v5490_v51 }
0x3bba   :  { %vm5496_vm12 = vcmp.eq.f32.partialorder %v5490_v51, 0.0 }
0x3bbb   :  { %9845 = vrsqrt.f32 %v5491_v14  ;;  %vm5501_vm13 = vcmp.eq.f32.partialorder %v5491_v14, inf  ;;  %v5504_v18 = vand.u32 2147483648, %v5491_v14  ;;  %vm5503_vm3 = vcmp.eq.f32.partialorder %v5491_v14, 0.0 }
0x3bc3   :  { %v9844_v16 = vpop.eup %9843 }
0x3bc4   :  { %v5493_v24 = vmul.f32 %v9844_v16, %v5490_v51 }
0x3bc5   :  { %v9846_v21 = vpop.eup %9845 }
0x3bc6   :  { %v5495_v27 = vsel %vm5494_vm5, %v5490_v51, %v5493_v24  ;;  %v5500_v37 = vmul.f32 %v9846_v21, %v5491_v14 }
0x3bc7   :  { %v5498_v28 = vsel %vm5496_vm12, %v5497_v17, %v5495_v27 }
0x3bc8   :  { %v5514_v26 = vadd.f32 1e-06, %v5498_v28  ;;  %v5502_v54 = vsel %vm5501_vm13, %v5491_v14, %v5500_v37 }
0x3bc9   :  { %v5505_v55 = vsel %vm5503_vm3, %v5504_v18, %v5502_v54 }
0x3bca   :  { %9847 = vrcp.f32 %v5514_v26  ;;  %v5515_v61 = vadd.f32 1e-06, %v5505_v55 }
0x3bcc   :  { %9849 = vrcp.f32 %v5515_v61 }
0x3bd4   :  { %v9848_v39 = vpop.eup %9847 }
0x3bd5   :  { %v5517_v33 = vmul.f32 %v9848_v39, %v5512_v23 }
0x3bd6   :  { %v9850_v50 = vpop.eup %9849 }
0x3bd7   :  { %v5519_v48 = vmul.f32 %v9850_v50, %v5513_v29  ;;  %v5526_v42 = vadd.f32 %v8305_v34, %v5517_v33 }
0x3bd9   :  { %v5527_v63 = vadd.f32 %v8305_v34, %v5519_v48 }
0x3bdb   :  { %v5535_v2 = vpack.c.bf16 %v5527_v63, %v5526_v42 }
0x3bdd   :  { %9204 = vmatmul.mubr.msk.bf16.vlgmr.msra.gmra.mrb[160].mxu1 %vm176_vm0, %v5535_v2 }
0x3bde   :  { %9209 = vmatprep.mubr.msk.bf16.mxu1 %vm10008_vm1, %v10007_v15 }
0x3cb0   :  { %v5591_v49 = vpop.f32.mrb[160].mxu1 }
0x3cb1   :  { %v5592_v59 = vadd.f32 %v8311_v32, %v5591_v49  ;;  %v9205_v22 = vpop.f32.mrb[161].mxu1 }
0x3cb2   :  { %v5594_v56 = vpop.f32.mrb[162].mxu1 }
0x3cb3   :  { %v11311_v44 = vpack.c.bf16 %v5592_v59, %v5592_v59  ;;  %v5595_v38 = vadd.f32 %v8311_v32, %v5594_v56  ;;  %v9206_v3 = vpop.f32.mrb[163].mxu1 }
0x3cb5   :  { %v11313_v45 = vpack.c.bf16 %v5595_v38, %v5595_v38  ;;  %5601 = vrot.lane.b32.xlu0 %v11311_v44, %s10009_s0 }
0x3cb7   :  { %5650 = vrot.lane.b32.xlu1 %v11313_v45, %s10009_s0 }
0x3d27   :  { %v5602_v1 = vpop.permute.xlu0 %5601 }
0x3d28   :  { %v5607_v20 = vsel %vm322_vm6, %v5602_v1, 0 }
0x3d29   :  { %9208 = vmatpush3.bf16.xpose.msra.mxu1 %v5607_v20  ;;  %v5651_v30 = vpop.permute.xlu1 %5650 }
0x3d2a   :  { %v5656_v43 = vsel %vm322_vm6, %v5651_v30, 0  ;;  %9219 = vmatprep.subr.bf16.mxu1 %v10007_v15 }
0x3d2b   :  { %9214 = vmatpush3.bf16.xpose.msra.mxu0 %v5656_v43 }
0x3d2c   :  { %9225 = vmatprep.subr.bf16.mxu0 %v10007_v15 }
0x3d30   :  { %9210 = vmatmul.mubr.msk.bf16.vlgmr.msra.gmra.mrb[164].mxu1 %vm322_vm6, %v11311_v44 }
0x3d31   :  { %9221 = vmatprep.mubr.msk.bf16.mxu1 %vm10008_vm1, %v10007_v15 }
0x3d32   :  { %9216 = vmatmul.mubr.msk.bf16.vlgmr.msra.gmra.mrb[156].mxu0 %vm322_vm6, %v11313_v45 }
0x3d33   :  { %9227 = vmatprep.mubr.msk.bf16.mxu0 %vm10008_vm1, %v10007_v15 }
0x3e03   :  { %v5643_v4 = vpop.f32.mrb[164].mxu1 }
0x3e04   :  { %v5698_v36 = vmul.f32 0.35355338, %v5643_v4  ;;  %v9211_v40 = vpop.f32.mrb[165].mxu1 }
0x3e05   :  { %v5646_v25 = vpop.f32.mrb[166].mxu1  ;;  %v5692_v53 = vpop.f32.mrb[156].mxu0 }
0x3e06   :  { %v5700_v60 = vsel %vm3066_vm14, %v5698_v36, -1e+09  ;;  %v5699_v5 = vmul.f32 0.35355338, %v5692_v53  ;;  %v9212_v19 = vpop.f32.mrb[167].mxu1  ;;  %v9217_v62 = vpop.f32.mrb[157].mxu0 }
0x3e07   :  { %v5695_v6 = vpop.f32.mrb[158].mxu0  ;;  %v5702_v31 = vsel %vm322_vm6, %v5700_v60, -inf }
0x3e08   :  { %v5701_v7 = vsel %vm3067_vm15, %v5699_v5, -1e+09  ;;  %5703 = vmax.xlane.f32.xlu1 %v5702_v31  ;;  %v9218_v8 = vpop.f32.mrb[159].mxu0 }
0x3e09   :  { %v5705_v9 = vsel %vm322_vm6, %v5701_v7, -inf }
0x3e0a   :  { %5706 = vmax.xlane.f32.xlu0 %v5705_v9 }
0x3e19   :  { %5774 = vrot.lane.b32.xlu1 %v11313_v45, %s10010_s13 }
0x3e1d   :  { %5824 = vrot.lane.b32.xlu1 %v11311_v44, %s10011_s28 }
0x3e95   :  { %v5704_v10 = vpop.xlane.xlu1 %5703 }
0x3e96   :  { %v5708_v11 = vsub.f32 %v5700_v60, %v5704_v10 }
0x3e97   :  { %v5707_v12 = vpop.xlane.xlu0 %5706 }
0x3e98   :  { %v5710_v51 = vmul.f32 1.442695, %v5708_v11  ;;  %v5709_v13 = vsub.f32 %v5701_v7, %v5707_v12 }
0x3e99   :  { %v5775_v14 = vpop.permute.xlu1 %5774 }
0x3e9a   :  { %9851 = vpow2.f32 %v5710_v51  ;;  %v5712_v16 = vmul.f32 1.442695, %v5709_v13  ;;  %v5780_v24 = vsel %vm451_vm9, %v5775_v14, 0 }
0x3e9b   :  { %9226 = vmatpush3.bf16.msra.mxu0 %v5780_v24 }
0x3e9c   :  { %9853 = vpow2.f32 %v5712_v16  ;;  %9237 = vmatprep.subr.bf16.mxu0 %v10007_v15 }
0x3e9d   :  { %v5825_v37 = vpop.permute.xlu1 %5824 }
0x3e9e   :  { %v5830_v50 = vsel %vm322_vm6, %v5825_v37, 0 }
0x3ea4   :  { %v9852_v17 = vpop.eup %9851 }
0x3ea5   :  { %v5714_v21 = vsel %vm322_vm6, %v9852_v17, 0.0 }
0x3ea6   :  { %v9854_v27 = vpop.eup %9853  ;;  %5715 = vadd.xlane.f32.xlu0 %v5714_v21 }
0x3ea7   :  { %v5717_v28 = vsel %vm322_vm6, %v9854_v27, 0.0 }
0x3ea8   :  { %5718 = vadd.xlane.f32.xlu1 %v5717_v28 }
0x3eb9   :  { %5874 = vrot.lane.b32.xlu1 %v11313_v45, %s10011_s28 }
0x3ebc   :  { %5726 = vrot.lane.b32.xlu0 %v11311_v44, %s10010_s13  ;;  %s11859_s13 = smov 72  }
0x3ebd   :  { %5872 = vrot.lane.b32.xlu1 %v11313_v45, %s10012_s1 }
0x3ec0   :  { %5822 = vrot.lane.b32.xlu0 %v11311_v44, %s10012_s1 }
0x3f33   :  { %v5716_v26 = vpop.xlane.xlu0 %5715 }
0x3f34   :  { %9855 = vrcp.f32 %v5716_v26 }
0x3f35   :  { %v5719_v18 = vpop.xlane.xlu1 %5718 }
0x3f36   :  { %9857 = vrcp.f32 %v5719_v18 }
0x3f37   :  { %v5727_v54 = vpop.permute.xlu0 %5726 }
0x3f38   :  { %v5732_v55 = vsel %vm451_vm9, %v5727_v54, 0 }
0x3f39   :  { %9220 = vmatpush3.bf16.msra.mxu1 %v5732_v55  ;;  %v5875_v33 = vpop.permute.xlu1 %5874 }
0x3f3a   :  { %9231 = vmatprep.subr.bf16.mxu1 %v10007_v15  ;;  %v5880_v48 = vsel %vm322_vm6, %v5875_v33, 0 }
0x3f3b   :  { %v5823_v42 = vpop.permute.xlu0 %5822 }
0x3f3d   :  { %v5873_v63 = vpop.permute.xlu1 %5872 }
0x3f3e   :  { %v9856_v61 = vpop.eup %9855 }
0x3f3f   :  { %v5722_v52 = vmul.f32 %v9856_v61, %v9852_v17 }
0x3f40   :  { %v9858_v39 = vpop.eup %9857 }
0x3f41   :  { %v5723_v23 = vmul.f32 %v9858_v39, %v9854_v27  ;;  %v5724_v29 = vpack.c.bf16 %v5722_v52, %v5722_v52 }
0x3f43   :  { %9222 = vmatmul.mubr.msk.bf16.vlgmr.msra.gmra.mrb[168].mxu1 %vm322_vm6, %v5724_v29  ;;  %v5725_v34 = vpack.c.bf16 %v5723_v23, %v5723_v23 }
0x3f44   :  { %9232 = vmatpush3.bf16.xpose.msra.mxu1 %v5830_v50  ;;  %9233 = vmatprep.mubr.msk.bf16.mxu1 %vm10008_vm1, %v10007_v15 }
0x3f45   :  { %9228 = vmatmul.mubr.msk.bf16.vlgmr.msra.gmra.mrb[160].mxu0 %vm322_vm6, %v5725_v34  ;;  %9243 = vmatprep.subr.bf16.mxu1 %v10007_v15 }
0x3f46   :  { %9238 = vmatpush3.bf16.xpose.msra.mxu0 %v5880_v48  ;;  %9239 = vmatprep.mubr.msk.bf16.mxu0 %vm10008_vm1, %v10007_v15 }
0x3f47   :  { %9249 = vmatprep.subr.bf16.mxu0 %v10007_v15 }
0x3f4b   :  { %9234 = vmatmul.mubr.msk.bf16.vlgmr.msra.gmra.mrb[172].mxu1 %vm322_vm6, %v5823_v42 }
0x3f4c   :  { %9245 = vmatprep.mubr.msk.bf16.mxu1 %vm10008_vm1, %v10007_v15 }
0x3f4d   :  { %9240 = vmatmul.mubr.msk.bf16.vlgmr.msra.gmra.mrb[164].mxu0 %vm322_vm6, %v5873_v63 }
0x3f4e   :  { %9251 = vmatprep.mubr.msk.bf16.mxu0 %vm10008_vm1, %v10007_v15 }
0x4016   :  { %v11371_v2 = vpop.f32.mrb[168].mxu1 }
0x4017   :  { %v9223_v32 = vpop.f32.mrb[169].mxu1 }
0x4018   :  { %v5771_v49 = vpop.f32.mrb[170].mxu1  ;;  %v11373_v59 = vpop.f32.mrb[160].mxu0 }
0x4019   :  { %v9224_v22 = vpop.f32.mrb[171].mxu1  ;;  %v9229_v56 = vpop.f32.mrb[161].mxu0 }
0x401a   :  { %v5819_v38 = vpop.f32.mrb[162].mxu0 }
0x401b   :  { %v9230_v3 = vpop.f32.mrb[163].mxu0 }
0x401e   :  { %v5866_v1 = vpop.f32.mrb[172].mxu1 }
0x401f   :  { %v5922_v20 = vmul.f32 0.35355338, %v5866_v1  ;;  %v9235_v30 = vpop.f32.mrb[173].mxu1 }
0x4020   :  { %v5869_v43 = vpop.f32.mrb[174].mxu1  ;;  %v5916_v4 = vpop.f32.mrb[164].mxu0 }
0x4021   :  { %v5924_v36 = vsel %vm3066_vm14, %v5922_v20, -1e+09  ;;  %v5923_v40 = vmul.f32 0.35355338, %v5916_v4  ;;  %v9236_v25 = vpop.f32.mrb[175].mxu1  ;;  %v9241_v53 = vpop.f32.mrb[165].mxu0 }
0x4022   :  { %v5919_v60 = vpop.f32.mrb[166].mxu0  ;;  %v5926_v5 = vsel %vm322_vm6, %v5924_v36, -inf }
0x4023   :  { %v5925_v19 = vsel %vm3067_vm15, %v5923_v40, -1e+09  ;;  %5927 = vmax.xlane.f32.xlu0 %v5926_v5  ;;  %v9242_v62 = vpop.f32.mrb[167].mxu0 }
0x4024   :  { %v5929_v6 = vsel %vm322_vm6, %v5925_v19, -inf }
0x4025   :  { %5930 = vmax.xlane.f32.xlu1 %v5929_v6 }
0x4036   :  { %5998 = vrot.lane.b32.xlu1 %v11313_v45, %s10013_s2 }
0x403a   :  { %6048 = vrot.lane.b32.xlu1 %v11311_v44, %s10014_s7 }
0x403e   :  { %6098 = vrot.lane.b32.xlu1 %v11313_v45, %s10014_s7 }
0x4042   :  { %6096 = vrot.lane.b32.xlu1 %v11313_v45, %s10015_s10 }
0x40b0   :  { %v5928_v31 = vpop.xlane.xlu0 %5927 }
0x40b1   :  { %v5932_v7 = vsub.f32 %v5924_v36, %v5928_v31 }
0x40b2   :  { %v5931_v8 = vpop.xlane.xlu1 %5930 }
0x40b3   :  { %v5934_v9 = vmul.f32 1.442695, %v5932_v7  ;;  %v5933_v10 = vsub.f32 %v5925_v19, %v5931_v8 }
0x40b5   :  { %9859 = vpow2.f32 %v5934_v9  ;;  %v5936_v11 = vmul.f32 1.442695, %v5933_v10 }
0x40b6   :  { %v5999_v12 = vpop.permute.xlu1 %5998 }
0x40b7   :  { %9861 = vpow2.f32 %v5936_v11  ;;  %v6004_v51 = vsel %vm451_vm9, %v5999_v12, 0 }
0x40b8   :  { %9250 = vmatpush3.bf16.msra.mxu0 %v6004_v51 }
0x40b9   :  { %9261 = vmatprep.subr.bf16.mxu0 %v10007_v15 }
0x40ba   :  { %v6049_v26 = vpop.permute.xlu1 %6048 }
0x40bb   :  { %v6054_v39 = vsel %vm322_vm6, %v6049_v26, 0 }
0x40be   :  { %v6099_v52 = vpop.permute.xlu1 %6098 }
0x40bf   :  { %v9860_v13 = vpop.eup %9859  ;;  %v6104_v29 = vsel %vm322_vm6, %v6099_v52, 0 }
0x40c0   :  { %v5938_v14 = vsel %vm322_vm6, %v9860_v13, 0.0 }
0x40c1   :  { %v9862_v16 = vpop.eup %9861  ;;  %5939 = vadd.xlane.f32.xlu0 %v5938_v14 }
0x40c2   :  { %v5941_v24 = vsel %vm322_vm6, %v9862_v16, 0.0  ;;  %v6097_v50 = vpop.permute.xlu1 %6096 }
0x40c5   :  { %5942 = vadd.xlane.f32.xlu0 %v5941_v24 }
0x40db   :  { %5950 = vrot.lane.b32.xlu0 %v11311_v44, %s10013_s2  ;;  %s11860_s2 = smov 104  }
0x40df   :  { %6046 = vrot.lane.b32.xlu0 %v11311_v44, %s10015_s10 }
0x414e   :  { %v5940_v17 = vpop.xlane.xlu0 %5939 }
0x414f   :  { %9863 = vrcp.f32 %v5940_v17 }
0x4152   :  { %v5943_v21 = vpop.xlane.xlu0 %5942 }
0x4153   :  { %9865 = vrcp.f32 %v5943_v21 }
0x4156   :  { %v5951_v27 = vpop.permute.xlu0 %5950 }
0x4157   :  { %v5956_v28 = vsel %vm451_vm9, %v5951_v27, 0 }
0x4158   :  { %9244 = vmatpush3.bf16.msra.mxu1 %v5956_v28 }
0x4159   :  { %v9864_v37 = vpop.eup %9863  ;;  %9255 = vmatprep.subr.bf16.mxu1 %v10007_v15 }
0x415a   :  { %v5946_v18 = vmul.f32 %v9864_v37, %v9860_v13  ;;  %v6047_v33 = vpop.permute.xlu0 %6046 }
0x415c   :  { %v5948_v54 = vpack.c.bf16 %v5946_v18, %v5946_v18 }
0x415d   :  { %v9866_v55 = vpop.eup %9865 }
0x415e   :  { %v5947_v61 = vmul.f32 %v9866_v55, %v9862_v16  ;;  %9246 = vmatmul.mubr.msk.bf16.vlgmr.msra.gmra.mrb[176].mxu1 %vm322_vm6, %v5948_v54 }
0x415f   :  { %9257 = vmatprep.mubr.msk.bf16.mxu1 %vm10008_vm1, %v10007_v15 }
0x4160   :  { %v5949_v23 = vpack.c.bf16 %v5947_v61, %v5947_v61 }
0x4161   :  { %9256 = vmatpush3.bf16.xpose.msra.mxu1 %v6054_v39 }
0x4162   :  { %9252 = vmatmul.mubr.msk.bf16.vlgmr.msra.gmra.mrb[168].mxu0 %vm322_vm6, %v5949_v23  ;;  %9267 = vmatprep.subr.bf16.mxu1 %v10007_v15 }
0x4163   :  { %9262 = vmatpush3.bf16.xpose.msra.mxu0 %v6104_v29  ;;  %9263 = vmatprep.mubr.msk.bf16.mxu0 %vm10008_vm1, %v10007_v15 }
0x4164   :  { %9273 = vmatprep.subr.bf16.mxu0 %v10007_v15 }
0x4168   :  { %9258 = vmatmul.mubr.msk.bf16.vlgmr.msra.gmra.mrb[180].mxu1 %vm322_vm6, %v6047_v33 }
0x4169   :  { %9269 = vmatprep.mubr.msk.bf16.mxu1 %vm10008_vm1, %v10007_v15 }
0x416a   :  { %9264 = vmatmul.mubr.msk.bf16.vlgmr.msra.gmra.mrb[172].mxu0 %vm322_vm6, %v6097_v50 }
0x416b   :  { %9275 = vmatprep.mubr.msk.bf16.mxu0 %vm10008_vm1, %v10007_v15 }
0x4231   :  { %v11415_v34 = vpop.f32.mrb[176].mxu1 }
0x4232   :  { %v9247_v48 = vpop.f32.mrb[177].mxu1 }
0x4233   :  { %v5995_v42 = vpop.f32.mrb[178].mxu1 }
0x4234   :  { %v9248_v63 = vpop.f32.mrb[179].mxu1 }
0x4235   :  { %v11417_v32 = vpop.f32.mrb[168].mxu0 }
0x4236   :  { %v9569_v49 = vpack.i.bf16 %v11417_v32, %v11415_v34  ;;  %v9253_v22 = vpop.f32.mrb[169].mxu0 }
0x4237   :  { %v6043_v56 = vpop.f32.mrb[170].mxu0 }
0x4238   :  { %v9254_v38 = vpop.f32.mrb[171].mxu0 }
0x423b   :  { %v6090_v3 = vpop.f32.mrb[180].mxu1 }
0x423c   :  { %v6146_v1 = vmul.f32 0.35355338, %v6090_v3  ;;  %v9259_v20 = vpop.f32.mrb[181].mxu1 }
0x423d   :  { %v6093_v30 = vpop.f32.mrb[182].mxu1  ;;  %v6140_v43 = vpop.f32.mrb[172].mxu0 }
0x423e   :  { %v6148_v4 = vsel %vm3066_vm14, %v6146_v1, -1e+09  ;;  %v6147_v36 = vmul.f32 0.35355338, %v6140_v43  ;;  %v9260_v40 = vpop.f32.mrb[183].mxu1  ;;  %v9265_v25 = vpop.f32.mrb[173].mxu0 }
0x423f   :  { %v6143_v53 = vpop.f32.mrb[174].mxu0  ;;  %v6150_v60 = vsel %vm322_vm6, %v6148_v4, -inf }
0x4240   :  { %v6149_v5 = vsel %vm3067_vm15, %v6147_v36, -1e+09  ;;  %6151 = vmax.xlane.f32.xlu0 %v6150_v60  ;;  %v9266_v19 = vpop.f32.mrb[175].mxu0 }
0x4241   :  { %v6153_v62 = vsel %vm322_vm6, %v6149_v5, -inf }
0x4242   :  { %6154 = vmax.xlane.f32.xlu1 %v6153_v62 }
0x4253   :  { %6222 = vrot.lane.b32.xlu1 %v11313_v45, %s10016_s11 }
0x4257   :  { %6272 = vrot.lane.b32.xlu1 %v11311_v44, %s11859_s13 }
0x425b   :  { %6322 = vrot.lane.b32.xlu1 %v11313_v45, %s11859_s13 }
0x425f   :  { %6320 = vrot.lane.b32.xlu1 %v11313_v45, %s11860_s2 }
0x42cd   :  { %v6152_v6 = vpop.xlane.xlu0 %6151 }
0x42ce   :  { %v6156_v31 = vsub.f32 %v6148_v4, %v6152_v6 }
0x42cf   :  { %v6155_v7 = vpop.xlane.xlu1 %6154 }
0x42d0   :  { %v6158_v8 = vmul.f32 1.442695, %v6156_v31  ;;  %v6157_v9 = vsub.f32 %v6149_v5, %v6155_v7 }
0x42d2   :  { %9867 = vpow2.f32 %v6158_v8  ;;  %v6160_v10 = vmul.f32 1.442695, %v6157_v9 }
0x42d3   :  { %v6223_v11 = vpop.permute.xlu1 %6222 }
0x42d4   :  { %9869 = vpow2.f32 %v6160_v10  ;;  %v6228_v12 = vsel %vm451_vm9, %v6223_v11, 0 }
0x42d5   :  { %9274 = vmatpush3.bf16.msra.mxu0 %v6228_v12 }
0x42d6   :  { %9285 = vmatprep.subr.bf16.mxu0 %v10007_v15 }
0x42d7   :  { %v6273_v37 = vpop.permute.xlu1 %6272 }
0x42d8   :  { %v6278_v52 = vsel %vm322_vm6, %v6273_v37, 0  ;;  %v9637_v37 = vld [vmem:[%s11842_s14 + $0x10] sm:$0xff]  }
0x42db   :  { %v6323_v61 = vpop.permute.xlu1 %6322 }
0x42dc   :  { %v9868_v51 = vpop.eup %9867  ;;  %v6328_v23 = vsel %vm322_vm6, %v6323_v61, 0 }
0x42dd   :  { %v6162_v13 = vsel %vm322_vm6, %v9868_v51, 0.0 }
0x42de   :  { %v9870_v14 = vpop.eup %9869  ;;  %6163 = vadd.xlane.f32.xlu0 %v6162_v13 }
0x42df   :  { %v6165_v16 = vsel %vm322_vm6, %v9870_v14, 0.0  ;;  %v6321_v33 = vpop.permute.xlu1 %6320 }
0x42e2   :  { %6166 = vadd.xlane.f32.xlu0 %v6165_v16 }
0x42f8   :  { %6174 = vrot.lane.b32.xlu0 %v11311_v44, %s10016_s11  ;;  %s11861_s11 = smov 40  }
0x42fc   :  { %6270 = vrot.lane.b32.xlu0 %v11311_v44, %s11860_s2 }
0x436b   :  { %v6164_v24 = vpop.xlane.xlu0 %6163 }
0x436c   :  { %9871 = vrcp.f32 %v6164_v24 }
0x436f   :  { %v6167_v17 = vpop.xlane.xlu0 %6166 }
0x4370   :  { %9873 = vrcp.f32 %v6167_v17 }
0x4373   :  { %v6175_v21 = vpop.permute.xlu0 %6174 }
0x4374   :  { %v6180_v27 = vsel %vm451_vm9, %v6175_v21, 0 }
0x4375   :  { %9268 = vmatpush3.bf16.msra.mxu1 %v6180_v27 }
0x4376   :  { %v9872_v28 = vpop.eup %9871  ;;  %9279 = vmatprep.subr.bf16.mxu1 %v10007_v15 }
0x4377   :  { %v6170_v26 = vmul.f32 %v9872_v28, %v9868_v51  ;;  %v6271_v29 = vpop.permute.xlu0 %6270 }
0x4379   :  { %v6172_v18 = vpack.c.bf16 %v6170_v26, %v6170_v26  ;;  %v9638_v26 = vld [vmem:[%s11842_s14 + $0x18] sm:$0xff]  }
0x437a   :  { %v9874_v54 = vpop.eup %9873 }
0x437b   :  { %v6171_v55 = vmul.f32 %v9874_v54, %v9870_v14  ;;  %9270 = vmatmul.mubr.msk.bf16.vlgmr.msra.gmra.mrb[184].mxu1 %vm322_vm6, %v6172_v18 }
0x437c   :  { %9281 = vmatprep.mubr.msk.bf16.mxu1 %vm10008_vm1, %v10007_v15 }
0x437d   :  { %v6173_v39 = vpack.c.bf16 %v6171_v55, %v6171_v55 }
0x437e   :  { %9280 = vmatpush3.bf16.xpose.msra.mxu1 %v6278_v52 }
0x437f   :  { %9276 = vmatmul.mubr.msk.bf16.vlgmr.msra.gmra.mrb[176].mxu0 %vm322_vm6, %v6173_v39  ;;  %9291 = vmatprep.subr.bf16.mxu1 %v10007_v15 }
0x4380   :  { %9286 = vmatpush3.bf16.xpose.msra.mxu0 %v6328_v23  ;;  %9287 = vmatprep.mubr.msk.bf16.mxu0 %vm10008_vm1, %v10007_v15 }
0x4381   :  { %9297 = vmatprep.subr.bf16.mxu0 %v10007_v15 }
0x4385   :  { %9282 = vmatmul.mubr.msk.bf16.vlgmr.msra.gmra.mrb[188].mxu1 %vm322_vm6, %v6271_v29 }
0x4386   :  { %9293 = vmatprep.mubr.msk.bf16.mxu1 %vm10008_vm1, %v10007_v15 }
0x4387   :  { %9288 = vmatmul.mubr.msk.bf16.vlgmr.msra.gmra.mrb[180].mxu0 %vm322_vm6, %v6321_v33 }
0x4388   :  { %9299 = vmatprep.mubr.msk.bf16.mxu0 %vm10008_vm1, %v10007_v15 }
0x444e   :  { %v6216_v50 = vpop.f32.mrb[184].mxu1 }
0x444f   :  { %v9271_v48 = vpop.f32.mrb[185].mxu1 }
0x4450   :  { %v6219_v42 = vpop.f32.mrb[186].mxu1 }
0x4451   :  { %v9272_v63 = vpop.f32.mrb[187].mxu1 }
0x4452   :  { %v6264_v22 = vpop.f32.mrb[176].mxu0 }
0x4453   :  { %v9574_v56 = vpack.i.bf16 %v6264_v22, %v6216_v50  ;;  %v9277_v38 = vpop.f32.mrb[177].mxu0 }
0x4454   :  { %v6267_v3 = vpop.f32.mrb[178].mxu0 }
0x4455   :  { %v9278_v1 = vpop.f32.mrb[179].mxu0 }
0x4458   :  { %v6314_v20 = vpop.f32.mrb[188].mxu1 }
0x4459   :  { %v6370_v30 = vmul.f32 0.35355338, %v6314_v20  ;;  %v9283_v43 = vpop.f32.mrb[189].mxu1 }
0x445a   :  { %v6317_v4 = vpop.f32.mrb[190].mxu1  ;;  %v6364_v36 = vpop.f32.mrb[180].mxu0 }
0x445b   :  { %v6372_v40 = vsel %vm3066_vm14, %v6370_v30, -1e+09  ;;  %v6371_v25 = vmul.f32 0.35355338, %v6364_v36  ;;  %v9284_v53 = vpop.f32.mrb[191].mxu1  ;;  %v9289_v60 = vpop.f32.mrb[181].mxu0 }
0x445c   :  { %v6367_v5 = vpop.f32.mrb[182].mxu0  ;;  %v6374_v19 = vsel %vm322_vm6, %v6372_v40, -inf }
0x445d   :  { %v6373_v62 = vsel %vm3067_vm15, %v6371_v25, -1e+09  ;;  %6375 = vmax.xlane.f32.xlu0 %v6374_v19  ;;  %v9290_v6 = vpop.f32.mrb[183].mxu0  ;;  %v9639_v25 = vld [vmem:[%s11844_s24 + $0x10] sm:$0xff]  }
0x445e   :  { %v6377_v31 = vsel %vm322_vm6, %v6373_v62, -inf }
0x445f   :  { %6378 = vmax.xlane.f32.xlu1 %v6377_v31 }
0x4470   :  { %6446 = vrot.lane.b32.xlu1 %v11313_v45, %s11861_s11 }
0x4474   :  { %9570 = vrot.lane.b32.xlu1 %v9569_v49, %s11862_s21 }
0x4478   :  { %9575 = vrot.lane.b32.xlu1 %v9574_v56, %s11863_s25 }
0x44ea   :  { %v6376_v46 = vpop.xlane.xlu0 %6375 }
0x44eb   :  { %v6380_v7 = vsub.f32 %v6372_v40, %v6376_v46 }
0x44ec   :  { %v6379_v8 = vpop.xlane.xlu1 %6378 }
0x44ed   :  { %v6382_v47 = vmul.f32 1.442695, %v6380_v7  ;;  %v6381_v9 = vsub.f32 %v6373_v62, %v6379_v8 }
0x44ef   :  { %9875 = vpow2.f32 %v6382_v47  ;;  %v6384_v10 = vmul.f32 1.442695, %v6381_v9 }
0x44f0   :  { %v6447_v11 = vpop.permute.xlu1 %6446 }
0x44f1   :  { %9877 = vpow2.f32 %v6384_v10  ;;  %v6452_v12 = vsel %vm451_vm9, %v6447_v11, 0 }
0x44f2   :  { %9298 = vmatpush3.bf16.msra.mxu0 %v6452_v12 }
0x44f3   :  { %9311 = vmatprep.subr.bf16.mxu0 %v10007_v15 }
0x44f4   :  { %v9571_v50 = vpop.permute.xlu1 %9570 }
0x44f5   :  { %v9573_v42 = vunpack.i.h.bf16 %v9571_v50  ;;  %v9572_v63 = vunpack.i.l.bf16 %v9571_v50 }
0x44f7   :  { %v6519_v3 = vsel %vm322_vm6, %v11373_v59, %v9573_v42  ;;  %v6518_v1 = vsel %vm322_vm6, %v11371_v2, %v9572_v63  ;;  %v9640_v59 = vld [vmem:[%s11844_s24 + $0x18] sm:$0xff]   ;;  %v8336_v2 = vld [vmem:[%s11843_s19 + $0x1] ss:$0 sm:$0xff] }
0x44f8   :  { %v9576_v48 = vpop.permute.xlu1 %9575 }
0x44f9   :  { %v9876_v45 = vpop.eup %9875  ;;  %v9578_v22 = vunpack.i.h.bf16 %v9576_v48  ;;  %v9577_v56 = vunpack.i.l.bf16 %v9576_v48 }
0x44fa   :  { %v6386_v34 = vsel %vm322_vm6, %v9876_v45, 0.0 }
0x44fb   :  { %v9878_v32 = vpop.eup %9877  ;;  %6387 = vadd.xlane.f32.xlu0 %v6386_v34  ;;  %v6520_v43 = vsel %vm1241_vm10, %v6518_v1, %v9577_v56  ;;  %v6521_v4 = vsel %vm1241_vm10, %v6519_v3, %v9578_v22  ;;  %v8342_v56 = vld [vmem:[%s11848_s20 + $0x1] ss:$0 sm:$0xff] }
0x44fc   :  { %v6389_v49 = vsel %vm322_vm6, %v9878_v32, 0.0 }
0x44ff   :  { %6390 = vadd.xlane.f32.xlu0 %v6389_v49 }
0x4515   :  { %6398 = vrot.lane.b32.xlu0 %v11311_v44, %s11861_s11 }
0x4588   :  { %v6388_v51 = vpop.xlane.xlu0 %6387 }
0x4589   :  { %9879 = vrcp.f32 %v6388_v51 }
0x458c   :  { %v6391_v13 = vpop.xlane.xlu0 %6390 }
0x458d   :  { %9881 = vrcp.f32 %v6391_v13 }
0x4590   :  { %v6399_v14 = vpop.permute.xlu0 %6398 }
0x4591   :  { %v6404_v16 = vsel %vm451_vm9, %v6399_v14, 0 }
0x4592   :  { %9292 = vmatpush3.bf16.msra.mxu1 %v6404_v16 }
0x4593   :  { %v9880_v24 = vpop.eup %9879  ;;  %9303 = vmatprep.subr.bf16.mxu1 %v10007_v15 }
0x4594   :  { %v6394_v17 = vmul.f32 %v9880_v24, %v9876_v45 }
0x4596   :  { %v6396_v21 = vpack.c.bf16 %v6394_v17, %v6394_v17 }
0x4597   :  { %v9882_v27 = vpop.eup %9881 }
0x4598   :  { %v6395_v28 = vmul.f32 %v9882_v27, %v9878_v32  ;;  %9294 = vmatmul.mubr.msk.bf16.vlgmr.msra.gmra.mrb[192].mxu1 %vm322_vm6, %v6396_v21 }
0x4599   :  { %9307 = vmatprep.mubr.msk.bf16.mxu1 %vm10008_vm1, %v10007_v15  ;;  %9304 = vmatpush3.bf16.msra.mxu1 %v9637_v37 }
0x459a   :  { %v6397_v44 = vpack.c.bf16 %v6395_v28, %v6395_v28  ;;  %9305 = vmatprep.subr.bf16.mxu1 %v10007_v15  ;;  %v9641_v28 = vld [vmem:[%s11847_s12 + $0x10] sm:$0xff]  }
0x459c   :  { %9300 = vmatmul.mubr.msk.bf16.vlgmr.msra.gmra.mrb[184].mxu0 %vm322_vm6, %v6397_v44  ;;  %v9642_v44 = vld [vmem:[%s11847_s12 + $0x18] sm:$0xff]  }
0x459d   :  { %9315 = vmatprep.mubr.msk.bf16.mxu0 %vm10008_vm1, %v10007_v15  ;;  %9306 = vmatpush3.bf16.msra.mxu1 %v9638_v26 }
0x459e   :  { %9319 = vmatprep.subr.bf16.mxu1 %v10007_v15  ;;  %9312 = vmatpush3.bf16.msra.mxu0 %v9641_v28 }
0x459f   :  { %9313 = vmatprep.subr.bf16.mxu0 %v10007_v15 }
0x45a2   :  { %9314 = vmatpush3.bf16.msra.mxu0 %v9642_v44 }
0x45a3   :  { %9327 = vmatprep.subr.bf16.mxu0 %v10007_v15 }
0x466b   :  { %v6440_v18 = vpop.f32.mrb[192].mxu1 }
0x466c   :  { %v9295_v54 = vpop.f32.mrb[193].mxu1 }
0x466d   :  { %v6443_v55 = vpop.f32.mrb[194].mxu1 }
0x466e   :  { %v9296_v61 = vpop.f32.mrb[195].mxu1 }
0x466f   :  { %v6488_v52 = vpop.f32.mrb[184].mxu0 }
0x4670   :  { %v9579_v39 = vpack.i.bf16 %v6488_v52, %v6440_v18  ;;  %v9301_v23 = vpop.f32.mrb[185].mxu0 }
0x4671   :  { %v6491_v29 = vpop.f32.mrb[186].mxu0 }
0x4672   :  { %9580 = vrot.lane.b32.xlu0 %v9579_v39, %s11864_s29  ;;  %v9302_v33 = vpop.f32.mrb[187].mxu0 }
0x46e4   :  { %v9581_v38 = vpop.permute.xlu0 %9580 }
0x46e5   :  { %v9583_v20 = vunpack.i.h.bf16 %v9581_v38  ;;  %v9582_v30 = vunpack.i.l.bf16 %v9581_v38 }
0x46e7   :  { %v6523_v36 = vsel %vm1244_vm11, %v6521_v4, %v9583_v20  ;;  %v6522_v40 = vsel %vm1244_vm11, %v6520_v43, %v9582_v30  ;;  %v8343_v43 = vld [vmem:[%s11849_s5 + $0x1] ss:$0 sm:$0xff] }
0x46e8   :  { %v6531_v53 = vpack.c.bf16 %v6523_v36, %v6522_v40 }
0x46ea   :  { %9308 = vmatmul.mubr.msk.bf16.vlgmr.msra.gmra.mrb[196].mxu1 %vm176_vm0, %v6531_v53 }
0x46eb   :  { %9320 = vmatpush3.bf16.msra.mxu1 %v9639_v25  ;;  %9323 = vmatprep.mubr.msk.bf16.mxu1 %vm10008_vm1, %v10007_v15 }
0x46ec   :  { %9321 = vmatprep.subr.bf16.mxu1 %v10007_v15 }
0x46ef   :  { %9322 = vmatpush3.bf16.msra.mxu1 %v9640_v59 }
0x46f0   :  { %9333 = vmatprep.subr.bf16.mxu1 %v10007_v15 }
0x46f2   :  { %9324 = vmatmul.mubr.msk.bf16.vlgmr.msra.gmra.mrb[200].mxu1 %vm176_vm0, %v11036_v0  ;;  %v8358_v0 = vld [vmem:[%s11850_s8 + $0x1] ss:$0 sm:$0xff] }
0x46f3   :  { %9335 = vmatprep.mubr.msk.bf16.mxu1 %vm10008_vm1, %v10007_v15 }
0x47bd   :  { %v6587_v60 = vpop.f32.mrb[196].mxu1 }
0x47be   :  { %v6588_v5 = vadd.f32 %v8336_v2, %v6587_v60  ;;  %v9309_v19 = vpop.f32.mrb[197].mxu1 }
0x47bf   :  { %v6590_v62 = vpop.f32.mrb[198].mxu1 }
0x47c0   :  { %v11514_v6 = vadd.f32 %v6588_v5, %v11288_v35  ;;  %v6591_v31 = vadd.f32 %v8336_v2, %v6590_v62  ;;  %v9310_v46 = vpop.f32.mrb[199].mxu1  ;;  %v8349_v2 = vld [vmem:[%s11851_s30 + $0x1] ss:$0 sm:$0xff] }
0x47c2   :  { %v11517_v7 = vadd.f32 %v6591_v31, %v11291_v41  ;;  %v6600_v8 = vsel %vm176_vm0, %v11514_v6, 0.0 }
0x47c3   :  { %6601 = vadd.xlane.f32.xlu1 %v6600_v8 }
0x47c4   :  { %v6603_v47 = vsel %vm176_vm0, %v11517_v7, 0.0 }
0x47c5   :  { %6604 = vadd.xlane.f32.xlu0 %v6603_v47  ;;  %v6785_v9 = vpop.f32.mrb[200].mxu1 }
0x47c6   :  { %v6786_v10 = vadd.f32 %v8358_v0, %v6785_v9  ;;  %v9325_v11 = vpop.f32.mrb[201].mxu1 }
0x47c7   :  { %v6788_v12 = vpop.f32.mrb[202].mxu1 }
0x47c8   :  { %v6789_v35 = vadd.f32 %v8358_v0, %v6788_v12  ;;  %v9326_v45 = vpop.f32.mrb[203].mxu1  ;;  %v11539_v36 = vpack.c.bf16 %v6786_v10, %v6786_v10 }
0x47ca   :  { %v11524_v34 = vpack.c.bf16 %v6789_v35, %v6789_v35  ;;  %v6800_v59 = vsel %vm322_vm6, %v11539_v36, 0 }
0x47cc   :  { %v6846_v41 = vsel %vm322_vm6, %v11524_v34, 0 }
0x47cd   :  { %9334 = vmatpush3.bf16.xpose.msra.mxu1 %v6846_v41 }
0x47ce   :  { %9345 = vmatprep.subr.bf16.mxu1 %v10007_v15 }
0x4850   :  { %v6602_v32 = vpop.xlane.xlu1 %6601 }
0x4851   :  { %v6606_v49 = vmul.f32 0.03125, %v6602_v32 }
0x4852   :  { %v6605_v51 = vpop.xlane.xlu0 %6604 }
0x4853   :  { %v6608_v13 = vsub.f32 %v11514_v6, %v6606_v49  ;;  %v6607_v14 = vmul.f32 0.03125, %v6605_v51 }
0x4855   :  { %v6609_v16 = vsub.f32 %v11517_v7, %v6607_v14  ;;  %v6610_v24 = vmul.f32 %v6608_v13, %v6608_v13  ;;  %v6640_v3 = vmul.f32 %v8342_v56, %v6608_v13 }
0x4857   :  { %v6612_v17 = vsel %vm176_vm0, %v6610_v24, 0.0  ;;  %v6611_v21 = vmul.f32 %v6609_v16, %v6609_v16  ;;  %v6641_v1 = vmul.f32 %v8342_v56, %v6609_v16 }
0x4858   :  { %6613 = vadd.xlane.f32.xlu0 %v6612_v17 }
0x4859   :  { %v6615_v27 = vsel %vm176_vm0, %v6611_v21, 0.0 }
0x485c   :  { %6616 = vadd.xlane.f32.xlu0 %v6615_v27 }
0x48e5   :  { %v6614_v37 = vpop.xlane.xlu0 %6613 }
0x48e6   :  { %v6618_v26 = vmul.f32 0.032258064, %v6614_v37 }
0x48e8   :  { %9883 = vrsqrt.f32 %v6618_v26  ;;  %vm6622_vm14 = vcmp.eq.f32.partialorder %v6618_v26, inf  ;;  %v6625_v52 = vand.u32 2147483648, %v6618_v26  ;;  %vm6624_vm15 = vcmp.eq.f32.partialorder %v6618_v26, 0.0 }
0x48e9   :  { %v6617_v18 = vpop.xlane.xlu0 %6616 }
0x48ea   :  { %v6619_v54 = vmul.f32 0.032258064, %v6617_v18 }
0x48ec   :  { %9885 = vrsqrt.f32 %v6619_v54  ;;  %vm6629_vm4 = vcmp.eq.f32.partialorder %v6619_v54, inf  ;;  %v6632_v48 = vand.u32 2147483648, %v6619_v54  ;;  %vm6631_vm5 = vcmp.eq.f32.partialorder %v6619_v54, 0.0 }
0x48f2   :  { %v9884_v55 = vpop.eup %9883 }
0x48f3   :  { %v6621_v61 = vmul.f32 %v9884_v55, %v6618_v26 }
0x48f5   :  { %v6623_v39 = vsel %vm6622_vm14, %v6618_v26, %v6621_v61 }
0x48f6   :  { %v9886_v23 = vpop.eup %9885  ;;  %v6626_v29 = vsel %vm6624_vm15, %v6625_v52, %v6623_v39 }
0x48f7   :  { %v6642_v33 = vadd.f32 1e-06, %v6626_v29  ;;  %v6628_v50 = vmul.f32 %v9886_v23, %v6619_v54 }
0x48f9   :  { %9887 = vrcp.f32 %v6642_v33  ;;  %v6630_v42 = vsel %vm6629_vm4, %v6619_v54, %v6628_v50 }
0x48fa   :  { %v6633_v63 = vsel %vm6631_vm5, %v6632_v48, %v6630_v42 }
0x48fb   :  { %v6643_v22 = vadd.f32 1e-06, %v6633_v63 }
0x48fd   :  { %9889 = vrcp.f32 %v6643_v22 }
0x4903   :  { %v9888_v38 = vpop.eup %9887 }
0x4904   :  { %v6645_v20 = vmul.f32 %v9888_v38, %v6640_v3 }
0x4906   :  { %v6654_v40 = vadd.f32 %v8343_v43, %v6645_v20 }
0x4907   :  { %v9890_v30 = vpop.eup %9889 }
0x4908   :  { %v6647_v4 = vmul.f32 %v9890_v30, %v6641_v1 }
0x490a   :  { %v6655_v25 = vadd.f32 %v8343_v43, %v6647_v4 }
0x490c   :  { %v6663_v53 = vpack.c.bf16 %v6655_v25, %v6654_v40 }
0x490e   :  { %9316 = vmatmul.mubr.msk.bf16.vlgmr.msra.gmra.mrb[188].mxu0 %vm176_vm0, %v6663_v53 }
0x490f   :  { %9328 = vmatpush3.bf16.xpose.msra.mxu0 %v6800_v59  ;;  %9329 = vmatprep.mubr.msk.bf16.mxu0 %vm10008_vm1, %v10007_v15 }
0x4910   :  { %9339 = vmatprep.subr.bf16.mxu0 %v10007_v15 }
0x49e1   :  { %v6719_v60 = vpop.f32.mrb[188].mxu0 }
0x49e2   :  { %v6720_v5 = vadd.f32 %v8349_v2, %v6719_v60  ;;  %v9317_v19 = vpop.f32.mrb[189].mxu0 }
0x49e3   :  { %v6722_v62 = vpop.f32.mrb[190].mxu0 }
0x49e4   :  { %v11548_v31 = vpack.c.bf16 %v6720_v5, %v6720_v5  ;;  %v6723_v46 = vadd.f32 %v8349_v2, %v6722_v62  ;;  %v9318_v8 = vpop.f32.mrb[191].mxu0 }
0x49e6   :  { %v11550_v0 = vpack.c.bf16 %v6723_v46, %v6723_v46  ;;  %9330 = vmatmul.mubr.msk.bf16.vlgmr.msra.gmra.mrb[192].mxu0 %vm322_vm6, %v11548_v31 }
0x49e7   :  { %9341 = vmatprep.mubr.msk.bf16.mxu0 %vm10008_vm1, %v10007_v15 }
0x49e8   :  { %9336 = vmatmul.mubr.msk.bf16.vlgmr.msra.gmra.mrb[204].mxu1 %vm322_vm6, %v11550_v0 }
0x49e9   :  { %9347 = vmatprep.mubr.msk.bf16.mxu1 %vm10008_vm1, %v10007_v15 }
0x4ab9   :  { %v6836_v47 = vpop.f32.mrb[192].mxu0 }
0x4aba   :  { %v6888_v9 = vmul.f32 0.35355338, %v6836_v47  ;;  %v9331_v10 = vpop.f32.mrb[193].mxu0 }
0x4abb   :  { %v6839_v11 = vpop.f32.mrb[194].mxu0  ;;  %v6882_v12 = vpop.f32.mrb[204].mxu1 }
0x4abc   :  { %v6890_v35 = vsel %vm315_vm7, %v6888_v9, -1e+09  ;;  %v6889_v45 = vmul.f32 0.35355338, %v6882_v12  ;;  %v9332_v41 = vpop.f32.mrb[195].mxu0  ;;  %v9337_v32 = vpop.f32.mrb[205].mxu1 }
0x4abd   :  { %v6885_v49 = vpop.f32.mrb[206].mxu1  ;;  %v6892_v51 = vsel %vm322_vm6, %v6890_v35, -inf }
0x4abe   :  { %v6891_v13 = vsel %vm316_vm8, %v6889_v45, -1e+09  ;;  %v9338_v14 = vpop.f32.mrb[207].mxu1  ;;  %6893 = vmax.xlane.f32.xlu1 %v6892_v51 }
0x4abf   :  { %v6895_v16 = vsel %vm322_vm6, %v6891_v13, -inf }
0x4ac0   :  { %6896 = vmax.xlane.f32.xlu0 %v6895_v16 }
0x4acf   :  { %6917 = vrot.lane.b32.xlu1 %v11539_v36, %s10009_s0 }
0x4b4b   :  { %v6894_v24 = vpop.xlane.xlu1 %6893 }
0x4b4c   :  { %v6898_v17 = vsub.f32 %v6890_v35, %v6894_v24 }
0x4b4d   :  { %v6897_v21 = vpop.xlane.xlu0 %6896 }
0x4b4e   :  { %v6900_v27 = vmul.f32 1.442695, %v6898_v17  ;;  %v6899_v28 = vsub.f32 %v6891_v13, %v6897_v21 }
0x4b4f   :  { %v6918_v44 = vpop.permute.xlu1 %6917 }
0x4b50   :  { %9891 = vpow2.f32 %v6900_v27  ;;  %v6902_v37 = vmul.f32 1.442695, %v6899_v28  ;;  %v6923_v26 = vsel %vm451_vm9, %v6918_v44, 0 }
0x4b51   :  { %9340 = vmatpush3.bf16.msra.mxu0 %v6923_v26 }
0x4b52   :  { %9893 = vpow2.f32 %v6902_v37  ;;  %9351 = vmatprep.subr.bf16.mxu0 %v10007_v15 }
0x4b5a   :  { %v9892_v18 = vpop.eup %9891 }
0x4b5b   :  { %v6904_v54 = vsel %vm322_vm6, %v9892_v18, 0.0 }
0x4b5c   :  { %v9894_v55 = vpop.eup %9893  ;;  %6905 = vadd.xlane.f32.xlu1 %v6904_v54 }
0x4b5d   :  { %v6907_v61 = vsel %vm322_vm6, %v9894_v55, 0.0 }
0x4b5e   :  { %6908 = vadd.xlane.f32.xlu0 %v6907_v61 }
0x4b6d   :  { %7017 = vrot.lane.b32.xlu1 %v11539_v36, %s10012_s1 }
0x4b71   :  { %7068 = vrot.lane.b32.xlu1 %v11524_v34, %s10012_s1 }
0x4b74   :  { %6966 = vrot.lane.b32.xlu0 %v11524_v34, %s10009_s0 }
0x4b75   :  { %7015 = vrot.lane.b32.xlu1 %v11548_v31, %s10012_s1 }
0x4b78   :  { %7066 = vrot.lane.b32.xlu0 %v11550_v0, %s10012_s1 }
0x4be9   :  { %v6906_v52 = vpop.xlane.xlu1 %6905 }
0x4bea   :  { %9895 = vrcp.f32 %v6906_v52 }
0x4beb   :  { %v6909_v39 = vpop.xlane.xlu0 %6908 }
0x4bec   :  { %9897 = vrcp.f32 %v6909_v39 }
0x4bed   :  { %v7018_v33 = vpop.permute.xlu1 %7017 }
0x4bee   :  { %v7023_v38 = vsel %vm322_vm6, %v7018_v33, 0 }
0x4bef   :  { %v6967_v23 = vpop.permute.xlu0 %6966 }
0x4bf0   :  { %v6972_v29 = vsel %vm451_vm9, %v6967_v23, 0 }
0x4bf1   :  { %9346 = vmatpush3.bf16.msra.mxu1 %v6972_v29  ;;  %v7069_v56 = vpop.permute.xlu1 %7068 }
0x4bf2   :  { %9357 = vmatprep.subr.bf16.mxu1 %v10007_v15  ;;  %v7074_v1 = vsel %vm322_vm6, %v7069_v56, 0 }
0x4bf3   :  { %v7067_v30 = vpop.permute.xlu0 %7066 }
0x4bf4   :  { %v9896_v50 = vpop.eup %9895 }
0x4bf5   :  { %v6912_v48 = vmul.f32 %v9896_v50, %v9892_v18  ;;  %v7016_v20 = vpop.permute.xlu1 %7015 }
0x4bf6   :  { %v9898_v42 = vpop.eup %9897 }
0x4bf7   :  { %v6913_v63 = vmul.f32 %v9898_v42, %v9894_v55  ;;  %v6914_v22 = vpack.c.bf16 %v6912_v48, %v6912_v48 }
0x4bf9   :  { %9342 = vmatmul.mubr.msk.bf16.vlgmr.msra.gmra.mrb[196].mxu0 %vm322_vm6, %v6914_v22  ;;  %v6915_v3 = vpack.c.bf16 %v6913_v63, %v6913_v63 }
0x4bfa   :  { %9352 = vmatpush3.bf16.xpose.msra.mxu0 %v7023_v38  ;;  %9353 = vmatprep.mubr.msk.bf16.mxu0 %vm10008_vm1, %v10007_v15 }
0x4bfb   :  { %9348 = vmatmul.mubr.msk.bf16.vlgmr.msra.gmra.mrb[208].mxu1 %vm322_vm6, %v6915_v3  ;;  %9363 = vmatprep.subr.bf16.mxu0 %v10007_v15 }
0x4bfc   :  { %9358 = vmatpush3.bf16.xpose.msra.mxu1 %v7074_v1  ;;  %9359 = vmatprep.mubr.msk.bf16.mxu1 %vm10008_vm1, %v10007_v15 }
0x4bfd   :  { %9369 = vmatprep.subr.bf16.mxu1 %v10007_v15 }
0x4c01   :  { %9354 = vmatmul.mubr.msk.bf16.vlgmr.msra.gmra.mrb[200].mxu0 %vm322_vm6, %v7016_v20 }
0x4c02   :  { %9365 = vmatprep.mubr.msk.bf16.mxu0 %vm10008_vm1, %v10007_v15 }
0x4c03   :  { %9360 = vmatmul.mubr.msk.bf16.vlgmr.msra.gmra.mrb[212].mxu1 %vm322_vm6, %v7067_v30 }
0x4c04   :  { %9371 = vmatprep.mubr.msk.bf16.mxu1 %vm10008_vm1, %v10007_v15 }
0x4ccc   :  { %v11600_v43 = vpop.f32.mrb[196].mxu0 }
0x4ccd   :  { %v9343_v4 = vpop.f32.mrb[197].mxu0 }
0x4cce   :  { %v6962_v40 = vpop.f32.mrb[198].mxu0  ;;  %v11602_v25 = vpop.f32.mrb[208].mxu1 }
0x4ccf   :  { %v9344_v53 = vpop.f32.mrb[199].mxu0  ;;  %v9349_v59 = vpop.f32.mrb[209].mxu1 }
0x4cd0   :  { %v7011_v2 = vpop.f32.mrb[210].mxu1 }
0x4cd1   :  { %v9350_v60 = vpop.f32.mrb[211].mxu1 }
0x4cd4   :  { %v7059_v5 = vpop.f32.mrb[200].mxu0 }
0x4cd5   :  { %v7116_v19 = vmul.f32 0.35355338, %v7059_v5  ;;  %v9355_v62 = vpop.f32.mrb[201].mxu0 }
0x4cd6   :  { %v7062_v46 = vpop.f32.mrb[202].mxu0  ;;  %v7110_v8 = vpop.f32.mrb[212].mxu1 }
0x4cd7   :  { %v7118_v47 = vsel %vm315_vm7, %v7116_v19, -1e+09  ;;  %v7117_v9 = vmul.f32 0.35355338, %v7110_v8  ;;  %v9356_v10 = vpop.f32.mrb[203].mxu0  ;;  %v9361_v11 = vpop.f32.mrb[213].mxu1 }
0x4cd8   :  { %v7113_v12 = vpop.f32.mrb[214].mxu1  ;;  %v7120_v35 = vsel %vm322_vm6, %v7118_v47, -inf }
0x4cd9   :  { %v7119_v45 = vsel %vm316_vm8, %v7117_v9, -1e+09  ;;  %v9362_v41 = vpop.f32.mrb[215].mxu1  ;;  %7121 = vmax.xlane.f32.xlu1 %v7120_v35 }
0x4cda   :  { %v7123_v32 = vsel %vm322_vm6, %v7119_v45, -inf }
0x4cdb   :  { %7124 = vmax.xlane.f32.xlu0 %v7123_v32 }
0x4cea   :  { %7144 = vrot.lane.b32.xlu1 %v11539_v36, %s10011_s28 }
0x4cee   :  { %7242 = vrot.lane.b32.xlu1 %v11539_v36, %s10015_s10 }
0x4cf2   :  { %7292 = vrot.lane.b32.xlu1 %v11524_v34, %s10015_s10 }
0x4cf6   :  { %7240 = vrot.lane.b32.xlu1 %v11548_v31, %s10015_s10 }
0x4d66   :  { %v7122_v49 = vpop.xlane.xlu1 %7121 }
0x4d67   :  { %v7126_v51 = vsub.f32 %v7118_v47, %v7122_v49 }
0x4d68   :  { %v7125_v13 = vpop.xlane.xlu0 %7124 }
0x4d69   :  { %v7128_v14 = vmul.f32 1.442695, %v7126_v51  ;;  %v7127_v16 = vsub.f32 %v7119_v45, %v7125_v13 }
0x4d6a   :  { %v7145_v24 = vpop.permute.xlu1 %7144 }
0x4d6b   :  { %9899 = vpow2.f32 %v7128_v14  ;;  %v7130_v17 = vmul.f32 1.442695, %v7127_v16  ;;  %v7150_v21 = vsel %vm451_vm9, %v7145_v24, 0 }
0x4d6c   :  { %9364 = vmatpush3.bf16.msra.mxu0 %v7150_v21 }
0x4d6d   :  { %9901 = vpow2.f32 %v7130_v17  ;;  %9375 = vmatprep.subr.bf16.mxu0 %v10007_v15 }
0x4d6e   :  { %v7243_v52 = vpop.permute.xlu1 %7242 }
0x4d6f   :  { %v7248_v33 = vsel %vm322_vm6, %v7243_v52, 0 }
0x4d72   :  { %v7293_v48 = vpop.permute.xlu1 %7292 }
0x4d73   :  { %v7298_v63 = vsel %vm322_vm6, %v7293_v48, 0 }
0x4d75   :  { %v9900_v27 = vpop.eup %9899 }
0x4d76   :  { %v7132_v28 = vsel %vm322_vm6, %v9900_v27, 0.0  ;;  %v7241_v22 = vpop.permute.xlu1 %7240 }
0x4d77   :  { %v9902_v44 = vpop.eup %9901  ;;  %7133 = vadd.xlane.f32.xlu0 %v7132_v28 }
0x4d78   :  { %v7135_v37 = vsel %vm322_vm6, %v9902_v44, 0.0 }
0x4d7b   :  { %7136 = vadd.xlane.f32.xlu0 %v7135_v37 }
0x4d91   :  { %7192 = vrot.lane.b32.xlu0 %v11524_v34, %s10011_s28 }
0x4d95   :  { %7290 = vrot.lane.b32.xlu0 %v11550_v0, %s10015_s10 }
0x4e04   :  { %v7134_v26 = vpop.xlane.xlu0 %7133 }
0x4e05   :  { %9903 = vrcp.f32 %v7134_v26 }
0x4e08   :  { %v7137_v18 = vpop.xlane.xlu0 %7136 }
0x4e09   :  { %9905 = vrcp.f32 %v7137_v18 }
0x4e0c   :  { %v7193_v54 = vpop.permute.xlu0 %7192 }
0x4e0d   :  { %v7198_v55 = vsel %vm451_vm9, %v7193_v54, 0 }
0x4e0e   :  { %9370 = vmatpush3.bf16.msra.mxu1 %v7198_v55 }
0x4e0f   :  { %v9904_v61 = vpop.eup %9903  ;;  %9381 = vmatprep.subr.bf16.mxu1 %v10007_v15 }
0x4e10   :  { %v7140_v39 = vmul.f32 %v9904_v61, %v9900_v27  ;;  %v7291_v56 = vpop.permute.xlu0 %7290 }
0x4e12   :  { %v7142_v23 = vpack.c.bf16 %v7140_v39, %v7140_v39 }
0x4e13   :  { %v9906_v29 = vpop.eup %9905 }
0x4e14   :  { %v7141_v50 = vmul.f32 %v9906_v29, %v9902_v44  ;;  %9366 = vmatmul.mubr.msk.bf16.vlgmr.msra.gmra.mrb[204].mxu0 %vm322_vm6, %v7142_v23 }
0x4e15   :  { %9376 = vmatpush3.bf16.xpose.msra.mxu0 %v7248_v33  ;;  %9377 = vmatprep.mubr.msk.bf16.mxu0 %vm10008_vm1, %v10007_v15 }
0x4e16   :  { %v7143_v42 = vpack.c.bf16 %v7141_v50, %v7141_v50  ;;  %9387 = vmatprep.subr.bf16.mxu0 %v10007_v15 }
0x4e18   :  { %9372 = vmatmul.mubr.msk.bf16.vlgmr.msra.gmra.mrb[216].mxu1 %vm322_vm6, %v7143_v42 }
0x4e19   :  { %9382 = vmatpush3.bf16.xpose.msra.mxu1 %v7298_v63  ;;  %9383 = vmatprep.mubr.msk.bf16.mxu1 %vm10008_vm1, %v10007_v15 }
0x4e1a   :  { %9393 = vmatprep.subr.bf16.mxu1 %v10007_v15 }
0x4e1c   :  { %9378 = vmatmul.mubr.msk.bf16.vlgmr.msra.gmra.mrb[208].mxu0 %vm322_vm6, %v7241_v22 }
0x4e1d   :  { %9389 = vmatprep.mubr.msk.bf16.mxu0 %vm10008_vm1, %v10007_v15 }
0x4e20   :  { %9384 = vmatmul.mubr.msk.bf16.vlgmr.msra.gmra.mrb[220].mxu1 %vm322_vm6, %v7291_v56 }
0x4e21   :  { %9395 = vmatprep.mubr.msk.bf16.mxu1 %vm10008_vm1, %v10007_v15 }
0x4ee7   :  { %v11644_v38 = vpop.f32.mrb[204].mxu0 }
0x4ee8   :  { %v9367_v3 = vpop.f32.mrb[205].mxu0 }
0x4ee9   :  { %v7189_v1 = vpop.f32.mrb[206].mxu0 }
0x4eea   :  { %v9368_v20 = vpop.f32.mrb[207].mxu0 }
0x4eeb   :  { %v11646_v30 = vpop.f32.mrb[216].mxu1 }
0x4eec   :  { %v9584_v4 = vpack.i.bf16 %v11646_v30, %v11644_v38  ;;  %v9373_v40 = vpop.f32.mrb[217].mxu1 }
0x4eed   :  { %v7237_v53 = vpop.f32.mrb[218].mxu1 }
0x4eee   :  { %v9374_v59 = vpop.f32.mrb[219].mxu1 }
0x4eef   :  { %v7284_v2 = vpop.f32.mrb[208].mxu0 }
0x4ef0   :  { %v7340_v60 = vmul.f32 0.35355338, %v7284_v2  ;;  %v9379_v5 = vpop.f32.mrb[209].mxu0 }
0x4ef1   :  { %v7287_v19 = vpop.f32.mrb[210].mxu0 }
0x4ef2   :  { %v7342_v62 = vsel %vm315_vm7, %v7340_v60, -1e+09  ;;  %v9380_v46 = vpop.f32.mrb[211].mxu0 }
0x4ef3   :  { %v7334_v8 = vpop.f32.mrb[220].mxu1  ;;  %v7344_v47 = vsel %vm322_vm6, %v7342_v62, -inf }
0x4ef4   :  { %v7341_v9 = vmul.f32 0.35355338, %v7334_v8  ;;  %v9385_v10 = vpop.f32.mrb[221].mxu1  ;;  %7345 = vmax.xlane.f32.xlu1 %v7344_v47 }
0x4ef5   :  { %v7337_v11 = vpop.f32.mrb[222].mxu1 }
0x4ef6   :  { %v7343_v12 = vsel %vm316_vm8, %v7341_v9, -1e+09  ;;  %v9386_v35 = vpop.f32.mrb[223].mxu1 }
0x4ef7   :  { %v7347_v45 = vsel %vm322_vm6, %v7343_v12, -inf }
0x4ef8   :  { %7348 = vmax.xlane.f32.xlu0 %v7347_v45 }
0x4f05   :  { %7368 = vrot.lane.b32.xlu1 %v11539_v36, %s10014_s7 }
0x4f09   :  { %7466 = vrot.lane.b32.xlu1 %v11539_v36, %s11860_s2 }
0x4f0d   :  { %7516 = vrot.lane.b32.xlu1 %v11524_v34, %s11860_s2 }
0x4f11   :  { %7464 = vrot.lane.b32.xlu1 %v11548_v31, %s11860_s2 }
0x4f81   :  { %v7346_v41 = vpop.xlane.xlu1 %7345 }
0x4f82   :  { %v7350_v32 = vsub.f32 %v7342_v62, %v7346_v41 }
0x4f84   :  { %v7352_v49 = vmul.f32 1.442695, %v7350_v32 }
0x4f85   :  { %v7349_v51 = vpop.xlane.xlu0 %7348  ;;  %v7369_v13 = vpop.permute.xlu1 %7368 }
0x4f86   :  { %9907 = vpow2.f32 %v7352_v49  ;;  %v7351_v14 = vsub.f32 %v7343_v12, %v7349_v51  ;;  %v7374_v16 = vsel %vm451_vm9, %v7369_v13, 0 }
0x4f87   :  { %9388 = vmatpush3.bf16.msra.mxu0 %v7374_v16 }
0x4f88   :  { %v7354_v24 = vmul.f32 1.442695, %v7351_v14  ;;  %9399 = vmatprep.subr.bf16.mxu0 %v10007_v15 }
0x4f89   :  { %v7467_v54 = vpop.permute.xlu1 %7466 }
0x4f8a   :  { %9909 = vpow2.f32 %v7354_v24  ;;  %v7472_v39 = vsel %vm322_vm6, %v7467_v54, 0 }
0x4f90   :  { %v9908_v17 = vpop.eup %9907 }
0x4f91   :  { %v7356_v21 = vsel %vm322_vm6, %v9908_v17, 0.0 }
0x4f92   :  { %7357 = vadd.xlane.f32.xlu0 %v7356_v21 }
0x4f94   :  { %v9910_v27 = vpop.eup %9909 }
0x4f95   :  { %v7359_v31 = vsel %vm322_vm6, %v9910_v27, 0.0 }
0x4f96   :  { %7360 = vadd.xlane.f32.xlu0 %v7359_v31 }
0x4fac   :  { %7416 = vrot.lane.b32.xlu0 %v11524_v34, %s10014_s7 }
0x4fb0   :  { %7514 = vrot.lane.b32.xlu0 %v11550_v0, %s11860_s2  ;;  %v7517_v0 = vpop.permute.xlu1 %7516 }
0x4fb1   :  { %v7522_v33 = vsel %vm322_vm6, %v7517_v0, 0 }
0x4fb4   :  { %v7465_v50 = vpop.permute.xlu1 %7464 }
0x501f   :  { %v7358_v28 = vpop.xlane.xlu0 %7357 }
0x5020   :  { %9911 = vrcp.f32 %v7358_v28 }
0x5023   :  { %v7361_v44 = vpop.xlane.xlu0 %7360 }
0x5024   :  { %9913 = vrcp.f32 %v7361_v44 }
0x5027   :  { %v7417_v37 = vpop.permute.xlu0 %7416 }
0x5028   :  { %v7422_v26 = vsel %vm451_vm9, %v7417_v37, 0  ;;  %v9643_v37 = vld [vmem:[%s11852_s6 + $0x10] sm:$0xff]  }
0x5029   :  { %9394 = vmatpush3.bf16.msra.mxu1 %v7422_v26  ;;  %v9644_v26 = vld [vmem:[%s11852_s6 + $0x18] sm:$0xff]  }
0x502a   :  { %v9912_v18 = vpop.eup %9911  ;;  %9405 = vmatprep.subr.bf16.mxu1 %v10007_v15 }
0x502b   :  { %v7364_v55 = vmul.f32 %v9912_v18, %v9908_v17  ;;  %v7515_v48 = vpop.permute.xlu0 %7514 }
0x502d   :  { %v7366_v61 = vpack.c.bf16 %v7364_v55, %v7364_v55 }
0x502e   :  { %v9914_v52 = vpop.eup %9913 }
0x502f   :  { %v7365_v23 = vmul.f32 %v9914_v52, %v9910_v27  ;;  %9390 = vmatmul.mubr.msk.bf16.vlgmr.msra.gmra.mrb[212].mxu0 %vm322_vm6, %v7366_v61 }
0x5030   :  { %9400 = vmatpush3.bf16.xpose.msra.mxu0 %v7472_v39  ;;  %9401 = vmatprep.mubr.msk.bf16.mxu0 %vm10008_vm1, %v10007_v15 }
0x5031   :  { %v7367_v29 = vpack.c.bf16 %v7365_v23, %v7365_v23  ;;  %9411 = vmatprep.subr.bf16.mxu0 %v10007_v15 }
0x5033   :  { %9396 = vmatmul.mubr.msk.bf16.vlgmr.msra.gmra.mrb[224].mxu1 %vm322_vm6, %v7367_v29 }
0x5034   :  { %9406 = vmatpush3.bf16.xpose.msra.mxu1 %v7522_v33  ;;  %9407 = vmatprep.mubr.msk.bf16.mxu1 %vm10008_vm1, %v10007_v15 }
0x5035   :  { %9417 = vmatprep.subr.bf16.mxu1 %v10007_v15 }
0x5037   :  { %9402 = vmatmul.mubr.msk.bf16.vlgmr.msra.gmra.mrb[216].mxu0 %vm322_vm6, %v7465_v50 }
0x5038   :  { %9413 = vmatprep.mubr.msk.bf16.mxu0 %vm10008_vm1, %v10007_v15 }
0x503b   :  { %9408 = vmatmul.mubr.msk.bf16.vlgmr.msra.gmra.mrb[228].mxu1 %vm322_vm6, %v7515_v48 }
0x503c   :  { %9419 = vmatprep.mubr.msk.bf16.mxu1 %vm10008_vm1, %v10007_v15 }
0x5102   :  { %v7410_v42 = vpop.f32.mrb[212].mxu0 }
0x5103   :  { %v9391_v63 = vpop.f32.mrb[213].mxu0 }
0x5104   :  { %v7413_v22 = vpop.f32.mrb[214].mxu0 }
0x5105   :  { %v9392_v56 = vpop.f32.mrb[215].mxu0 }
0x5106   :  { %v7458_v3 = vpop.f32.mrb[224].mxu1 }
0x5107   :  { %v9589_v1 = vpack.i.bf16 %v7458_v3, %v7410_v42  ;;  %v9397_v20 = vpop.f32.mrb[225].mxu1 }
0x5108   :  { %v7461_v40 = vpop.f32.mrb[226].mxu1 }
0x5109   :  { %v9398_v53 = vpop.f32.mrb[227].mxu1 }
0x510a   :  { %v7508_v59 = vpop.f32.mrb[216].mxu0 }
0x510b   :  { %v7564_v2 = vmul.f32 0.35355338, %v7508_v59  ;;  %v9403_v60 = vpop.f32.mrb[217].mxu0 }
0x510c   :  { %v7511_v5 = vpop.f32.mrb[218].mxu0 }
0x510d   :  { %v7566_v19 = vsel %vm315_vm7, %v7564_v2, -1e+09  ;;  %v9404_v62 = vpop.f32.mrb[219].mxu0 }
0x510e   :  { %v7558_v46 = vpop.f32.mrb[228].mxu1  ;;  %v7568_v8 = vsel %vm322_vm6, %v7566_v19, -inf }
0x510f   :  { %v7565_v47 = vmul.f32 0.35355338, %v7558_v46  ;;  %v9409_v9 = vpop.f32.mrb[229].mxu1  ;;  %7569 = vmax.xlane.f32.xlu1 %v7568_v8 }
0x5110   :  { %v7561_v10 = vpop.f32.mrb[230].mxu1 }
0x5111   :  { %v7567_v11 = vsel %vm316_vm8, %v7565_v47, -1e+09  ;;  %v9410_v12 = vpop.f32.mrb[231].mxu1 }
0x5112   :  { %v7571_v35 = vsel %vm322_vm6, %v7567_v11, -inf }
0x5113   :  { %7572 = vmax.xlane.f32.xlu0 %v7571_v35 }
0x5120   :  { %7592 = vrot.lane.b32.xlu1 %v11539_v36, %s11859_s13 }
0x5124   :  { %9585 = vrot.lane.b32.xlu1 %v9584_v4, %s11862_s21 }
0x5128   :  { %9590 = vrot.lane.b32.xlu1 %v9589_v1, %s11863_s25 }
0x519c   :  { %v7570_v57 = vpop.xlane.xlu1 %7569 }
0x519d   :  { %v7574_v45 = vsub.f32 %v7566_v19, %v7570_v57 }
0x519f   :  { %v7576_v41 = vmul.f32 1.442695, %v7574_v45 }
0x51a0   :  { %v7573_v32 = vpop.xlane.xlu0 %7572  ;;  %v7593_v58 = vpop.permute.xlu1 %7592 }
0x51a1   :  { %9915 = vpow2.f32 %v7576_v41  ;;  %v7575_v49 = vsub.f32 %v7567_v11, %v7573_v32  ;;  %v7598_v51 = vsel %vm451_vm9, %v7593_v58, 0 }
0x51a2   :  { %9412 = vmatpush3.bf16.msra.mxu0 %v7598_v51 }
0x51a3   :  { %v7578_v13 = vmul.f32 1.442695, %v7575_v49  ;;  %9423 = vmatprep.subr.bf16.mxu0 %v10007_v15 }
0x51a4   :  { %v9586_v33 = vpop.permute.xlu1 %9585 }
0x51a5   :  { %9917 = vpow2.f32 %v7578_v13  ;;  %v9588_v48 = vunpack.i.h.bf16 %v9586_v33  ;;  %v9587_v42 = vunpack.i.l.bf16 %v9586_v33  ;;  %v9645_v13 = vld [vmem:[%s11854_s26 + $0x10] sm:$0xff]   ;;  %v8390_v33 = vld [vmem:[%s11857_s16 + $0x1] ss:$0 sm:$0xff] }
0x51a7   :  { %v7713_v3 = vsel %vm322_vm6, %v11602_v25, %v9588_v48  ;;  %v7712_v1 = vsel %vm322_vm6, %v11600_v43, %v9587_v42  ;;  %v8383_v25 = vld [vmem:[%s11853_s23 + $0x1] ss:$0 sm:$0xff] }
0x51a8   :  { %v9591_v50 = vpop.permute.xlu1 %9590 }
0x51a9   :  { %v9593_v63 = vunpack.i.h.bf16 %v9591_v50  ;;  %v9592_v22 = vunpack.i.l.bf16 %v9591_v50 }
0x51ab   :  { %v9916_v36 = vpop.eup %9915  ;;  %v7714_v53 = vsel %vm1241_vm10, %v7712_v1, %v9592_v22  ;;  %v7715_v59 = vsel %vm1241_vm10, %v7713_v3, %v9593_v63  ;;  %v9649_v22 = vld [vmem:[%s11855_s22 + $0x30] sm:$0xff]   ;;  %v8396_v3 = vld [vmem:[%s11858_s15 + $0x1] ss:$0 sm:$0xff] }
0x51ac   :  { %v7580_v38 = vsel %vm322_vm6, %v9916_v36, 0.0 }
0x51ad   :  { %7581 = vadd.xlane.f32.xlu0 %v7580_v38  ;;  %v9647_v38 = vld [vmem:[%s11855_s22 + $0x20] sm:$0xff]  }
0x51af   :  { %v9918_v30 = vpop.eup %9917 }
0x51b0   :  { %v7583_v4 = vsel %vm322_vm6, %v9918_v30, 0.0 }
0x51b1   :  { %7584 = vadd.xlane.f32.xlu0 %v7583_v4 }
0x51c7   :  { %7640 = vrot.lane.b32.xlu0 %v11524_v34, %s11859_s13 }
0x523a   :  { %v7582_v14 = vpop.xlane.xlu0 %7581 }
0x523b   :  { %9919 = vrcp.f32 %v7582_v14 }
0x523e   :  { %v7585_v16 = vpop.xlane.xlu0 %7584 }
0x523f   :  { %9921 = vrcp.f32 %v7585_v16 }
0x5242   :  { %v7641_v24 = vpop.permute.xlu0 %7640 }
0x5243   :  { %v7646_v17 = vsel %vm451_vm9, %v7641_v24, 0 }
0x5244   :  { %9418 = vmatpush3.bf16.msra.mxu1 %v7646_v17 }
0x5245   :  { %v9920_v21 = vpop.eup %9919  ;;  %9431 = vmatprep.subr.bf16.mxu1 %v10007_v15 }
0x5246   :  { %v7588_v27 = vmul.f32 %v9920_v21, %v9916_v36  ;;  %v9646_v36 = vld [vmem:[%s11854_s26 + $0x18] sm:$0xff]  }
0x5248   :  { %v7590_v31 = vpack.c.bf16 %v7588_v27, %v7588_v27 }
0x5249   :  { %v9922_v28 = vpop.eup %9921 }
0x524a   :  { %v7589_v44 = vmul.f32 %v9922_v28, %v9918_v30  ;;  %9414 = vmatmul.mubr.msk.bf16.vlgmr.msra.gmra.mrb[220].mxu0 %vm322_vm6, %v7590_v31  ;;  %v9648_v30 = vld [vmem:[%s11855_s22 + $0x28] sm:$0xff]  }
0x524b   :  { %9427 = vmatprep.mubr.msk.bf16.mxu0 %vm10008_vm1, %v10007_v15  ;;  %9424 = vmatpush3.bf16.msra.mxu0 %v9643_v37 }
0x524c   :  { %v7591_v34 = vpack.c.bf16 %v7589_v44, %v7589_v44  ;;  %9425 = vmatprep.subr.bf16.mxu0 %v10007_v15 }
0x524e   :  { %9420 = vmatmul.mubr.msk.bf16.vlgmr.msra.gmra.mrb[232].mxu1 %vm322_vm6, %v7591_v34 }
0x524f   :  { %9435 = vmatprep.mubr.msk.bf16.mxu1 %vm10008_vm1, %v10007_v15  ;;  %9426 = vmatpush3.bf16.msra.mxu0 %v9644_v26 }
0x5250   :  { %9439 = vmatprep.subr.bf16.mxu0 %v10007_v15  ;;  %9432 = vmatpush3.bf16.msra.mxu1 %v9645_v13 }
0x5251   :  { %9433 = vmatprep.subr.bf16.mxu1 %v10007_v15 }
0x5254   :  { %9434 = vmatpush3.bf16.msra.mxu1 %v9646_v36 }
0x531d   :  { %v7634_v18 = vpop.f32.mrb[220].mxu0 }
0x531e   :  { %v9415_v54 = vpop.f32.mrb[221].mxu0 }
0x531f   :  { %v7637_v55 = vpop.f32.mrb[222].mxu0 }
0x5320   :  { %v9416_v61 = vpop.f32.mrb[223].mxu0 }
0x5321   :  { %v7682_v52 = vpop.f32.mrb[232].mxu1  ;;  %v8389_v61 = vld [vmem:[%s11856_s18 + $0x1] ss:$0 sm:$0xff] }
0x5322   :  { %v9594_v39 = vpack.i.bf16 %v7682_v52, %v7634_v18  ;;  %v9421_v23 = vpop.f32.mrb[233].mxu1 }
0x5323   :  { %v7685_v0 = vpop.f32.mrb[234].mxu1 }
0x5324   :  { %v9422_v29 = vpop.f32.mrb[235].mxu1  ;;  %9595 = vrot.lane.b32.xlu1 %v9594_v39, %s11864_s29 }
0x5396   :  { %v9596_v56 = vpop.permute.xlu1 %9595 }
0x5397   :  { %v9598_v20 = vunpack.i.h.bf16 %v9596_v56  ;;  %v9597_v40 = vunpack.i.l.bf16 %v9596_v56  ;;  %v9650_v56 = vld [vmem:[%s11855_s22 + $0x38] sm:$0xff]  }
0x5399   :  { %v7717_v2 = vsel %vm1244_vm11, %v7715_v59, %v9598_v20  ;;  %v7716_v60 = vsel %vm1244_vm11, %v7714_v53, %v9597_v40 }
0x539a   :  { %v7725_v5 = vpack.c.bf16 %v7717_v2, %v7716_v60 }
0x539c   :  { %9428 = vmatmul.mubr.msk.bf16.vlgmr.msra.gmra.mrb[224].mxu0 %vm176_vm0, %v7725_v5 }
0x539d   :  { %9447 = vmatprep.mubr.msk.bf16.mxu0 %vm10008_vm1, %v10007_v15  ;;  %9440 = vmatpush3.bf16.msra.mxu0 %v9647_v38 }
0x539e   :  { %9441 = vmatprep.subr.bf16.mxu0 %v10007_v15 }
0x53a1   :  { %9442 = vmatpush3.bf16.msra.mxu0 %v9648_v30 }
0x53a2   :  { %9443 = vmatprep.subr.bf16.mxu0 %v10007_v15 }
0x53a5   :  { %9444 = vmatpush3.bf16.msra.mxu0 %v9649_v22 }
0x53a6   :  { %9445 = vmatprep.subr.bf16.mxu0 %v10007_v15 }
0x53a9   :  { %9446 = vmatpush3.bf16.msra.mxu0 %v9650_v56 }
0x546f   :  { %v7781_v19 = vpop.f32.mrb[224].mxu0 }
0x5470   :  { %v7782_v62 = vadd.f32 %v8383_v25, %v7781_v19  ;;  %v9429_v43 = vpop.f32.mrb[225].mxu0  ;;  %v8409_v19 = vld [vmem:[%s10218_s4 + $0x1] ss:$0 sm:$0xff]  ;;  %s10023_s4 = smov [#allocation2]  }
0x5471   :  { %v7784_v46 = vpop.f32.mrb[226].mxu0  ;;  %s8075_s0 = sshll.u32 %s10023_s4, 4  ;;  %s8076_s0 = int_to_ptr.vmem [resolvable:$true] %s8075_s0 }
0x5472   :  { %v11735_v8 = vadd.f32 %v7782_v62, %v11514_v6  ;;  %v7785_v47 = vadd.f32 %v8383_v25, %v7784_v46  ;;  %v9430_v9 = vpop.f32.mrb[227].mxu0  ;;  %s9943_s28 = scalar_lea.vmem %s8076_s0, 256  ;;  %p9948_p1 = scmp.lt.s32.totalorder %s8076_s0, %s8076_s0 }
0x5473   :  { %p9944_p0 = scmp.ne.s32.totalorder %s8076_s0, %s9943_s28  ;;  %p9949_p2 = scmp.lt.s32.totalorder %s9943_s28, %s9943_s28 }
0x5474   :  { %v11738_v10 = vadd.f32 %v7785_v47, %v11517_v7  ;;  %v7794_v11 = vsel %vm176_vm0, %v11735_v8, 0.0 }
0x5475   :  { %7795 = vadd.xlane.f32.xlu0 %v7794_v11  ;;  %p9950_p3 = por %p9949_p2, %p9948_p1 }
0x5476   :  { %v7797_v12 = vsel %vm176_vm0, %v11738_v10, 0.0 }
0x5477   :  { %7798 = vadd.xlane.f32.xlu1 %v7797_v12  ;;  %p9951_p4 = pnand %p9950_p3, %p9944_p0 }
0x5502   :  { %v7796_v35 = vpop.xlane.xlu0 %7795 }
0x5503   :  { %v7800_v57 = vmul.f32 0.03125, %v7796_v35 }
0x5504   :  { %v7799_v6 = vpop.xlane.xlu1 %7798 }
0x5505   :  { %v7802_v45 = vsub.f32 %v11735_v8, %v7800_v57  ;;  %v7801_v41 = vmul.f32 0.03125, %v7799_v6 }
0x5507   :  { %v7803_v7 = vsub.f32 %v11738_v10, %v7801_v41  ;;  %v7804_v32 = vmul.f32 %v7802_v45, %v7802_v45  ;;  %v7834_v39 = vmul.f32 %v8389_v61, %v7802_v45 }
0x5509   :  { %v7806_v58 = vsel %vm176_vm0, %v7804_v32, 0.0  ;;  %v7805_v49 = vmul.f32 %v7803_v7, %v7803_v7  ;;  %v7835_v23 = vmul.f32 %v8389_v61, %v7803_v7 }
0x550a   :  { %7807 = vadd.xlane.f32.xlu0 %v7806_v58 }
0x550b   :  { %v7809_v51 = vsel %vm176_vm0, %v7805_v49, 0.0 }
0x550e   :  { %7810 = vadd.xlane.f32.xlu0 %v7809_v51 }
0x5597   :  { %v7808_v4 = vpop.xlane.xlu0 %7807 }
0x5598   :  { %v7812_v14 = vmul.f32 0.032258064, %v7808_v4 }
0x559a   :  { %9923 = vrsqrt.f32 %v7812_v14  ;;  %vm7816_vm1 = vcmp.eq.f32.partialorder %v7812_v14, inf  ;;  %v7819_v27 = vand.u32 2147483648, %v7812_v14  ;;  %vm7818_vm6 = vcmp.eq.f32.partialorder %v7812_v14, 0.0 }
0x559b   :  { %v7811_v16 = vpop.xlane.xlu0 %7810 }
0x559c   :  { %v7813_v24 = vmul.f32 0.032258064, %v7811_v16 }
0x559e   :  { %9925 = vrsqrt.f32 %v7813_v24  ;;  %vm7823_vm7 = vcmp.eq.f32.partialorder %v7813_v24, inf  ;;  %v7826_v26 = vand.u32 2147483648, %v7813_v24  ;;  %vm7825_vm8 = vcmp.eq.f32.partialorder %v7813_v24, 0.0 }
0x55a4   :  { %v9924_v17 = vpop.eup %9923 }
0x55a5   :  { %v7815_v21 = vmul.f32 %v9924_v17, %v7812_v14 }
0x55a7   :  { %v7817_v31 = vsel %vm7816_vm1, %v7812_v14, %v7815_v21 }
0x55a8   :  { %v9926_v28 = vpop.eup %9925  ;;  %v7820_v44 = vsel %vm7818_vm6, %v7819_v27, %v7817_v31 }
0x55a9   :  { %v7836_v34 = vadd.f32 1e-06, %v7820_v44  ;;  %v7822_v37 = vmul.f32 %v9926_v28, %v7813_v24 }
0x55ab   :  { %9927 = vrcp.f32 %v7836_v34  ;;  %v7824_v18 = vsel %vm7823_vm7, %v7813_v24, %v7822_v37 }
0x55ac   :  { %v7827_v54 = vsel %vm7825_vm8, %v7826_v26, %v7824_v18  ;;  %v8415_v26 = vld [vmem:[%s10223_s17] ss:$0 sm:$0xff] }
0x55ad   :  { %v7837_v55 = vadd.f32 1e-06, %v7827_v54 }
0x55af   :  { %9929 = vrcp.f32 %v7837_v55  ;;  %v8416_v55 = vld [vmem:[%s10228_s9] ss:$0 sm:$0xff] }
0x55b5   :  { %v9928_v52 = vpop.eup %9927 }
0x55b6   :  { %v7839_v0 = vmul.f32 %v9928_v52, %v7834_v39 }
0x55b8   :  { %v7848_v48 = vadd.f32 %v8390_v33, %v7839_v0 }
0x55b9   :  { %v9930_v29 = vpop.eup %9929 }
0x55ba   :  { %v7841_v50 = vmul.f32 %v9930_v29, %v7835_v23 }
0x55bc   :  { %v7849_v42 = vadd.f32 %v8390_v33, %v7841_v50 }
0x55be   :  { %v7857_v63 = vpack.c.bf16 %v7849_v42, %v7848_v48 }
0x55c0   :  { %9436 = vmatmul.mubr.msk.bf16.vlgmr.msra.gmra.mrb[236].mxu1 %vm176_vm0, %v7857_v63 }
0x5693   :  { %v7913_v1 = vpop.f32.mrb[236].mxu1 }
0x5694   :  { %v7914_v20 = vadd.f32 %v8396_v3, %v7913_v1  ;;  %v9437_v40 = vpop.f32.mrb[237].mxu1 }
0x5695   :  { %v7916_v53 = vpop.f32.mrb[238].mxu1 }
0x5696   :  { %v7917_v59 = vadd.f32 %v8396_v3, %v7916_v53  ;;  %v9438_v2 = vpop.f32.mrb[239].mxu1  ;;  %v7920_v60 = vmax.f32 %v7914_v20, 0.0 }
0x5698   :  { %v7921_v5 = vmax.f32 %v7917_v59, 0.0 }
0x569a   :  { %v7933_v25 = vpack.c.bf16 %v7921_v5, %v7920_v60 }
0x569c   :  { %9448 = vmatmul.mubr.msk.bf16.vlgmr.msra.gmra.mrb[228].mxu0 %vm1485_vm2, %v7933_v25 }
0x576f   :  { %v8001_v62 = vpop.f32.mrb[228].mxu0 }
0x5770   :  { %v8002_v43 = vadd.f32 %v8409_v19, %v8001_v62  ;;  %v9449_v46 = vpop.f32.mrb[229].mxu0 }
0x5771   :  { %v8004_v47 = vpop.f32.mrb[230].mxu0 }
0x5772   :  { %v8008_v15 = vadd.f32 %v8002_v43, %v11735_v8  ;;  %v8005_v9 = vadd.f32 %v8409_v19, %v8004_v47  ;;  %v9450_v11 = vpop.f32.mrb[231].mxu0 }
0x5774   :  { %v8009_v12 = vadd.f32 %v8005_v9, %v11738_v10  ;;  %v8012_v35 = vsel %vm176_vm0, %v8008_v15, 0.0 }
0x5775   :  { %8013 = vadd.xlane.f32.xlu0 %v8012_v35 }
0x5776   :  { %v8015_v57 = vsel %vm176_vm0, %v8009_v12, 0.0 }
0x5777   :  { %8016 = vadd.xlane.f32.xlu1 %v8015_v57 }
0x5802   :  { %v8014_v6 = vpop.xlane.xlu0 %8013 }
0x5803   :  { %v8018_v45 = vmul.f32 0.03125, %v8014_v6 }
0x5804   :  { %v8017_v41 = vpop.xlane.xlu1 %8016 }
0x5805   :  { %v8020_v7 = vsub.f32 %v8008_v15, %v8018_v45  ;;  %v8019_v32 = vmul.f32 0.03125, %v8017_v41 }
0x5807   :  { %v8021_v58 = vsub.f32 %v8009_v12, %v8019_v32  ;;  %v8022_v49 = vmul.f32 %v8020_v7, %v8020_v7  ;;  %v8052_v18 = vmul.f32 %v8415_v26, %v8020_v7 }
0x5809   :  { %v8024_v51 = vsel %vm176_vm0, %v8022_v49, 0.0  ;;  %v8023_v8 = vmul.f32 %v8021_v58, %v8021_v58  ;;  %v8053_v52 = vmul.f32 %v8415_v26, %v8021_v58 }
0x580a   :  { %8025 = vadd.xlane.f32.xlu0 %v8024_v51 }
0x580b   :  { %v8027_v13 = vsel %vm176_vm0, %v8023_v8, 0.0 }
0x580c   :  { %8028 = vadd.xlane.f32.xlu1 %v8027_v13 }
0x5897   :  { %v8026_v10 = vpop.xlane.xlu0 %8025 }
0x5898   :  { %v8030_v36 = vmul.f32 0.032258064, %v8026_v10 }
0x5899   :  { %v8029_v38 = vpop.xlane.xlu1 %8028 }
0x589a   :  { %9931 = vrsqrt.f32 %v8030_v36  ;;  %v8031_v30 = vmul.f32 0.032258064, %v8029_v38  ;;  %vm8034_vm9 = vcmp.eq.f32.partialorder %v8030_v36, inf  ;;  %v8037_v16 = vand.u32 2147483648, %v8030_v36 }
0x589b   :  { %vm8036_vm10 = vcmp.eq.f32.partialorder %v8030_v36, 0.0 }
0x589c   :  { %9933 = vrsqrt.f32 %v8031_v30  ;;  %vm8041_vm11 = vcmp.eq.f32.partialorder %v8031_v30, inf  ;;  %v8044_v28 = vand.u32 2147483648, %v8031_v30  ;;  %vm8043_vm2 = vcmp.eq.f32.partialorder %v8031_v30, 0.0 }
0x58a4   :  { %v9932_v4 = vpop.eup %9931 }
0x58a5   :  { %v8033_v14 = vmul.f32 %v9932_v4, %v8030_v36 }
0x58a6   :  { %v9934_v24 = vpop.eup %9933 }
0x58a7   :  { %v8035_v17 = vsel %vm8034_vm9, %v8030_v36, %v8033_v14  ;;  %v8040_v27 = vmul.f32 %v9934_v24, %v8031_v30 }
0x58a8   :  { %v8038_v21 = vsel %vm8036_vm10, %v8037_v16, %v8035_v17 }
0x58a9   :  { %v8054_v31 = vadd.f32 1e-06, %v8038_v21  ;;  %v8042_v44 = vsel %vm8041_vm11, %v8031_v30, %v8040_v27 }
0x58aa   :  { %v8045_v34 = vsel %vm8043_vm2, %v8044_v28, %v8042_v44 }
0x58ab   :  { %9935 = vrcp.f32 %v8054_v31  ;;  %v8055_v37 = vadd.f32 1e-06, %v8045_v34 }
0x58ad   :  { %9937 = vrcp.f32 %v8055_v37 }
0x58b5   :  { %v9936_v54 = vpop.eup %9935 }
0x58b6   :  { %v8057_v61 = vmul.f32 %v9936_v54, %v8052_v18 }
0x58b7   :  { %v9938_v39 = vpop.eup %9937 }
0x58b8   :  { %v8066_v23 = vadd.f32 %v8416_v55, %v8057_v61  ;;  %v8059_v0 = vmul.f32 %v9938_v39, %v8053_v52 }
0x58ba   :  { %8068 = vst.msk [vmem:[#allocation2] sm:$0xff] %vm176_vm0, %v8066_v23  ;;  %v8067_v29 = vadd.f32 %v8416_v55, %v8059_v0 }
0x58bc   :  { %8069 = vst.msk [vmem:[#allocation2 + $0x8] sm:$0xff] %vm176_vm0, %v8067_v29 }
0x58bd   :  { %9954 = shalt.err (!%p9951_p4)
}
0x58be   :  { %s9955_s9 = scalar_lea.hbm %s10233_s27, 256 }
0x58bf   :  { %p9956_p5 = scmp.ne.s32.totalorder %s10233_s27, %s9955_s9  ;;  %p9959_p6 = scmp.lt.u32.totalorder %s9955_s9, %s10233_s27 }
0x58c1   :  { %p9961_p7 = pnand %p9959_p6, %p9956_p5 }
0x58c3   :  { %9964 = shalt.err (!%p9961_p7)
}
0x58c4   :  { %s10024_s17 = smov 128  }
0x58c5   :  { %8081 = dma.vmem_to_hbm [thread:$0]  %s8076_s0, 256, %s10233_s27, [#allocation3], %s10024_s17, %s10024_s17, %s11862_s21  }
0x58c6   :  { %9965 = dma.done.wait [#allocation3], 256  }
0x58c7   :  { %9966 = vsyncadd [#allocation3], 4294967040 }
0x58c8   :  { %8085 = vsyncpa [#allocation3], 1 }

</bundles_post_ra>
